<compile_context>
chip_gen: v6e
topology: v6e:2x2x1
jax: 0.10.0
libtpu: 0.0.40
codegen_flags: <defaults>
</compile_context>

<pallas_src>
import jax
import jax.numpy as jnp
from jax.experimental import pallas as pl
from jax.experimental.pallas import tpu as pltpu


LANES = 128

# Architecture constants (Config defaults of the 3dcnn_simple branch).
CONV1_CH = 16
CONV2_CH = 32
HID3D = 128
N_PREDICT_FRAMES = 1
K2D = 3
STRIDE2D = 2
PAD2D = 1
K3D = (7, 5, 5)
STRIDE3D = (2, 1, 1)
PAD3D = (0, 1, 1)
N_K_BLOCKS = 4            # reduction tiling of the fused conv3d tail kernel


def _round_up(x, m):
    return ((x + m - 1) // m) * m


def _conv_out(n, k, s, p):
    return (n + 2 * p - k) // s + 1


def _default_row_blocks():
    # 2 row blocks ("parallel") only pays off with 2 TensorCores per chip (v7x).
    try:
        kind = jax.devices()[0].device_kind.lower()
    except Exception:
        return 1
    return 2 if "7" in kind else 1


_N_ROW_BLOCKS = _default_row_blocks()


# ----------------------------------------------------------------------------
# Pallas kernel 1: tiled matmul (bf16 in, f32 acc) fused with bias + ReLU.
# BN scale is pre-folded into the weight matrix; N is padded to 128 lanes;
# output is stored as bf16 (halves HBM writeback of the intermediates).
# ----------------------------------------------------------------------------
def _matmul_bias_relu_kernel(a_ref, b_ref, bias_ref, o_ref):
    acc = jnp.dot(a_ref[...], b_ref[...], preferred_element_type=jnp.float32)
    o_ref[...] = jnp.maximum(acc + bias_ref[...], 0.0).astype(o_ref.dtype)


def matmul_bias_relu(a, b, bias, *, n_row_blocks=1):
    """relu((M,K)@(K,N) + bias[1,N]) -> bf16; N must be a multiple of 128."""
    M, K = a.shape
    K2, N = b.shape
    assert K == K2 and N % LANES == 0
    block_m = max(8, _round_up(pl.cdiv(M, n_row_blocks), 8))
    Mp = _round_up(M, block_m)
    if Mp != M:
        a = jnp.pad(a, ((0, Mp - M), (0, 0)))

    out = pl.pallas_call(
        _matmul_bias_relu_kernel,
        out_shape=jax.ShapeDtypeStruct((Mp, N), jnp.bfloat16),
        grid=(Mp // block_m,),
        in_specs=[
            pl.BlockSpec((block_m, K), lambda i: (i, 0)),
            pl.BlockSpec((K, N), lambda i: (0, 0)),
            pl.BlockSpec((1, N), lambda i: (0, 0)),
        ],
        out_specs=pl.BlockSpec((block_m, N), lambda i: (i, 0)),
        compiler_params=pltpu.CompilerParams(
            dimension_semantics=("parallel",),
            vmem_limit_bytes=32 * 1024 * 1024,
        ),
    )(a, b, bias)
    if Mp != M:
        out = out[:M]
    return out


# ----------------------------------------------------------------------------
# Pallas kernel 2: fused SimpleConv3d matmul (K-tiled reduction) + BN-bias +
# ReLU + adaptive_avg_pool3d(1) + fc_endzone / fc_sideline / fc.
# GAP and the x[::2]/x[1::2] view split are expressed as small constant
# matrices (pe, ps) so the whole tail is matmuls only (robust lowering).
# Head weights are zero-padded to 128 output lanes; real column is col 0.
# ----------------------------------------------------------------------------
def _conv3d_gap_heads_kernel(p_ref, w_ref, b_ref, pe_ref, ps_ref,
                             we_ref, be_ref, ws_ref, bs_ref,
                             wfe_ref, wfs_ref, bf_ref,
                             o_ref, oe_ref, os_ref, acc_ref):
    k = pl.program_id(0)

    @pl.when(k == 0)
    def _():
        acc_ref[...] = jnp.zeros_like(acc_ref)

    acc_ref[...] += jnp.dot(p_ref[...], w_ref[...],
                            preferred_element_type=jnp.float32)

    @pl.when(k == pl.num_programs(0) - 1)
    def _():
        y = jnp.maximum(acc_ref[...] + b_ref[...], 0.0).astype(jnp.bfloat16)
        xe = jnp.dot(pe_ref[...], y,
                     preferred_element_type=jnp.float32).astype(jnp.bfloat16)
        xs = jnp.dot(ps_ref[...], y,
                     preferred_element_type=jnp.float32).astype(jnp.bfloat16)
        oe_ref[...] = (jnp.dot(xe, we_ref[...],
                               preferred_element_type=jnp.float32) + be_ref[...])
        os_ref[...] = (jnp.dot(xs, ws_ref[...],
                               preferred_element_type=jnp.float32) + bs_ref[...])
        o_ref[...] = (jnp.dot(xe, wfe_ref[...], preferred_element_type=jnp.float32)
                      + jnp.dot(xs, wfs_ref[...], preferred_element_type=jnp.float32)
                      + bf_ref[...])


def conv3d_gap_heads(patches, w3, b3, pe, ps, we, be, ws, bsd, wfe, wfs, bf):
    M3, K3p = patches.shape
    hid = w3.shape[1]
    bsz = pe.shape[0]
    assert K3p % N_K_BLOCKS == 0
    bk = K3p // N_K_BLOCKS
    assert bk % LANES == 0

    def full(arr):
        return pl.BlockSpec(arr.shape, lambda k: (0, 0))

    outs = pl.pallas_call(
        _conv3d_gap_heads_kernel,
        out_shape=(jax.ShapeDtypeStruct((bsz, LANES), jnp.float32),) * 3,
        grid=(N_K_BLOCKS,),
        in_specs=[
            pl.BlockSpec((M3, bk), lambda k: (0, k)),     # im2col patches (K-tiled)
            pl.BlockSpec((bk, hid), lambda k: (k, 0)),    # conv3d weight  (K-tiled)
            full(b3), full(pe), full(ps),
            full(we), full(be), full(ws), full(bsd),
            full(wfe), full(wfs), full(bf),
        ],
        out_specs=[pl.BlockSpec((bsz, LANES), lambda k: (0, 0))] * 3,
        scratch_shapes=[pltpu.VMEM((M3, hid), jnp.float32)],
        compiler_params=pltpu.CompilerParams(
            dimension_semantics=("arbitrary",),
            vmem_limit_bytes=32 * 1024 * 1024,
        ),
    )(patches, w3, b3, pe, ps, we, be, ws, bsd, wfe, wfs, bf)
    return outs  # (x, x_endzone, x_sideline), each (bs, 128) — slice col 0 outside


# ----------------------------------------------------------------------------
# im2col glue, channels-last (pure layout work, stays in JAX; runs in bf16)
# ----------------------------------------------------------------------------
def im2col_2d_cl(x, kh, kw, stride, pad):
    # x: (N, H, W, C) -> (N*Ho*Wo, kh*kw*C)
    x = jnp.pad(x, ((0, 0), (pad, pad), (pad, pad), (0, 0)))
    N, H, W, C = x.shape
    Ho = (H - kh) // stride + 1
    Wo = (W - kw) // stride + 1
    taps = []
    for i in range(kh):
        for j in range(kw):
            taps.append(x[:, i:i + stride * Ho:stride, j:j + stride * Wo:stride, :])
    p = jnp.stack(taps, axis=3)                      # (N, Ho, Wo, kh*kw, C)
    return p.reshape(N * Ho * Wo, kh * kw * C), Ho, Wo


def im2col_3d_cl(x, kt, kh, kw, st, sh, sw, pt, ph, pw):
    # x: (N, T, H, W, C) -> (N*To*Ho*Wo, kt*kh*kw*C)
    x = jnp.pad(x, ((0, 0), (pt, pt), (ph, ph), (pw, pw), (0, 0)))
    N, T, H, W, C = x.shape
    To = (T - kt) // st + 1
    Ho = (H - kh) // sh + 1
    Wo = (W - kw) // sw + 1
    taps = []
    for a in range(kt):
        for i in range(kh):
            for j in range(kw):
                taps.append(x[:, a:a + st * To:st, i:i + sh * Ho:sh, j:j + sw * Wo:sw, :])
    p = jnp.stack(taps, axis=4)                      # (N, To, Ho, Wo, kt*kh*kw, C)
    return p.reshape(N * To * Ho * Wo, kt * kh * kw * C), To, Ho, Wo


# ----------------------------------------------------------------------------
# Parameters (deterministic synthetic init, BN running stats kept for folding)
# ----------------------------------------------------------------------------
def _bn_fold(key, c):
    kg, kb, km, kv = jax.random.split(key, 4)
    gamma = 1.0 + 0.1 * jax.random.normal(kg, (c,), jnp.float32)
    beta = 0.1 * jax.random.normal(kb, (c,), jnp.float32)
    mean = 0.1 * jax.random.normal(km, (c,), jnp.float32)
    var = 1.0 + 0.1 * jnp.square(jax.random.normal(kv, (c,), jnp.float32))
    scale = gamma / jnp.sqrt(var + 1e-5)
    bias = beta - mean * scale
    return scale, bias


def build_params(key, in_ch=3, c1=CONV1_CH, c2=CONV2_CH, hid3d=HID3D,
                 n_pred=N_PREDICT_FRAMES, k3d=K3D):
    ks = jax.random.split(key, 10)
    p = {}
    p["conv1_w"] = 0.05 * jax.random.normal(ks[0], (c1, in_ch, K2D, K2D), jnp.float32)
    p["bn1_scale"], p["bn1_bias"] = _bn_fold(ks[1], c1)
    p["conv2_w"] = 0.05 * jax.random.normal(ks[2], (c2, c1, K2D, K2D), jnp.float32)
    p["bn2_scale"], p["bn2_bias"] = _bn_fold(ks[3], c2)
    p["conv3d_w"] = 0.05 * jax.random.normal(ks[4], (hid3d, c2) + k3d, jnp.float32)
    p["bn3d_scale"], p["bn3d_bias"] = _bn_fold(ks[5], hid3d)
    p["fc_end_w"] = 0.05 * jax.random.normal(ks[6], (hid3d, n_pred), jnp.float32)
    p["fc_end_b"] = jnp.zeros((n_pred,), jnp.float32)
    p["fc_side_w"] = 0.05 * jax.random.normal(ks[7], (hid3d, n_pred), jnp.float32)
    p["fc_side_b"] = jnp.zeros((n_pred,), jnp.float32)
    p["fc_w"] = 0.05 * jax.random.normal(ks[8], (2 * hid3d, n_pred), jnp.float32)
    p["fc_b"] = jnp.zeros((n_pred,), jnp.float32)
    return p


# ----------------------------------------------------------------------------
# One-time weight preparation (hoisted out of the per-call forward).
# ----------------------------------------------------------------------------
def prepare_params(params, *, bs, seq_len, height, width):
    in_ch = params["conv1_w"].shape[1]
    c2 = params["conv2_w"].shape[0]
    hid = params["conv3d_w"].shape[0]
    assert hid == LANES, "hidden_size_3d is expected to be 128 (lane width)"

    def fold2d(w, scale, bias, cin_pad):
        outc, cin, kh, kw = w.shape
        wt = jnp.transpose(w, (2, 3, 1, 0)) * scale[None, None, None, :]
        wt = jnp.pad(wt, ((0, 0), (0, 0), (0, cin_pad - cin), (0, LANES - outc)))
        wmat = wt.reshape(kh * kw * cin_pad, LANES).astype(jnp.bfloat16)
        bvec = jnp.pad(bias, (0, LANES - outc)).reshape(1, LANES).astype(jnp.float32)
        return wmat, bvec

    # conv1: real input channels; conv2: consumes the 128-lane padded activation,
    # so its weight input rows are zero-padded to 128 channels.
    w1, b1 = fold2d(params["conv1_w"], params["bn1_scale"], params["bn1_bias"], in_ch)
    w2, b2 = fold2d(params["conv2_w"], params["bn2_scale"], params["bn2_bias"], LANES)

    kt, kh, kw = K3D
    w3 = (jnp.transpose(params["conv3d_w"], (2, 3, 4, 1, 0))
          * params["bn3d_scale"]).reshape(kt * kh * kw * c2, hid)
    K3 = w3.shape[0]
    bk = _round_up(pl.cdiv(K3, N_K_BLOCKS), LANES)
    K3p = bk * N_K_BLOCKS
    w3 = jnp.pad(w3, ((0, K3p - K3), (0, 0))).astype(jnp.bfloat16)
    b3 = params["bn3d_bias"].reshape(1, hid).astype(jnp.float32)

    def pad_head(w, b):
        n = w.shape[1]
        wp = jnp.pad(w, ((0, 0), (0, LANES - n))).astype(jnp.bfloat16)
        bp = jnp.pad(b, (0, LANES - n)).reshape(1, LANES).astype(jnp.float32)
        return wp, bp

    we, be = pad_head(params["fc_end_w"], params["fc_end_b"])
    ws, bsd = pad_head(params["fc_side_w"], params["fc_side_b"])
    # concat([x_end, x_side]) @ fc_w  ==  x_end @ fc_w[:hid] + x_side @ fc_w[hid:]
    wfe, bf = pad_head(params["fc_w"][:hid], params["fc_b"])
    wfs, _ = pad_head(params["fc_w"][hid:], params["fc_b"])

    # GAP (adaptive_avg_pool3d(1)) + x[::2]/x[1::2] view split as tiny matrices.
    hf = _conv_out(_conv_out(height, K2D, STRIDE2D, PAD2D), K2D, STRIDE2D, PAD2D)
    wf_ = _conv_out(_conv_out(width, K2D, STRIDE2D, PAD2D), K2D, STRIDE2D, PAD2D)
    to = (seq_len // 2 + 2 * PAD3D[0] - kt) // STRIDE3D[0] + 1
    ho = _conv_out(hf, kh, STRIDE3D[1], PAD3D[1])
    wo = _conv_out(wf_, kw, STRIDE3D[2], PAD3D[2])
    S = to * ho * wo
    M3 = (bs * 2) * S
    grp = jnp.arange(M3) // S
    pe = (grp[None, :] == (2 * jnp.arange(bs))[:, None]).astype(jnp.float32) / S
    ps = (grp[None, :] == (2 * jnp.arange(bs) + 1)[:, None]).astype(jnp.float32) / S

    return dict(w1=w1, b1=b1, w2=w2, b2=b2, w3=w3, b3=b3,
                pe=pe.astype(jnp.bfloat16), ps=ps.astype(jnp.bfloat16),
                we=we, be=be, ws=ws, bs=bsd, wfe=wfe, wfs=wfs, bf=bf)


# ----------------------------------------------------------------------------
# Model.forward (3dcnn_simple branch, fc_sideend='concat', single-view heads)
# ----------------------------------------------------------------------------
def model_forward(prepped, x, is_g=None, feature=None):
    del is_g, feature  # accepted for signature parity; unused by this branch
    bs, C, seq_len, W, H = x.shape

    # (bs, C, seq, W, H) -> (bs*seq, W, H, C) channels-last bf16 frames.
    x = x.astype(jnp.bfloat16)
    x = jnp.transpose(x, (0, 2, 3, 4, 1)).reshape(bs * seq_len, W, H, C)

    # cnn_2d.forward_features (synthetic backbone: 2x [conv3x3 s2 + BN + ReLU]).
    p1, H1, W1 = im2col_2d_cl(x, K2D, K2D, STRIDE2D, PAD2D)
    y1 = matmul_bias_relu(p1, prepped["w1"], prepped["b1"],
                          n_row_blocks=_N_ROW_BLOCKS)
    y1 = y1.reshape(bs * seq_len, H1, W1, LANES)     # stays 128-lane padded (bf16)

    p2, H2, W2 = im2col_2d_cl(y1, K2D, K2D, STRIDE2D, PAD2D)
    y2 = matmul_bias_relu(p2, prepped["w2"], prepped["b2"],
                          n_row_blocks=_N_ROW_BLOCKS)

    # channels-last: (bs*seq, H2*W2, 128) -> (bs*2, seq/2, H2, W2, 32), no permute.
    # Channel slice to the real 32 keeps the conv3d weight matrix at 1.4 MB.
    y2 = y2[:, :CONV2_CH].reshape(bs * 2, seq_len // 2, H2, W2, CONV2_CH)

    # SequenceModel('3dcnn_simple') = Conv3d(k=(7,5,5),s=(2,1,1),p=(0,1,1)) + BN + ReLU,
    # then GAP + heads, all fused into one K-tiled pallas_call.
    kt, kh, kw = K3D
    p3, To, Ho, Wo = im2col_3d_cl(y2, kt, kh, kw,
                                  STRIDE3D[0], STRIDE3D[1], STRIDE3D[2],
                                  PAD3D[0], PAD3D[1], PAD3D[2])
    K3p = prepped["w3"].shape[0]
    if p3.shape[1] != K3p:                            # pad K to the tiled width
        p3 = jnp.pad(p3, ((0, 0), (0, K3p - p3.shape[1])))

    out, out_end, out_side = conv3d_gap_heads(
        p3, prepped["w3"], prepped["b3"], prepped["pe"], prepped["ps"],
        prepped["we"], prepped["be"], prepped["ws"], prepped["bs"],
        prepped["wfe"], prepped["wfs"], prepped["bf"])

    n = N_PREDICT_FRAMES
    return out[:, :n], out_end[:, :n], out_side[:, :n]


if __name__ == "__main__":
    key = jax.random.PRNGKey(0)
    kx, kp, kg, kf = jax.random.split(key, 4)

    bs, C, seq_len, W, H = 2, 3, 18, 16, 16   # seq_len = 2 views * 9 frames

    x = jax.random.normal(kx, (bs, C, seq_len, W, H), jnp.float32)
    is_g = jnp.zeros((bs,), jnp.float32)                      # unused by this branch
    feature = jax.random.normal(kf, (bs, 3), jnp.float32)     # unused by this branch

    params = build_params(kp, in_ch=C)
    prepped = prepare_params(params, bs=bs, seq_len=seq_len, height=W, width=H)

    fwd = jax.jit(model_forward)
    out, out_end, out_side = jax.block_until_ready(fwd(prepped, x, is_g, feature))

    assert out.shape == (bs, N_PREDICT_FRAMES)
    assert out_end.shape == (bs, N_PREDICT_FRAMES)
    assert out_side.shape == (bs, N_PREDICT_FRAMES)
    print("KERNEL_OK")
</pallas_src>

<mosaic_0001>
module attributes {stable_mosaic.version = 11 : i64} {
  func.func @_matmul_bias_relu_kernel(%arg0: i32, %arg1: memref<2304x27xbf16, #tpu.memory_space<vmem>>, %arg2: memref<27x128xbf16, #tpu.memory_space<vmem>>, %arg3: memref<1x128xf32, #tpu.memory_space<vmem>>, %arg4: memref<2304x128xbf16, #tpu.memory_space<vmem>>) attributes {dimension_semantics = [#tpu.dimension_semantics<parallel>], iteration_bounds = array<i64: 1>, scalar_prefetch = 0 : i64, scratch_operands = 0 : i64, tpu.core_type = #tpu.core_type<tc>, window_params = [{transform_indices = @transform_0, window_bounds = array<i64: 2304, 27>}, {pipeline_mode = #tpu.pipeline_mode<synchronous>, transform_indices = @transform_1, window_bounds = array<i64: 27, 128>}, {pipeline_mode = #tpu.pipeline_mode<synchronous>, transform_indices = @transform_2, window_bounds = array<i64: 1, 128>}, {transform_indices = @transform_3, window_bounds = array<i64: 2304, 128>}]} {
    %c0 = arith.constant 0 : index
    %c0_0 = arith.constant 0 : index
    %0 = vector.load %arg1[%c0, %c0_0] : memref<2304x27xbf16, #tpu.memory_space<vmem>>, vector<2304x27xbf16>
    %c0_1 = arith.constant 0 : index
    %c0_2 = arith.constant 0 : index
    %1 = vector.load %arg2[%c0_1, %c0_2] : memref<27x128xbf16, #tpu.memory_space<vmem>>, vector<27x128xbf16>
    %cst = arith.constant dense<0.000000e+00> : vector<2304x128xf32>
    %2 = tpu.matmul %0, %1, %cst {dimension_numbers = #tpu.dot_dimension_numbers<[1], [0], [0], [1], [0, 0, 1, 1], [], []>} : vector<2304x27xbf16>, vector<27x128xbf16>, vector<2304x128xf32> -> vector<2304x128xf32>
    %c0_3 = arith.constant 0 : index
    %c0_4 = arith.constant 0 : index
    %3 = vector.load %arg3[%c0_3, %c0_4] : memref<1x128xf32, #tpu.memory_space<vmem>>, vector<1x128xf32>
    %4 = vector.broadcast %3 : vector<1x128xf32> to vector<2304x128xf32>
    %5 = arith.addf %2, %4 : vector<2304x128xf32>
    %cst_5 = arith.constant 0.000000e+00 : f32
    %6 = vector.broadcast %cst_5 : f32 to vector<2304x128xf32>
    %7 = arith.maximumf %5, %6 : vector<2304x128xf32>
    %8 = arith.truncf %7 : vector<2304x128xf32> to vector<2304x128xbf16>
    %c0_6 = arith.constant 0 : index
    %c0_7 = arith.constant 0 : index
    %9 = vector.load %arg4[%c0_6, %c0_7] : memref<2304x128xbf16, #tpu.memory_space<vmem>>, vector<2304x128xbf16>
    tpu.vector_store %arg4[%c0_6, %c0_7], %8 {strides = array<i32>} : memref<2304x128xbf16, #tpu.memory_space<vmem>>, vector<2304x128xbf16>,
    return
  }
  func.func @transform_0(%arg0: i32) -> (i32, i32) {
    %c0_i32 = arith.constant 0 : i32
    %c0_i32_0 = arith.constant 0 : i32
    return %arg0, %c0_i32 : i32, i32
  }
  func.func @transform_1(%arg0: i32) -> (i32, i32) {
    %c0_i32 = arith.constant 0 : i32
    %c0_i32_0 = arith.constant 0 : i32
    %c0_i32_1 = arith.constant 0 : i32
    return %c0_i32, %c0_i32_0 : i32, i32
  }
  func.func @transform_2(%arg0: i32) -> (i32, i32) {
    %c0_i32 = arith.constant 0 : i32
    %c0_i32_0 = arith.constant 0 : i32
    %c0_i32_1 = arith.constant 0 : i32
    return %c0_i32, %c0_i32_0 : i32, i32
  }
  func.func @transform_3(%arg0: i32) -> (i32, i32) {
    %c0_i32 = arith.constant 0 : i32
    %c0_i32_0 = arith.constant 0 : i32
    return %arg0, %c0_i32 : i32, i32
  }
}

module attributes {stable_mosaic.version = 11 : i64} {
  func.func @_matmul_bias_relu_kernel(%arg0: i32, %arg1: memref<576x1152xbf16, #tpu.memory_space<vmem>>, %arg2: memref<1152x128xbf16, #tpu.memory_space<vmem>>, %arg3: memref<1x128xf32, #tpu.memory_space<vmem>>, %arg4: memref<576x128xbf16, #tpu.memory_space<vmem>>) attributes {dimension_semantics = [#tpu.dimension_semantics<parallel>], iteration_bounds = array<i64: 1>, scalar_prefetch = 0 : i64, scratch_operands = 0 : i64, tpu.core_type = #tpu.core_type<tc>, window_params = [{transform_indices = @transform_0, window_bounds = array<i64: 576, 1152>}, {pipeline_mode = #tpu.pipeline_mode<synchronous>, transform_indices = @transform_1, window_bounds = array<i64: 1152, 128>}, {pipeline_mode = #tpu.pipeline_mode<synchronous>, transform_indices = @transform_2, window_bounds = array<i64: 1, 128>}, {transform_indices = @transform_3, window_bounds = array<i64: 576, 128>}]} {
    %c0 = arith.constant 0 : index
    %c0_0 = arith.constant 0 : index
    %0 = vector.load %arg1[%c0, %c0_0] : memref<576x1152xbf16, #tpu.memory_space<vmem>>, vector<576x1152xbf16>
    %c0_1 = arith.constant 0 : index
    %c0_2 = arith.constant 0 : index
    %1 = vector.load %arg2[%c0_1, %c0_2] : memref<1152x128xbf16, #tpu.memory_space<vmem>>, vector<1152x128xbf16>
    %cst = arith.constant dense<0.000000e+00> : vector<576x128xf32>
    %2 = tpu.matmul %0, %1, %cst {dimension_numbers = #tpu.dot_dimension_numbers<[1], [0], [0], [1], [0, 0, 1, 1], [], []>} : vector<576x1152xbf16>, vector<1152x128xbf16>, vector<576x128xf32> -> vector<576x128xf32>
    %c0_3 = arith.constant 0 : index
    %c0_4 = arith.constant 0 : index
    %3 = vector.load %arg3[%c0_3, %c0_4] : memref<1x128xf32, #tpu.memory_space<vmem>>, vector<1x128xf32>
    %4 = vector.broadcast %3 : vector<1x128xf32> to vector<576x128xf32>
    %5 = arith.addf %2, %4 : vector<576x128xf32>
    %cst_5 = arith.constant 0.000000e+00 : f32
    %6 = vector.broadcast %cst_5 : f32 to vector<576x128xf32>
    %7 = arith.maximumf %5, %6 : vector<576x128xf32>
    %8 = arith.truncf %7 : vector<576x128xf32> to vector<576x128xbf16>
    %c0_6 = arith.constant 0 : index
    %c0_7 = arith.constant 0 : index
    %9 = vector.load %arg4[%c0_6, %c0_7] : memref<576x128xbf16, #tpu.memory_space<vmem>>, vector<576x128xbf16>
    tpu.vector_store %arg4[%c0_6, %c0_7], %8 {strides = array<i32>} : memref<576x128xbf16, #tpu.memory_space<vmem>>, vector<576x128xbf16>,
    return
  }
  func.func @transform_0(%arg0: i32) -> (i32, i32) {
    %c0_i32 = arith.constant 0 : i32
    %c0_i32_0 = arith.constant 0 : i32
    return %arg0, %c0_i32 : i32, i32
  }
  func.func @transform_1(%arg0: i32) -> (i32, i32) {
    %c0_i32 = arith.constant 0 : i32
    %c0_i32_0 = arith.constant 0 : i32
    %c0_i32_1 = arith.constant 0 : i32
    return %c0_i32, %c0_i32_0 : i32, i32
  }
  func.func @transform_2(%arg0: i32) -> (i32, i32) {
    %c0_i32 = arith.constant 0 : i32
    %c0_i32_0 = arith.constant 0 : i32
    %c0_i32_1 = arith.constant 0 : i32
    return %c0_i32, %c0_i32_0 : i32, i32
  }
  func.func @transform_3(%arg0: i32) -> (i32, i32) {
    %c0_i32 = arith.constant 0 : i32
    %c0_i32_0 = arith.constant 0 : i32
    return %arg0, %c0_i32 : i32, i32
  }
}

module attributes {stable_mosaic.version = 11 : i64} {
  func.func @_conv3d_gap_heads_kernel(%arg0: i32, %arg1: memref<32x1408xbf16, #tpu.memory_space<vmem>>, %arg2: memref<1408x128xbf16, #tpu.memory_space<vmem>>, %arg3: memref<1x128xf32, #tpu.memory_space<vmem>>, %arg4: memref<2x32xbf16, #tpu.memory_space<vmem>>, %arg5: memref<2x32xbf16, #tpu.memory_space<vmem>>, %arg6: memref<128x128xbf16, #tpu.memory_space<vmem>>, %arg7: memref<1x128xf32, #tpu.memory_space<vmem>>, %arg8: memref<128x128xbf16, #tpu.memory_space<vmem>>, %arg9: memref<1x128xf32, #tpu.memory_space<vmem>>, %arg10: memref<128x128xbf16, #tpu.memory_space<vmem>>, %arg11: memref<128x128xbf16, #tpu.memory_space<vmem>>, %arg12: memref<1x128xf32, #tpu.memory_space<vmem>>, %arg13: memref<2x128xf32, #tpu.memory_space<vmem>>, %arg14: memref<2x128xf32, #tpu.memory_space<vmem>>, %arg15: memref<2x128xf32, #tpu.memory_space<vmem>>, %arg16: memref<32x128xf32, #tpu.memory_space<vmem>>) attributes {dimension_semantics = [#tpu.dimension_semantics<arbitrary>], iteration_bounds = array<i64: 4>, scalar_prefetch = 0 : i64, scratch_operands = 1 : i64, tpu.core_type = #tpu.core_type<tc>, window_params = [{transform_indices = @transform_0, window_bounds = array<i64: 32, 1408>}, {transform_indices = @transform_1, window_bounds = array<i64: 1408, 128>}, {pipeline_mode = #tpu.pipeline_mode<synchronous>, transform_indices = @transform_2, window_bounds = array<i64: 1, 128>}, {pipeline_mode = #tpu.pipeline_mode<synchronous>, transform_indices = @transform_3, window_bounds = array<i64: 2, 32>}, {pipeline_mode = #tpu.pipeline_mode<synchronous>, transform_indices = @transform_4, window_bounds = array<i64: 2, 32>}, {pipeline_mode = #tpu.pipeline_mode<synchronous>, transform_indices = @transform_5, window_bounds = array<i64: 128, 128>}, {pipeline_mode = #tpu.pipeline_mode<synchronous>, transform_indices = @transform_6, window_bounds = array<i64: 1, 128>}, {pipeline_mode = #tpu.pipeline_mode<synchronous>, transform_indices = @transform_7, window_bounds = array<i64: 128, 128>}, {pipeline_mode = #tpu.pipeline_mode<synchronous>, transform_indices = @transform_8, window_bounds = array<i64: 1, 128>}, {pipeline_mode = #tpu.pipeline_mode<synchronous>, transform_indices = @transform_9, window_bounds = array<i64: 128, 128>}, {pipeline_mode = #tpu.pipeline_mode<synchronous>, transform_indices = @transform_10, window_bounds = array<i64: 128, 128>}, {pipeline_mode = #tpu.pipeline_mode<synchronous>, transform_indices = @transform_11, window_bounds = array<i64: 1, 128>}, {pipeline_mode = #tpu.pipeline_mode<synchronous>, transform_indices = @transform_12, window_bounds = array<i64: 2, 128>}, {pipeline_mode = #tpu.pipeline_mode<synchronous>, transform_indices = @transform_13, window_bounds = array<i64: 2, 128>}, {pipeline_mode = #tpu.pipeline_mode<synchronous>, transform_indices = @transform_14, window_bounds = array<i64: 2, 128>}]} {
    %c0_i32 = arith.constant 0 : i32
    %0 = arith.cmpi eq, %arg0, %c0_i32 : i32
    %1 = arith.extui %0 : i1 to i32
    %c0_i32_0 = arith.constant 0 : i32
    %2 = arith.cmpi ne, %1, %c0_i32_0 : i32
    scf.if %2 {
      %cst_9 = arith.constant 0.000000e+00 : f32
      %12 = vector.broadcast %cst_9 : f32 to vector<32x128xf32>
      %c0_10 = arith.constant 0 : index
      %c0_11 = arith.constant 0 : index
      %13 = vector.load %arg16[%c0_10, %c0_11] : memref<32x128xf32, #tpu.memory_space<vmem>>, vector<32x128xf32>
      tpu.vector_store %arg16[%c0_10, %c0_11], %12 {strides = array<i32>} : memref<32x128xf32, #tpu.memory_space<vmem>>, vector<32x128xf32>,
    } else {
    }
    %c0 = arith.constant 0 : index
    %c0_1 = arith.constant 0 : index
    %3 = vector.load %arg16[%c0, %c0_1] : memref<32x128xf32, #tpu.memory_space<vmem>>, vector<32x128xf32>
    %c0_2 = arith.constant 0 : index
    %c0_3 = arith.constant 0 : index
    %4 = vector.load %arg1[%c0_2, %c0_3] : memref<32x1408xbf16, #tpu.memory_space<vmem>>, vector<32x1408xbf16>
    %c0_4 = arith.constant 0 : index
    %c0_5 = arith.constant 0 : index
    %5 = vector.load %arg2[%c0_4, %c0_5] : memref<1408x128xbf16, #tpu.memory_space<vmem>>, vector<1408x128xbf16>
    %cst = arith.constant dense<0.000000e+00> : vector<32x128xf32>
    %6 = tpu.matmul %4, %5, %cst {dimension_numbers = #tpu.dot_dimension_numbers<[1], [0], [0], [1], [0, 0, 1, 1], [], []>} : vector<32x1408xbf16>, vector<1408x128xbf16>, vector<32x128xf32> -> vector<32x128xf32>
    %7 = arith.addf %3, %6 : vector<32x128xf32>
    %c0_6 = arith.constant 0 : index
    %c0_7 = arith.constant 0 : index
    %8 = vector.load %arg16[%c0_6, %c0_7] : memref<32x128xf32, #tpu.memory_space<vmem>>, vector<32x128xf32>
    tpu.vector_store %arg16[%c0_6, %c0_7], %7 {strides = array<i32>} : memref<32x128xf32, #tpu.memory_space<vmem>>, vector<32x128xf32>,
    %c3_i32 = arith.constant 3 : i32
    %9 = arith.cmpi eq, %arg0, %c3_i32 : i32
    %10 = arith.extui %9 : i1 to i32
    %c0_i32_8 = arith.constant 0 : i32
    %11 = arith.cmpi ne, %10, %c0_i32_8 : i32
    scf.if %11 {
      %c0_9 = arith.constant 0 : index
      %c0_10 = arith.constant 0 : index
      %12 = vector.load %arg16[%c0_9, %c0_10] : memref<32x128xf32, #tpu.memory_space<vmem>>, vector<32x128xf32>
      %c0_11 = arith.constant 0 : index
      %c0_12 = arith.constant 0 : index
      %13 = vector.load %arg3[%c0_11, %c0_12] : memref<1x128xf32, #tpu.memory_space<vmem>>, vector<1x128xf32>
      %14 = vector.broadcast %13 : vector<1x128xf32> to vector<32x128xf32>
      %15 = arith.addf %12, %14 : vector<32x128xf32>
      %cst_13 = arith.constant 0.000000e+00 : f32
      %16 = vector.broadcast %cst_13 : f32 to vector<32x128xf32>
      %17 = arith.maximumf %15, %16 : vector<32x128xf32>
      %18 = arith.truncf %17 : vector<32x128xf32> to vector<32x128xbf16>
      %c0_14 = arith.constant 0 : index
      %c0_15 = arith.constant 0 : index
      %19 = vector.load %arg4[%c0_14, %c0_15] : memref<2x32xbf16, #tpu.memory_space<vmem>>, vector<2x32xbf16>
      %cst_16 = arith.constant dense<0.000000e+00> : vector<2x128xf32>
      %20 = tpu.matmul %19, %18, %cst_16 {dimension_numbers = #tpu.dot_dimension_numbers<[1], [0], [0], [1], [0, 0, 1, 1], [], []>} : vector<2x32xbf16>, vector<32x128xbf16>, vector<2x128xf32> -> vector<2x128xf32>
      %21 = arith.truncf %20 : vector<2x128xf32> to vector<2x128xbf16>
      %c0_17 = arith.constant 0 : index
      %c0_18 = arith.constant 0 : index
      %22 = vector.load %arg5[%c0_17, %c0_18] : memref<2x32xbf16, #tpu.memory_space<vmem>>, vector<2x32xbf16>
      %cst_19 = arith.constant dense<0.000000e+00> : vector<2x128xf32>
      %23 = tpu.matmul %22, %18, %cst_19 {dimension_numbers = #tpu.dot_dimension_numbers<[1], [0], [0], [1], [0, 0, 1, 1], [], []>} : vector<2x32xbf16>, vector<32x128xbf16>, vector<2x128xf32> -> vector<2x128xf32>
      %24 = arith.truncf %23 : vector<2x128xf32> to vector<2x128xbf16>
      %c0_20 = arith.constant 0 : index
      %c0_21 = arith.constant 0 : index
      %25 = vector.load %arg6[%c0_20, %c0_21] : memref<128x128xbf16, #tpu.memory_space<vmem>>, vector<128x128xbf16>
      %cst_22 = arith.constant dense<0.000000e+00> : vector<2x128xf32>
      %26 = tpu.matmul %21, %25, %cst_22 {dimension_numbers = #tpu.dot_dimension_numbers<[1], [0], [0], [1], [0, 0, 1, 1], [], []>} : vector<2x128xbf16>, vector<128x128xbf16>, vector<2x128xf32> -> vector<2x128xf32>
      %c0_23 = arith.constant 0 : index
      %c0_24 = arith.constant 0 : index
      %27 = vector.load %arg7[%c0_23, %c0_24] : memref<1x128xf32, #tpu.memory_space<vmem>>, vector<1x128xf32>
      %28 = vector.broadcast %27 : vector<1x128xf32> to vector<2x128xf32>
      %29 = arith.addf %26, %28 : vector<2x128xf32>
      %c0_25 = arith.constant 0 : index
      %c0_26 = arith.constant 0 : index
      %30 = vector.load %arg14[%c0_25, %c0_26] : memref<2x128xf32, #tpu.memory_space<vmem>>, vector<2x128xf32>
      tpu.vector_store %arg14[%c0_25, %c0_26], %29 {strides = array<i32>} : memref<2x128xf32, #tpu.memory_space<vmem>>, vector<2x128xf32>,
      %c0_27 = arith.constant 0 : index
      %c0_28 = arith.constant 0 : index
      %31 = vector.load %arg8[%c0_27, %c0_28] : memref<128x128xbf16, #tpu.memory_space<vmem>>, vector<128x128xbf16>
      %cst_29 = arith.constant dense<0.000000e+00> : vector<2x128xf32>
      %32 = tpu.matmul %24, %31, %cst_29 {dimension_numbers = #tpu.dot_dimension_numbers<[1], [0], [0], [1], [0, 0, 1, 1], [], []>} : vector<2x128xbf16>, vector<128x128xbf16>, vector<2x128xf32> -> vector<2x128xf32>
      %c0_30 = arith.constant 0 : index
      %c0_31 = arith.constant 0 : index
      %33 = vector.load %arg9[%c0_30, %c0_31] : memref<1x128xf32, #tpu.memory_space<vmem>>, vector<1x128xf32>
      %34 = vector.broadcast %33 : vector<1x128xf32> to vector<2x128xf32>
      %35 = arith.addf %32, %34 : vector<2x128xf32>
      %c0_32 = arith.constant 0 : index
      %c0_33 = arith.constant 0 : index
      %36 = vector.load %arg15[%c0_32, %c0_33] : memref<2x128xf32, #tpu.memory_space<vmem>>, vector<2x128xf32>
      tpu.vector_store %arg15[%c0_32, %c0_33], %35 {strides = array<i32>} : memref<2x128xf32, #tpu.memory_space<vmem>>, vector<2x128xf32>,
      %c0_34 = arith.constant 0 : index
      %c0_35 = arith.constant 0 : index
      %37 = vector.load %arg10[%c0_34, %c0_35] : memref<128x128xbf16, #tpu.memory_space<vmem>>, vector<128x128xbf16>
      %cst_36 = arith.constant dense<0.000000e+00> : vector<2x128xf32>
      %38 = tpu.matmul %21, %37, %cst_36 {dimension_numbers = #tpu.dot_dimension_numbers<[1], [0], [0], [1], [0, 0, 1, 1], [], []>} : vector<2x128xbf16>, vector<128x128xbf16>, vector<2x128xf32> -> vector<2x128xf32>
      %c0_37 = arith.constant 0 : index
      %c0_38 = arith.constant 0 : index
      %39 = vector.load %arg11[%c0_37, %c0_38] : memref<128x128xbf16, #tpu.memory_space<vmem>>, vector<128x128xbf16>
      %cst_39 = arith.constant dense<0.000000e+00> : vector<2x128xf32>
      %40 = tpu.matmul %24, %39, %cst_39 {dimension_numbers = #tpu.dot_dimension_numbers<[1], [0], [0], [1], [0, 0, 1, 1], [], []>} : vector<2x128xbf16>, vector<128x128xbf16>, vector<2x128xf32> -> vector<2x128xf32>
      %41 = arith.addf %38, %40 : vector<2x128xf32>
      %c0_40 = arith.constant 0 : index
      %c0_41 = arith.constant 0 : index
      %42 = vector.load %arg12[%c0_40, %c0_41] : memref<1x128xf32, #tpu.memory_space<vmem>>, vector<1x128xf32>
      %43 = vector.broadcast %42 : vector<1x128xf32> to vector<2x128xf32>
      %44 = arith.addf %41, %43 : vector<2x128xf32>
      %c0_42 = arith.constant 0 : index
      %c0_43 = arith.constant 0 : index
      %45 = vector.load %arg13[%c0_42, %c0_43] : memref<2x128xf32, #tpu.memory_space<vmem>>, vector<2x128xf32>
      tpu.vector_store %arg13[%c0_42, %c0_43], %44 {strides = array<i32>} : memref<2x128xf32, #tpu.memory_space<vmem>>, vector<2x128xf32>,
    } else {
    }
    return
  }
  func.func @transform_0(%arg0: i32) -> (i32, i32) {
    %c0_i32 = arith.constant 0 : i32
    %c0_i32_0 = arith.constant 0 : i32
    return %c0_i32, %arg0 : i32, i32
  }
  func.func @transform_1(%arg0: i32) -> (i32, i32) {
    %c0_i32 = arith.constant 0 : i32
    %c0_i32_0 = arith.constant 0 : i32
    return %arg0, %c0_i32 : i32, i32
  }
  func.func @transform_2(%arg0: i32) -> (i32, i32) {
    %c0_i32 = arith.constant 0 : i32
    %c0_i32_0 = arith.constant 0 : i32
    %c0_i32_1 = arith.constant 0 : i32
    return %c0_i32, %c0_i32_0 : i32, i32
  }
  func.func @transform_3(%arg0: i32) -> (i32, i32) {
    %c0_i32 = arith.constant 0 : i32
    %c0_i32_0 = arith.constant 0 : i32
    %c0_i32_1 = arith.constant 0 : i32
    return %c0_i32, %c0_i32_0 : i32, i32
  }
  func.func @transform_4(%arg0: i32) -> (i32, i32) {
    %c0_i32 = arith.constant 0 : i32
    %c0_i32_0 = arith.constant 0 : i32
    %c0_i32_1 = arith.constant 0 : i32
    return %c0_i32, %c0_i32_0 : i32, i32
  }
  func.func @transform_5(%arg0: i32) -> (i32, i32) {
    %c0_i32 = arith.constant 0 : i32
    %c0_i32_0 = arith.constant 0 : i32
    %c0_i32_1 = arith.constant 0 : i32
    return %c0_i32, %c0_i32_0 : i32, i32
  }
  func.func @transform_6(%arg0: i32) -> (i32, i32) {
    %c0_i32 = arith.constant 0 : i32
    %c0_i32_0 = arith.constant 0 : i32
    %c0_i32_1 = arith.constant 0 : i32
    return %c0_i32, %c0_i32_0 : i32, i32
  }
  func.func @transform_7(%arg0: i32) -> (i32, i32) {
    %c0_i32 = arith.constant 0 : i32
    %c0_i32_0 = arith.constant 0 : i32
    %c0_i32_1 = arith.constant 0 : i32
    return %c0_i32, %c0_i32_0 : i32, i32
  }
  func.func @transform_8(%arg0: i32) -> (i32, i32) {
    %c0_i32 = arith.constant 0 : i32
    %c0_i32_0 = arith.constant 0 : i32
    %c0_i32_1 = arith.constant 0 : i32
    return %c0_i32, %c0_i32_0 : i32, i32
  }
  func.func @transform_9(%arg0: i32) -> (i32, i32) {
    %c0_i32 = arith.constant 0 : i32
    %c0_i32_0 = arith.constant 0 : i32
    %c0_i32_1 = arith.constant 0 : i32
    return %c0_i32, %c0_i32_0 : i32, i32
  }
  func.func @transform_10(%arg0: i32) -> (i32, i32) {
    %c0_i32 = arith.constant 0 : i32
    %c0_i32_0 = arith.constant 0 : i32
    %c0_i32_1 = arith.constant 0 : i32
    return %c0_i32, %c0_i32_0 : i32, i32
  }
  func.func @transform_11(%arg0: i32) -> (i32, i32) {
    %c0_i32 = arith.constant 0 : i32
    %c0_i32_0 = arith.constant 0 : i32
    %c0_i32_1 = arith.constant 0 : i32
    return %c0_i32, %c0_i32_0 : i32, i32
  }
  func.func @transform_12(%arg0: i32) -> (i32, i32) {
    %c0_i32 = arith.constant 0 : i32
    %c0_i32_0 = arith.constant 0 : i32
    %c0_i32_1 = arith.constant 0 : i32
    return %c0_i32, %c0_i32_0 : i32, i32
  }
  func.func @transform_13(%arg0: i32) -> (i32, i32) {
    %c0_i32 = arith.constant 0 : i32
    %c0_i32_0 = arith.constant 0 : i32
    %c0_i32_1 = arith.constant 0 : i32
    return %c0_i32, %c0_i32_0 : i32, i32
  }
  func.func @transform_14(%arg0: i32) -> (i32, i32) {
    %c0_i32 = arith.constant 0 : i32
    %c0_i32_0 = arith.constant 0 : i32
    %c0_i32_1 = arith.constant 0 : i32
    return %c0_i32, %c0_i32_0 : i32, i32
  }
}

</mosaic_0001>

<bundles_post_ra>
// kernel: model_forward.3
= control target key start
LH: loop header
LB: loop body
LE: loop exit
PB: predicated region body
PF: predicated region fallthrough
CT: control target
= control target key end

     0   :  { %vm1478_vm0 = vcmask 1044480   ;;  %vm1479_vm1 = vcmask 1045504   ;;  %v6723_v1 = vmov 65535   ;;  %vm1045_vm2 = vcmask 220160   ;;  %s8061_s1 = inlined_call_operand.vmem [shape: bf16[27,128], index: 1, kind: input, shape index: {}]   ;;  %s8062_s0 = inlined_call_operand.vmem [shape: bf16[2304,27], index: 0, kind: input, shape index: {}]   ;;  %s8063_s2 = inlined_call_operand.vmem [shape: f32[1,128], index: 2, kind: input, shape index: {}]   ;;  %s8064_s3 = inlined_call_operand.vmem [shape: bf16[2304,128], index: 3, kind: output, shape index: {}]  }
   0x1   :  { %v6575_v0 = vld [vmem:[%s8061_s1 + $0x8] sm:$0x3f]   ;;  %v1480_v2 = vsel %vm1478_vm0, 4294967295, %v6723_v1  ;;  %v6577_v4 = vld [vmem:[%s8062_s0] sm:$0xff]   ;;  %v6581_v10 = vld [vmem:[%s8062_s0 + $0x10] sm:$0xff]  }
   0x2   :  { %v1481_v3 = vsel %vm1479_vm1, %v1480_v2, 0  ;;  %v6576_v6 = vld [vmem:[%s8061_s1] sm:$0xff]   ;;  %6282 = vmatprep.mubr.msk.bf16.mxu0 %vm1045_vm2, %v6577_v4  ;;  %v6579_v8 = vld [vmem:[%s8062_s0 + $0x8] sm:$0xff]   ;;  %v6582_v11 = vld [vmem:[%s8062_s0 + $0x250] sm:$0xff]  }
   0x3   :  { %v1483_v5 = vand.u32 %v6575_v0, %v1481_v3  ;;  %v6578_v7 = vld [vmem:[%s8062_s0 + $0x240] sm:$0xff]   ;;  %v6580_v9 = vld [vmem:[%s8062_s0 + $0x248] sm:$0xff]   ;;  %v6583_v12 = vld [vmem:[%s8062_s0 + $0x18] sm:$0xff]  }
   0x4   :  { %6426 = vmatprep.mubr.msk.bf16.mxu1 %vm1045_vm2, %v6578_v7  ;;  %v6584_v13 = vld [vmem:[%s8062_s0 + $0x258] sm:$0xff]   ;;  %v6585_v14 = vld [vmem:[%s8062_s0 + $0x20] sm:$0xff]   ;;  %v6587_v16 = vld [vmem:[%s8062_s0 + $0x28] sm:$0xff]  }
   0x5   :  { %6278 = vmatprep.subr.bf16.mxu0 %v1483_v5  ;;  %6570 = vmatprep.subr.bf16.mxu1 %v1483_v5  ;;  %v6586_v15 = vld [vmem:[%s8062_s0 + $0x260] sm:$0xff]   ;;  %v6588_v17 = vld [vmem:[%s8062_s0 + $0x268] sm:$0xff]   ;;  %v6589_v18 = vld [vmem:[%s8062_s0 + $0x30] sm:$0xff]  }
   0x6   :  { %6279 = vmatpush3.bf16.msra.mxu0 %v1483_v5  ;;  %6572 = vmatpush3.bf16.msra.mxu1 %v1483_v5  ;;  %v6590_v19 = vld [vmem:[%s8062_s0 + $0x270] sm:$0xff]   ;;  %v6591_v20 = vld [vmem:[%s8062_s0 + $0x38] sm:$0xff]   ;;  %v6593_v22 = vld [vmem:[%s8062_s0 + $0x40] sm:$0xff]  }
   0x7   :  { %6280 = vmatprep.subr.bf16.mxu0 %v6576_v6  ;;  %6571 = vmatprep.subr.bf16.mxu1 %v6576_v6  ;;  %v6592_v21 = vld [vmem:[%s8062_s0 + $0x278] sm:$0xff]   ;;  %v6594_v23 = vld [vmem:[%s8062_s0 + $0x280] sm:$0xff]   ;;  %v6595_v24 = vld [vmem:[%s8062_s0 + $0x48] sm:$0xff]  }
   0x8   :  { %v6596_v25 = vld [vmem:[%s8062_s0 + $0x288] sm:$0xff]   ;;  %v6597_v26 = vld [vmem:[%s8062_s0 + $0x50] sm:$0xff]   ;;  %v6599_v28 = vld [vmem:[%s8062_s0 + $0x58] sm:$0xff]  }
   0x9   :  { %v6598_v27 = vld [vmem:[%s8062_s0 + $0x290] sm:$0xff]   ;;  %v6600_v29 = vld [vmem:[%s8062_s0 + $0x298] sm:$0xff]   ;;  %v6601_v30 = vld [vmem:[%s8062_s0 + $0x60] sm:$0xff]  }
   0xa   :  { %6281 = vmatpush3.bf16.msra.mxu0 %v6576_v6  ;;  %6573 = vmatpush3.bf16.msra.mxu1 %v6576_v6  ;;  %v6602_v31 = vld [vmem:[%s8062_s0 + $0x2a0] sm:$0xff]   ;;  %v6603_v32 = vld [vmem:[%s8062_s0 + $0x68] sm:$0xff]   ;;  %v6605_v34 = vld [vmem:[%s8062_s0 + $0x70] sm:$0xff]  }
   0xb   :  { %v6604_v33 = vld [vmem:[%s8062_s0 + $0x2a8] sm:$0xff]   ;;  %v6606_v35 = vld [vmem:[%s8062_s0 + $0x2b0] sm:$0xff]   ;;  %v6607_v36 = vld [vmem:[%s8062_s0 + $0x78] sm:$0xff]  }
   0xc   :  { %v6608_v37 = vld [vmem:[%s8062_s0 + $0x2b8] sm:$0xff]   ;;  %v6609_v38 = vld [vmem:[%s8062_s0 + $0x80] sm:$0xff]   ;;  %v6611_v40 = vld [vmem:[%s8062_s0 + $0x88] sm:$0xff]  }
   0xd   :  { %6283 = vmatmul.mubr.msk.bf16.vlgmr.msra.gmra.mxu0 %vm1045_vm2, %v6579_v8  ;;  %6427 = vmatmul.mubr.msk.bf16.vlgmr.msra.gmra.mxu1 %vm1045_vm2, %v6580_v9  ;;  %v6610_v39 = vld [vmem:[%s8062_s0 + $0x2c0] sm:$0xff]   ;;  %v6612_v41 = vld [vmem:[%s8062_s0 + $0x2c8] sm:$0xff]   ;;  %v6613_v42 = vld [vmem:[%s8062_s0 + $0x90] sm:$0xff]  }
   0xe   :  { %6286 = vmatprep.mubr.msk.bf16.mxu0 %vm1045_vm2, %v6581_v10  ;;  %6430 = vmatprep.mubr.msk.bf16.mxu1 %vm1045_vm2, %v6582_v11  ;;  %v6614_v43 = vld [vmem:[%s8062_s0 + $0x2d0] sm:$0xff]   ;;  %v6615_v44 = vld [vmem:[%s8062_s0 + $0x98] sm:$0xff]   ;;  %v6617_v46 = vld [vmem:[%s8062_s0 + $0xa0] sm:$0xff]  }
   0xf   :  { %v6616_v45 = vld [vmem:[%s8062_s0 + $0x2d8] sm:$0xff]   ;;  %v6618_v47 = vld [vmem:[%s8062_s0 + $0x2e0] sm:$0xff]   ;;  %v6619_v48 = vld [vmem:[%s8062_s0 + $0xa8] sm:$0xff]  }
  0x10   :  { %v6620_v49 = vld [vmem:[%s8062_s0 + $0x2e8] sm:$0xff]   ;;  %v6621_v50 = vld [vmem:[%s8062_s0 + $0xb0] sm:$0xff]   ;;  %v6623_v52 = vld [vmem:[%s8062_s0 + $0xb8] sm:$0xff]  }
  0x11   :  { %v6622_v51 = vld [vmem:[%s8062_s0 + $0x2f0] sm:$0xff]   ;;  %v6624_v53 = vld [vmem:[%s8062_s0 + $0x2f8] sm:$0xff]   ;;  %v6625_v54 = vld [vmem:[%s8062_s0 + $0xc0] sm:$0xff]  }
  0x12   :  { %v6626_v55 = vld [vmem:[%s8062_s0 + $0x300] sm:$0xff]   ;;  %v6627_v56 = vld [vmem:[%s8062_s0 + $0xc8] sm:$0xff]   ;;  %v6629_v58 = vld [vmem:[%s8062_s0 + $0xd0] sm:$0xff]  }
  0x13   :  { %v6628_v57 = vld [vmem:[%s8062_s0 + $0x308] sm:$0xff]   ;;  %v6630_v59 = vld [vmem:[%s8062_s0 + $0x310] sm:$0xff]   ;;  %v6631_v60 = vld [vmem:[%s8062_s0 + $0xd8] sm:$0xff]  }
  0x14   :  { %v6632_v61 = vld [vmem:[%s8062_s0 + $0x318] sm:$0xff]   ;;  %v6633_v62 = vld [vmem:[%s8062_s0 + $0xe0] sm:$0xff]   ;;  %v6635_v0 = vld [vmem:[%s8062_s0 + $0xe8] sm:$0xff]  }
  0x15   :  { %6287 = vmatmul.mubr.msk.bf16.gmra.mxu0 %vm1045_vm2, %v6583_v12  ;;  %6431 = vmatmul.mubr.msk.bf16.gmra.mxu1 %vm1045_vm2, %v6584_v13  ;;  %v6634_v63 = vld [vmem:[%s8062_s0 + $0x320] sm:$0xff]   ;;  %v6636_v1 = vld [vmem:[%s8062_s0 + $0x328] sm:$0xff]   ;;  %v6637_v2 = vld [vmem:[%s8062_s0 + $0xf0] sm:$0xff]  }
  0x16   :  { %6290 = vmatprep.mubr.msk.bf16.mxu0 %vm1045_vm2, %v6585_v14  ;;  %6434 = vmatprep.mubr.msk.bf16.mxu1 %vm1045_vm2, %v6586_v15  ;;  %v6638_v3 = vld [vmem:[%s8062_s0 + $0x330] sm:$0xff]   ;;  %v6639_v4 = vld [vmem:[%s8062_s0 + $0xf8] sm:$0xff]   ;;  %v6641_v6 = vld [vmem:[%s8062_s0 + $0x100] sm:$0xff]  }
  0x17   :  { %v6640_v5 = vld [vmem:[%s8062_s0 + $0x338] sm:$0xff]   ;;  %v6642_v7 = vld [vmem:[%s8062_s0 + $0x340] sm:$0xff]   ;;  %v6643_v8 = vld [vmem:[%s8062_s0 + $0x108] sm:$0xff]  }
  0x18   :  { %v6644_v9 = vld [vmem:[%s8062_s0 + $0x348] sm:$0xff]   ;;  %v6645_v10 = vld [vmem:[%s8062_s0 + $0x110] sm:$0xff]   ;;  %v6647_v12 = vld [vmem:[%s8062_s0 + $0x118] sm:$0xff]  }
  0x19   :  { %v6646_v11 = vld [vmem:[%s8062_s0 + $0x350] sm:$0xff]   ;;  %v6648_v13 = vld [vmem:[%s8062_s0 + $0x358] sm:$0xff]   ;;  %v6649_v14 = vld [vmem:[%s8062_s0 + $0x120] sm:$0xff]  }
  0x1a   :  { %v6650_v15 = vld [vmem:[%s8062_s0 + $0x360] sm:$0xff]  }
  0x1d   :  { %6291 = vmatmul.mubr.msk.bf16.gmra.mxu0 %vm1045_vm2, %v6587_v16  ;;  %6435 = vmatmul.mubr.msk.bf16.gmra.mxu1 %vm1045_vm2, %v6588_v17  ;;  %v6651_v16 = vld [vmem:[%s8062_s0 + $0x128] sm:$0xff]  }
  0x1e   :  { %6294 = vmatprep.mubr.msk.bf16.mxu0 %vm1045_vm2, %v6589_v18  ;;  %6438 = vmatprep.mubr.msk.bf16.mxu1 %vm1045_vm2, %v6590_v19  ;;  %v6652_v17 = vld [vmem:[%s8062_s0 + $0x368] sm:$0xff]   ;;  %v6653_v18 = vld [vmem:[%s8062_s0 + $0x130] sm:$0xff]  }
  0x1f   :  { %v6654_v19 = vld [vmem:[%s8062_s0 + $0x370] sm:$0xff]  }
  0x25   :  { %6295 = vmatmul.mubr.msk.bf16.gmra.mxu0 %vm1045_vm2, %v6591_v20  ;;  %6439 = vmatmul.mubr.msk.bf16.gmra.mxu1 %vm1045_vm2, %v6592_v21  ;;  %v6655_v20 = vld [vmem:[%s8062_s0 + $0x138] sm:$0xff]  }
  0x26   :  { %6298 = vmatprep.mubr.msk.bf16.mxu0 %vm1045_vm2, %v6593_v22  ;;  %6442 = vmatprep.mubr.msk.bf16.mxu1 %vm1045_vm2, %v6594_v23  ;;  %v6656_v21 = vld [vmem:[%s8062_s0 + $0x378] sm:$0xff]   ;;  %v6657_v22 = vld [vmem:[%s8062_s0 + $0x140] sm:$0xff]  }
  0x27   :  { %v6658_v23 = vld [vmem:[%s8062_s0 + $0x380] sm:$0xff]  }
  0x2d   :  { %6299 = vmatmul.mubr.msk.bf16.gmra.mxu0 %vm1045_vm2, %v6595_v24  ;;  %6443 = vmatmul.mubr.msk.bf16.gmra.mxu1 %vm1045_vm2, %v6596_v25  ;;  %v6659_v24 = vld [vmem:[%s8062_s0 + $0x148] sm:$0xff]  }
  0x2e   :  { %6302 = vmatprep.mubr.msk.bf16.mxu0 %vm1045_vm2, %v6597_v26  ;;  %6446 = vmatprep.mubr.msk.bf16.mxu1 %vm1045_vm2, %v6598_v27  ;;  %v6660_v25 = vld [vmem:[%s8062_s0 + $0x388] sm:$0xff]   ;;  %v6661_v26 = vld [vmem:[%s8062_s0 + $0x150] sm:$0xff]  }
  0x2f   :  { %v6662_v27 = vld [vmem:[%s8062_s0 + $0x390] sm:$0xff]  }
  0x35   :  { %6303 = vmatmul.mubr.msk.bf16.gmra.mxu0 %vm1045_vm2, %v6599_v28  ;;  %6447 = vmatmul.mubr.msk.bf16.gmra.mxu1 %vm1045_vm2, %v6600_v29  ;;  %v6663_v28 = vld [vmem:[%s8062_s0 + $0x158] sm:$0xff]  }
  0x36   :  { %6306 = vmatprep.mubr.msk.bf16.mxu0 %vm1045_vm2, %v6601_v30  ;;  %6450 = vmatprep.mubr.msk.bf16.mxu1 %vm1045_vm2, %v6602_v31  ;;  %v6664_v29 = vld [vmem:[%s8062_s0 + $0x398] sm:$0xff]   ;;  %v6665_v30 = vld [vmem:[%s8062_s0 + $0x160] sm:$0xff]  }
  0x37   :  { %v6666_v31 = vld [vmem:[%s8062_s0 + $0x3a0] sm:$0xff]  }
  0x3d   :  { %6307 = vmatmul.mubr.msk.bf16.gmra.mxu0 %vm1045_vm2, %v6603_v32  ;;  %6451 = vmatmul.mubr.msk.bf16.gmra.mxu1 %vm1045_vm2, %v6604_v33  ;;  %v6667_v32 = vld [vmem:[%s8062_s0 + $0x168] sm:$0xff]  }
  0x3e   :  { %6310 = vmatprep.mubr.msk.bf16.mxu0 %vm1045_vm2, %v6605_v34  ;;  %6454 = vmatprep.mubr.msk.bf16.mxu1 %vm1045_vm2, %v6606_v35  ;;  %v6668_v33 = vld [vmem:[%s8062_s0 + $0x3a8] sm:$0xff]   ;;  %v6669_v34 = vld [vmem:[%s8062_s0 + $0x170] sm:$0xff]  }
  0x3f   :  { %v6670_v35 = vld [vmem:[%s8062_s0 + $0x3b0] sm:$0xff]  }
  0x45   :  { %6311 = vmatmul.mubr.msk.bf16.gmra.mxu0 %vm1045_vm2, %v6607_v36  ;;  %6455 = vmatmul.mubr.msk.bf16.gmra.mxu1 %vm1045_vm2, %v6608_v37  ;;  %v6671_v36 = vld [vmem:[%s8062_s0 + $0x178] sm:$0xff]  }
  0x46   :  { %6314 = vmatprep.mubr.msk.bf16.mxu0 %vm1045_vm2, %v6609_v38  ;;  %6458 = vmatprep.mubr.msk.bf16.mxu1 %vm1045_vm2, %v6610_v39  ;;  %v6672_v37 = vld [vmem:[%s8062_s0 + $0x3b8] sm:$0xff]   ;;  %v6673_v38 = vld [vmem:[%s8062_s0 + $0x180] sm:$0xff]  }
  0x47   :  { %v6674_v39 = vld [vmem:[%s8062_s0 + $0x3c0] sm:$0xff]  }
  0x4d   :  { %6315 = vmatmul.mubr.msk.bf16.gmra.mxu0 %vm1045_vm2, %v6611_v40  ;;  %6459 = vmatmul.mubr.msk.bf16.gmra.mxu1 %vm1045_vm2, %v6612_v41  ;;  %v6675_v40 = vld [vmem:[%s8062_s0 + $0x188] sm:$0xff]  }
  0x4e   :  { %6318 = vmatprep.mubr.msk.bf16.mxu0 %vm1045_vm2, %v6613_v42  ;;  %6462 = vmatprep.mubr.msk.bf16.mxu1 %vm1045_vm2, %v6614_v43  ;;  %v6676_v41 = vld [vmem:[%s8062_s0 + $0x3c8] sm:$0xff]   ;;  %v6677_v42 = vld [vmem:[%s8062_s0 + $0x190] sm:$0xff]  }
  0x4f   :  { %v6678_v43 = vld [vmem:[%s8062_s0 + $0x3d0] sm:$0xff]  }
  0x55   :  { %6319 = vmatmul.mubr.msk.bf16.gmra.mxu0 %vm1045_vm2, %v6615_v44  ;;  %6463 = vmatmul.mubr.msk.bf16.gmra.mxu1 %vm1045_vm2, %v6616_v45  ;;  %v7157_v44 = vld [vmem:[%s8063_s2] ss:$0 sm:$0xff] }
  0x56   :  { %6322 = vmatprep.mubr.msk.bf16.mxu0 %vm1045_vm2, %v6617_v46  ;;  %6466 = vmatprep.mubr.msk.bf16.mxu1 %vm1045_vm2, %v6618_v47 }
  0x5d   :  { %6323 = vmatmul.mubr.msk.bf16.gmra.mxu0 %vm1045_vm2, %v6619_v48  ;;  %6467 = vmatmul.mubr.msk.bf16.gmra.mxu1 %vm1045_vm2, %v6620_v49 }
  0x5e   :  { %6326 = vmatprep.mubr.msk.bf16.mxu0 %vm1045_vm2, %v6621_v50  ;;  %6470 = vmatprep.mubr.msk.bf16.mxu1 %vm1045_vm2, %v6622_v51 }
  0x65   :  { %6327 = vmatmul.mubr.msk.bf16.gmra.mxu0 %vm1045_vm2, %v6623_v52  ;;  %6471 = vmatmul.mubr.msk.bf16.gmra.mxu1 %vm1045_vm2, %v6624_v53 }
  0x66   :  { %6330 = vmatprep.mubr.msk.bf16.mxu0 %vm1045_vm2, %v6625_v54  ;;  %6474 = vmatprep.mubr.msk.bf16.mxu1 %vm1045_vm2, %v6626_v55  ;;  %v6679_v55 = vld [vmem:[%s8062_s0 + $0x198] sm:$0xff]  }
  0x6d   :  { %6331 = vmatmul.mubr.msk.bf16.gmra.mxu0 %vm1045_vm2, %v6627_v56  ;;  %6475 = vmatmul.mubr.msk.bf16.gmra.mxu1 %vm1045_vm2, %v6628_v57  ;;  %v6680_v56 = vld [vmem:[%s8062_s0 + $0x3d8] sm:$0xff]  }
  0x6e   :  { %6334 = vmatprep.mubr.msk.bf16.mxu0 %vm1045_vm2, %v6629_v58  ;;  %6478 = vmatprep.mubr.msk.bf16.mxu1 %vm1045_vm2, %v6630_v59  ;;  %v6681_v59 = vld [vmem:[%s8062_s0 + $0x1a0] sm:$0xff]  }
  0x75   :  { %6335 = vmatmul.mubr.msk.bf16.gmra.mxu0 %vm1045_vm2, %v6631_v60  ;;  %6479 = vmatmul.mubr.msk.bf16.gmra.mxu1 %vm1045_vm2, %v6632_v61  ;;  %v6682_v60 = vld [vmem:[%s8062_s0 + $0x3e0] sm:$0xff]  }
  0x76   :  { %6338 = vmatprep.mubr.msk.bf16.mxu0 %vm1045_vm2, %v6633_v62  ;;  %6482 = vmatprep.mubr.msk.bf16.mxu1 %vm1045_vm2, %v6634_v63 }
  0x7d   :  { %6339 = vmatmul.mubr.msk.bf16.gmra.mxu0 %vm1045_vm2, %v6635_v0  ;;  %6483 = vmatmul.mubr.msk.bf16.gmra.mxu1 %vm1045_vm2, %v6636_v1 }
  0x7e   :  { %6342 = vmatprep.mubr.msk.bf16.mxu0 %vm1045_vm2, %v6637_v2  ;;  %6486 = vmatprep.mubr.msk.bf16.mxu1 %vm1045_vm2, %v6638_v3 }
  0x85   :  { %6343 = vmatmul.mubr.msk.bf16.gmra.mxu0 %vm1045_vm2, %v6639_v4  ;;  %6487 = vmatmul.mubr.msk.bf16.gmra.mxu1 %vm1045_vm2, %v6640_v5 }
  0x86   :  { %6346 = vmatprep.mubr.msk.bf16.mxu0 %vm1045_vm2, %v6641_v6  ;;  %6490 = vmatprep.mubr.msk.bf16.mxu1 %vm1045_vm2, %v6642_v7 }
  0x8d   :  { %6347 = vmatmul.mubr.msk.bf16.gmra.mxu0 %vm1045_vm2, %v6643_v8  ;;  %6491 = vmatmul.mubr.msk.bf16.gmra.mxu1 %vm1045_vm2, %v6644_v9 }
  0x8e   :  { %6350 = vmatprep.mubr.msk.bf16.mxu0 %vm1045_vm2, %v6645_v10  ;;  %6494 = vmatprep.mubr.msk.bf16.mxu1 %vm1045_vm2, %v6646_v11 }
  0x95   :  { %6351 = vmatmul.mubr.msk.bf16.gmra.mxu0 %vm1045_vm2, %v6647_v12  ;;  %6495 = vmatmul.mubr.msk.bf16.gmra.mxu1 %vm1045_vm2, %v6648_v13 }
  0x96   :  { %6354 = vmatprep.mubr.msk.bf16.mxu0 %vm1045_vm2, %v6649_v14  ;;  %6498 = vmatprep.mubr.msk.bf16.mxu1 %vm1045_vm2, %v6650_v15 }
  0x9d   :  { %6355 = vmatmul.mubr.msk.bf16.gmra.mxu0 %vm1045_vm2, %v6651_v16  ;;  %6499 = vmatmul.mubr.msk.bf16.gmra.mxu1 %vm1045_vm2, %v6652_v17 }
  0x9e   :  { %6358 = vmatprep.mubr.msk.bf16.mxu0 %vm1045_vm2, %v6653_v18  ;;  %6502 = vmatprep.mubr.msk.bf16.mxu1 %vm1045_vm2, %v6654_v19 }
  0xa5   :  { %6359 = vmatmul.mubr.msk.bf16.gmra.mxu0 %vm1045_vm2, %v6655_v20  ;;  %6503 = vmatmul.mubr.msk.bf16.gmra.mxu1 %vm1045_vm2, %v6656_v21 }
  0xa6   :  { %6362 = vmatprep.mubr.msk.bf16.mxu0 %vm1045_vm2, %v6657_v22  ;;  %6506 = vmatprep.mubr.msk.bf16.mxu1 %vm1045_vm2, %v6658_v23  ;;  %v6683_v23 = vld [vmem:[%s8062_s0 + $0x1a8] sm:$0xff]  }
  0xad   :  { %6363 = vmatmul.mubr.msk.bf16.gmra.mxu0 %vm1045_vm2, %v6659_v24  ;;  %6507 = vmatmul.mubr.msk.bf16.gmra.mxu1 %vm1045_vm2, %v6660_v25  ;;  %v6684_v24 = vld [vmem:[%s8062_s0 + $0x3e8] sm:$0xff]  }
  0xae   :  { %6366 = vmatprep.mubr.msk.bf16.mxu0 %vm1045_vm2, %v6661_v26  ;;  %6510 = vmatprep.mubr.msk.bf16.mxu1 %vm1045_vm2, %v6662_v27  ;;  %v6685_v27 = vld [vmem:[%s8062_s0 + $0x1b0] sm:$0xff]  }
  0xb5   :  { %6367 = vmatmul.mubr.msk.bf16.gmra.mxu0 %vm1045_vm2, %v6663_v28  ;;  %6511 = vmatmul.mubr.msk.bf16.gmra.mxu1 %vm1045_vm2, %v6664_v29  ;;  %v6686_v28 = vld [vmem:[%s8062_s0 + $0x3f0] sm:$0xff]  }
  0xb6   :  { %6370 = vmatprep.mubr.msk.bf16.mxu0 %vm1045_vm2, %v6665_v30  ;;  %6514 = vmatprep.mubr.msk.bf16.mxu1 %vm1045_vm2, %v6666_v31 }
  0xbd   :  { %6371 = vmatmul.mubr.msk.bf16.gmra.mxu0 %vm1045_vm2, %v6667_v32  ;;  %6515 = vmatmul.mubr.msk.bf16.gmra.mxu1 %vm1045_vm2, %v6668_v33 }
  0xbe   :  { %6374 = vmatprep.mubr.msk.bf16.mxu0 %vm1045_vm2, %v6669_v34  ;;  %6518 = vmatprep.mubr.msk.bf16.mxu1 %vm1045_vm2, %v6670_v35 }
  0xc5   :  { %6375 = vmatmul.mubr.msk.bf16.gmra.mxu0 %vm1045_vm2, %v6671_v36  ;;  %6519 = vmatmul.mubr.msk.bf16.gmra.mxu1 %vm1045_vm2, %v6672_v37 }
  0xc6   :  { %6378 = vmatprep.mubr.msk.bf16.mxu0 %vm1045_vm2, %v6673_v38  ;;  %6522 = vmatprep.mubr.msk.bf16.mxu1 %vm1045_vm2, %v6674_v39 }
  0xcd   :  { %v6284_v45 = vpop.f32.mrf.mxu0  ;;  %6379 = vmatmul.mubr.msk.bf16.gmra.mxu0 %vm1045_vm2, %v6675_v40  ;;  %v6428_v46 = vpop.f32.mrf.mxu1  ;;  %6523 = vmatmul.mubr.msk.bf16.gmra.mxu1 %vm1045_vm2, %v6676_v41 }
  0xce   :  { %6382 = vmatprep.mubr.msk.bf16.mxu0 %vm1045_vm2, %v6677_v42  ;;  %6526 = vmatprep.mubr.msk.bf16.mxu1 %vm1045_vm2, %v6678_v43  ;;  %v1528_v47 = vadd.f32 %v6284_v45, %v7157_v44  ;;  %v2104_v48 = vadd.f32 %v6428_v46, %v7157_v44 }
  0xcf   :  { %v1519_v49 = vpop.f32.mrf.mxu0  ;;  %v2095_v50 = vpop.f32.mrf.mxu1 }
  0xd0   :  { %v1520_v51 = vadd.f32 %v7157_v44, %v1519_v49  ;;  %v2096_v52 = vadd.f32 %v7157_v44, %v2095_v50  ;;  %v2672_v61 = vmax.f32 %v1528_v47, 0.0  ;;  %v2816_v62 = vmax.f32 %v2104_v48, 0.0 }
  0xd1   :  { %v6285_v53 = vpop.f32.mrf.mxu0  ;;  %v6429_v54 = vpop.f32.mrf.mxu1 }
  0xd2   :  { %v1531_v57 = vadd.f32 %v6285_v53, %v7157_v44  ;;  %v2107_v58 = vadd.f32 %v6429_v54, %v7157_v44  ;;  %v2670_v5 = vmax.f32 %v1520_v51, 0.0  ;;  %v2814_v6 = vmax.f32 %v2096_v52, 0.0 }
  0xd3   :  { %v1522_v63 = vpop.f32.mrf.mxu0  ;;  %v2098_v0 = vpop.f32.mrf.mxu1 }
  0xd4   :  { %v2673_v1 = vmax.f32 %v1531_v57, 0.0  ;;  %v2817_v2 = vmax.f32 %v2107_v58, 0.0  ;;  %v1523_v3 = vadd.f32 %v7157_v44, %v1522_v63  ;;  %v2099_v4 = vadd.f32 %v7157_v44, %v2098_v0  ;;  %v6688_v57 = vld [vmem:[%s8062_s0 + $0x3f8] sm:$0xff]  }
  0xd5   :  { %v6288_v7 = vpop.f32.mrf.mxu0  ;;  %6383 = vmatmul.mubr.msk.bf16.gmra.mxu0 %vm1045_vm2, %v6679_v55  ;;  %v6432_v8 = vpop.f32.mrf.mxu1  ;;  %6527 = vmatmul.mubr.msk.bf16.gmra.mxu1 %vm1045_vm2, %v6680_v56  ;;  %v6687_v56 = vld [vmem:[%s8062_s0 + $0x1b8] sm:$0xff]  }
  0xd6   :  { %v5277_v9 = vpack.c.bf16 %v2673_v1, %v2672_v61  ;;  %v5637_v10 = vpack.c.bf16 %v2817_v2, %v2816_v62  ;;  %v2671_v11 = vmax.f32 %v1523_v3, 0.0  ;;  %v2815_v12 = vmax.f32 %v2099_v4, 0.0  ;;  %6386 = vmatprep.mubr.msk.bf16.mxu0 %vm1045_vm2, %v6681_v59  ;;  %6530 = vmatprep.mubr.msk.bf16.mxu1 %vm1045_vm2, %v6682_v60  ;;  %v6689_v60 = vld [vmem:[%s8062_s0 + $0x1c0] sm:$0xff]  }
  0xd7   :  { %v1544_v13 = vadd.f32 %v6288_v7, %v7157_v44  ;;  %v2120_v14 = vadd.f32 %v6432_v8, %v7157_v44  ;;  %v1535_v15 = vpop.f32.mrf.mxu0  ;;  %v2111_v16 = vpop.f32.mrf.mxu1  ;;  %v6690_v61 = vld [vmem:[%s8062_s0 + $0x400] sm:$0xff]  }
  0xd8   :  { %5989 = vst [vmem:[%s8064_s3 + $0x8] sm:$0xff] %v5277_v9   ;;  %6061 = vst [vmem:[%s8064_s3 + $0x248] sm:$0xff] %v5637_v10   ;;  %v5272_v17 = vpack.c.bf16 %v2671_v11, %v2670_v5  ;;  %v5632_v18 = vpack.c.bf16 %v2815_v12, %v2814_v6  ;;  %v1536_v19 = vadd.f32 %v7157_v44, %v1535_v15 }
  0xd9   :  { %v2112_v20 = vadd.f32 %v7157_v44, %v2111_v16  ;;  %v6289_v21 = vpop.f32.mrf.mxu0  ;;  %v6433_v22 = vpop.f32.mrf.mxu1  ;;  %v2676_v29 = vmax.f32 %v1544_v13, 0.0  ;;  %v2820_v30 = vmax.f32 %v2120_v14, 0.0 }
  0xda   :  { %5273 = vst [vmem:[%s8064_s3] sm:$0xff] %v5272_v17   ;;  %6060 = vst [vmem:[%s8064_s3 + $0x240] sm:$0xff] %v5632_v18   ;;  %v1547_v25 = vadd.f32 %v6289_v21, %v7157_v44  ;;  %v2123_v26 = vadd.f32 %v6433_v22, %v7157_v44  ;;  %v2674_v37 = vmax.f32 %v1536_v19, 0.0 }
  0xdb   :  { %v1538_v31 = vpop.f32.mrf.mxu0  ;;  %v2114_v32 = vpop.f32.mrf.mxu1  ;;  %v2818_v38 = vmax.f32 %v2112_v20, 0.0 }
  0xdc   :  { %v2677_v33 = vmax.f32 %v1547_v25, 0.0  ;;  %v2821_v34 = vmax.f32 %v2123_v26, 0.0  ;;  %v1539_v35 = vadd.f32 %v7157_v44, %v1538_v31  ;;  %v2115_v36 = vadd.f32 %v7157_v44, %v2114_v32  ;;  %v6692_v25 = vld [vmem:[%s8062_s0 + $0x408] sm:$0xff]  }
  0xdd   :  { %v6292_v39 = vpop.f32.mrf.mxu0  ;;  %6387 = vmatmul.mubr.msk.bf16.gmra.mxu0 %vm1045_vm2, %v6683_v23  ;;  %v6436_v40 = vpop.f32.mrf.mxu1  ;;  %6531 = vmatmul.mubr.msk.bf16.gmra.mxu1 %vm1045_vm2, %v6684_v24  ;;  %v6691_v24 = vld [vmem:[%s8062_s0 + $0x1c8] sm:$0xff]  }
  0xde   :  { %v5287_v41 = vpack.c.bf16 %v2677_v33, %v2676_v29  ;;  %v5647_v42 = vpack.c.bf16 %v2821_v34, %v2820_v30  ;;  %v2675_v43 = vmax.f32 %v1539_v35, 0.0  ;;  %v2819_v45 = vmax.f32 %v2115_v36, 0.0  ;;  %6390 = vmatprep.mubr.msk.bf16.mxu0 %vm1045_vm2, %v6685_v27  ;;  %6534 = vmatprep.mubr.msk.bf16.mxu1 %vm1045_vm2, %v6686_v28  ;;  %v6693_v28 = vld [vmem:[%s8062_s0 + $0x1d0] sm:$0xff]  }
  0xdf   :  { %v1560_v46 = vadd.f32 %v6292_v39, %v7157_v44  ;;  %v2136_v47 = vadd.f32 %v6436_v40, %v7157_v44  ;;  %v1551_v48 = vpop.f32.mrf.mxu0  ;;  %v2127_v49 = vpop.f32.mrf.mxu1  ;;  %v6694_v29 = vld [vmem:[%s8062_s0 + $0x410] sm:$0xff]  }
  0xe0   :  { %5991 = vst [vmem:[%s8064_s3 + $0x18] sm:$0xff] %v5287_v41   ;;  %6063 = vst [vmem:[%s8064_s3 + $0x258] sm:$0xff] %v5647_v42   ;;  %v5282_v50 = vpack.c.bf16 %v2675_v43, %v2674_v37  ;;  %v5642_v51 = vpack.c.bf16 %v2819_v45, %v2818_v38  ;;  %v1552_v52 = vadd.f32 %v7157_v44, %v1551_v48 }
  0xe1   :  { %v2128_v53 = vadd.f32 %v7157_v44, %v2127_v49  ;;  %v6293_v54 = vpop.f32.mrf.mxu0  ;;  %v6437_v55 = vpop.f32.mrf.mxu1  ;;  %v2680_v62 = vmax.f32 %v1560_v46, 0.0  ;;  %v2824_v63 = vmax.f32 %v2136_v47, 0.0 }
  0xe2   :  { %5990 = vst [vmem:[%s8064_s3 + $0x10] sm:$0xff] %v5282_v50   ;;  %6062 = vst [vmem:[%s8064_s3 + $0x250] sm:$0xff] %v5642_v51   ;;  %v1563_v58 = vadd.f32 %v6293_v54, %v7157_v44  ;;  %v2139_v59 = vadd.f32 %v6437_v55, %v7157_v44  ;;  %v2678_v6 = vmax.f32 %v1552_v52, 0.0 }
  0xe3   :  { %v1554_v0 = vpop.f32.mrf.mxu0  ;;  %v2130_v1 = vpop.f32.mrf.mxu1  ;;  %v2822_v7 = vmax.f32 %v2128_v53, 0.0 }
  0xe4   :  { %v2681_v2 = vmax.f32 %v1563_v58, 0.0  ;;  %v2825_v3 = vmax.f32 %v2139_v59, 0.0  ;;  %v1555_v4 = vadd.f32 %v7157_v44, %v1554_v0  ;;  %v2131_v5 = vadd.f32 %v7157_v44, %v2130_v1  ;;  %v6696_v58 = vld [vmem:[%s8062_s0 + $0x418] sm:$0xff]  }
  0xe5   :  { %v6296_v8 = vpop.f32.mrf.mxu0  ;;  %6391 = vmatmul.mubr.msk.bf16.gmra.mxu0 %vm1045_vm2, %v6687_v56  ;;  %v6440_v9 = vpop.f32.mrf.mxu1  ;;  %6535 = vmatmul.mubr.msk.bf16.gmra.mxu1 %vm1045_vm2, %v6688_v57  ;;  %v6695_v57 = vld [vmem:[%s8062_s0 + $0x1d8] sm:$0xff]  }
  0xe6   :  { %v5297_v10 = vpack.c.bf16 %v2681_v2, %v2680_v62  ;;  %v5657_v11 = vpack.c.bf16 %v2825_v3, %v2824_v63  ;;  %v2679_v12 = vmax.f32 %v1555_v4, 0.0  ;;  %v2823_v13 = vmax.f32 %v2131_v5, 0.0  ;;  %6394 = vmatprep.mubr.msk.bf16.mxu0 %vm1045_vm2, %v6689_v60  ;;  %6538 = vmatprep.mubr.msk.bf16.mxu1 %vm1045_vm2, %v6690_v61  ;;  %v6697_v61 = vld [vmem:[%s8062_s0 + $0x1e0] sm:$0xff]  }
  0xe7   :  { %v1576_v14 = vadd.f32 %v6296_v8, %v7157_v44  ;;  %v2152_v15 = vadd.f32 %v6440_v9, %v7157_v44  ;;  %v1567_v16 = vpop.f32.mrf.mxu0  ;;  %v2143_v17 = vpop.f32.mrf.mxu1  ;;  %v6698_v62 = vld [vmem:[%s8062_s0 + $0x420] sm:$0xff]  }
  0xe8   :  { %5993 = vst [vmem:[%s8064_s3 + $0x28] sm:$0xff] %v5297_v10   ;;  %6065 = vst [vmem:[%s8064_s3 + $0x268] sm:$0xff] %v5657_v11   ;;  %v5292_v18 = vpack.c.bf16 %v2679_v12, %v2678_v6  ;;  %v5652_v19 = vpack.c.bf16 %v2823_v13, %v2822_v7  ;;  %v1568_v20 = vadd.f32 %v7157_v44, %v1567_v16 }
  0xe9   :  { %v2144_v21 = vadd.f32 %v7157_v44, %v2143_v17  ;;  %v6297_v22 = vpop.f32.mrf.mxu0  ;;  %v6441_v23 = vpop.f32.mrf.mxu1  ;;  %v2684_v30 = vmax.f32 %v1576_v14, 0.0  ;;  %v2828_v31 = vmax.f32 %v2152_v15, 0.0 }
  0xea   :  { %5992 = vst [vmem:[%s8064_s3 + $0x20] sm:$0xff] %v5292_v18   ;;  %6064 = vst [vmem:[%s8064_s3 + $0x260] sm:$0xff] %v5652_v19   ;;  %v1579_v26 = vadd.f32 %v6297_v22, %v7157_v44  ;;  %v2155_v27 = vadd.f32 %v6441_v23, %v7157_v44  ;;  %v2682_v38 = vmax.f32 %v1568_v20, 0.0 }
  0xeb   :  { %v1570_v32 = vpop.f32.mrf.mxu0  ;;  %v2146_v33 = vpop.f32.mrf.mxu1  ;;  %v2826_v39 = vmax.f32 %v2144_v21, 0.0 }
  0xec   :  { %v2685_v34 = vmax.f32 %v1579_v26, 0.0  ;;  %v2829_v35 = vmax.f32 %v2155_v27, 0.0  ;;  %v1571_v36 = vadd.f32 %v7157_v44, %v1570_v32  ;;  %v2147_v37 = vadd.f32 %v7157_v44, %v2146_v33  ;;  %v6700_v26 = vld [vmem:[%s8062_s0 + $0x428] sm:$0xff]  }
  0xed   :  { %v6300_v40 = vpop.f32.mrf.mxu0  ;;  %6395 = vmatmul.mubr.msk.bf16.gmra.mxu0 %vm1045_vm2, %v6691_v24  ;;  %v6444_v41 = vpop.f32.mrf.mxu1  ;;  %6539 = vmatmul.mubr.msk.bf16.gmra.mxu1 %vm1045_vm2, %v6692_v25  ;;  %v6699_v25 = vld [vmem:[%s8062_s0 + $0x1e8] sm:$0xff]  }
  0xee   :  { %v5307_v42 = vpack.c.bf16 %v2685_v34, %v2684_v30  ;;  %v5667_v43 = vpack.c.bf16 %v2829_v35, %v2828_v31  ;;  %v2683_v45 = vmax.f32 %v1571_v36, 0.0  ;;  %v2827_v46 = vmax.f32 %v2147_v37, 0.0  ;;  %6398 = vmatprep.mubr.msk.bf16.mxu0 %vm1045_vm2, %v6693_v28  ;;  %6542 = vmatprep.mubr.msk.bf16.mxu1 %vm1045_vm2, %v6694_v29  ;;  %v6701_v29 = vld [vmem:[%s8062_s0 + $0x1f0] sm:$0xff]  }
  0xef   :  { %v1592_v47 = vadd.f32 %v6300_v40, %v7157_v44  ;;  %v2168_v48 = vadd.f32 %v6444_v41, %v7157_v44  ;;  %v1583_v49 = vpop.f32.mrf.mxu0  ;;  %v2159_v50 = vpop.f32.mrf.mxu1  ;;  %v6702_v30 = vld [vmem:[%s8062_s0 + $0x430] sm:$0xff]  }
  0xf0   :  { %5995 = vst [vmem:[%s8064_s3 + $0x38] sm:$0xff] %v5307_v42   ;;  %6067 = vst [vmem:[%s8064_s3 + $0x278] sm:$0xff] %v5667_v43   ;;  %v5302_v51 = vpack.c.bf16 %v2683_v45, %v2682_v38  ;;  %v5662_v52 = vpack.c.bf16 %v2827_v46, %v2826_v39  ;;  %v1584_v53 = vadd.f32 %v7157_v44, %v1583_v49 }
  0xf1   :  { %v2160_v54 = vadd.f32 %v7157_v44, %v2159_v50  ;;  %v6301_v55 = vpop.f32.mrf.mxu0  ;;  %v6445_v56 = vpop.f32.mrf.mxu1  ;;  %v2688_v63 = vmax.f32 %v1592_v47, 0.0  ;;  %v2832_v0 = vmax.f32 %v2168_v48, 0.0 }
  0xf2   :  { %5994 = vst [vmem:[%s8064_s3 + $0x30] sm:$0xff] %v5302_v51   ;;  %6066 = vst [vmem:[%s8064_s3 + $0x270] sm:$0xff] %v5662_v52   ;;  %v1595_v59 = vadd.f32 %v6301_v55, %v7157_v44  ;;  %v2171_v60 = vadd.f32 %v6445_v56, %v7157_v44  ;;  %v2686_v7 = vmax.f32 %v1584_v53, 0.0 }
  0xf3   :  { %v1586_v1 = vpop.f32.mrf.mxu0  ;;  %v2162_v2 = vpop.f32.mrf.mxu1  ;;  %v2830_v8 = vmax.f32 %v2160_v54, 0.0 }
  0xf4   :  { %v2689_v3 = vmax.f32 %v1595_v59, 0.0  ;;  %v2833_v4 = vmax.f32 %v2171_v60, 0.0  ;;  %v1587_v5 = vadd.f32 %v7157_v44, %v1586_v1  ;;  %v2163_v6 = vadd.f32 %v7157_v44, %v2162_v2  ;;  %v6704_v59 = vld [vmem:[%s8062_s0 + $0x438] sm:$0xff]  }
  0xf5   :  { %v6304_v9 = vpop.f32.mrf.mxu0  ;;  %6399 = vmatmul.mubr.msk.bf16.gmra.mxu0 %vm1045_vm2, %v6695_v57  ;;  %v6448_v10 = vpop.f32.mrf.mxu1  ;;  %6543 = vmatmul.mubr.msk.bf16.gmra.mxu1 %vm1045_vm2, %v6696_v58  ;;  %v6703_v58 = vld [vmem:[%s8062_s0 + $0x1f8] sm:$0xff]  }
  0xf6   :  { %v5317_v11 = vpack.c.bf16 %v2689_v3, %v2688_v63  ;;  %v5677_v12 = vpack.c.bf16 %v2833_v4, %v2832_v0  ;;  %v2687_v13 = vmax.f32 %v1587_v5, 0.0  ;;  %v2831_v14 = vmax.f32 %v2163_v6, 0.0  ;;  %6402 = vmatprep.mubr.msk.bf16.mxu0 %vm1045_vm2, %v6697_v61  ;;  %6546 = vmatprep.mubr.msk.bf16.mxu1 %vm1045_vm2, %v6698_v62  ;;  %v6705_v62 = vld [vmem:[%s8062_s0 + $0x200] sm:$0xff]  }
  0xf7   :  { %v1608_v15 = vadd.f32 %v6304_v9, %v7157_v44  ;;  %v2184_v16 = vadd.f32 %v6448_v10, %v7157_v44  ;;  %v1599_v17 = vpop.f32.mrf.mxu0  ;;  %v2175_v18 = vpop.f32.mrf.mxu1  ;;  %v6706_v63 = vld [vmem:[%s8062_s0 + $0x440] sm:$0xff]  }
  0xf8   :  { %5997 = vst [vmem:[%s8064_s3 + $0x48] sm:$0xff] %v5317_v11   ;;  %6069 = vst [vmem:[%s8064_s3 + $0x288] sm:$0xff] %v5677_v12   ;;  %v5312_v19 = vpack.c.bf16 %v2687_v13, %v2686_v7  ;;  %v5672_v20 = vpack.c.bf16 %v2831_v14, %v2830_v8  ;;  %v1600_v21 = vadd.f32 %v7157_v44, %v1599_v17 }
  0xf9   :  { %v2176_v22 = vadd.f32 %v7157_v44, %v2175_v18  ;;  %v6305_v23 = vpop.f32.mrf.mxu0  ;;  %v6449_v24 = vpop.f32.mrf.mxu1  ;;  %v2692_v31 = vmax.f32 %v1608_v15, 0.0  ;;  %v2836_v32 = vmax.f32 %v2184_v16, 0.0 }
  0xfa   :  { %5996 = vst [vmem:[%s8064_s3 + $0x40] sm:$0xff] %v5312_v19   ;;  %6068 = vst [vmem:[%s8064_s3 + $0x280] sm:$0xff] %v5672_v20   ;;  %v1611_v27 = vadd.f32 %v6305_v23, %v7157_v44  ;;  %v2187_v28 = vadd.f32 %v6449_v24, %v7157_v44  ;;  %v2690_v39 = vmax.f32 %v1600_v21, 0.0 }
  0xfb   :  { %v1602_v33 = vpop.f32.mrf.mxu0  ;;  %v2178_v34 = vpop.f32.mrf.mxu1  ;;  %v2834_v40 = vmax.f32 %v2176_v22, 0.0 }
  0xfc   :  { %v2693_v35 = vmax.f32 %v1611_v27, 0.0  ;;  %v2837_v36 = vmax.f32 %v2187_v28, 0.0  ;;  %v1603_v37 = vadd.f32 %v7157_v44, %v1602_v33  ;;  %v2179_v38 = vadd.f32 %v7157_v44, %v2178_v34  ;;  %v6708_v27 = vld [vmem:[%s8062_s0 + $0x448] sm:$0xff]  }
  0xfd   :  { %v6308_v41 = vpop.f32.mrf.mxu0  ;;  %6403 = vmatmul.mubr.msk.bf16.gmra.mxu0 %vm1045_vm2, %v6699_v25  ;;  %v6452_v42 = vpop.f32.mrf.mxu1  ;;  %6547 = vmatmul.mubr.msk.bf16.gmra.mxu1 %vm1045_vm2, %v6700_v26  ;;  %v6707_v26 = vld [vmem:[%s8062_s0 + $0x208] sm:$0xff]  }
  0xfe   :  { %v5327_v43 = vpack.c.bf16 %v2693_v35, %v2692_v31  ;;  %v5687_v45 = vpack.c.bf16 %v2837_v36, %v2836_v32  ;;  %v2691_v46 = vmax.f32 %v1603_v37, 0.0  ;;  %v2835_v47 = vmax.f32 %v2179_v38, 0.0  ;;  %6406 = vmatprep.mubr.msk.bf16.mxu0 %vm1045_vm2, %v6701_v29  ;;  %6550 = vmatprep.mubr.msk.bf16.mxu1 %vm1045_vm2, %v6702_v30  ;;  %v6709_v30 = vld [vmem:[%s8062_s0 + $0x210] sm:$0xff]  }
  0xff   :  { %v1624_v48 = vadd.f32 %v6308_v41, %v7157_v44  ;;  %v2200_v49 = vadd.f32 %v6452_v42, %v7157_v44  ;;  %v1615_v50 = vpop.f32.mrf.mxu0  ;;  %v2191_v51 = vpop.f32.mrf.mxu1  ;;  %v6710_v31 = vld [vmem:[%s8062_s0 + $0x450] sm:$0xff]  }
 0x100   :  { %5999 = vst [vmem:[%s8064_s3 + $0x58] sm:$0xff] %v5327_v43   ;;  %6071 = vst [vmem:[%s8064_s3 + $0x298] sm:$0xff] %v5687_v45   ;;  %v5322_v52 = vpack.c.bf16 %v2691_v46, %v2690_v39  ;;  %v5682_v53 = vpack.c.bf16 %v2835_v47, %v2834_v40  ;;  %v1616_v54 = vadd.f32 %v7157_v44, %v1615_v50 }
 0x101   :  { %v2192_v55 = vadd.f32 %v7157_v44, %v2191_v51  ;;  %v6309_v56 = vpop.f32.mrf.mxu0  ;;  %v6453_v57 = vpop.f32.mrf.mxu1  ;;  %v2696_v0 = vmax.f32 %v1624_v48, 0.0  ;;  %v2840_v1 = vmax.f32 %v2200_v49, 0.0 }
 0x102   :  { %5998 = vst [vmem:[%s8064_s3 + $0x50] sm:$0xff] %v5322_v52   ;;  %6070 = vst [vmem:[%s8064_s3 + $0x290] sm:$0xff] %v5682_v53   ;;  %v1627_v60 = vadd.f32 %v6309_v56, %v7157_v44  ;;  %v2203_v61 = vadd.f32 %v6453_v57, %v7157_v44  ;;  %v2694_v8 = vmax.f32 %v1616_v54, 0.0 }
 0x103   :  { %v1618_v2 = vpop.f32.mrf.mxu0  ;;  %v2194_v3 = vpop.f32.mrf.mxu1  ;;  %v2838_v9 = vmax.f32 %v2192_v55, 0.0 }
 0x104   :  { %v2697_v4 = vmax.f32 %v1627_v60, 0.0  ;;  %v2841_v5 = vmax.f32 %v2203_v61, 0.0  ;;  %v1619_v6 = vadd.f32 %v7157_v44, %v1618_v2  ;;  %v2195_v7 = vadd.f32 %v7157_v44, %v2194_v3  ;;  %v6712_v60 = vld [vmem:[%s8062_s0 + $0x458] sm:$0xff]  }
 0x105   :  { %v6312_v10 = vpop.f32.mrf.mxu0  ;;  %6407 = vmatmul.mubr.msk.bf16.gmra.mxu0 %vm1045_vm2, %v6703_v58  ;;  %v6456_v11 = vpop.f32.mrf.mxu1  ;;  %6551 = vmatmul.mubr.msk.bf16.gmra.mxu1 %vm1045_vm2, %v6704_v59  ;;  %v6711_v59 = vld [vmem:[%s8062_s0 + $0x218] sm:$0xff]  }
 0x106   :  { %v5337_v12 = vpack.c.bf16 %v2697_v4, %v2696_v0  ;;  %v5697_v13 = vpack.c.bf16 %v2841_v5, %v2840_v1  ;;  %v2695_v14 = vmax.f32 %v1619_v6, 0.0  ;;  %v2839_v15 = vmax.f32 %v2195_v7, 0.0  ;;  %6410 = vmatprep.mubr.msk.bf16.mxu0 %vm1045_vm2, %v6705_v62  ;;  %6554 = vmatprep.mubr.msk.bf16.mxu1 %vm1045_vm2, %v6706_v63  ;;  %v6713_v63 = vld [vmem:[%s8062_s0 + $0x220] sm:$0xff]  }
 0x107   :  { %v1640_v16 = vadd.f32 %v6312_v10, %v7157_v44  ;;  %v2216_v17 = vadd.f32 %v6456_v11, %v7157_v44  ;;  %v1631_v18 = vpop.f32.mrf.mxu0  ;;  %v2207_v19 = vpop.f32.mrf.mxu1  ;;  %v6714_v0 = vld [vmem:[%s8062_s0 + $0x460] sm:$0xff]  }
 0x108   :  { %6001 = vst [vmem:[%s8064_s3 + $0x68] sm:$0xff] %v5337_v12   ;;  %6073 = vst [vmem:[%s8064_s3 + $0x2a8] sm:$0xff] %v5697_v13   ;;  %v5332_v20 = vpack.c.bf16 %v2695_v14, %v2694_v8  ;;  %v5692_v21 = vpack.c.bf16 %v2839_v15, %v2838_v9  ;;  %v1632_v22 = vadd.f32 %v7157_v44, %v1631_v18 }
 0x109   :  { %v2208_v23 = vadd.f32 %v7157_v44, %v2207_v19  ;;  %v6313_v24 = vpop.f32.mrf.mxu0  ;;  %v6457_v25 = vpop.f32.mrf.mxu1  ;;  %v2700_v32 = vmax.f32 %v1640_v16, 0.0  ;;  %v2844_v33 = vmax.f32 %v2216_v17, 0.0 }
 0x10a   :  { %6000 = vst [vmem:[%s8064_s3 + $0x60] sm:$0xff] %v5332_v20   ;;  %6072 = vst [vmem:[%s8064_s3 + $0x2a0] sm:$0xff] %v5692_v21   ;;  %v1643_v28 = vadd.f32 %v6313_v24, %v7157_v44  ;;  %v2219_v29 = vadd.f32 %v6457_v25, %v7157_v44  ;;  %v2698_v40 = vmax.f32 %v1632_v22, 0.0 }
 0x10b   :  { %v1634_v34 = vpop.f32.mrf.mxu0  ;;  %v2210_v35 = vpop.f32.mrf.mxu1  ;;  %v2842_v41 = vmax.f32 %v2208_v23, 0.0 }
 0x10c   :  { %v2701_v36 = vmax.f32 %v1643_v28, 0.0  ;;  %v2845_v37 = vmax.f32 %v2219_v29, 0.0  ;;  %v1635_v38 = vadd.f32 %v7157_v44, %v1634_v34  ;;  %v2211_v39 = vadd.f32 %v7157_v44, %v2210_v35  ;;  %v6716_v28 = vld [vmem:[%s8062_s0 + $0x468] sm:$0xff]  }
 0x10d   :  { %v6316_v42 = vpop.f32.mrf.mxu0  ;;  %6411 = vmatmul.mubr.msk.bf16.gmra.mxu0 %vm1045_vm2, %v6707_v26  ;;  %v6460_v43 = vpop.f32.mrf.mxu1  ;;  %6555 = vmatmul.mubr.msk.bf16.gmra.mxu1 %vm1045_vm2, %v6708_v27  ;;  %v6715_v27 = vld [vmem:[%s8062_s0 + $0x228] sm:$0xff]  }
 0x10e   :  { %v5347_v45 = vpack.c.bf16 %v2701_v36, %v2700_v32  ;;  %v5707_v46 = vpack.c.bf16 %v2845_v37, %v2844_v33  ;;  %v2699_v47 = vmax.f32 %v1635_v38, 0.0  ;;  %v2843_v48 = vmax.f32 %v2211_v39, 0.0  ;;  %6414 = vmatprep.mubr.msk.bf16.mxu0 %vm1045_vm2, %v6709_v30  ;;  %6558 = vmatprep.mubr.msk.bf16.mxu1 %vm1045_vm2, %v6710_v31  ;;  %v6717_v31 = vld [vmem:[%s8062_s0 + $0x230] sm:$0xff]  }
 0x10f   :  { %v1656_v49 = vadd.f32 %v6316_v42, %v7157_v44  ;;  %v2232_v50 = vadd.f32 %v6460_v43, %v7157_v44  ;;  %v1647_v51 = vpop.f32.mrf.mxu0  ;;  %v2223_v52 = vpop.f32.mrf.mxu1  ;;  %v6718_v32 = vld [vmem:[%s8062_s0 + $0x470] sm:$0xff]  }
 0x110   :  { %6003 = vst [vmem:[%s8064_s3 + $0x78] sm:$0xff] %v5347_v45   ;;  %6075 = vst [vmem:[%s8064_s3 + $0x2b8] sm:$0xff] %v5707_v46   ;;  %v5342_v53 = vpack.c.bf16 %v2699_v47, %v2698_v40  ;;  %v5702_v54 = vpack.c.bf16 %v2843_v48, %v2842_v41  ;;  %v1648_v55 = vadd.f32 %v7157_v44, %v1647_v51 }
 0x111   :  { %v2224_v56 = vadd.f32 %v7157_v44, %v2223_v52  ;;  %v6317_v57 = vpop.f32.mrf.mxu0  ;;  %v6461_v58 = vpop.f32.mrf.mxu1  ;;  %v2704_v1 = vmax.f32 %v1656_v49, 0.0  ;;  %v2848_v2 = vmax.f32 %v2232_v50, 0.0 }
 0x112   :  { %6002 = vst [vmem:[%s8064_s3 + $0x70] sm:$0xff] %v5342_v53   ;;  %6074 = vst [vmem:[%s8064_s3 + $0x2b0] sm:$0xff] %v5702_v54   ;;  %v1659_v61 = vadd.f32 %v6317_v57, %v7157_v44  ;;  %v2235_v62 = vadd.f32 %v6461_v58, %v7157_v44  ;;  %v2702_v9 = vmax.f32 %v1648_v55, 0.0 }
 0x113   :  { %v1650_v3 = vpop.f32.mrf.mxu0  ;;  %v2226_v4 = vpop.f32.mrf.mxu1  ;;  %v2846_v10 = vmax.f32 %v2224_v56, 0.0 }
 0x114   :  { %v2705_v5 = vmax.f32 %v1659_v61, 0.0  ;;  %v2849_v6 = vmax.f32 %v2235_v62, 0.0  ;;  %v1651_v7 = vadd.f32 %v7157_v44, %v1650_v3  ;;  %v2227_v8 = vadd.f32 %v7157_v44, %v2226_v4  ;;  %v6720_v61 = vld [vmem:[%s8062_s0 + $0x478] sm:$0xff]  }
 0x115   :  { %v6320_v11 = vpop.f32.mrf.mxu0  ;;  %6415 = vmatmul.mubr.msk.bf16.gmra.mxu0 %vm1045_vm2, %v6711_v59  ;;  %v6464_v12 = vpop.f32.mrf.mxu1  ;;  %6559 = vmatmul.mubr.msk.bf16.gmra.mxu1 %vm1045_vm2, %v6712_v60  ;;  %v6719_v60 = vld [vmem:[%s8062_s0 + $0x238] sm:$0xff]  }
 0x116   :  { %v5357_v13 = vpack.c.bf16 %v2705_v5, %v2704_v1  ;;  %v5717_v14 = vpack.c.bf16 %v2849_v6, %v2848_v2  ;;  %v2703_v15 = vmax.f32 %v1651_v7, 0.0  ;;  %v2847_v16 = vmax.f32 %v2227_v8, 0.0  ;;  %6418 = vmatprep.mubr.msk.bf16.mxu0 %vm1045_vm2, %v6713_v63  ;;  %6562 = vmatprep.mubr.msk.bf16.mxu1 %vm1045_vm2, %v6714_v0 }
 0x117   :  { %v1672_v17 = vadd.f32 %v6320_v11, %v7157_v44  ;;  %v2248_v18 = vadd.f32 %v6464_v12, %v7157_v44  ;;  %v1663_v19 = vpop.f32.mrf.mxu0  ;;  %v2239_v20 = vpop.f32.mrf.mxu1 }
 0x118   :  { %6005 = vst [vmem:[%s8064_s3 + $0x88] sm:$0xff] %v5357_v13   ;;  %6077 = vst [vmem:[%s8064_s3 + $0x2c8] sm:$0xff] %v5717_v14   ;;  %v5352_v21 = vpack.c.bf16 %v2703_v15, %v2702_v9  ;;  %v5712_v22 = vpack.c.bf16 %v2847_v16, %v2846_v10  ;;  %v1664_v23 = vadd.f32 %v7157_v44, %v1663_v19 }
 0x119   :  { %v2240_v24 = vadd.f32 %v7157_v44, %v2239_v20  ;;  %v6321_v25 = vpop.f32.mrf.mxu0  ;;  %v6465_v26 = vpop.f32.mrf.mxu1  ;;  %v2708_v33 = vmax.f32 %v1672_v17, 0.0  ;;  %v2852_v34 = vmax.f32 %v2248_v18, 0.0 }
 0x11a   :  { %6004 = vst [vmem:[%s8064_s3 + $0x80] sm:$0xff] %v5352_v21   ;;  %6076 = vst [vmem:[%s8064_s3 + $0x2c0] sm:$0xff] %v5712_v22   ;;  %v1675_v29 = vadd.f32 %v6321_v25, %v7157_v44  ;;  %v2251_v30 = vadd.f32 %v6465_v26, %v7157_v44  ;;  %v2706_v41 = vmax.f32 %v1664_v23, 0.0 }
 0x11b   :  { %v1666_v35 = vpop.f32.mrf.mxu0  ;;  %v2242_v36 = vpop.f32.mrf.mxu1  ;;  %v2850_v42 = vmax.f32 %v2240_v24, 0.0 }
 0x11c   :  { %v2709_v37 = vmax.f32 %v1675_v29, 0.0  ;;  %v2853_v38 = vmax.f32 %v2251_v30, 0.0  ;;  %v1667_v39 = vadd.f32 %v7157_v44, %v1666_v35  ;;  %v2243_v40 = vadd.f32 %v7157_v44, %v2242_v36 }
 0x11d   :  { %v6324_v43 = vpop.f32.mrf.mxu0  ;;  %6419 = vmatmul.mubr.msk.bf16.gmra.mxu0 %vm1045_vm2, %v6715_v27  ;;  %v6468_v45 = vpop.f32.mrf.mxu1  ;;  %6563 = vmatmul.mubr.msk.bf16.gmra.mxu1 %vm1045_vm2, %v6716_v28 }
 0x11e   :  { %v5367_v46 = vpack.c.bf16 %v2709_v37, %v2708_v33  ;;  %v5727_v47 = vpack.c.bf16 %v2853_v38, %v2852_v34  ;;  %v2707_v48 = vmax.f32 %v1667_v39, 0.0  ;;  %v2851_v49 = vmax.f32 %v2243_v40, 0.0  ;;  %6422 = vmatprep.mubr.msk.bf16.mxu0 %vm1045_vm2, %v6717_v31  ;;  %6566 = vmatprep.mubr.msk.bf16.mxu1 %vm1045_vm2, %v6718_v32 }
 0x11f   :  { %v1688_v50 = vadd.f32 %v6324_v43, %v7157_v44  ;;  %v2264_v51 = vadd.f32 %v6468_v45, %v7157_v44  ;;  %v1679_v52 = vpop.f32.mrf.mxu0  ;;  %v2255_v53 = vpop.f32.mrf.mxu1 }
 0x120   :  { %6007 = vst [vmem:[%s8064_s3 + $0x98] sm:$0xff] %v5367_v46   ;;  %6079 = vst [vmem:[%s8064_s3 + $0x2d8] sm:$0xff] %v5727_v47   ;;  %v5362_v54 = vpack.c.bf16 %v2707_v48, %v2706_v41  ;;  %v5722_v55 = vpack.c.bf16 %v2851_v49, %v2850_v42  ;;  %v1680_v56 = vadd.f32 %v7157_v44, %v1679_v52 }
 0x121   :  { %v2256_v57 = vadd.f32 %v7157_v44, %v2255_v53  ;;  %v6325_v58 = vpop.f32.mrf.mxu0  ;;  %v6469_v59 = vpop.f32.mrf.mxu1  ;;  %v2712_v0 = vmax.f32 %v1688_v50, 0.0  ;;  %v2856_v1 = vmax.f32 %v2264_v51, 0.0 }
 0x122   :  { %6006 = vst [vmem:[%s8064_s3 + $0x90] sm:$0xff] %v5362_v54   ;;  %6078 = vst [vmem:[%s8064_s3 + $0x2d0] sm:$0xff] %v5722_v55   ;;  %v1691_v62 = vadd.f32 %v6325_v58, %v7157_v44  ;;  %v2267_v63 = vadd.f32 %v6469_v59, %v7157_v44  ;;  %v2710_v8 = vmax.f32 %v1680_v56, 0.0 }
 0x123   :  { %v1682_v2 = vpop.f32.mrf.mxu0  ;;  %v2258_v3 = vpop.f32.mrf.mxu1  ;;  %v2854_v9 = vmax.f32 %v2256_v57, 0.0 }
 0x124   :  { %v2713_v4 = vmax.f32 %v1691_v62, 0.0  ;;  %v2857_v5 = vmax.f32 %v2267_v63, 0.0  ;;  %v1683_v6 = vadd.f32 %v7157_v44, %v1682_v2  ;;  %v2259_v7 = vadd.f32 %v7157_v44, %v2258_v3 }
 0x125   :  { %v6328_v10 = vpop.f32.mrf.mxu0  ;;  %6423 = vmatmul.mubr.msk.bf16.gmra.mxu0 %vm1045_vm2, %v6719_v60  ;;  %v6472_v11 = vpop.f32.mrf.mxu1  ;;  %6567 = vmatmul.mubr.msk.bf16.gmra.mxu1 %vm1045_vm2, %v6720_v61 }
 0x126   :  { %v5377_v12 = vpack.c.bf16 %v2713_v4, %v2712_v0  ;;  %v5737_v13 = vpack.c.bf16 %v2857_v5, %v2856_v1  ;;  %v2711_v14 = vmax.f32 %v1683_v6, 0.0  ;;  %v2855_v15 = vmax.f32 %v2259_v7, 0.0 }
 0x127   :  { %v1704_v16 = vadd.f32 %v6328_v10, %v7157_v44  ;;  %v2280_v17 = vadd.f32 %v6472_v11, %v7157_v44  ;;  %v1695_v18 = vpop.f32.mrf.mxu0  ;;  %v2271_v19 = vpop.f32.mrf.mxu1 }
 0x128   :  { %6009 = vst [vmem:[%s8064_s3 + $0xa8] sm:$0xff] %v5377_v12   ;;  %6081 = vst [vmem:[%s8064_s3 + $0x2e8] sm:$0xff] %v5737_v13   ;;  %v5372_v20 = vpack.c.bf16 %v2711_v14, %v2710_v8  ;;  %v5732_v21 = vpack.c.bf16 %v2855_v15, %v2854_v9  ;;  %v1696_v22 = vadd.f32 %v7157_v44, %v1695_v18 }
 0x129   :  { %v2272_v23 = vadd.f32 %v7157_v44, %v2271_v19  ;;  %v6329_v24 = vpop.f32.mrf.mxu0  ;;  %v6473_v25 = vpop.f32.mrf.mxu1  ;;  %v2716_v28 = vmax.f32 %v1704_v16, 0.0  ;;  %v2860_v29 = vmax.f32 %v2280_v17, 0.0  ;;  %v7598_v19 = vld [vmem:[%s8063_s2] ss:$0 sm:$0xff] }
 0x12a   :  { %6008 = vst [vmem:[%s8064_s3 + $0xa0] sm:$0xff] %v5372_v20   ;;  %6080 = vst [vmem:[%s8064_s3 + $0x2e0] sm:$0xff] %v5732_v21   ;;  %v1707_v26 = vadd.f32 %v6329_v24, %v7157_v44  ;;  %v2283_v27 = vadd.f32 %v6473_v25, %v7157_v44  ;;  %v2714_v36 = vmax.f32 %v1696_v22, 0.0 }
 0x12b   :  { %v1698_v30 = vpop.f32.mrf.mxu0  ;;  %v2274_v31 = vpop.f32.mrf.mxu1  ;;  %v2858_v37 = vmax.f32 %v2272_v23, 0.0 }
 0x12c   :  { %v2717_v32 = vmax.f32 %v1707_v26, 0.0  ;;  %v2861_v33 = vmax.f32 %v2283_v27, 0.0  ;;  %v1699_v34 = vadd.f32 %v7157_v44, %v1698_v30  ;;  %v2275_v35 = vadd.f32 %v7157_v44, %v2274_v31 }
 0x12d   :  { %v6332_v38 = vpop.f32.mrf.mxu0  ;;  %v6476_v39 = vpop.f32.mrf.mxu1 }
 0x12e   :  { %v5387_v40 = vpack.c.bf16 %v2717_v32, %v2716_v28  ;;  %v5747_v41 = vpack.c.bf16 %v2861_v33, %v2860_v29  ;;  %v2715_v42 = vmax.f32 %v1699_v34, 0.0  ;;  %v2859_v43 = vmax.f32 %v2275_v35, 0.0 }
 0x12f   :  { %v1720_v45 = vadd.f32 %v6332_v38, %v7157_v44  ;;  %v2296_v46 = vadd.f32 %v6476_v39, %v7157_v44  ;;  %v1711_v47 = vpop.f32.mrf.mxu0  ;;  %v2287_v48 = vpop.f32.mrf.mxu1 }
 0x130   :  { %6011 = vst [vmem:[%s8064_s3 + $0xb8] sm:$0xff] %v5387_v40   ;;  %6083 = vst [vmem:[%s8064_s3 + $0x2f8] sm:$0xff] %v5747_v41   ;;  %v5382_v49 = vpack.c.bf16 %v2715_v42, %v2714_v36  ;;  %v5742_v50 = vpack.c.bf16 %v2859_v43, %v2858_v37  ;;  %v1712_v51 = vadd.f32 %v7157_v44, %v1711_v47 }
 0x131   :  { %v2288_v52 = vadd.f32 %v7157_v44, %v2287_v48  ;;  %v6333_v53 = vpop.f32.mrf.mxu0  ;;  %v6477_v54 = vpop.f32.mrf.mxu1  ;;  %v2720_v57 = vmax.f32 %v1720_v45, 0.0  ;;  %v2864_v58 = vmax.f32 %v2296_v46, 0.0 }
 0x132   :  { %6010 = vst [vmem:[%s8064_s3 + $0xb0] sm:$0xff] %v5382_v49   ;;  %6082 = vst [vmem:[%s8064_s3 + $0x2f0] sm:$0xff] %v5742_v50   ;;  %v1723_v55 = vadd.f32 %v6333_v53, %v7157_v44  ;;  %v2299_v56 = vadd.f32 %v6477_v54, %v7157_v44  ;;  %v2718_v1 = vmax.f32 %v1712_v51, 0.0 }
 0x133   :  { %v1714_v59 = vpop.f32.mrf.mxu0  ;;  %v2290_v60 = vpop.f32.mrf.mxu1  ;;  %v2862_v2 = vmax.f32 %v2288_v52, 0.0 }
 0x134   :  { %v2721_v61 = vmax.f32 %v1723_v55, 0.0  ;;  %v2865_v62 = vmax.f32 %v2299_v56, 0.0  ;;  %v1715_v63 = vadd.f32 %v7157_v44, %v1714_v59  ;;  %v2291_v0 = vadd.f32 %v7157_v44, %v2290_v60 }
 0x135   :  { %v6336_v3 = vpop.f32.mrf.mxu0  ;;  %v6480_v4 = vpop.f32.mrf.mxu1 }
 0x136   :  { %v5397_v5 = vpack.c.bf16 %v2721_v61, %v2720_v57  ;;  %v5757_v6 = vpack.c.bf16 %v2865_v62, %v2864_v58  ;;  %v2719_v7 = vmax.f32 %v1715_v63, 0.0  ;;  %v2863_v8 = vmax.f32 %v2291_v0, 0.0 }
 0x137   :  { %v1736_v9 = vadd.f32 %v6336_v3, %v7157_v44  ;;  %v2312_v10 = vadd.f32 %v6480_v4, %v7157_v44  ;;  %v1727_v11 = vpop.f32.mrf.mxu0  ;;  %v2303_v12 = vpop.f32.mrf.mxu1 }
 0x138   :  { %6013 = vst [vmem:[%s8064_s3 + $0xc8] sm:$0xff] %v5397_v5   ;;  %6085 = vst [vmem:[%s8064_s3 + $0x308] sm:$0xff] %v5757_v6   ;;  %v5392_v13 = vpack.c.bf16 %v2719_v7, %v2718_v1  ;;  %v5752_v14 = vpack.c.bf16 %v2863_v8, %v2862_v2  ;;  %v1728_v15 = vadd.f32 %v7157_v44, %v1727_v11 }
 0x139   :  { %v2304_v16 = vadd.f32 %v7157_v44, %v2303_v12  ;;  %v6337_v17 = vpop.f32.mrf.mxu0  ;;  %v6481_v18 = vpop.f32.mrf.mxu1  ;;  %v2724_v44 = vmax.f32 %v1736_v9, 0.0  ;;  %v2868_v22 = vmax.f32 %v2312_v10, 0.0 }
 0x13a   :  { %6012 = vst [vmem:[%s8064_s3 + $0xc0] sm:$0xff] %v5392_v13   ;;  %6084 = vst [vmem:[%s8064_s3 + $0x300] sm:$0xff] %v5752_v14   ;;  %v1739_v20 = vadd.f32 %v7598_v19, %v6337_v17  ;;  %v2315_v21 = vadd.f32 %v7598_v19, %v6481_v18  ;;  %v2722_v29 = vmax.f32 %v1728_v15, 0.0 }
 0x13b   :  { %v1730_v23 = vpop.f32.mrf.mxu0  ;;  %v2306_v24 = vpop.f32.mrf.mxu1  ;;  %v2866_v30 = vmax.f32 %v2304_v16, 0.0 }
 0x13c   :  { %v2725_v25 = vmax.f32 %v1739_v20, 0.0  ;;  %v2869_v26 = vmax.f32 %v2315_v21, 0.0  ;;  %v1731_v27 = vadd.f32 %v7598_v19, %v1730_v23  ;;  %v2307_v28 = vadd.f32 %v7598_v19, %v2306_v24 }
 0x13d   :  { %v6340_v31 = vpop.f32.mrf.mxu0  ;;  %v6484_v32 = vpop.f32.mrf.mxu1 }
 0x13e   :  { %v5407_v33 = vpack.c.bf16 %v2725_v25, %v2724_v44  ;;  %v5767_v34 = vpack.c.bf16 %v2869_v26, %v2868_v22  ;;  %v2723_v35 = vmax.f32 %v1731_v27, 0.0  ;;  %v2867_v36 = vmax.f32 %v2307_v28, 0.0 }
 0x13f   :  { %v1752_v37 = vadd.f32 %v7598_v19, %v6340_v31  ;;  %v2328_v38 = vadd.f32 %v7598_v19, %v6484_v32  ;;  %v1743_v39 = vpop.f32.mrf.mxu0  ;;  %v2319_v40 = vpop.f32.mrf.mxu1 }
 0x140   :  { %6015 = vst [vmem:[%s8064_s3 + $0xd8] sm:$0xff] %v5407_v33   ;;  %6087 = vst [vmem:[%s8064_s3 + $0x318] sm:$0xff] %v5767_v34   ;;  %v5402_v41 = vpack.c.bf16 %v2723_v35, %v2722_v29  ;;  %v5762_v42 = vpack.c.bf16 %v2867_v36, %v2866_v30  ;;  %v1744_v43 = vadd.f32 %v7598_v19, %v1743_v39 }
 0x141   :  { %v2320_v45 = vadd.f32 %v7598_v19, %v2319_v40  ;;  %v6341_v46 = vpop.f32.mrf.mxu0  ;;  %v6485_v47 = vpop.f32.mrf.mxu1  ;;  %v2728_v50 = vmax.f32 %v1752_v37, 0.0  ;;  %v2872_v51 = vmax.f32 %v2328_v38, 0.0 }
 0x142   :  { %6014 = vst [vmem:[%s8064_s3 + $0xd0] sm:$0xff] %v5402_v41   ;;  %6086 = vst [vmem:[%s8064_s3 + $0x310] sm:$0xff] %v5762_v42   ;;  %v1755_v48 = vadd.f32 %v7598_v19, %v6341_v46  ;;  %v2331_v49 = vadd.f32 %v7598_v19, %v6485_v47  ;;  %v2726_v58 = vmax.f32 %v1744_v43, 0.0 }
 0x143   :  { %v1746_v52 = vpop.f32.mrf.mxu0  ;;  %v2322_v53 = vpop.f32.mrf.mxu1  ;;  %v2870_v59 = vmax.f32 %v2320_v45, 0.0 }
 0x144   :  { %v2729_v54 = vmax.f32 %v1755_v48, 0.0  ;;  %v2873_v55 = vmax.f32 %v2331_v49, 0.0  ;;  %v1747_v56 = vadd.f32 %v7598_v19, %v1746_v52  ;;  %v2323_v57 = vadd.f32 %v7598_v19, %v2322_v53 }
 0x145   :  { %v6344_v60 = vpop.f32.mrf.mxu0  ;;  %v6488_v61 = vpop.f32.mrf.mxu1 }
 0x146   :  { %v5417_v62 = vpack.c.bf16 %v2729_v54, %v2728_v50  ;;  %v5777_v63 = vpack.c.bf16 %v2873_v55, %v2872_v51  ;;  %v2727_v0 = vmax.f32 %v1747_v56, 0.0  ;;  %v2871_v1 = vmax.f32 %v2323_v57, 0.0 }
 0x147   :  { %v1768_v2 = vadd.f32 %v7598_v19, %v6344_v60  ;;  %v2344_v3 = vadd.f32 %v7598_v19, %v6488_v61  ;;  %v1759_v4 = vpop.f32.mrf.mxu0  ;;  %v2335_v5 = vpop.f32.mrf.mxu1 }
 0x148   :  { %6017 = vst [vmem:[%s8064_s3 + $0xe8] sm:$0xff] %v5417_v62   ;;  %6089 = vst [vmem:[%s8064_s3 + $0x328] sm:$0xff] %v5777_v63   ;;  %v5412_v6 = vpack.c.bf16 %v2727_v0, %v2726_v58  ;;  %v5772_v7 = vpack.c.bf16 %v2871_v1, %v2870_v59  ;;  %v1760_v8 = vadd.f32 %v7598_v19, %v1759_v4 }
 0x149   :  { %v2336_v9 = vadd.f32 %v7598_v19, %v2335_v5  ;;  %v6345_v10 = vpop.f32.mrf.mxu0  ;;  %v6489_v11 = vpop.f32.mrf.mxu1  ;;  %v2732_v14 = vmax.f32 %v1768_v2, 0.0  ;;  %v2876_v15 = vmax.f32 %v2344_v3, 0.0 }
 0x14a   :  { %6016 = vst [vmem:[%s8064_s3 + $0xe0] sm:$0xff] %v5412_v6   ;;  %6088 = vst [vmem:[%s8064_s3 + $0x320] sm:$0xff] %v5772_v7   ;;  %v1771_v12 = vadd.f32 %v7598_v19, %v6345_v10  ;;  %v2347_v13 = vadd.f32 %v7598_v19, %v6489_v11  ;;  %v2730_v22 = vmax.f32 %v1760_v8, 0.0 }
 0x14b   :  { %v1762_v16 = vpop.f32.mrf.mxu0  ;;  %v2338_v17 = vpop.f32.mrf.mxu1  ;;  %v2874_v23 = vmax.f32 %v2336_v9, 0.0 }
 0x14c   :  { %v2733_v18 = vmax.f32 %v1771_v12, 0.0  ;;  %v2877_v20 = vmax.f32 %v2347_v13, 0.0  ;;  %v1763_v21 = vadd.f32 %v7598_v19, %v1762_v16  ;;  %v2339_v44 = vadd.f32 %v7598_v19, %v2338_v17 }
 0x14d   :  { %v6348_v24 = vpop.f32.mrf.mxu0  ;;  %v6492_v25 = vpop.f32.mrf.mxu1 }
 0x14e   :  { %v5427_v26 = vpack.c.bf16 %v2733_v18, %v2732_v14  ;;  %v5787_v27 = vpack.c.bf16 %v2877_v20, %v2876_v15  ;;  %v2731_v28 = vmax.f32 %v1763_v21, 0.0  ;;  %v2875_v29 = vmax.f32 %v2339_v44, 0.0 }
 0x14f   :  { %v1784_v30 = vadd.f32 %v7598_v19, %v6348_v24  ;;  %v2360_v31 = vadd.f32 %v7598_v19, %v6492_v25  ;;  %v1775_v32 = vpop.f32.mrf.mxu0  ;;  %v2351_v33 = vpop.f32.mrf.mxu1 }
 0x150   :  { %6019 = vst [vmem:[%s8064_s3 + $0xf8] sm:$0xff] %v5427_v26   ;;  %6091 = vst [vmem:[%s8064_s3 + $0x338] sm:$0xff] %v5787_v27   ;;  %v5422_v34 = vpack.c.bf16 %v2731_v28, %v2730_v22  ;;  %v5782_v35 = vpack.c.bf16 %v2875_v29, %v2874_v23  ;;  %v1776_v36 = vadd.f32 %v7598_v19, %v1775_v32 }
 0x151   :  { %v2352_v37 = vadd.f32 %v7598_v19, %v2351_v33  ;;  %v6349_v38 = vpop.f32.mrf.mxu0  ;;  %v6493_v39 = vpop.f32.mrf.mxu1  ;;  %v2736_v42 = vmax.f32 %v1784_v30, 0.0  ;;  %v2880_v43 = vmax.f32 %v2360_v31, 0.0 }
 0x152   :  { %6018 = vst [vmem:[%s8064_s3 + $0xf0] sm:$0xff] %v5422_v34   ;;  %6090 = vst [vmem:[%s8064_s3 + $0x330] sm:$0xff] %v5782_v35   ;;  %v1787_v40 = vadd.f32 %v7598_v19, %v6349_v38  ;;  %v2363_v41 = vadd.f32 %v7598_v19, %v6493_v39  ;;  %v2734_v51 = vmax.f32 %v1776_v36, 0.0 }
 0x153   :  { %v1778_v45 = vpop.f32.mrf.mxu0  ;;  %v2354_v46 = vpop.f32.mrf.mxu1  ;;  %v2878_v52 = vmax.f32 %v2352_v37, 0.0 }
 0x154   :  { %v2737_v47 = vmax.f32 %v1787_v40, 0.0  ;;  %v2881_v48 = vmax.f32 %v2363_v41, 0.0  ;;  %v1779_v49 = vadd.f32 %v7598_v19, %v1778_v45  ;;  %v2355_v50 = vadd.f32 %v7598_v19, %v2354_v46 }
 0x155   :  { %v6352_v53 = vpop.f32.mrf.mxu0  ;;  %v6496_v54 = vpop.f32.mrf.mxu1 }
 0x156   :  { %v5437_v55 = vpack.c.bf16 %v2737_v47, %v2736_v42  ;;  %v5797_v56 = vpack.c.bf16 %v2881_v48, %v2880_v43  ;;  %v2735_v57 = vmax.f32 %v1779_v49, 0.0  ;;  %v2879_v58 = vmax.f32 %v2355_v50, 0.0 }
 0x157   :  { %v1800_v59 = vadd.f32 %v7598_v19, %v6352_v53  ;;  %v2376_v60 = vadd.f32 %v7598_v19, %v6496_v54  ;;  %v1791_v61 = vpop.f32.mrf.mxu0  ;;  %v2367_v62 = vpop.f32.mrf.mxu1 }
 0x158   :  { %6021 = vst [vmem:[%s8064_s3 + $0x108] sm:$0xff] %v5437_v55   ;;  %6093 = vst [vmem:[%s8064_s3 + $0x348] sm:$0xff] %v5797_v56   ;;  %v5432_v63 = vpack.c.bf16 %v2735_v57, %v2734_v51  ;;  %v5792_v0 = vpack.c.bf16 %v2879_v58, %v2878_v52  ;;  %v1792_v1 = vadd.f32 %v7598_v19, %v1791_v61 }
 0x159   :  { %v2368_v2 = vadd.f32 %v7598_v19, %v2367_v62  ;;  %v6353_v3 = vpop.f32.mrf.mxu0  ;;  %v6497_v4 = vpop.f32.mrf.mxu1  ;;  %v2740_v7 = vmax.f32 %v1800_v59, 0.0  ;;  %v2884_v8 = vmax.f32 %v2376_v60, 0.0 }
 0x15a   :  { %6020 = vst [vmem:[%s8064_s3 + $0x100] sm:$0xff] %v5432_v63   ;;  %6092 = vst [vmem:[%s8064_s3 + $0x340] sm:$0xff] %v5792_v0   ;;  %v1803_v5 = vadd.f32 %v7598_v19, %v6353_v3  ;;  %v2379_v6 = vadd.f32 %v7598_v19, %v6497_v4  ;;  %v2738_v15 = vmax.f32 %v1792_v1, 0.0 }
 0x15b   :  { %v1794_v9 = vpop.f32.mrf.mxu0  ;;  %v2370_v10 = vpop.f32.mrf.mxu1  ;;  %v2882_v16 = vmax.f32 %v2368_v2, 0.0 }
 0x15c   :  { %v2741_v11 = vmax.f32 %v1803_v5, 0.0  ;;  %v2885_v12 = vmax.f32 %v2379_v6, 0.0  ;;  %v1795_v13 = vadd.f32 %v7598_v19, %v1794_v9  ;;  %v2371_v14 = vadd.f32 %v7598_v19, %v2370_v10 }
 0x15d   :  { %v6356_v17 = vpop.f32.mrf.mxu0  ;;  %v6500_v18 = vpop.f32.mrf.mxu1 }
 0x15e   :  { %v5447_v20 = vpack.c.bf16 %v2741_v11, %v2740_v7  ;;  %v5807_v21 = vpack.c.bf16 %v2885_v12, %v2884_v8  ;;  %v2739_v44 = vmax.f32 %v1795_v13, 0.0  ;;  %v2883_v22 = vmax.f32 %v2371_v14, 0.0 }
 0x15f   :  { %v1816_v23 = vadd.f32 %v7598_v19, %v6356_v17  ;;  %v2392_v24 = vadd.f32 %v7598_v19, %v6500_v18  ;;  %v1807_v25 = vpop.f32.mrf.mxu0  ;;  %v2383_v26 = vpop.f32.mrf.mxu1 }
 0x160   :  { %6023 = vst [vmem:[%s8064_s3 + $0x118] sm:$0xff] %v5447_v20   ;;  %6095 = vst [vmem:[%s8064_s3 + $0x358] sm:$0xff] %v5807_v21   ;;  %v5442_v27 = vpack.c.bf16 %v2739_v44, %v2738_v15  ;;  %v5802_v28 = vpack.c.bf16 %v2883_v22, %v2882_v16  ;;  %v1808_v29 = vadd.f32 %v7598_v19, %v1807_v25 }
 0x161   :  { %v2384_v30 = vadd.f32 %v7598_v19, %v2383_v26  ;;  %v6357_v31 = vpop.f32.mrf.mxu0  ;;  %v6501_v32 = vpop.f32.mrf.mxu1  ;;  %v2744_v35 = vmax.f32 %v1816_v23, 0.0  ;;  %v2888_v36 = vmax.f32 %v2392_v24, 0.0 }
 0x162   :  { %6022 = vst [vmem:[%s8064_s3 + $0x110] sm:$0xff] %v5442_v27   ;;  %6094 = vst [vmem:[%s8064_s3 + $0x350] sm:$0xff] %v5802_v28   ;;  %v1819_v33 = vadd.f32 %v7598_v19, %v6357_v31  ;;  %v2395_v34 = vadd.f32 %v7598_v19, %v6501_v32  ;;  %v2742_v43 = vmax.f32 %v1808_v29, 0.0 }
 0x163   :  { %v1810_v37 = vpop.f32.mrf.mxu0  ;;  %v2386_v38 = vpop.f32.mrf.mxu1  ;;  %v2886_v45 = vmax.f32 %v2384_v30, 0.0 }
 0x164   :  { %v2745_v39 = vmax.f32 %v1819_v33, 0.0  ;;  %v2889_v40 = vmax.f32 %v2395_v34, 0.0  ;;  %v1811_v41 = vadd.f32 %v7598_v19, %v1810_v37  ;;  %v2387_v42 = vadd.f32 %v7598_v19, %v2386_v38 }
 0x165   :  { %v6360_v46 = vpop.f32.mrf.mxu0  ;;  %v6504_v47 = vpop.f32.mrf.mxu1 }
 0x166   :  { %v5457_v48 = vpack.c.bf16 %v2745_v39, %v2744_v35  ;;  %v5817_v49 = vpack.c.bf16 %v2889_v40, %v2888_v36  ;;  %v2743_v50 = vmax.f32 %v1811_v41, 0.0  ;;  %v2887_v51 = vmax.f32 %v2387_v42, 0.0 }
 0x167   :  { %v1832_v52 = vadd.f32 %v7598_v19, %v6360_v46  ;;  %v2408_v53 = vadd.f32 %v7598_v19, %v6504_v47  ;;  %v1823_v54 = vpop.f32.mrf.mxu0  ;;  %v2399_v55 = vpop.f32.mrf.mxu1 }
 0x168   :  { %6025 = vst [vmem:[%s8064_s3 + $0x128] sm:$0xff] %v5457_v48   ;;  %6097 = vst [vmem:[%s8064_s3 + $0x368] sm:$0xff] %v5817_v49   ;;  %v5452_v56 = vpack.c.bf16 %v2743_v50, %v2742_v43  ;;  %v5812_v57 = vpack.c.bf16 %v2887_v51, %v2886_v45  ;;  %v1824_v58 = vadd.f32 %v7598_v19, %v1823_v54 }
 0x169   :  { %v2400_v59 = vadd.f32 %v7598_v19, %v2399_v55  ;;  %v6361_v60 = vpop.f32.mrf.mxu0  ;;  %v6505_v61 = vpop.f32.mrf.mxu1  ;;  %v2748_v0 = vmax.f32 %v1832_v52, 0.0  ;;  %v2892_v1 = vmax.f32 %v2408_v53, 0.0 }
 0x16a   :  { %6024 = vst [vmem:[%s8064_s3 + $0x120] sm:$0xff] %v5452_v56   ;;  %6096 = vst [vmem:[%s8064_s3 + $0x360] sm:$0xff] %v5812_v57   ;;  %v1835_v62 = vadd.f32 %v7598_v19, %v6361_v60  ;;  %v2411_v63 = vadd.f32 %v7598_v19, %v6505_v61  ;;  %v2746_v8 = vmax.f32 %v1824_v58, 0.0 }
 0x16b   :  { %v1826_v2 = vpop.f32.mrf.mxu0  ;;  %v2402_v3 = vpop.f32.mrf.mxu1  ;;  %v2890_v9 = vmax.f32 %v2400_v59, 0.0 }
 0x16c   :  { %v2749_v4 = vmax.f32 %v1835_v62, 0.0  ;;  %v2893_v5 = vmax.f32 %v2411_v63, 0.0  ;;  %v1827_v6 = vadd.f32 %v7598_v19, %v1826_v2  ;;  %v2403_v7 = vadd.f32 %v7598_v19, %v2402_v3 }
 0x16d   :  { %v6364_v10 = vpop.f32.mrf.mxu0  ;;  %v6508_v11 = vpop.f32.mrf.mxu1 }
 0x16e   :  { %v5467_v12 = vpack.c.bf16 %v2749_v4, %v2748_v0  ;;  %v5827_v13 = vpack.c.bf16 %v2893_v5, %v2892_v1  ;;  %v2747_v14 = vmax.f32 %v1827_v6, 0.0  ;;  %v2891_v15 = vmax.f32 %v2403_v7, 0.0 }
 0x16f   :  { %v1848_v16 = vadd.f32 %v7598_v19, %v6364_v10  ;;  %v2424_v17 = vadd.f32 %v7598_v19, %v6508_v11  ;;  %v1839_v18 = vpop.f32.mrf.mxu0  ;;  %v2415_v20 = vpop.f32.mrf.mxu1 }
 0x170   :  { %6027 = vst [vmem:[%s8064_s3 + $0x138] sm:$0xff] %v5467_v12   ;;  %6099 = vst [vmem:[%s8064_s3 + $0x378] sm:$0xff] %v5827_v13   ;;  %v5462_v21 = vpack.c.bf16 %v2747_v14, %v2746_v8  ;;  %v5822_v44 = vpack.c.bf16 %v2891_v15, %v2890_v9  ;;  %v1840_v22 = vadd.f32 %v7598_v19, %v1839_v18 }
 0x171   :  { %v2416_v23 = vadd.f32 %v7598_v19, %v2415_v20  ;;  %v6365_v24 = vpop.f32.mrf.mxu0  ;;  %v6509_v25 = vpop.f32.mrf.mxu1  ;;  %v2752_v28 = vmax.f32 %v1848_v16, 0.0  ;;  %v2896_v29 = vmax.f32 %v2424_v17, 0.0 }
 0x172   :  { %6026 = vst [vmem:[%s8064_s3 + $0x130] sm:$0xff] %v5462_v21   ;;  %6098 = vst [vmem:[%s8064_s3 + $0x370] sm:$0xff] %v5822_v44   ;;  %v1851_v26 = vadd.f32 %v7598_v19, %v6365_v24  ;;  %v2427_v27 = vadd.f32 %v7598_v19, %v6509_v25  ;;  %v2750_v36 = vmax.f32 %v1840_v22, 0.0 }
 0x173   :  { %v1842_v30 = vpop.f32.mrf.mxu0  ;;  %v2418_v31 = vpop.f32.mrf.mxu1  ;;  %v2894_v37 = vmax.f32 %v2416_v23, 0.0 }
 0x174   :  { %v2753_v32 = vmax.f32 %v1851_v26, 0.0  ;;  %v2897_v33 = vmax.f32 %v2427_v27, 0.0  ;;  %v1843_v34 = vadd.f32 %v7598_v19, %v1842_v30  ;;  %v2419_v35 = vadd.f32 %v7598_v19, %v2418_v31 }
 0x175   :  { %v6368_v38 = vpop.f32.mrf.mxu0  ;;  %v6512_v39 = vpop.f32.mrf.mxu1 }
 0x176   :  { %v5477_v40 = vpack.c.bf16 %v2753_v32, %v2752_v28  ;;  %v5837_v41 = vpack.c.bf16 %v2897_v33, %v2896_v29  ;;  %v2751_v42 = vmax.f32 %v1843_v34, 0.0  ;;  %v2895_v43 = vmax.f32 %v2419_v35, 0.0 }
 0x177   :  { %v1864_v45 = vadd.f32 %v7598_v19, %v6368_v38  ;;  %v2440_v46 = vadd.f32 %v7598_v19, %v6512_v39  ;;  %v1855_v47 = vpop.f32.mrf.mxu0  ;;  %v2431_v48 = vpop.f32.mrf.mxu1 }
 0x178   :  { %6029 = vst [vmem:[%s8064_s3 + $0x148] sm:$0xff] %v5477_v40   ;;  %6101 = vst [vmem:[%s8064_s3 + $0x388] sm:$0xff] %v5837_v41   ;;  %v5472_v49 = vpack.c.bf16 %v2751_v42, %v2750_v36  ;;  %v5832_v50 = vpack.c.bf16 %v2895_v43, %v2894_v37  ;;  %v1856_v51 = vadd.f32 %v7598_v19, %v1855_v47 }
 0x179   :  { %v2432_v52 = vadd.f32 %v7598_v19, %v2431_v48  ;;  %v6369_v53 = vpop.f32.mrf.mxu0  ;;  %v6513_v54 = vpop.f32.mrf.mxu1  ;;  %v2756_v57 = vmax.f32 %v1864_v45, 0.0  ;;  %v2900_v58 = vmax.f32 %v2440_v46, 0.0 }
 0x17a   :  { %6028 = vst [vmem:[%s8064_s3 + $0x140] sm:$0xff] %v5472_v49   ;;  %6100 = vst [vmem:[%s8064_s3 + $0x380] sm:$0xff] %v5832_v50   ;;  %v1867_v55 = vadd.f32 %v7598_v19, %v6369_v53  ;;  %v2443_v56 = vadd.f32 %v7598_v19, %v6513_v54  ;;  %v2754_v1 = vmax.f32 %v1856_v51, 0.0 }
 0x17b   :  { %v1858_v59 = vpop.f32.mrf.mxu0  ;;  %v2434_v60 = vpop.f32.mrf.mxu1  ;;  %v2898_v2 = vmax.f32 %v2432_v52, 0.0 }
 0x17c   :  { %v2757_v61 = vmax.f32 %v1867_v55, 0.0  ;;  %v2901_v62 = vmax.f32 %v2443_v56, 0.0  ;;  %v1859_v63 = vadd.f32 %v7598_v19, %v1858_v59  ;;  %v2435_v0 = vadd.f32 %v7598_v19, %v2434_v60 }
 0x17d   :  { %v6372_v3 = vpop.f32.mrf.mxu0  ;;  %v6516_v4 = vpop.f32.mrf.mxu1 }
 0x17e   :  { %v5487_v5 = vpack.c.bf16 %v2757_v61, %v2756_v57  ;;  %v5847_v6 = vpack.c.bf16 %v2901_v62, %v2900_v58  ;;  %v2755_v7 = vmax.f32 %v1859_v63, 0.0  ;;  %v2899_v8 = vmax.f32 %v2435_v0, 0.0 }
 0x17f   :  { %v1880_v9 = vadd.f32 %v7598_v19, %v6372_v3  ;;  %v2456_v10 = vadd.f32 %v7598_v19, %v6516_v4  ;;  %v1871_v11 = vpop.f32.mrf.mxu0  ;;  %v2447_v12 = vpop.f32.mrf.mxu1 }
 0x180   :  { %6031 = vst [vmem:[%s8064_s3 + $0x158] sm:$0xff] %v5487_v5   ;;  %6103 = vst [vmem:[%s8064_s3 + $0x398] sm:$0xff] %v5847_v6   ;;  %v5482_v13 = vpack.c.bf16 %v2755_v7, %v2754_v1  ;;  %v5842_v14 = vpack.c.bf16 %v2899_v8, %v2898_v2  ;;  %v1872_v15 = vadd.f32 %v7598_v19, %v1871_v11 }
 0x181   :  { %v2448_v16 = vadd.f32 %v7598_v19, %v2447_v12  ;;  %v6373_v17 = vpop.f32.mrf.mxu0  ;;  %v6517_v18 = vpop.f32.mrf.mxu1  ;;  %v2760_v44 = vmax.f32 %v1880_v9, 0.0  ;;  %v2904_v22 = vmax.f32 %v2456_v10, 0.0 }
 0x182   :  { %6030 = vst [vmem:[%s8064_s3 + $0x150] sm:$0xff] %v5482_v13   ;;  %6102 = vst [vmem:[%s8064_s3 + $0x390] sm:$0xff] %v5842_v14   ;;  %v1883_v20 = vadd.f32 %v7598_v19, %v6373_v17  ;;  %v2459_v21 = vadd.f32 %v7598_v19, %v6517_v18  ;;  %v2758_v29 = vmax.f32 %v1872_v15, 0.0 }
 0x183   :  { %v1874_v23 = vpop.f32.mrf.mxu0  ;;  %v2450_v24 = vpop.f32.mrf.mxu1  ;;  %v2902_v30 = vmax.f32 %v2448_v16, 0.0 }
 0x184   :  { %v2761_v25 = vmax.f32 %v1883_v20, 0.0  ;;  %v2905_v26 = vmax.f32 %v2459_v21, 0.0  ;;  %v1875_v27 = vadd.f32 %v7598_v19, %v1874_v23  ;;  %v2451_v28 = vadd.f32 %v7598_v19, %v2450_v24 }
 0x185   :  { %v6376_v31 = vpop.f32.mrf.mxu0  ;;  %v6520_v32 = vpop.f32.mrf.mxu1 }
 0x186   :  { %v5497_v33 = vpack.c.bf16 %v2761_v25, %v2760_v44  ;;  %v5857_v34 = vpack.c.bf16 %v2905_v26, %v2904_v22  ;;  %v2759_v35 = vmax.f32 %v1875_v27, 0.0  ;;  %v2903_v36 = vmax.f32 %v2451_v28, 0.0 }
 0x187   :  { %v1896_v37 = vadd.f32 %v7598_v19, %v6376_v31  ;;  %v2472_v38 = vadd.f32 %v7598_v19, %v6520_v32  ;;  %v1887_v39 = vpop.f32.mrf.mxu0  ;;  %v2463_v40 = vpop.f32.mrf.mxu1 }
 0x188   :  { %6033 = vst [vmem:[%s8064_s3 + $0x168] sm:$0xff] %v5497_v33   ;;  %6105 = vst [vmem:[%s8064_s3 + $0x3a8] sm:$0xff] %v5857_v34   ;;  %v5492_v41 = vpack.c.bf16 %v2759_v35, %v2758_v29  ;;  %v5852_v42 = vpack.c.bf16 %v2903_v36, %v2902_v30  ;;  %v1888_v43 = vadd.f32 %v7598_v19, %v1887_v39 }
 0x189   :  { %v2464_v45 = vadd.f32 %v7598_v19, %v2463_v40  ;;  %v6377_v46 = vpop.f32.mrf.mxu0  ;;  %v6521_v47 = vpop.f32.mrf.mxu1  ;;  %v2764_v50 = vmax.f32 %v1896_v37, 0.0  ;;  %v2908_v51 = vmax.f32 %v2472_v38, 0.0 }
 0x18a   :  { %6032 = vst [vmem:[%s8064_s3 + $0x160] sm:$0xff] %v5492_v41   ;;  %6104 = vst [vmem:[%s8064_s3 + $0x3a0] sm:$0xff] %v5852_v42   ;;  %v1899_v48 = vadd.f32 %v7598_v19, %v6377_v46  ;;  %v2475_v49 = vadd.f32 %v7598_v19, %v6521_v47  ;;  %v2762_v58 = vmax.f32 %v1888_v43, 0.0 }
 0x18b   :  { %v1890_v52 = vpop.f32.mrf.mxu0  ;;  %v2466_v53 = vpop.f32.mrf.mxu1  ;;  %v2906_v59 = vmax.f32 %v2464_v45, 0.0 }
 0x18c   :  { %v2765_v54 = vmax.f32 %v1899_v48, 0.0  ;;  %v2909_v55 = vmax.f32 %v2475_v49, 0.0  ;;  %v1891_v56 = vadd.f32 %v7598_v19, %v1890_v52  ;;  %v2467_v57 = vadd.f32 %v7598_v19, %v2466_v53 }
 0x18d   :  { %v6380_v60 = vpop.f32.mrf.mxu0  ;;  %v6524_v61 = vpop.f32.mrf.mxu1 }
 0x18e   :  { %v5507_v62 = vpack.c.bf16 %v2765_v54, %v2764_v50  ;;  %v5867_v63 = vpack.c.bf16 %v2909_v55, %v2908_v51  ;;  %v2763_v0 = vmax.f32 %v1891_v56, 0.0  ;;  %v2907_v1 = vmax.f32 %v2467_v57, 0.0 }
 0x18f   :  { %v1912_v2 = vadd.f32 %v7598_v19, %v6380_v60  ;;  %v2488_v3 = vadd.f32 %v7598_v19, %v6524_v61  ;;  %v1903_v4 = vpop.f32.mrf.mxu0  ;;  %v2479_v5 = vpop.f32.mrf.mxu1 }
 0x190   :  { %6035 = vst [vmem:[%s8064_s3 + $0x178] sm:$0xff] %v5507_v62   ;;  %6107 = vst [vmem:[%s8064_s3 + $0x3b8] sm:$0xff] %v5867_v63   ;;  %v5502_v6 = vpack.c.bf16 %v2763_v0, %v2762_v58  ;;  %v5862_v7 = vpack.c.bf16 %v2907_v1, %v2906_v59  ;;  %v1904_v8 = vadd.f32 %v7598_v19, %v1903_v4 }
 0x191   :  { %v2480_v9 = vadd.f32 %v7598_v19, %v2479_v5  ;;  %v6381_v10 = vpop.f32.mrf.mxu0  ;;  %v6525_v11 = vpop.f32.mrf.mxu1  ;;  %v2768_v14 = vmax.f32 %v1912_v2, 0.0  ;;  %v2912_v15 = vmax.f32 %v2488_v3, 0.0 }
 0x192   :  { %6034 = vst [vmem:[%s8064_s3 + $0x170] sm:$0xff] %v5502_v6   ;;  %6106 = vst [vmem:[%s8064_s3 + $0x3b0] sm:$0xff] %v5862_v7   ;;  %v1915_v12 = vadd.f32 %v7598_v19, %v6381_v10  ;;  %v2491_v13 = vadd.f32 %v7598_v19, %v6525_v11  ;;  %v2766_v22 = vmax.f32 %v1904_v8, 0.0 }
 0x193   :  { %v1906_v16 = vpop.f32.mrf.mxu0  ;;  %v2482_v17 = vpop.f32.mrf.mxu1  ;;  %v2910_v23 = vmax.f32 %v2480_v9, 0.0 }
 0x194   :  { %v2769_v18 = vmax.f32 %v1915_v12, 0.0  ;;  %v2913_v20 = vmax.f32 %v2491_v13, 0.0  ;;  %v1907_v21 = vadd.f32 %v7598_v19, %v1906_v16  ;;  %v2483_v44 = vadd.f32 %v7598_v19, %v2482_v17 }
 0x195   :  { %v6384_v24 = vpop.f32.mrf.mxu0  ;;  %v6528_v25 = vpop.f32.mrf.mxu1 }
 0x196   :  { %v5517_v26 = vpack.c.bf16 %v2769_v18, %v2768_v14  ;;  %v5877_v27 = vpack.c.bf16 %v2913_v20, %v2912_v15  ;;  %v2767_v28 = vmax.f32 %v1907_v21, 0.0  ;;  %v2911_v29 = vmax.f32 %v2483_v44, 0.0 }
 0x197   :  { %v1928_v30 = vadd.f32 %v7598_v19, %v6384_v24  ;;  %v2504_v31 = vadd.f32 %v7598_v19, %v6528_v25  ;;  %v1919_v32 = vpop.f32.mrf.mxu0  ;;  %v2495_v33 = vpop.f32.mrf.mxu1 }
 0x198   :  { %6037 = vst [vmem:[%s8064_s3 + $0x188] sm:$0xff] %v5517_v26   ;;  %6109 = vst [vmem:[%s8064_s3 + $0x3c8] sm:$0xff] %v5877_v27   ;;  %v5512_v34 = vpack.c.bf16 %v2767_v28, %v2766_v22  ;;  %v5872_v35 = vpack.c.bf16 %v2911_v29, %v2910_v23  ;;  %v1920_v36 = vadd.f32 %v7598_v19, %v1919_v32 }
 0x199   :  { %v2496_v37 = vadd.f32 %v7598_v19, %v2495_v33  ;;  %v6385_v38 = vpop.f32.mrf.mxu0  ;;  %v6529_v39 = vpop.f32.mrf.mxu1  ;;  %v2772_v42 = vmax.f32 %v1928_v30, 0.0  ;;  %v2916_v43 = vmax.f32 %v2504_v31, 0.0 }
 0x19a   :  { %6036 = vst [vmem:[%s8064_s3 + $0x180] sm:$0xff] %v5512_v34   ;;  %6108 = vst [vmem:[%s8064_s3 + $0x3c0] sm:$0xff] %v5872_v35   ;;  %v1931_v40 = vadd.f32 %v7598_v19, %v6385_v38  ;;  %v2507_v41 = vadd.f32 %v7598_v19, %v6529_v39  ;;  %v2770_v51 = vmax.f32 %v1920_v36, 0.0 }
 0x19b   :  { %v1922_v45 = vpop.f32.mrf.mxu0  ;;  %v2498_v46 = vpop.f32.mrf.mxu1  ;;  %v2914_v52 = vmax.f32 %v2496_v37, 0.0 }
 0x19c   :  { %v2773_v47 = vmax.f32 %v1931_v40, 0.0  ;;  %v2917_v48 = vmax.f32 %v2507_v41, 0.0  ;;  %v1923_v49 = vadd.f32 %v7598_v19, %v1922_v45  ;;  %v2499_v50 = vadd.f32 %v7598_v19, %v2498_v46 }
 0x19d   :  { %v6388_v53 = vpop.f32.mrf.mxu0  ;;  %v6532_v54 = vpop.f32.mrf.mxu1 }
 0x19e   :  { %v5527_v55 = vpack.c.bf16 %v2773_v47, %v2772_v42  ;;  %v5887_v56 = vpack.c.bf16 %v2917_v48, %v2916_v43  ;;  %v2771_v57 = vmax.f32 %v1923_v49, 0.0  ;;  %v2915_v58 = vmax.f32 %v2499_v50, 0.0 }
 0x19f   :  { %v1944_v59 = vadd.f32 %v7598_v19, %v6388_v53  ;;  %v2520_v60 = vadd.f32 %v7598_v19, %v6532_v54  ;;  %v1935_v61 = vpop.f32.mrf.mxu0  ;;  %v2511_v62 = vpop.f32.mrf.mxu1 }
 0x1a0   :  { %6039 = vst [vmem:[%s8064_s3 + $0x198] sm:$0xff] %v5527_v55   ;;  %6111 = vst [vmem:[%s8064_s3 + $0x3d8] sm:$0xff] %v5887_v56   ;;  %v5522_v63 = vpack.c.bf16 %v2771_v57, %v2770_v51  ;;  %v5882_v0 = vpack.c.bf16 %v2915_v58, %v2914_v52  ;;  %v1936_v1 = vadd.f32 %v7598_v19, %v1935_v61 }
 0x1a1   :  { %v2512_v2 = vadd.f32 %v7598_v19, %v2511_v62  ;;  %v6389_v3 = vpop.f32.mrf.mxu0  ;;  %v6533_v4 = vpop.f32.mrf.mxu1  ;;  %v2776_v7 = vmax.f32 %v1944_v59, 0.0  ;;  %v2920_v8 = vmax.f32 %v2520_v60, 0.0 }
 0x1a2   :  { %6038 = vst [vmem:[%s8064_s3 + $0x190] sm:$0xff] %v5522_v63   ;;  %6110 = vst [vmem:[%s8064_s3 + $0x3d0] sm:$0xff] %v5882_v0   ;;  %v1947_v5 = vadd.f32 %v7598_v19, %v6389_v3  ;;  %v2523_v6 = vadd.f32 %v7598_v19, %v6533_v4  ;;  %v2774_v15 = vmax.f32 %v1936_v1, 0.0 }
 0x1a3   :  { %v1938_v9 = vpop.f32.mrf.mxu0  ;;  %v2514_v10 = vpop.f32.mrf.mxu1  ;;  %v2918_v16 = vmax.f32 %v2512_v2, 0.0 }
 0x1a4   :  { %v2777_v11 = vmax.f32 %v1947_v5, 0.0  ;;  %v2921_v12 = vmax.f32 %v2523_v6, 0.0  ;;  %v1939_v13 = vadd.f32 %v7598_v19, %v1938_v9  ;;  %v2515_v14 = vadd.f32 %v7598_v19, %v2514_v10 }
 0x1a5   :  { %v6392_v17 = vpop.f32.mrf.mxu0  ;;  %v6536_v18 = vpop.f32.mrf.mxu1 }
 0x1a6   :  { %v5537_v20 = vpack.c.bf16 %v2777_v11, %v2776_v7  ;;  %v5897_v21 = vpack.c.bf16 %v2921_v12, %v2920_v8  ;;  %v2775_v44 = vmax.f32 %v1939_v13, 0.0  ;;  %v2919_v22 = vmax.f32 %v2515_v14, 0.0 }
 0x1a7   :  { %v1960_v23 = vadd.f32 %v7598_v19, %v6392_v17  ;;  %v2536_v24 = vadd.f32 %v7598_v19, %v6536_v18  ;;  %v1951_v25 = vpop.f32.mrf.mxu0  ;;  %v2527_v26 = vpop.f32.mrf.mxu1 }
 0x1a8   :  { %6041 = vst [vmem:[%s8064_s3 + $0x1a8] sm:$0xff] %v5537_v20   ;;  %6113 = vst [vmem:[%s8064_s3 + $0x3e8] sm:$0xff] %v5897_v21   ;;  %v5532_v27 = vpack.c.bf16 %v2775_v44, %v2774_v15  ;;  %v5892_v28 = vpack.c.bf16 %v2919_v22, %v2918_v16  ;;  %v1952_v29 = vadd.f32 %v7598_v19, %v1951_v25 }
 0x1a9   :  { %v2528_v30 = vadd.f32 %v7598_v19, %v2527_v26  ;;  %v6393_v31 = vpop.f32.mrf.mxu0  ;;  %v6537_v32 = vpop.f32.mrf.mxu1  ;;  %v2780_v35 = vmax.f32 %v1960_v23, 0.0  ;;  %v2924_v36 = vmax.f32 %v2536_v24, 0.0  ;;  %v7923_v26 = vld [vmem:[%s8063_s2] ss:$0 sm:$0xff] }
 0x1aa   :  { %6040 = vst [vmem:[%s8064_s3 + $0x1a0] sm:$0xff] %v5532_v27   ;;  %6112 = vst [vmem:[%s8064_s3 + $0x3e0] sm:$0xff] %v5892_v28   ;;  %v1963_v33 = vadd.f32 %v7598_v19, %v6393_v31  ;;  %v2539_v34 = vadd.f32 %v7598_v19, %v6537_v32  ;;  %v2778_v43 = vmax.f32 %v1952_v29, 0.0 }
 0x1ab   :  { %v1954_v37 = vpop.f32.mrf.mxu0  ;;  %v2530_v38 = vpop.f32.mrf.mxu1  ;;  %v2922_v45 = vmax.f32 %v2528_v30, 0.0 }
 0x1ac   :  { %v2781_v39 = vmax.f32 %v1963_v33, 0.0  ;;  %v2925_v40 = vmax.f32 %v2539_v34, 0.0  ;;  %v1955_v41 = vadd.f32 %v7598_v19, %v1954_v37  ;;  %v2531_v42 = vadd.f32 %v7598_v19, %v2530_v38 }
 0x1ad   :  { %v6396_v46 = vpop.f32.mrf.mxu0  ;;  %v6540_v47 = vpop.f32.mrf.mxu1 }
 0x1ae   :  { %v5547_v48 = vpack.c.bf16 %v2781_v39, %v2780_v35  ;;  %v5907_v49 = vpack.c.bf16 %v2925_v40, %v2924_v36  ;;  %v2779_v50 = vmax.f32 %v1955_v41, 0.0  ;;  %v2923_v51 = vmax.f32 %v2531_v42, 0.0 }
 0x1af   :  { %v1976_v52 = vadd.f32 %v7598_v19, %v6396_v46  ;;  %v2552_v53 = vadd.f32 %v7598_v19, %v6540_v47  ;;  %v1967_v54 = vpop.f32.mrf.mxu0  ;;  %v2543_v55 = vpop.f32.mrf.mxu1 }
 0x1b0   :  { %6043 = vst [vmem:[%s8064_s3 + $0x1b8] sm:$0xff] %v5547_v48   ;;  %6115 = vst [vmem:[%s8064_s3 + $0x3f8] sm:$0xff] %v5907_v49   ;;  %v5542_v56 = vpack.c.bf16 %v2779_v50, %v2778_v43  ;;  %v5902_v57 = vpack.c.bf16 %v2923_v51, %v2922_v45  ;;  %v1968_v58 = vadd.f32 %v7598_v19, %v1967_v54 }
 0x1b1   :  { %v2544_v59 = vadd.f32 %v7598_v19, %v2543_v55  ;;  %v6397_v60 = vpop.f32.mrf.mxu0  ;;  %v6541_v61 = vpop.f32.mrf.mxu1  ;;  %v2784_v0 = vmax.f32 %v1976_v52, 0.0  ;;  %v2928_v1 = vmax.f32 %v2552_v53, 0.0 }
 0x1b2   :  { %6042 = vst [vmem:[%s8064_s3 + $0x1b0] sm:$0xff] %v5542_v56   ;;  %6114 = vst [vmem:[%s8064_s3 + $0x3f0] sm:$0xff] %v5902_v57   ;;  %v1979_v62 = vadd.f32 %v7598_v19, %v6397_v60  ;;  %v2555_v63 = vadd.f32 %v7598_v19, %v6541_v61  ;;  %v2782_v8 = vmax.f32 %v1968_v58, 0.0 }
 0x1b3   :  { %v1970_v2 = vpop.f32.mrf.mxu0  ;;  %v2546_v3 = vpop.f32.mrf.mxu1  ;;  %v2926_v9 = vmax.f32 %v2544_v59, 0.0 }
 0x1b4   :  { %v2785_v4 = vmax.f32 %v1979_v62, 0.0  ;;  %v2929_v5 = vmax.f32 %v2555_v63, 0.0  ;;  %v1971_v6 = vadd.f32 %v7598_v19, %v1970_v2  ;;  %v2547_v7 = vadd.f32 %v7598_v19, %v2546_v3 }
 0x1b5   :  { %v6400_v10 = vpop.f32.mrf.mxu0  ;;  %v6544_v11 = vpop.f32.mrf.mxu1 }
 0x1b6   :  { %v5557_v12 = vpack.c.bf16 %v2785_v4, %v2784_v0  ;;  %v5917_v13 = vpack.c.bf16 %v2929_v5, %v2928_v1  ;;  %v2783_v14 = vmax.f32 %v1971_v6, 0.0  ;;  %v2927_v15 = vmax.f32 %v2547_v7, 0.0 }
 0x1b7   :  { %v1992_v16 = vadd.f32 %v7598_v19, %v6400_v10  ;;  %v2568_v17 = vadd.f32 %v7598_v19, %v6544_v11  ;;  %v1983_v18 = vpop.f32.mrf.mxu0  ;;  %v2559_v20 = vpop.f32.mrf.mxu1 }
 0x1b8   :  { %6045 = vst [vmem:[%s8064_s3 + $0x1c8] sm:$0xff] %v5557_v12   ;;  %6117 = vst [vmem:[%s8064_s3 + $0x408] sm:$0xff] %v5917_v13   ;;  %v5552_v21 = vpack.c.bf16 %v2783_v14, %v2782_v8  ;;  %v5912_v44 = vpack.c.bf16 %v2927_v15, %v2926_v9  ;;  %v1984_v22 = vadd.f32 %v7598_v19, %v1983_v18 }
 0x1b9   :  { %v2560_v23 = vadd.f32 %v7598_v19, %v2559_v20  ;;  %v6401_v24 = vpop.f32.mrf.mxu0  ;;  %v6545_v25 = vpop.f32.mrf.mxu1  ;;  %v2788_v19 = vmax.f32 %v1992_v16, 0.0  ;;  %v2932_v29 = vmax.f32 %v2568_v17, 0.0 }
 0x1ba   :  { %6044 = vst [vmem:[%s8064_s3 + $0x1c0] sm:$0xff] %v5552_v21   ;;  %6116 = vst [vmem:[%s8064_s3 + $0x400] sm:$0xff] %v5912_v44   ;;  %v1995_v27 = vadd.f32 %v7923_v26, %v6401_v24  ;;  %v2571_v28 = vadd.f32 %v7923_v26, %v6545_v25  ;;  %v2786_v36 = vmax.f32 %v1984_v22, 0.0 }
 0x1bb   :  { %v1986_v30 = vpop.f32.mrf.mxu0  ;;  %v2562_v31 = vpop.f32.mrf.mxu1  ;;  %v2930_v37 = vmax.f32 %v2560_v23, 0.0 }
 0x1bc   :  { %v2789_v32 = vmax.f32 %v1995_v27, 0.0  ;;  %v2933_v33 = vmax.f32 %v2571_v28, 0.0  ;;  %v1987_v34 = vadd.f32 %v7923_v26, %v1986_v30  ;;  %v2563_v35 = vadd.f32 %v7923_v26, %v2562_v31 }
 0x1bd   :  { %v6404_v38 = vpop.f32.mrf.mxu0  ;;  %v6548_v39 = vpop.f32.mrf.mxu1 }
 0x1be   :  { %v5567_v40 = vpack.c.bf16 %v2789_v32, %v2788_v19  ;;  %v5927_v41 = vpack.c.bf16 %v2933_v33, %v2932_v29  ;;  %v2787_v42 = vmax.f32 %v1987_v34, 0.0  ;;  %v2931_v43 = vmax.f32 %v2563_v35, 0.0 }
 0x1bf   :  { %v2008_v45 = vadd.f32 %v7923_v26, %v6404_v38  ;;  %v2584_v46 = vadd.f32 %v7923_v26, %v6548_v39  ;;  %v1999_v47 = vpop.f32.mrf.mxu0  ;;  %v2575_v48 = vpop.f32.mrf.mxu1 }
 0x1c0   :  { %6047 = vst [vmem:[%s8064_s3 + $0x1d8] sm:$0xff] %v5567_v40   ;;  %6119 = vst [vmem:[%s8064_s3 + $0x418] sm:$0xff] %v5927_v41   ;;  %v5562_v49 = vpack.c.bf16 %v2787_v42, %v2786_v36  ;;  %v5922_v50 = vpack.c.bf16 %v2931_v43, %v2930_v37  ;;  %v2000_v51 = vadd.f32 %v7923_v26, %v1999_v47 }
 0x1c1   :  { %v2576_v52 = vadd.f32 %v7923_v26, %v2575_v48  ;;  %v6405_v53 = vpop.f32.mrf.mxu0  ;;  %v6549_v54 = vpop.f32.mrf.mxu1  ;;  %v2792_v57 = vmax.f32 %v2008_v45, 0.0  ;;  %v2936_v58 = vmax.f32 %v2584_v46, 0.0 }
 0x1c2   :  { %6046 = vst [vmem:[%s8064_s3 + $0x1d0] sm:$0xff] %v5562_v49   ;;  %6118 = vst [vmem:[%s8064_s3 + $0x410] sm:$0xff] %v5922_v50   ;;  %v2011_v55 = vadd.f32 %v7923_v26, %v6405_v53  ;;  %v2587_v56 = vadd.f32 %v7923_v26, %v6549_v54  ;;  %v2790_v1 = vmax.f32 %v2000_v51, 0.0 }
 0x1c3   :  { %v2002_v59 = vpop.f32.mrf.mxu0  ;;  %v2578_v60 = vpop.f32.mrf.mxu1  ;;  %v2934_v2 = vmax.f32 %v2576_v52, 0.0 }
 0x1c4   :  { %v2793_v61 = vmax.f32 %v2011_v55, 0.0  ;;  %v2937_v62 = vmax.f32 %v2587_v56, 0.0  ;;  %v2003_v63 = vadd.f32 %v7923_v26, %v2002_v59  ;;  %v2579_v0 = vadd.f32 %v7923_v26, %v2578_v60 }
 0x1c5   :  { %v6408_v3 = vpop.f32.mrf.mxu0  ;;  %v6552_v4 = vpop.f32.mrf.mxu1 }
 0x1c6   :  { %v5577_v5 = vpack.c.bf16 %v2793_v61, %v2792_v57  ;;  %v5937_v6 = vpack.c.bf16 %v2937_v62, %v2936_v58  ;;  %v2791_v7 = vmax.f32 %v2003_v63, 0.0  ;;  %v2935_v8 = vmax.f32 %v2579_v0, 0.0 }
 0x1c7   :  { %v2024_v9 = vadd.f32 %v7923_v26, %v6408_v3  ;;  %v2600_v10 = vadd.f32 %v7923_v26, %v6552_v4  ;;  %v2015_v11 = vpop.f32.mrf.mxu0  ;;  %v2591_v12 = vpop.f32.mrf.mxu1 }
 0x1c8   :  { %6049 = vst [vmem:[%s8064_s3 + $0x1e8] sm:$0xff] %v5577_v5   ;;  %6121 = vst [vmem:[%s8064_s3 + $0x428] sm:$0xff] %v5937_v6   ;;  %v5572_v13 = vpack.c.bf16 %v2791_v7, %v2790_v1  ;;  %v5932_v14 = vpack.c.bf16 %v2935_v8, %v2934_v2  ;;  %v2016_v15 = vadd.f32 %v7923_v26, %v2015_v11 }
 0x1c9   :  { %v2592_v16 = vadd.f32 %v7923_v26, %v2591_v12  ;;  %v6409_v17 = vpop.f32.mrf.mxu0  ;;  %v6553_v18 = vpop.f32.mrf.mxu1  ;;  %v2796_v44 = vmax.f32 %v2024_v9, 0.0  ;;  %v2940_v22 = vmax.f32 %v2600_v10, 0.0 }
 0x1ca   :  { %6048 = vst [vmem:[%s8064_s3 + $0x1e0] sm:$0xff] %v5572_v13   ;;  %6120 = vst [vmem:[%s8064_s3 + $0x420] sm:$0xff] %v5932_v14   ;;  %v2027_v20 = vadd.f32 %v7923_v26, %v6409_v17  ;;  %v2603_v21 = vadd.f32 %v7923_v26, %v6553_v18  ;;  %v2794_v29 = vmax.f32 %v2016_v15, 0.0 }
 0x1cb   :  { %v2018_v23 = vpop.f32.mrf.mxu0  ;;  %v2594_v24 = vpop.f32.mrf.mxu1  ;;  %v2938_v30 = vmax.f32 %v2592_v16, 0.0 }
 0x1cc   :  { %v2797_v25 = vmax.f32 %v2027_v20, 0.0  ;;  %v2941_v27 = vmax.f32 %v2603_v21, 0.0  ;;  %v2019_v28 = vadd.f32 %v7923_v26, %v2018_v23  ;;  %v2595_v19 = vadd.f32 %v7923_v26, %v2594_v24 }
 0x1cd   :  { %v6412_v31 = vpop.f32.mrf.mxu0  ;;  %v6556_v32 = vpop.f32.mrf.mxu1 }
 0x1ce   :  { %v5587_v33 = vpack.c.bf16 %v2797_v25, %v2796_v44  ;;  %v5947_v34 = vpack.c.bf16 %v2941_v27, %v2940_v22  ;;  %v2795_v35 = vmax.f32 %v2019_v28, 0.0  ;;  %v2939_v36 = vmax.f32 %v2595_v19, 0.0 }
 0x1cf   :  { %v2040_v37 = vadd.f32 %v7923_v26, %v6412_v31  ;;  %v2616_v38 = vadd.f32 %v7923_v26, %v6556_v32  ;;  %v2031_v39 = vpop.f32.mrf.mxu0  ;;  %v2607_v40 = vpop.f32.mrf.mxu1 }
 0x1d0   :  { %6051 = vst [vmem:[%s8064_s3 + $0x1f8] sm:$0xff] %v5587_v33   ;;  %6123 = vst [vmem:[%s8064_s3 + $0x438] sm:$0xff] %v5947_v34   ;;  %v5582_v41 = vpack.c.bf16 %v2795_v35, %v2794_v29  ;;  %v5942_v42 = vpack.c.bf16 %v2939_v36, %v2938_v30  ;;  %v2032_v43 = vadd.f32 %v7923_v26, %v2031_v39 }
 0x1d1   :  { %v2608_v45 = vadd.f32 %v7923_v26, %v2607_v40  ;;  %v6413_v46 = vpop.f32.mrf.mxu0  ;;  %v6557_v47 = vpop.f32.mrf.mxu1  ;;  %v2800_v50 = vmax.f32 %v2040_v37, 0.0  ;;  %v2944_v51 = vmax.f32 %v2616_v38, 0.0 }
 0x1d2   :  { %6050 = vst [vmem:[%s8064_s3 + $0x1f0] sm:$0xff] %v5582_v41   ;;  %6122 = vst [vmem:[%s8064_s3 + $0x430] sm:$0xff] %v5942_v42   ;;  %v2043_v48 = vadd.f32 %v7923_v26, %v6413_v46  ;;  %v2619_v49 = vadd.f32 %v7923_v26, %v6557_v47  ;;  %v2798_v58 = vmax.f32 %v2032_v43, 0.0 }
 0x1d3   :  { %v2034_v52 = vpop.f32.mrf.mxu0  ;;  %v2610_v53 = vpop.f32.mrf.mxu1  ;;  %v2942_v59 = vmax.f32 %v2608_v45, 0.0 }
 0x1d4   :  { %v2801_v54 = vmax.f32 %v2043_v48, 0.0  ;;  %v2945_v55 = vmax.f32 %v2619_v49, 0.0  ;;  %v2035_v56 = vadd.f32 %v7923_v26, %v2034_v52  ;;  %v2611_v57 = vadd.f32 %v7923_v26, %v2610_v53 }
 0x1d5   :  { %v6416_v60 = vpop.f32.mrf.mxu0  ;;  %v6560_v61 = vpop.f32.mrf.mxu1 }
 0x1d6   :  { %v5597_v62 = vpack.c.bf16 %v2801_v54, %v2800_v50  ;;  %v5957_v63 = vpack.c.bf16 %v2945_v55, %v2944_v51  ;;  %v2799_v0 = vmax.f32 %v2035_v56, 0.0  ;;  %v2943_v1 = vmax.f32 %v2611_v57, 0.0 }
 0x1d7   :  { %v2056_v2 = vadd.f32 %v7923_v26, %v6416_v60  ;;  %v2632_v3 = vadd.f32 %v7923_v26, %v6560_v61  ;;  %v2047_v4 = vpop.f32.mrf.mxu0  ;;  %v2623_v5 = vpop.f32.mrf.mxu1 }
 0x1d8   :  { %6053 = vst [vmem:[%s8064_s3 + $0x208] sm:$0xff] %v5597_v62   ;;  %6125 = vst [vmem:[%s8064_s3 + $0x448] sm:$0xff] %v5957_v63   ;;  %v5592_v6 = vpack.c.bf16 %v2799_v0, %v2798_v58  ;;  %v5952_v7 = vpack.c.bf16 %v2943_v1, %v2942_v59  ;;  %v2048_v8 = vadd.f32 %v7923_v26, %v2047_v4 }
 0x1d9   :  { %v2624_v9 = vadd.f32 %v7923_v26, %v2623_v5  ;;  %v6417_v10 = vpop.f32.mrf.mxu0  ;;  %v6561_v11 = vpop.f32.mrf.mxu1  ;;  %v2804_v14 = vmax.f32 %v2056_v2, 0.0  ;;  %v2948_v15 = vmax.f32 %v2632_v3, 0.0 }
 0x1da   :  { %6052 = vst [vmem:[%s8064_s3 + $0x200] sm:$0xff] %v5592_v6   ;;  %6124 = vst [vmem:[%s8064_s3 + $0x440] sm:$0xff] %v5952_v7   ;;  %v2059_v12 = vadd.f32 %v7923_v26, %v6417_v10  ;;  %v2635_v13 = vadd.f32 %v7923_v26, %v6561_v11  ;;  %v2802_v22 = vmax.f32 %v2048_v8, 0.0 }
 0x1db   :  { %v2050_v16 = vpop.f32.mrf.mxu0  ;;  %v2626_v17 = vpop.f32.mrf.mxu1  ;;  %v2946_v23 = vmax.f32 %v2624_v9, 0.0 }
 0x1dc   :  { %v2805_v18 = vmax.f32 %v2059_v12, 0.0  ;;  %v2949_v20 = vmax.f32 %v2635_v13, 0.0  ;;  %v2051_v21 = vadd.f32 %v7923_v26, %v2050_v16  ;;  %v2627_v44 = vadd.f32 %v7923_v26, %v2626_v17 }
 0x1dd   :  { %v6420_v24 = vpop.f32.mrf.mxu0  ;;  %v6564_v25 = vpop.f32.mrf.mxu1 }
 0x1de   :  { %v5607_v27 = vpack.c.bf16 %v2805_v18, %v2804_v14  ;;  %v5967_v28 = vpack.c.bf16 %v2949_v20, %v2948_v15  ;;  %v2803_v19 = vmax.f32 %v2051_v21, 0.0  ;;  %v2947_v29 = vmax.f32 %v2627_v44, 0.0 }
 0x1df   :  { %v2072_v30 = vadd.f32 %v7923_v26, %v6420_v24  ;;  %v2648_v31 = vadd.f32 %v7923_v26, %v6564_v25  ;;  %v2063_v32 = vpop.f32.mrf.mxu0  ;;  %v2639_v33 = vpop.f32.mrf.mxu1 }
 0x1e0   :  { %6055 = vst [vmem:[%s8064_s3 + $0x218] sm:$0xff] %v5607_v27   ;;  %6127 = vst [vmem:[%s8064_s3 + $0x458] sm:$0xff] %v5967_v28   ;;  %v5602_v34 = vpack.c.bf16 %v2803_v19, %v2802_v22  ;;  %v5962_v35 = vpack.c.bf16 %v2947_v29, %v2946_v23  ;;  %v2064_v36 = vadd.f32 %v7923_v26, %v2063_v32 }
 0x1e1   :  { %v2640_v37 = vadd.f32 %v7923_v26, %v2639_v33  ;;  %v6421_v38 = vpop.f32.mrf.mxu0  ;;  %v6565_v39 = vpop.f32.mrf.mxu1  ;;  %v2808_v42 = vmax.f32 %v2072_v30, 0.0  ;;  %v2952_v43 = vmax.f32 %v2648_v31, 0.0 }
 0x1e2   :  { %6054 = vst [vmem:[%s8064_s3 + $0x210] sm:$0xff] %v5602_v34   ;;  %6126 = vst [vmem:[%s8064_s3 + $0x450] sm:$0xff] %v5962_v35   ;;  %v2075_v40 = vadd.f32 %v7923_v26, %v6421_v38  ;;  %v2651_v41 = vadd.f32 %v7923_v26, %v6565_v39  ;;  %v2806_v51 = vmax.f32 %v2064_v36, 0.0 }
 0x1e3   :  { %v2066_v45 = vpop.f32.mrf.mxu0  ;;  %v2642_v46 = vpop.f32.mrf.mxu1  ;;  %v2950_v52 = vmax.f32 %v2640_v37, 0.0 }
 0x1e4   :  { %v2809_v47 = vmax.f32 %v2075_v40, 0.0  ;;  %v2953_v48 = vmax.f32 %v2651_v41, 0.0  ;;  %v2067_v49 = vadd.f32 %v7923_v26, %v2066_v45  ;;  %v2643_v50 = vadd.f32 %v7923_v26, %v2642_v46 }
 0x1e5   :  { %v6424_v53 = vpop.f32.mrf.mxu0  ;;  %v6568_v54 = vpop.f32.mrf.mxu1 }
 0x1e6   :  { %v5617_v55 = vpack.c.bf16 %v2809_v47, %v2808_v42  ;;  %v5977_v56 = vpack.c.bf16 %v2953_v48, %v2952_v43  ;;  %v2807_v57 = vmax.f32 %v2067_v49, 0.0  ;;  %v2951_v58 = vmax.f32 %v2643_v50, 0.0 }
 0x1e7   :  { %v2088_v59 = vadd.f32 %v7923_v26, %v6424_v53  ;;  %v2664_v60 = vadd.f32 %v7923_v26, %v6568_v54  ;;  %v2079_v61 = vpop.f32.mrf.mxu0  ;;  %v2655_v62 = vpop.f32.mrf.mxu1 }
 0x1e8   :  { %6057 = vst [vmem:[%s8064_s3 + $0x228] sm:$0xff] %v5617_v55   ;;  %6129 = vst [vmem:[%s8064_s3 + $0x468] sm:$0xff] %v5977_v56   ;;  %v5612_v63 = vpack.c.bf16 %v2807_v57, %v2806_v51  ;;  %v5972_v0 = vpack.c.bf16 %v2951_v58, %v2950_v52  ;;  %v2080_v1 = vadd.f32 %v7923_v26, %v2079_v61 }
 0x1e9   :  { %v2656_v2 = vadd.f32 %v7923_v26, %v2655_v62  ;;  %v6425_v3 = vpop.f32.mrf.mxu0  ;;  %v6569_v4 = vpop.f32.mrf.mxu1  ;;  %v2812_v7 = vmax.f32 %v2088_v59, 0.0  ;;  %v2956_v8 = vmax.f32 %v2664_v60, 0.0 }
 0x1ea   :  { %6056 = vst [vmem:[%s8064_s3 + $0x220] sm:$0xff] %v5612_v63   ;;  %6128 = vst [vmem:[%s8064_s3 + $0x460] sm:$0xff] %v5972_v0   ;;  %v2091_v5 = vadd.f32 %v7923_v26, %v6425_v3  ;;  %v2667_v6 = vadd.f32 %v7923_v26, %v6569_v4  ;;  %v2810_v15 = vmax.f32 %v2080_v1, 0.0 }
 0x1eb   :  { %v2082_v9 = vpop.f32.mrf.mxu0  ;;  %v2658_v10 = vpop.f32.mrf.mxu1  ;;  %v2954_v16 = vmax.f32 %v2656_v2, 0.0 }
 0x1ec   :  { %v2813_v11 = vmax.f32 %v2091_v5, 0.0  ;;  %v2957_v12 = vmax.f32 %v2667_v6, 0.0  ;;  %v2083_v13 = vadd.f32 %v7923_v26, %v2082_v9  ;;  %v2659_v14 = vadd.f32 %v7923_v26, %v2658_v10 }
 0x1ee   :  { %v5627_v17 = vpack.c.bf16 %v2813_v11, %v2812_v7  ;;  %v5987_v18 = vpack.c.bf16 %v2957_v12, %v2956_v8  ;;  %v2811_v20 = vmax.f32 %v2083_v13, 0.0  ;;  %v2955_v21 = vmax.f32 %v2659_v14, 0.0 }
 0x1f0   :  { %6059 = vst [vmem:[%s8064_s3 + $0x238] sm:$0xff] %v5627_v17   ;;  %6131 = vst [vmem:[%s8064_s3 + $0x478] sm:$0xff] %v5987_v18   ;;  %v5622_v44 = vpack.c.bf16 %v2811_v20, %v2810_v15  ;;  %v5982_v22 = vpack.c.bf16 %v2955_v21, %v2954_v16 }
 0x1f2   :  { %6058 = vst [vmem:[%s8064_s3 + $0x230] sm:$0xff] %v5622_v44   ;;  %6130 = vst [vmem:[%s8064_s3 + $0x470] sm:$0xff] %v5982_v22  }

// kernel: model_forward.4
= control target key start
LH: loop header
LB: loop body
LE: loop exit
PB: predicated region body
PF: predicated region fallthrough
CT: control target
= control target key end

     0   :  { %v6117_v0 = vmov 0   ;;  %s8434_s1 = inlined_call_operand.vmem [shape: bf16[1152,128], index: 1, kind: input, shape index: {}]   ;;  %s8435_s0 = inlined_call_operand.vmem [shape: bf16[576,1152], index: 0, kind: input, shape index: {}]   ;;  %s8436_s2 = inlined_call_operand.vmem [shape: f32[1,128], index: 2, kind: input, shape index: {}]   ;;  %s8437_s3 = inlined_call_operand.vmem [shape: bf16[576,128], index: 3, kind: output, shape index: {}]  }
   0x1   :  { %2614 = vmatprep.subr.bf16.mxu0 %v6117_v0  ;;  %5543 = vmatprep.subr.bf16.mxu1 %v6117_v0  ;;  %v5576_v1 = vld [vmem:[%s8434_s1 + $0x38] sm:$0xff]   ;;  %v5577_v2 = vld [vmem:[%s8434_s1 + $0x30] sm:$0xff]   ;;  %v5578_v3 = vld [vmem:[%s8434_s1 + $0x28] sm:$0xff]  }
   0x2   :  { %2615 = vmatpush1.bf16.msra.mxu0 %v5576_v1  ;;  %5559 = vmatpush1.bf16.msra.mxu1 %v5576_v1  ;;  %v5579_v4 = vld [vmem:[%s8434_s1 + $0x20] sm:$0xff]   ;;  %v5580_v5 = vld [vmem:[%s8434_s1 + $0x18] sm:$0xff]   ;;  %v5581_v7 = vld [vmem:[%s8434_s1 + $0x10] sm:$0xff]  }
   0x3   :  { %2616 = vmatprep.subr.bf16.mxu0 %v6117_v0  ;;  %5544 = vmatprep.subr.bf16.mxu1 %v6117_v0  ;;  %v5594_v6 = vld [vmem:[%s8435_s0 + $0x4] ss:$36 sps:$4 sm:$0xff]   ;;  %v5597_v8 = vld [vmem:[%s8435_s0 + $0x79c] ss:$36 sps:$4 sm:$0xff]   ;;  %v5585_v12 = vld [vmem:[%s8434_s1 + $0x70] sm:$0xff]  }
   0x4   :  { %2646 = vmatprep.mubr.bf16.mxu0 %v5594_v6  ;;  %2862 = vmatprep.mubr.bf16.mxu1 %v5597_v8  ;;  %v5582_v9 = vld [vmem:[%s8434_s1 + $0x8] sm:$0xff]   ;;  %v5583_v10 = vld [vmem:[%s8434_s1] sm:$0xff]   ;;  %v5584_v11 = vld [vmem:[%s8434_s1 + $0x78] sm:$0xff]  }
   0x5   :  { %v5586_v13 = vld [vmem:[%s8434_s1 + $0x68] sm:$0xff]   ;;  %v5587_v14 = vld [vmem:[%s8434_s1 + $0x60] sm:$0xff]   ;;  %v5588_v15 = vld [vmem:[%s8434_s1 + $0x58] sm:$0xff]  }
   0x6   :  { %2617 = vmatpush1.bf16.msra.mxu0 %v5577_v2  ;;  %5560 = vmatpush1.bf16.msra.mxu1 %v5577_v2  ;;  %v5589_v16 = vld [vmem:[%s8434_s1 + $0x50] sm:$0xff]   ;;  %v5590_v17 = vld [vmem:[%s8434_s1 + $0x48] sm:$0xff]   ;;  %v5591_v18 = vld [vmem:[%s8434_s1 + $0x40] sm:$0xff]  }
   0x7   :  { %2618 = vmatprep.subr.bf16.mxu0 %v6117_v0  ;;  %5545 = vmatprep.subr.bf16.mxu1 %v6117_v0  ;;  %v5592_v19 = vld [vmem:[%s8435_s0] ss:$36 sps:$4 sm:$0xff]   ;;  %v5595_v20 = vld [vmem:[%s8435_s0 + $0x798] ss:$36 sps:$4 sm:$0xff]   ;;  %v5601_v23 = vld [vmem:[%s8435_s0 + $0x4c] ss:$36 sps:$4 sm:$0xff]  }
   0x8   :  { %v5598_v21 = vld [vmem:[%s8434_s1 + $0xb8] sm:$0xff]   ;;  %v5603_v24 = vld [vmem:[%s8435_s0 + $0x7e4] ss:$36 sps:$4 sm:$0xff]   ;;  %v5600_v25 = vld [vmem:[%s8434_s1 + $0xb0] sm:$0xff]  }
   0x9   :  { %v5599_v22 = vld [vmem:[%s8434_s1 + $0x138] sm:$0xff]   ;;  %v5613_v26 = vld [vmem:[%s8434_s1 + $0x130] sm:$0xff]   ;;  %v5605_v27 = vld [vmem:[%s8435_s0 + $0x48] ss:$36 sps:$4 sm:$0xff]  }
   0xa   :  { %2619 = vmatpush1.bf16.msra.mxu0 %v5578_v3  ;;  %5561 = vmatpush1.bf16.msra.mxu1 %v5578_v3  ;;  %v5606_v28 = vld [vmem:[%s8435_s0 + $0x7e0] ss:$36 sps:$4 sm:$0xff]   ;;  %v5607_v29 = vld [vmem:[%s8434_s1 + $0xa8] sm:$0xff]   ;;  %v5608_v30 = vld [vmem:[%s8435_s0 + $0x94] ss:$36 sps:$4 sm:$0xff]  }
   0xb   :  { %2620 = vmatprep.subr.bf16.mxu0 %v6117_v0  ;;  %5546 = vmatprep.subr.bf16.mxu1 %v6117_v0  ;;  %v5610_v31 = vld [vmem:[%s8435_s0 + $0x82c] ss:$36 sps:$4 sm:$0xff]   ;;  %v5612_v33 = vld [vmem:[%s8434_s1 + $0xa0] sm:$0xff]   ;;  %v5616_v37 = vld [vmem:[%s8434_s1 + $0x98] sm:$0xff]  }
   0xc   :  { %v5625_v32 = vld [vmem:[%s8434_s1 + $0x128] sm:$0xff]   ;;  %v5614_v34 = vld [vmem:[%s8435_s0 + $0x90] ss:$36 sps:$4 sm:$0xff]   ;;  %v5641_v35 = vld [vmem:[%s8434_s1 + $0x120] sm:$0xff]  }
   0xd   :  { %v5615_v36 = vld [vmem:[%s8435_s0 + $0x828] ss:$36 sps:$4 sm:$0xff]   ;;  %v5617_v38 = vld [vmem:[%s8435_s0 + $0xdc] ss:$36 sps:$4 sm:$0xff]   ;;  %v5619_v39 = vld [vmem:[%s8435_s0 + $0x874] ss:$36 sps:$4 sm:$0xff]  }
   0xe   :  { %2621 = vmatpush1.bf16.msra.mxu0 %v5579_v4  ;;  %5562 = vmatpush1.bf16.msra.mxu1 %v5579_v4  ;;  %v5655_v40 = vld [vmem:[%s8434_s1 + $0x118] sm:$0xff]   ;;  %v5623_v41 = vld [vmem:[%s8434_s1 + $0x90] sm:$0xff]   ;;  %v5624_v44 = vld [vmem:[%s8434_s1 + $0x88] sm:$0xff]  }
   0xf   :  { %2622 = vmatprep.subr.bf16.mxu0 %v6117_v0  ;;  %5547 = vmatprep.subr.bf16.mxu1 %v6117_v0  ;;  %v5621_v42 = vld [vmem:[%s8435_s0 + $0xd8] ss:$36 sps:$4 sm:$0xff]   ;;  %v5622_v43 = vld [vmem:[%s8435_s0 + $0x870] ss:$36 sps:$4 sm:$0xff]   ;;  %v5626_v45 = vld [vmem:[%s8435_s0 + $0x124] ss:$36 sps:$4 sm:$0xff]  }
  0x10   :  { %v5628_v46 = vld [vmem:[%s8435_s0 + $0x8bc] ss:$36 sps:$4 sm:$0xff]   ;;  %v5667_v47 = vld [vmem:[%s8434_s1 + $0x110] sm:$0xff]   ;;  %v5681_v49 = vld [vmem:[%s8434_s1 + $0x108] sm:$0xff]  }
  0x11   :  { %v5632_v48 = vld [vmem:[%s8434_s1 + $0x80] sm:$0xff]   ;;  %v5631_v51 = vld [vmem:[%s8435_s0 + $0x8b8] ss:$36 sps:$4 sm:$0xff]   ;;  %v5634_v53 = vld [vmem:[%s8435_s0 + $0x16c] ss:$36 sps:$4 sm:$0xff]  }
  0x12   :  { %2623 = vmatpush1.bf16.msra.mxu0 %v5580_v5  ;;  %5563 = vmatpush1.bf16.msra.mxu1 %v5580_v5  ;;  %v5630_v50 = vld [vmem:[%s8435_s0 + $0x120] ss:$36 sps:$4 sm:$0xff]   ;;  %v5633_v52 = vld [vmem:[%s8434_s1 + $0xf8] sm:$0xff]   ;;  %v5640_v56 = vld [vmem:[%s8434_s1 + $0xf0] sm:$0xff]  }
  0x13   :  { %2624 = vmatprep.subr.bf16.mxu0 %v6117_v0  ;;  %5548 = vmatprep.subr.bf16.mxu1 %v6117_v0  ;;  %v5636_v54 = vld [vmem:[%s8435_s0 + $0x904] ss:$36 sps:$4 sm:$0xff]   ;;  %v5643_v60 = vld [vmem:[%s8435_s0 + $0x1b4] ss:$36 sps:$4 sm:$0xff]   ;;  %v5645_v61 = vld [vmem:[%s8435_s0 + $0x94c] ss:$36 sps:$4 sm:$0xff]  }
  0x14   :  { %v5695_v55 = vld [vmem:[%s8434_s1 + $0x100] sm:$0xff]   ;;  %v5638_v57 = vld [vmem:[%s8435_s0 + $0x168] ss:$36 sps:$4 sm:$0xff]   ;;  %v5702_v62 = vld [vmem:[%s8434_s1 + $0x178] sm:$0xff]  }
  0x15   :  { %v5639_v58 = vld [vmem:[%s8435_s0 + $0x900] ss:$36 sps:$4 sm:$0xff]   ;;  %v5642_v59 = vld [vmem:[%s8434_s1 + $0xe8] sm:$0xff]   ;;  %v5647_v1 = vld [vmem:[%s8435_s0 + $0x1b0] ss:$36 sps:$4 sm:$0xff]  }
  0x16   :  { %2625 = vmatpush1.bf16.msra.mxu0 %v5581_v7  ;;  %5564 = vmatpush1.bf16.msra.mxu1 %v5581_v7  ;;  %v5649_v63 = vld [vmem:[%s8434_s1 + $0xe0] sm:$0xff]   ;;  %v5716_v2 = vld [vmem:[%s8434_s1 + $0x170] sm:$0xff]   ;;  %v5648_v3 = vld [vmem:[%s8435_s0 + $0x948] ss:$36 sps:$4 sm:$0xff]  }
  0x17   :  { %2626 = vmatprep.subr.bf16.mxu0 %v6117_v0  ;;  %5549 = vmatprep.subr.bf16.mxu1 %v6117_v0  ;;  %v5650_v4 = vld [vmem:[%s8435_s0 + $0x1fc] ss:$36 sps:$4 sm:$0xff]   ;;  %v5652_v5 = vld [vmem:[%s8435_s0 + $0x994] ss:$36 sps:$4 sm:$0xff]   ;;  %v5730_v7 = vld [vmem:[%s8434_s1 + $0x168] sm:$0xff]  }
  0x18   :  { %v5654_v6 = vld [vmem:[%s8434_s1 + $0xd8] sm:$0xff]  }
  0x19   :  { %v5656_v8 = vld [vmem:[%s8435_s0 + $0x1f8] ss:$36 sps:$4 sm:$0xff]  }
  0x1a   :  { %2627 = vmatpush1.bf16.msra.mxu0 %v5582_v9  ;;  %5565 = vmatpush1.bf16.msra.mxu1 %v5582_v9  ;;  %v5657_v9 = vld [vmem:[%s8435_s0 + $0x990] ss:$36 sps:$4 sm:$0xff]  }
  0x1b   :  { %2628 = vmatprep.subr.bf16.mxu0 %v6117_v0  ;;  %5550 = vmatprep.subr.bf16.mxu1 %v6117_v0 }
  0x1e   :  { %2629 = vmatpush1.bf16.msra.mxu0 %v5583_v10  ;;  %5566 = vmatpush1.bf16.msra.mxu1 %v5583_v10  ;;  %v5658_v10 = vld [vmem:[%s8434_s1 + $0xd0] sm:$0xff]  }
  0x1f   :  { %2630 = vmatprep.subr.bf16.mxu0 %v6117_v0  ;;  %5551 = vmatprep.subr.bf16.mxu1 %v6117_v0 }
  0x22   :  { %2631 = vmatpush2.bf16.msra.mxu0 %v5584_v11  ;;  %5567 = vmatpush2.bf16.msra.mxu1 %v5584_v11  ;;  %v5659_v11 = vld [vmem:[%s8435_s0 + $0x244] ss:$36 sps:$4 sm:$0xff]  }
  0x23   :  { %2632 = vmatprep.subr.bf16.mxu0 %v6117_v0  ;;  %5552 = vmatprep.subr.bf16.mxu1 %v6117_v0 }
  0x26   :  { %2633 = vmatpush2.bf16.msra.mxu0 %v5585_v12  ;;  %5568 = vmatpush2.bf16.msra.mxu1 %v5585_v12  ;;  %v5661_v12 = vld [vmem:[%s8435_s0 + $0x9dc] ss:$36 sps:$4 sm:$0xff]  }
  0x27   :  { %2634 = vmatprep.subr.bf16.mxu0 %v6117_v0  ;;  %5553 = vmatprep.subr.bf16.mxu1 %v6117_v0 }
  0x2a   :  { %2635 = vmatpush2.bf16.msra.mxu0 %v5586_v13  ;;  %5569 = vmatpush2.bf16.msra.mxu1 %v5586_v13  ;;  %v5738_v13 = vld [vmem:[%s8434_s1 + $0x160] sm:$0xff]  }
  0x2b   :  { %2636 = vmatprep.subr.bf16.mxu0 %v6117_v0  ;;  %5554 = vmatprep.subr.bf16.mxu1 %v6117_v0 }
  0x2e   :  { %2637 = vmatpush2.bf16.msra.mxu0 %v5587_v14  ;;  %5570 = vmatpush2.bf16.msra.mxu1 %v5587_v14  ;;  %v5665_v14 = vld [vmem:[%s8434_s1 + $0xc8] sm:$0xff]  }
  0x2f   :  { %2638 = vmatprep.subr.bf16.mxu0 %v6117_v0  ;;  %5555 = vmatprep.subr.bf16.mxu1 %v6117_v0 }
  0x32   :  { %2639 = vmatpush2.bf16.msra.mxu0 %v5588_v15  ;;  %5571 = vmatpush2.bf16.msra.mxu1 %v5588_v15  ;;  %v5751_v15 = vld [vmem:[%s8434_s1 + $0x158] sm:$0xff]  }
  0x33   :  { %2640 = vmatprep.subr.bf16.mxu0 %v6117_v0  ;;  %5556 = vmatprep.subr.bf16.mxu1 %v6117_v0 }
  0x36   :  { %2641 = vmatpush2.bf16.msra.mxu0 %v5589_v16  ;;  %5572 = vmatpush2.bf16.msra.mxu1 %v5589_v16  ;;  %v5666_v16 = vld [vmem:[%s8434_s1 + $0xc0] sm:$0xff]  }
  0x37   :  { %2642 = vmatprep.subr.bf16.mxu0 %v6117_v0  ;;  %5557 = vmatprep.subr.bf16.mxu1 %v6117_v0 }
  0x3a   :  { %2643 = vmatpush2.bf16.msra.mxu0 %v5590_v17  ;;  %5573 = vmatpush2.bf16.msra.mxu1 %v5590_v17  ;;  %v5663_v17 = vld [vmem:[%s8435_s0 + $0x240] ss:$36 sps:$4 sm:$0xff]  }
  0x3b   :  { %2644 = vmatprep.subr.bf16.mxu0 %v6117_v0  ;;  %5558 = vmatprep.subr.bf16.mxu1 %v6117_v0 }
  0x3e   :  { %2645 = vmatpush2.bf16.msra.mxu0 %v5591_v18  ;;  %5574 = vmatpush2.bf16.msra.mxu1 %v5591_v18  ;;  %v5664_v18 = vld [vmem:[%s8435_s0 + $0x9d8] ss:$36 sps:$4 sm:$0xff]  }
  0x3f   :  { %2935 = vmatprep.subr.bf16.mxu1 %v6117_v0  ;;  %3256 = vmatprep.subr.bf16.mxu0 %v6117_v0 }
  0x41   :  { %2647 = vmatmul.mubr.bf16.vlgmr.msra.gmra.mxu0 %v5592_v19  ;;  %2863 = vmatmul.mubr.bf16.vlgmr.msra.gmra.mxu1 %v5595_v20  ;;  %v5765_v19 = vld [vmem:[%s8434_s1 + $0x150] sm:$0xff]  }
  0x42   :  { %2936 = vmatpush1.bf16.msra.mxu1 %v5598_v21  ;;  %3257 = vmatpush1.bf16.msra.mxu0 %v5599_v22  ;;  %v5668_v20 = vld [vmem:[%s8435_s0 + $0x28c] ss:$36 sps:$4 sm:$0xff]  }
  0x43   :  { %2937 = vmatprep.subr.bf16.mxu1 %v6117_v0  ;;  %2654 = vmatprep.mubr.bf16.mxu0 %v5601_v23  ;;  %v5672_v21 = vld [vmem:[%s8435_s0 + $0xc] ss:$36 sps:$4 sm:$0xff]  }
  0x44   :  { %2870 = vmatprep.mubr.bf16.mxu1 %v5603_v24  ;;  %3258 = vmatprep.subr.bf16.mxu0 %v6117_v0  ;;  %v5773_v22 = vld [vmem:[%s8434_s1 + $0x148] sm:$0xff]  }
  0x45   :  { %v5670_v23 = vld [vmem:[%s8435_s0 + $0x8] ss:$36 sps:$4 sm:$0xff]  }
  0x46   :  { %2938 = vmatpush1.bf16.msra.mxu1 %v5600_v25  ;;  %3259 = vmatpush1.bf16.msra.mxu0 %v5613_v26  ;;  %v5673_v24 = vld [vmem:[%s8435_s0 + $0x288] ss:$36 sps:$4 sm:$0xff]   ;;  %v5674_v25 = vld [vmem:[%s8434_s1 + $0x1b8] sm:$0xff]  }
  0x47   :  { %2939 = vmatprep.subr.bf16.mxu1 %v6117_v0  ;;  %3260 = vmatprep.subr.bf16.mxu0 %v6117_v0  ;;  %v5675_v26 = vld [vmem:[%s8435_s0 + $0x2d4] ss:$36 sps:$4 sm:$0xff]  }
  0x49   :  { %2655 = vmatmul.mubr.bf16.gmra.mxu0 %v5605_v27  ;;  %2871 = vmatmul.mubr.bf16.gmra.mxu1 %v5606_v28  ;;  %v5677_v27 = vld [vmem:[%s8435_s0 + $0x54] ss:$36 sps:$4 sm:$0xff]  }
  0x4a   :  { %2940 = vmatpush1.bf16.msra.mxu1 %v5607_v29  ;;  %2662 = vmatprep.mubr.bf16.mxu0 %v5608_v30  ;;  %v5688_v28 = vld [vmem:[%s8434_s1 + $0x1b0] sm:$0xff]  }
  0x4b   :  { %2941 = vmatprep.subr.bf16.mxu1 %v6117_v0  ;;  %2878 = vmatprep.mubr.bf16.mxu1 %v5610_v31  ;;  %v5679_v29 = vld [vmem:[%s8435_s0 + $0x2d0] ss:$36 sps:$4 sm:$0xff]   ;;  %v5682_v31 = vld [vmem:[%s8435_s0 + $0x31c] ss:$36 sps:$4 sm:$0xff]  }
  0x4c   :  { %3261 = vmatpush1.bf16.msra.mxu0 %v5625_v32  ;;  %v5680_v30 = vld [vmem:[%s8435_s0 + $0x50] ss:$36 sps:$4 sm:$0xff]   ;;  %v5684_v32 = vld [vmem:[%s8435_s0 + $0x9c] ss:$36 sps:$4 sm:$0xff]  }
  0x4d   :  { %3262 = vmatprep.subr.bf16.mxu0 %v6117_v0 }
  0x4e   :  { %2942 = vmatpush1.bf16.msra.mxu1 %v5612_v33  ;;  %v5787_v33 = vld [vmem:[%s8434_s1 + $0x140] sm:$0xff]  }
  0x4f   :  { %2943 = vmatprep.subr.bf16.mxu1 %v6117_v0 }
  0x50   :  { %3263 = vmatpush1.bf16.msra.mxu0 %v5641_v35  ;;  %v5721_v35 = vld [vmem:[%s8434_s1 + $0x1a0] sm:$0xff]  }
  0x51   :  { %2663 = vmatmul.mubr.bf16.gmra.mxu0 %v5614_v34  ;;  %2879 = vmatmul.mubr.bf16.gmra.mxu1 %v5615_v36  ;;  %v5703_v34 = vld [vmem:[%s8434_s1 + $0x1a8] sm:$0xff]   ;;  %v5686_v36 = vld [vmem:[%s8435_s0 + $0x318] ss:$36 sps:$4 sm:$0xff]  }
  0x52   :  { %2944 = vmatpush1.bf16.msra.mxu1 %v5616_v37  ;;  %2670 = vmatprep.mubr.bf16.mxu0 %v5617_v38  ;;  %v5687_v37 = vld [vmem:[%s8435_s0 + $0x98] ss:$36 sps:$4 sm:$0xff]   ;;  %v5689_v38 = vld [vmem:[%s8435_s0 + $0x364] ss:$36 sps:$4 sm:$0xff]  }
  0x53   :  { %2886 = vmatprep.mubr.bf16.mxu1 %v5619_v39  ;;  %2945 = vmatprep.subr.bf16.mxu1 %v6117_v0  ;;  %v5691_v39 = vld [vmem:[%s8435_s0 + $0xe4] ss:$36 sps:$4 sm:$0xff]  }
  0x54   :  { %3264 = vmatprep.subr.bf16.mxu0 %v6117_v0 }
  0x55   :  { %3265 = vmatpush1.bf16.msra.mxu0 %v5655_v40  ;;  %v5737_v40 = vld [vmem:[%s8434_s1 + $0x198] sm:$0xff]  }
  0x56   :  { %2946 = vmatpush1.bf16.msra.mxu1 %v5623_v41  ;;  %3266 = vmatprep.subr.bf16.mxu0 %v6117_v0  ;;  %v5752_v41 = vld [vmem:[%s8434_s1 + $0x190] sm:$0xff]  }
  0x57   :  { %2947 = vmatprep.subr.bf16.mxu1 %v6117_v0 }
  0x59   :  { %2671 = vmatmul.mubr.bf16.gmra.mxu0 %v5621_v42  ;;  %2887 = vmatmul.mubr.bf16.gmra.mxu1 %v5622_v43  ;;  %v6522_v42 = vld [vmem:[%s8434_s1 + $0x238] sm:$0xff]   ;;  %v5693_v43 = vld [vmem:[%s8435_s0 + $0x360] ss:$36 sps:$4 sm:$0xff]  }
  0x5a   :  { %2948 = vmatpush1.bf16.msra.mxu1 %v5624_v44  ;;  %2678 = vmatprep.mubr.bf16.mxu0 %v5626_v45  ;;  %v5694_v44 = vld [vmem:[%s8435_s0 + $0xe0] ss:$36 sps:$4 sm:$0xff]   ;;  %v5696_v45 = vld [vmem:[%s8435_s0 + $0x3ac] ss:$36 sps:$4 sm:$0xff]  }
  0x5b   :  { %2894 = vmatprep.mubr.bf16.mxu1 %v5628_v46  ;;  %2949 = vmatprep.subr.bf16.mxu1 %v6117_v0  ;;  %v5698_v46 = vld [vmem:[%s8435_s0 + $0x12c] ss:$36 sps:$4 sm:$0xff]  }
  0x5c   :  { %3267 = vmatpush1.bf16.msra.mxu0 %v5667_v47  ;;  %v5766_v47 = vld [vmem:[%s8434_s1 + $0x188] sm:$0xff]  }
  0x5d   :  { %3268 = vmatprep.subr.bf16.mxu0 %v6117_v0 }
  0x5e   :  { %2950 = vmatpush1.bf16.msra.mxu1 %v5632_v48  ;;  %v5784_v48 = vld [vmem:[%s8434_s1 + $0x180] sm:$0xff]  }
  0x5f   :  { %2951 = vmatprep.subr.bf16.mxu1 %v6117_v0 }
  0x60   :  { %3269 = vmatpush1.bf16.msra.mxu0 %v5681_v49  ;;  %v5700_v49 = vld [vmem:[%s8435_s0 + $0x3a8] ss:$36 sps:$4 sm:$0xff]  }
  0x61   :  { %2679 = vmatmul.mubr.bf16.gmra.mxu0 %v5630_v50  ;;  %2895 = vmatmul.mubr.bf16.gmra.mxu1 %v5631_v51  ;;  %v5701_v50 = vld [vmem:[%s8435_s0 + $0x128] ss:$36 sps:$4 sm:$0xff]   ;;  %v5704_v51 = vld [vmem:[%s8435_s0 + $0x3f4] ss:$36 sps:$4 sm:$0xff]  }
  0x62   :  { %2952 = vmatpush2.bf16.msra.mxu1 %v5633_v52  ;;  %2686 = vmatprep.mubr.bf16.mxu0 %v5634_v53  ;;  %v5706_v52 = vld [vmem:[%s8435_s0 + $0x174] ss:$36 sps:$4 sm:$0xff]  }
  0x63   :  { %2902 = vmatprep.mubr.bf16.mxu1 %v5636_v54  ;;  %2953 = vmatprep.subr.bf16.mxu1 %v6117_v0  ;;  %v5801_v53 = vld [vmem:[%s8434_s1 + $0x1f8] sm:$0xff]   ;;  %v5708_v54 = vld [vmem:[%s8435_s0 + $0x3f0] ss:$36 sps:$4 sm:$0xff]  }
  0x64   :  { %3270 = vmatprep.subr.bf16.mxu0 %v6117_v0 }
  0x65   :  { %3271 = vmatpush1.bf16.msra.mxu0 %v5695_v55  ;;  %v5709_v55 = vld [vmem:[%s8435_s0 + $0x170] ss:$36 sps:$4 sm:$0xff]  }
  0x66   :  { %2954 = vmatpush2.bf16.msra.mxu1 %v5640_v56  ;;  %3272 = vmatprep.subr.bf16.mxu0 %v6117_v0  ;;  %v5814_v56 = vld [vmem:[%s8434_s1 + $0x1f0] sm:$0xff]  }
  0x67   :  { %2955 = vmatprep.subr.bf16.mxu1 %v6117_v0 }
  0x69   :  { %2687 = vmatmul.mubr.bf16.gmra.mxu0 %v5638_v57  ;;  %2903 = vmatmul.mubr.bf16.gmra.mxu1 %v5639_v58  ;;  %v5710_v57 = vld [vmem:[%s8435_s0 + $0x43c] ss:$36 sps:$4 sm:$0xff]  }
  0x6a   :  { %2956 = vmatpush2.bf16.msra.mxu1 %v5642_v59  ;;  %2694 = vmatprep.mubr.bf16.mxu0 %v5643_v60  ;;  %v5712_v58 = vld [vmem:[%s8435_s0 + $0x1bc] ss:$36 sps:$4 sm:$0xff]  }
  0x6b   :  { %2910 = vmatprep.mubr.bf16.mxu1 %v5645_v61  ;;  %2957 = vmatprep.subr.bf16.mxu1 %v6117_v0  ;;  %v5714_v59 = vld [vmem:[%s8435_s0 + $0x438] ss:$36 sps:$4 sm:$0xff]   ;;  %v5717_v61 = vld [vmem:[%s8435_s0 + $0x484] ss:$36 sps:$4 sm:$0xff]  }
  0x6c   :  { %3273 = vmatpush2.bf16.msra.mxu0 %v5702_v62  ;;  %v5715_v60 = vld [vmem:[%s8435_s0 + $0x1b8] ss:$36 sps:$4 sm:$0xff]   ;;  %v5719_v62 = vld [vmem:[%s8435_s0 + $0x204] ss:$36 sps:$4 sm:$0xff]  }
  0x6d   :  { %3274 = vmatprep.subr.bf16.mxu0 %v6117_v0 }
  0x6e   :  { %2958 = vmatpush2.bf16.msra.mxu1 %v5649_v63  ;;  %v5722_v63 = vld [vmem:[%s8435_s0 + $0x480] ss:$36 sps:$4 sm:$0xff]  }
  0x6f   :  { %2959 = vmatprep.subr.bf16.mxu1 %v6117_v0 }
  0x70   :  { %3275 = vmatpush2.bf16.msra.mxu0 %v5716_v2  ;;  %v5724_v2 = vld [vmem:[%s8435_s0 + $0x4cc] ss:$36 sps:$4 sm:$0xff]  }
  0x71   :  { %2695 = vmatmul.mubr.bf16.gmra.mxu0 %v5647_v1  ;;  %2911 = vmatmul.mubr.bf16.gmra.mxu1 %v5648_v3  ;;  %v5723_v1 = vld [vmem:[%s8435_s0 + $0x200] ss:$36 sps:$4 sm:$0xff]   ;;  %v5726_v3 = vld [vmem:[%s8435_s0 + $0x24c] ss:$36 sps:$4 sm:$0xff]  }
  0x72   :  { %2702 = vmatprep.mubr.bf16.mxu0 %v5650_v4  ;;  %2918 = vmatprep.mubr.bf16.mxu1 %v5652_v5  ;;  %v5828_v4 = vld [vmem:[%s8434_s1 + $0x1e8] sm:$0xff]  }
  0x73   :  { %2960 = vmatpush2.bf16.msra.mxu1 %v5654_v6  ;;  %3276 = vmatprep.subr.bf16.mxu0 %v6117_v0  ;;  %v5728_v5 = vld [vmem:[%s8435_s0 + $0x4c8] ss:$36 sps:$4 sm:$0xff]  }
  0x74   :  { %2961 = vmatprep.subr.bf16.mxu1 %v6117_v0  ;;  %3277 = vmatpush2.bf16.msra.mxu0 %v5730_v7  ;;  %v5729_v6 = vld [vmem:[%s8435_s0 + $0x248] ss:$36 sps:$4 sm:$0xff]   ;;  %v5731_v7 = vld [vmem:[%s8435_s0 + $0x514] ss:$36 sps:$4 sm:$0xff]  }
  0x75   :  { %3278 = vmatprep.subr.bf16.mxu0 %v6117_v0 }
  0x77   :  { %2962 = vmatpush2.bf16.msra.mxu1 %v5658_v10  ;;  %v5736_v10 = vld [vmem:[%s8435_s0 + $0x290] ss:$36 sps:$4 sm:$0xff]  }
  0x78   :  { %2963 = vmatprep.subr.bf16.mxu1 %v6117_v0  ;;  %3279 = vmatpush2.bf16.msra.mxu0 %v5738_v13  ;;  %v5847_v13 = vld [vmem:[%s8434_s1 + $0x1e0] sm:$0xff]  }
  0x79   :  { %2703 = vmatmul.mubr.bf16.gmra.mxu0 %v5656_v8  ;;  %2919 = vmatmul.mubr.bf16.gmra.mxu1 %v5657_v9  ;;  %v5733_v8 = vld [vmem:[%s8435_s0 + $0x294] ss:$36 sps:$4 sm:$0xff]  }
  0x7a   :  { %2710 = vmatprep.mubr.bf16.mxu0 %v5659_v11  ;;  %2926 = vmatprep.mubr.bf16.mxu1 %v5661_v12  ;;  %v5735_v9 = vld [vmem:[%s8435_s0 + $0x510] ss:$36 sps:$4 sm:$0xff]   ;;  %v5739_v11 = vld [vmem:[%s8435_s0 + $0x55c] ss:$36 sps:$4 sm:$0xff]  }
  0x7b   :  { %2964 = vmatpush2.bf16.msra.mxu1 %v5665_v14  ;;  %3280 = vmatprep.subr.bf16.mxu0 %v6117_v0  ;;  %v5741_v12 = vld [vmem:[%s8435_s0 + $0x2dc] ss:$36 sps:$4 sm:$0xff]  }
  0x7c   :  { %2965 = vmatprep.subr.bf16.mxu1 %v6117_v0  ;;  %3281 = vmatpush2.bf16.msra.mxu0 %v5751_v15  ;;  %v5743_v14 = vld [vmem:[%s8435_s0 + $0x558] ss:$36 sps:$4 sm:$0xff]  }
  0x7d   :  { %3282 = vmatprep.subr.bf16.mxu0 %v6117_v0  ;;  %v5744_v15 = vld [vmem:[%s8435_s0 + $0x2d8] ss:$36 sps:$4 sm:$0xff]  }
  0x7f   :  { %2966 = vmatpush2.bf16.msra.mxu1 %v5666_v16  ;;  %v5745_v16 = vld [vmem:[%s8435_s0 + $0x5a4] ss:$36 sps:$4 sm:$0xff]  }
  0x80   :  { %3577 = vmatprep.subr.bf16.mxu1 %v6117_v0  ;;  %3283 = vmatpush2.bf16.msra.mxu0 %v5765_v19  ;;  %v5750_v19 = vld [vmem:[%s8435_s0 + $0x320] ss:$36 sps:$4 sm:$0xff]  }
  0x81   :  { %2711 = vmatmul.mubr.bf16.gmra.mxu0 %v5663_v17  ;;  %2927 = vmatmul.mubr.bf16.gmra.mxu1 %v5664_v18  ;;  %v5747_v17 = vld [vmem:[%s8435_s0 + $0x324] ss:$36 sps:$4 sm:$0xff]  }
  0x82   :  { %2718 = vmatprep.mubr.bf16.mxu0 %v5668_v20  ;;  %2967 = vmatprep.mubr.bf16.mxu1 %v5672_v21  ;;  %v5749_v18 = vld [vmem:[%s8435_s0 + $0x5a0] ss:$36 sps:$4 sm:$0xff]   ;;  %v5753_v20 = vld [vmem:[%s8435_s0 + $0x5ec] ss:$36 sps:$4 sm:$0xff]  }
  0x83   :  { %3284 = vmatprep.subr.bf16.mxu0 %v6117_v0  ;;  %v5755_v21 = vld [vmem:[%s8435_s0 + $0x36c] ss:$36 sps:$4 sm:$0xff]  }
  0x84   :  { %3285 = vmatpush2.bf16.msra.mxu0 %v5773_v22  ;;  %v5861_v22 = vld [vmem:[%s8434_s1 + $0x1d8] sm:$0xff]  }
  0x85   :  { %3286 = vmatprep.subr.bf16.mxu0 %v6117_v0 }
  0x88   :  { %3287 = vmatpush2.bf16.msra.mxu0 %v5787_v33  ;;  %v5772_v33 = vld [vmem:[%s8435_s0 + $0x3f8] ss:$36 sps:$4 sm:$0xff]  }
  0x89   :  { %2719 = vmatmul.mubr.bf16.gmra.mxu0 %v5673_v24  ;;  %2968 = vmatmul.mubr.bf16.vlgmr.msra.gmra.mxu1 %v5670_v23  ;;  %v5757_v23 = vld [vmem:[%s8435_s0 + $0x5e8] ss:$36 sps:$4 sm:$0xff]  }
  0x8a   :  { %3578 = vmatpush1.bf16.msra.mxu1 %v5674_v25  ;;  %2726 = vmatprep.mubr.bf16.mxu0 %v5675_v26  ;;  %v5758_v24 = vld [vmem:[%s8435_s0 + $0x368] ss:$36 sps:$4 sm:$0xff]   ;;  %v5759_v25 = vld [vmem:[%s8435_s0 + $0x634] ss:$36 sps:$4 sm:$0xff]  }
  0x8b   :  { %2975 = vmatprep.mubr.bf16.mxu1 %v5677_v27  ;;  %3579 = vmatprep.subr.bf16.mxu1 %v6117_v0  ;;  %v5761_v26 = vld [vmem:[%s8435_s0 + $0x3b4] ss:$36 sps:$4 sm:$0xff]  }
  0x8c   :  { %5455 = vmatprep.subr.bf16.mxu0 %v6522_v42  ;;  %v5763_v27 = vld [vmem:[%s8435_s0 + $0x630] ss:$36 sps:$4 sm:$0xff]  }
  0x8e   :  { %3580 = vmatpush1.bf16.msra.mxu1 %v5688_v28  ;;  %v5764_v28 = vld [vmem:[%s8435_s0 + $0x3b0] ss:$36 sps:$4 sm:$0xff]  }
  0x8f   :  { %3581 = vmatprep.subr.bf16.mxu1 %v6117_v0 }
  0x91   :  { %2727 = vmatmul.mubr.bf16.gmra.mxu0 %v5679_v29  ;;  %2976 = vmatmul.mubr.bf16.gmra.mxu1 %v5680_v30  ;;  %v5767_v29 = vld [vmem:[%s8435_s0 + $0x67c] ss:$36 sps:$4 sm:$0xff]  }
  0x92   :  { %2734 = vmatprep.mubr.bf16.mxu0 %v5682_v31  ;;  %2983 = vmatprep.mubr.bf16.mxu1 %v5684_v32  ;;  %v5769_v30 = vld [vmem:[%s8435_s0 + $0x3fc] ss:$36 sps:$4 sm:$0xff]   ;;  %v5874_v31 = vld [vmem:[%s8434_s1 + $0x1d0] sm:$0xff]  }
  0x93   :  { %3582 = vmatpush1.bf16.msra.mxu1 %v5703_v34  ;;  %v5771_v32 = vld [vmem:[%s8435_s0 + $0x678] ss:$36 sps:$4 sm:$0xff]   ;;  %v5774_v34 = vld [vmem:[%s8435_s0 + $0x6c4] ss:$36 sps:$4 sm:$0xff]  }
  0x94   :  { %3583 = vmatprep.subr.bf16.mxu1 %v6117_v0 }
  0x97   :  { %3584 = vmatpush1.bf16.msra.mxu1 %v5721_v35  ;;  %v5776_v35 = vld [vmem:[%s8435_s0 + $0x444] ss:$36 sps:$4 sm:$0xff]  }
  0x98   :  { %3585 = vmatprep.subr.bf16.mxu1 %v6117_v0 }
  0x99   :  { %2735 = vmatmul.mubr.bf16.gmra.mxu0 %v5686_v36  ;;  %2984 = vmatmul.mubr.bf16.gmra.mxu1 %v5687_v37  ;;  %v5778_v36 = vld [vmem:[%s8435_s0 + $0x6c0] ss:$36 sps:$4 sm:$0xff]  }
  0x9a   :  { %2742 = vmatprep.mubr.bf16.mxu0 %v5689_v38  ;;  %2991 = vmatprep.mubr.bf16.mxu1 %v5691_v39  ;;  %v5779_v37 = vld [vmem:[%s8435_s0 + $0x440] ss:$36 sps:$4 sm:$0xff]   ;;  %v5780_v38 = vld [vmem:[%s8435_s0 + $0x70c] ss:$36 sps:$4 sm:$0xff]  }
  0x9b   :  { %3586 = vmatpush1.bf16.msra.mxu1 %v5737_v40  ;;  %v5782_v39 = vld [vmem:[%s8435_s0 + $0x48c] ss:$36 sps:$4 sm:$0xff]  }
  0x9c   :  { %3587 = vmatprep.subr.bf16.mxu1 %v6117_v0 }
  0x9f   :  { %3588 = vmatpush1.bf16.msra.mxu1 %v5752_v41 }
  0xa0   :  { %3589 = vmatprep.subr.bf16.mxu1 %v6117_v0 }
  0xa1   :  { %2743 = vmatmul.mubr.bf16.gmra.mxu0 %v5693_v43  ;;  %2992 = vmatmul.mubr.bf16.gmra.mxu1 %v5694_v44 }
  0xa2   :  { %2750 = vmatprep.mubr.bf16.mxu0 %v5696_v45  ;;  %2999 = vmatprep.mubr.bf16.mxu1 %v5698_v46 }
  0xa3   :  { %3590 = vmatpush1.bf16.msra.mxu1 %v5766_v47  ;;  %v5785_v47 = vld [vmem:[%s8435_s0 + $0x708] ss:$36 sps:$4 sm:$0xff]  }
  0xa4   :  { %3591 = vmatprep.subr.bf16.mxu1 %v6117_v0 }
  0xa7   :  { %3592 = vmatpush1.bf16.msra.mxu1 %v5784_v48  ;;  %v5786_v48 = vld [vmem:[%s8435_s0 + $0x488] ss:$36 sps:$4 sm:$0xff]  }
  0xa8   :  { %3593 = vmatprep.subr.bf16.mxu1 %v6117_v0 }
  0xa9   :  { %2751 = vmatmul.mubr.bf16.gmra.mxu0 %v5700_v49  ;;  %3000 = vmatmul.mubr.bf16.gmra.mxu1 %v5701_v50  ;;  %v5788_v49 = vld [vmem:[%s8435_s0 + $0x754] ss:$36 sps:$4 sm:$0xff]  }
  0xaa   :  { %2758 = vmatprep.mubr.bf16.mxu0 %v5704_v51  ;;  %3007 = vmatprep.mubr.bf16.mxu1 %v5706_v52  ;;  %v5790_v50 = vld [vmem:[%s8435_s0 + $0x4d4] ss:$36 sps:$4 sm:$0xff]   ;;  %v5888_v51 = vld [vmem:[%s8434_s1 + $0x1c8] sm:$0xff]  }
  0xab   :  { %3594 = vmatpush2.bf16.msra.mxu1 %v5801_v53 }
  0xac   :  { %3595 = vmatprep.subr.bf16.mxu1 %v6117_v0 }
  0xaf   :  { %3596 = vmatpush2.bf16.msra.mxu1 %v5814_v56 }
  0xb0   :  { %3597 = vmatprep.subr.bf16.mxu1 %v6117_v0 }
  0xb1   :  { %2759 = vmatmul.mubr.bf16.gmra.mxu0 %v5708_v54  ;;  %3008 = vmatmul.mubr.bf16.gmra.mxu1 %v5709_v55 }
  0xb2   :  { %2766 = vmatprep.mubr.bf16.mxu0 %v5710_v57  ;;  %3015 = vmatprep.mubr.bf16.mxu1 %v5712_v58 }
  0xb3   :  { %3598 = vmatpush2.bf16.msra.mxu1 %v5828_v4 }
  0xb4   :  { %3599 = vmatprep.subr.bf16.mxu1 %v6117_v0 }
  0xb7   :  { %3600 = vmatpush2.bf16.msra.mxu1 %v5847_v13  ;;  %v5807_v13 = vld [vmem:[%s8435_s0 + $0x5c] ss:$36 sps:$4 sm:$0xff]  }
  0xb8   :  { %3601 = vmatprep.subr.bf16.mxu1 %v6117_v0 }
  0xb9   :  { %2767 = vmatmul.mubr.bf16.gmra.mxu0 %v5714_v59  ;;  %3016 = vmatmul.mubr.bf16.gmra.mxu1 %v5715_v60  ;;  %v5792_v60 = vld [vmem:[%s8435_s0 + $0x750] ss:$36 sps:$4 sm:$0xff]  }
  0xba   :  { %2774 = vmatprep.mubr.bf16.mxu0 %v5717_v61  ;;  %3023 = vmatprep.mubr.bf16.mxu1 %v5719_v62  ;;  %v5793_v61 = vld [vmem:[%s8435_s0 + $0x4d0] ss:$36 sps:$4 sm:$0xff]   ;;  %v5794_v62 = vld [vmem:[%s8435_s0 + $0x51c] ss:$36 sps:$4 sm:$0xff]  }
  0xbb   :  { %3602 = vmatpush2.bf16.msra.mxu1 %v5861_v22 }
  0xbc   :  { %3603 = vmatprep.subr.bf16.mxu1 %v6117_v0 }
  0xbf   :  { %3604 = vmatpush2.bf16.msra.mxu1 %v5874_v31 }
  0xc0   :  { %3605 = vmatprep.subr.bf16.mxu1 %v6117_v0 }
  0xc1   :  { %2775 = vmatmul.mubr.bf16.gmra.mxu0 %v5722_v63  ;;  %3024 = vmatmul.mubr.bf16.gmra.mxu1 %v5723_v1 }
  0xc2   :  { %2782 = vmatprep.mubr.bf16.mxu0 %v5724_v2  ;;  %3031 = vmatprep.mubr.bf16.mxu1 %v5726_v3 }
  0xc3   :  { %3606 = vmatpush2.bf16.msra.mxu1 %v5888_v51 }
  0xc4   :  { %3607 = vmatprep.subr.bf16.mxu1 %v6117_v0  ;;  %v5798_v0 = vld [vmem:[%s8435_s0 + $0x14] ss:$36 sps:$4 sm:$0xff]  }
  0xc9   :  { %2783 = vmatmul.mubr.bf16.gmra.mxu0 %v5728_v5  ;;  %3032 = vmatmul.mubr.bf16.gmra.mxu1 %v5729_v6 }
  0xca   :  { %2790 = vmatprep.mubr.bf16.mxu0 %v5731_v7  ;;  %3039 = vmatprep.mubr.bf16.mxu1 %v5733_v8  ;;  %v5796_v8 = vld [vmem:[%s8435_s0 + $0x10] ss:$36 sps:$4 sm:$0xff]  }
  0xd1   :  { %2791 = vmatmul.mubr.bf16.gmra.mxu0 %v5735_v9  ;;  %3040 = vmatmul.mubr.bf16.gmra.mxu1 %v5736_v10  ;;  %v5799_v9 = vld [vmem:[%s8435_s0 + $0x518] ss:$36 sps:$4 sm:$0xff]   ;;  %v5804_v10 = vld [vmem:[%s8435_s0 + $0x564] ss:$36 sps:$4 sm:$0xff]  }
  0xd2   :  { %2798 = vmatprep.mubr.bf16.mxu0 %v5739_v11  ;;  %3047 = vmatprep.mubr.bf16.mxu1 %v5741_v12 }
  0xd9   :  { %2799 = vmatmul.mubr.bf16.gmra.mxu0 %v5743_v14  ;;  %3048 = vmatmul.mubr.bf16.gmra.mxu1 %v5744_v15  ;;  %v5827_v14 = vld [vmem:[%s8434_s1 + $0x230] sm:$0xff]   ;;  %v5907_v15 = vld [vmem:[%s8434_s1 + $0x1c0] sm:$0xff]  }
  0xda   :  { %2806 = vmatprep.mubr.bf16.mxu0 %v5745_v16  ;;  %3055 = vmatprep.mubr.bf16.mxu1 %v5747_v17 }
  0xdb   :  { %3608 = vmatpush2.bf16.msra.mxu1 %v5907_v15 }
  0xe1   :  { %2807 = vmatmul.mubr.bf16.gmra.mxu0 %v5749_v18  ;;  %3056 = vmatmul.mubr.bf16.gmra.mxu1 %v5750_v19 }
  0xe2   :  { %2814 = vmatprep.mubr.bf16.mxu0 %v5753_v20  ;;  %3063 = vmatprep.mubr.bf16.mxu1 %v5755_v21  ;;  %v5860_v20 = vld [vmem:[%s8434_s1 + $0x228] sm:$0xff]  }
  0xe9   :  { %2815 = vmatmul.mubr.bf16.gmra.mxu0 %v5757_v23  ;;  %3064 = vmatmul.mubr.bf16.gmra.mxu1 %v5758_v24  ;;  %v5802_v23 = vld [vmem:[%s8435_s0 + $0x560] ss:$36 sps:$4 sm:$0xff]   ;;  %v5810_v24 = vld [vmem:[%s8435_s0 + $0x5ac] ss:$36 sps:$4 sm:$0xff]  }
  0xea   :  { %2822 = vmatprep.mubr.bf16.mxu0 %v5759_v25  ;;  %3071 = vmatprep.mubr.bf16.mxu1 %v5761_v26  ;;  %v5813_v25 = vld [vmem:[%s8435_s0 + $0xa4] ss:$36 sps:$4 sm:$0xff]  }
  0xf1   :  { %2823 = vmatmul.mubr.bf16.gmra.mxu0 %v5763_v27  ;;  %3072 = vmatmul.mubr.bf16.gmra.mxu1 %v5764_v28  ;;  %v5887_v28 = vld [vmem:[%s8434_s1 + $0x220] sm:$0xff]  }
  0xf2   :  { %2830 = vmatprep.mubr.bf16.mxu0 %v5767_v29  ;;  %3079 = vmatprep.mubr.bf16.mxu1 %v5769_v30 }
  0xf9   :  { %2831 = vmatmul.mubr.bf16.gmra.mxu0 %v5771_v32  ;;  %3080 = vmatmul.mubr.bf16.gmra.mxu1 %v5772_v33 }
  0xfa   :  { %2838 = vmatprep.mubr.bf16.mxu0 %v5774_v34  ;;  %3087 = vmatprep.mubr.bf16.mxu1 %v5776_v35  ;;  %v5808_v35 = vld [vmem:[%s8435_s0 + $0x5a8] ss:$36 sps:$4 sm:$0xff]  }
 0x101   :  { %v6715_v40 = vpop.f32.mrf.mxu0  ;;  %2839 = vmatmul.mubr.bf16.gmra.mxu0 %v5778_v36  ;;  %v6717_v41 = vpop.f32.mrf.mxu1  ;;  %3088 = vmatmul.mubr.bf16.gmra.mxu1 %v5779_v37  ;;  %v5811_v36 = vld [vmem:[%s8435_s0 + $0xa0] ss:$36 sps:$4 sm:$0xff]   ;;  %v5817_v37 = vld [vmem:[%s8435_s0 + $0x5f4] ss:$36 sps:$4 sm:$0xff]  }
 0x102   :  { %2846 = vmatprep.mubr.bf16.mxu0 %v5780_v38  ;;  %3095 = vmatprep.mubr.bf16.mxu1 %v5782_v39  ;;  %v5820_v38 = vld [vmem:[%s8435_s0 + $0xec] ss:$36 sps:$4 sm:$0xff]  }
 0x103   :  { %v2650_v43 = vpop.f32.mrf.mxu0  ;;  %v2866_v44 = vpop.f32.mrf.mxu1 }
 0x105   :  { %v6719_v45 = vpop.f32.mrf.mxu0  ;;  %v6721_v46 = vpop.f32.mrf.mxu1 }
 0x107   :  { %v2653_v52 = vpop.f32.mrf.mxu0  ;;  %v2869_v53 = vpop.f32.mrf.mxu1 }
 0x108   :  { %v5815_v53 = vld [vmem:[%s8435_s0 + $0x5f0] ss:$36 sps:$4 sm:$0xff]  }
 0x109   :  { %v6738_v54 = vpop.f32.mrf.mxu0  ;;  %2847 = vmatmul.mubr.bf16.gmra.mxu0 %v5785_v47  ;;  %v6740_v55 = vpop.f32.mrf.mxu1  ;;  %3096 = vmatmul.mubr.bf16.gmra.mxu1 %v5786_v48  ;;  %v5920_v48 = vld [vmem:[%s8434_s1 + $0x218] sm:$0xff]  }
 0x10a   :  { %2854 = vmatprep.mubr.bf16.mxu0 %v5788_v49  ;;  %3103 = vmatprep.mubr.bf16.mxu1 %v5790_v50 }
 0x10b   :  { %v2658_v56 = vpop.f32.mrf.mxu0  ;;  %v2874_v57 = vpop.f32.mrf.mxu1 }
 0x10c   :  { %v5818_v56 = vld [vmem:[%s8435_s0 + $0xe8] ss:$36 sps:$4 sm:$0xff]   ;;  %v5823_v57 = vld [vmem:[%s8435_s0 + $0x63c] ss:$36 sps:$4 sm:$0xff]  }
 0x10d   :  { %v6743_v58 = vpop.f32.mrf.mxu0  ;;  %v6745_v59 = vpop.f32.mrf.mxu1 }
 0x10f   :  { %v2661_v63 = vpop.f32.mrf.mxu0  ;;  %v2877_v1 = vpop.f32.mrf.mxu1 }
 0x111   :  { %v6759_v2 = vpop.f32.mrf.mxu0  ;;  %2855 = vmatmul.mubr.bf16.gmra.mxu0 %v5792_v60  ;;  %v6761_v3 = vpop.f32.mrf.mxu1  ;;  %3104 = vmatmul.mubr.bf16.gmra.mxu1 %v5793_v61  ;;  %v5826_v60 = vld [vmem:[%s8435_s0 + $0x134] ss:$36 sps:$4 sm:$0xff]  }
 0x112   :  { %3111 = vmatprep.mubr.bf16.mxu1 %v5794_v62  ;;  %3288 = vmatprep.mubr.bf16.mxu0 %v5798_v0 }
 0x113   :  { %v2666_v4 = vpop.f32.mrf.mxu0  ;;  %v2882_v5 = vpop.f32.mrf.mxu1 }
 0x115   :  { %v6763_v6 = vpop.f32.mrf.mxu0  ;;  %v6765_v7 = vpop.f32.mrf.mxu1 }
 0x117   :  { %v2669_v11 = vpop.f32.mrf.mxu0  ;;  %v2885_v12 = vpop.f32.mrf.mxu1 }
 0x118   :  { %v5831_v11 = vld [vmem:[%s8435_s0 + $0x684] ss:$36 sps:$4 sm:$0xff]   ;;  %v5834_v12 = vld [vmem:[%s8435_s0 + $0x17c] ss:$36 sps:$4 sm:$0xff]  }
 0x119   :  { %v6785_v16 = vpop.f32.mrf.mxu0  ;;  %v6787_v17 = vpop.f32.mrf.mxu1  ;;  %3112 = vmatmul.mubr.bf16.gmra.mxu1 %v5799_v9  ;;  %3289 = vmatmul.mubr.bf16.vlgmr.msra.gmra.mxu0 %v5796_v8  ;;  %v5821_v9 = vld [vmem:[%s8435_s0 + $0x638] ss:$36 sps:$4 sm:$0xff]  }
 0x11a   :  { %5456 = vmatpush3.bf16.msra.mxu0 %v6522_v42  ;;  %3119 = vmatprep.mubr.bf16.mxu1 %v5804_v10  ;;  %v5805_v42 = vld [vmem:[%s8435_s0 + $0x58] ss:$36 sps:$4 sm:$0xff]   ;;  %v5824_v10 = vld [vmem:[%s8435_s0 + $0x130] ss:$36 sps:$4 sm:$0xff]  }
 0x11b   :  { %v2674_v18 = vpop.f32.mrf.mxu0  ;;  %v2890_v19 = vpop.f32.mrf.mxu1  ;;  %3296 = vmatprep.mubr.bf16.mxu0 %v5807_v13  ;;  %5457 = vmatprep.subr.bf16.mxu0 %v5827_v14 }
 0x11d   :  { %v6793_v21 = vpop.f32.mrf.mxu0  ;;  %v6795_v22 = vpop.f32.mrf.mxu1 }
 0x11e   :  { %8438 = vst [vmem:[#allocation2_spill] sm:$0xff] %v6795_v22  ;;  %5458 = vmatpush3.bf16.msra.mxu0 %v5827_v14 }
 0x11f   :  { %v2677_v26 = vpop.f32.mrf.mxu0  ;;  %v2893_v27 = vpop.f32.mrf.mxu1  ;;  %5459 = vmatprep.subr.bf16.mxu0 %v5860_v20 }
 0x120   :  { %v5837_v26 = vld [vmem:[%s8435_s0 + $0x6cc] ss:$36 sps:$4 sm:$0xff]   ;;  %v5840_v27 = vld [vmem:[%s8435_s0 + $0x1c4] ss:$36 sps:$4 sm:$0xff]  }
 0x121   :  { %v6812_v29 = vpop.f32.mrf.mxu0  ;;  %v6814_v30 = vpop.f32.mrf.mxu1  ;;  %3120 = vmatmul.mubr.bf16.gmra.mxu1 %v5802_v23  ;;  %3297 = vmatmul.mubr.bf16.gmra.mxu0 %v5805_v42 }
 0x122   :  { %8439 = vst [vmem:[#allocation3_spill] sm:$0xff] %v6814_v30  ;;  %3127 = vmatprep.mubr.bf16.mxu1 %v5810_v24  ;;  %3304 = vmatprep.mubr.bf16.mxu0 %v5813_v25  ;;  %v5829_v24 = vld [vmem:[%s8435_s0 + $0x680] ss:$36 sps:$4 sm:$0xff]   ;;  %v5832_v25 = vld [vmem:[%s8435_s0 + $0x178] ss:$36 sps:$4 sm:$0xff]  }
 0x123   :  { %v2682_v31 = vpop.f32.mrf.mxu0  ;;  %v2898_v32 = vpop.f32.mrf.mxu1  ;;  %5460 = vmatpush3.bf16.msra.mxu0 %v5860_v20 }
 0x124   :  { %5461 = vmatprep.subr.bf16.mxu0 %v5887_v28 }
 0x125   :  { %v6816_v33 = vpop.f32.mrf.mxu0  ;;  %v6818_v34 = vpop.f32.mrf.mxu1 }
 0x126   :  { %8440 = vst [vmem:[#allocation4_spill] sm:$0xff] %v6818_v34 }
 0x127   :  { %v2685_v39 = vpop.f32.mrf.mxu0  ;;  %v2901_v43 = vpop.f32.mrf.mxu1  ;;  %5462 = vmatpush3.bf16.msra.mxu0 %v5887_v28 }
 0x128   :  { %5463 = vmatprep.subr.bf16.mxu0 %v5920_v48 }
 0x129   :  { %v6832_v44 = vpop.f32.mrf.mxu0  ;;  %v6834_v47 = vpop.f32.mrf.mxu1  ;;  %3128 = vmatmul.mubr.bf16.gmra.mxu1 %v5808_v35  ;;  %3305 = vmatmul.mubr.bf16.gmra.mxu0 %v5811_v36 }
 0x12a   :  { %8441 = vst [vmem:[#allocation5_spill] sm:$0xff] %v6834_v47  ;;  %3135 = vmatprep.mubr.bf16.mxu1 %v5817_v37  ;;  %3312 = vmatprep.mubr.bf16.mxu0 %v5820_v38  ;;  %v6902_v38 = vld [vmem:[%s8436_s2] ss:$0 sm:$0xff] }
 0x12b   :  { %v2690_v49 = vpop.f32.mrf.mxu0  ;;  %v2906_v50 = vpop.f32.mrf.mxu1  ;;  %5464 = vmatpush3.bf16.msra.mxu0 %v5920_v48  ;;  %v5835_v48 = vld [vmem:[%s8435_s0 + $0x6c8] ss:$36 sps:$4 sm:$0xff]  }
 0x12c   :  { %v5838_v49 = vld [vmem:[%s8435_s0 + $0x1c0] ss:$36 sps:$4 sm:$0xff]   ;;  %v5843_v50 = vld [vmem:[%s8435_s0 + $0x714] ss:$36 sps:$4 sm:$0xff]  }
 0x12d   :  { %v6839_v51 = vpop.f32.mrf.mxu0  ;;  %v6841_v52 = vpop.f32.mrf.mxu1 }
 0x12e   :  { %8442 = vst [vmem:[#allocation6_spill] sm:$0xff] %v6841_v52 }
 0x12f   :  { %v2693_v61 = vpop.f32.mrf.mxu0  ;;  %v2909_v62 = vpop.f32.mrf.mxu1 }
 0x131   :  { %v6855_v0 = vpop.f32.mrf.mxu0  ;;  %v6857_v63 = vpop.f32.mrf.mxu1  ;;  %3136 = vmatmul.mubr.bf16.gmra.mxu1 %v5815_v53  ;;  %3313 = vmatmul.mubr.bf16.gmra.mxu0 %v5818_v56  ;;  %v5846_v53 = vld [vmem:[%s8435_s0 + $0x20c] ss:$36 sps:$4 sm:$0xff]  }
 0x132   :  { %8443 = vst [vmem:[#allocation7_spill] sm:$0xff] %v6857_v63  ;;  %3143 = vmatprep.mubr.bf16.mxu1 %v5823_v57  ;;  %3320 = vmatprep.mubr.bf16.mxu0 %v5826_v60  ;;  %v2649_v60 = vadd.f32 %v6902_v38, %v6715_v40  ;;  %v5841_v40 = vld [vmem:[%s8435_s0 + $0x710] ss:$36 sps:$4 sm:$0xff]  }
 0x133   :  { %v2698_v1 = vpop.f32.mrf.mxu0  ;;  %v2914_v4 = vpop.f32.mrf.mxu1 }
 0x135   :  { %v6859_v5 = vpop.f32.mrf.mxu0  ;;  %v6861_v8 = vpop.f32.mrf.mxu1 }
 0x136   :  { %8444 = vst [vmem:[#allocation8_spill] sm:$0xff] %v6861_v8 }
 0x137   :  { %v2701_v13 = vpop.f32.mrf.mxu0  ;;  %v2917_v14 = vpop.f32.mrf.mxu1 }
 0x138   :  { %v5844_v13 = vld [vmem:[%s8435_s0 + $0x208] ss:$36 sps:$4 sm:$0xff]  }
 0x139   :  { %v6875_v15 = vpop.f32.mrf.mxu0  ;;  %v6877_v18 = vpop.f32.mrf.mxu1  ;;  %3144 = vmatmul.mubr.bf16.gmra.mxu1 %v5821_v9  ;;  %3321 = vmatmul.mubr.bf16.gmra.mxu0 %v5824_v10  ;;  %v2652_v10 = vadd.f32 %v6902_v38, %v6719_v45  ;;  %v5853_v45 = vld [vmem:[%s8435_s0 + $0x254] ss:$36 sps:$4 sm:$0xff]  }
 0x13a   :  { %8445 = vst [vmem:[#allocation9_spill] sm:$0xff] %v6877_v18  ;;  %3151 = vmatprep.mubr.bf16.mxu1 %v5831_v11  ;;  %3328 = vmatprep.mubr.bf16.mxu0 %v5834_v12 }
 0x13b   :  { %v2706_v19 = vpop.f32.mrf.mxu0  ;;  %v2922_v20 = vpop.f32.mrf.mxu1 }
 0x13c   :  { %v5850_v19 = vld [vmem:[%s8435_s0 + $0x75c] ss:$36 sps:$4 sm:$0xff]   ;;  %v5945_v20 = vld [vmem:[%s8434_s1 + $0x210] sm:$0xff]  }
 0x13d   :  { %v6879_v23 = vpop.f32.mrf.mxu0  ;;  %v6881_v42 = vpop.f32.mrf.mxu1  ;;  %5465 = vmatprep.subr.bf16.mxu0 %v5945_v20 }
 0x13e   :  { %8446 = vst [vmem:[#allocation10_spill] sm:$0xff] %v6881_v42  ;;  %5466 = vmatpush3.bf16.msra.mxu0 %v5945_v20 }
 0x13f   :  { %v2709_v28 = vpop.f32.mrf.mxu0  ;;  %v2925_v31 = vpop.f32.mrf.mxu1 }
 0x141   :  { %v6895_v32 = vpop.f32.mrf.mxu0  ;;  %v6897_v35 = vpop.f32.mrf.mxu1  ;;  %3152 = vmatmul.mubr.bf16.gmra.mxu1 %v5829_v24  ;;  %3329 = vmatmul.mubr.bf16.gmra.mxu0 %v5832_v25 }
 0x142   :  { %8447 = vst [vmem:[#allocation11_spill] sm:$0xff] %v6897_v35  ;;  %3159 = vmatprep.mubr.bf16.mxu1 %v5837_v26  ;;  %3336 = vmatprep.mubr.bf16.mxu0 %v5840_v27  ;;  %v2657_v26 = vadd.f32 %v6902_v38, %v6738_v54  ;;  %v5848_v54 = vld [vmem:[%s8435_s0 + $0x758] ss:$36 sps:$4 sm:$0xff]  }
 0x143   :  { %v2714_v36 = vpop.f32.mrf.mxu0  ;;  %v2930_v37 = vpop.f32.mrf.mxu1 }
 0x145   :  { %v6904_v39 = vpop.f32.mrf.mxu0  ;;  %v6906_v43 = vpop.f32.mrf.mxu1 }
 0x146   :  { %8448 = vst [vmem:[#allocation12_spill] sm:$0xff] %v6906_v43  ;;  %v2716_v35 = vadd.f32 %v6902_v38, %v6904_v39  ;;  %v5906_v39 = vld [vmem:[%s8435_s0 + $0x494] ss:$36 sps:$4 sm:$0xff]  }
 0x147   :  { %v2717_v56 = vpop.f32.mrf.mxu0  ;;  %v2933_v57 = vpop.f32.mrf.mxu1 }
 0x148   :  { %v5856_v57 = vld [vmem:[%s8435_s0 + $0x7a4] ss:$36 sps:$4 sm:$0xff]  }
 0x149   :  { %v6922_v61 = vpop.f32.mrf.mxu0  ;;  %v2969_v62 = vpop.f32.mrf.mxu1  ;;  %3160 = vmatmul.mubr.bf16.gmra.mxu1 %v5835_v48  ;;  %3337 = vmatmul.mubr.bf16.gmra.mxu0 %v5838_v49  ;;  %v2660_v48 = vadd.f32 %v6902_v38, %v6743_v58  ;;  %v5859_v58 = vld [vmem:[%s8435_s0 + $0x29c] ss:$36 sps:$4 sm:$0xff]  }
 0x14a   :  { %v6924_v1 = vadd.f32 %v2969_v62, %v2649_v60  ;;  %3167 = vmatprep.mubr.bf16.mxu1 %v5843_v50  ;;  %3344 = vmatprep.mubr.bf16.mxu0 %v5846_v53  ;;  %v5851_v53 = vld [vmem:[%s8435_s0 + $0x250] ss:$36 sps:$4 sm:$0xff]  }
 0x14b   :  { %v2722_v4 = vpop.f32.mrf.mxu0  ;;  %v2971_v9 = vpop.f32.mrf.mxu1 }
 0x14c   :  { %v2665_v4 = vadd.f32 %v6902_v38, %v6759_v2  ;;  %v5854_v2 = vld [vmem:[%s8435_s0 + $0x7a0] ss:$36 sps:$4 sm:$0xff]  }
 0x14d   :  { %v6928_v11 = vpop.f32.mrf.mxu0  ;;  %v2972_v12 = vpop.f32.mrf.mxu1 }
 0x14e   :  { %v6936_v14 = vadd.f32 %v2972_v12, %v2652_v10  ;;  %v2724_v18 = vadd.f32 %v6902_v38, %v6928_v11  ;;  %v5913_v11 = vld [vmem:[%s8435_s0 + $0x4dc] ss:$36 sps:$4 sm:$0xff]  }
 0x14f   :  { %v2725_v24 = vpop.f32.mrf.mxu0  ;;  %v2974_v25 = vpop.f32.mrf.mxu1 }
 0x150   :  { %v5857_v24 = vld [vmem:[%s8435_s0 + $0x298] ss:$36 sps:$4 sm:$0xff]  }
 0x151   :  { %v6949_v27 = vpop.f32.mrf.mxu0  ;;  %v2977_v28 = vpop.f32.mrf.mxu1  ;;  %3168 = vmatmul.mubr.bf16.gmra.mxu1 %v5841_v40  ;;  %3345 = vmatmul.mubr.bf16.gmra.mxu0 %v5844_v13 }
 0x152   :  { %v6951_v31 = vadd.f32 %v2977_v28, %v2657_v26  ;;  %3175 = vmatprep.mubr.bf16.mxu1 %v5850_v19  ;;  %3352 = vmatprep.mubr.bf16.mxu0 %v5853_v45  ;;  %v2668_v19 = vadd.f32 %v6902_v38, %v6763_v6  ;;  %v5864_v26 = vld [vmem:[%s8435_s0 + $0x7ec] ss:$36 sps:$4 sm:$0xff]   ;;  %v5867_v6 = vld [vmem:[%s8435_s0 + $0x2e4] ss:$36 sps:$4 sm:$0xff]  }
 0x153   :  { %v2730_v36 = vpop.f32.mrf.mxu0  ;;  %v2979_v37 = vpop.f32.mrf.mxu1 }
 0x154   :  { %v2673_v37 = vadd.f32 %v6902_v38, %v6785_v16  ;;  %v5862_v16 = vld [vmem:[%s8435_s0 + $0x7e8] ss:$36 sps:$4 sm:$0xff]  }
 0x155   :  { %v6955_v49 = vpop.f32.mrf.mxu0  ;;  %v2980_v50 = vpop.f32.mrf.mxu1 }
 0x156   :  { %v6963_v56 = vadd.f32 %v2980_v50, %v2660_v48 }
 0x157   :  { %v2733_v60 = vpop.f32.mrf.mxu0  ;;  %v2982_v62 = vpop.f32.mrf.mxu1 }
 0x159   :  { %v6973_v9 = vpop.f32.mrf.mxu0  ;;  %v2985_v10 = vpop.f32.mrf.mxu1  ;;  %3176 = vmatmul.mubr.bf16.gmra.mxu1 %v5848_v54  ;;  %3353 = vmatmul.mubr.bf16.gmra.mxu0 %v5851_v53 }
 0x15a   :  { %v6975_v12 = vadd.f32 %v2985_v10, %v2665_v4  ;;  %3183 = vmatprep.mubr.bf16.mxu1 %v5856_v57  ;;  %3360 = vmatprep.mubr.bf16.mxu0 %v5859_v58  ;;  %v2676_v58 = vadd.f32 %v6902_v38, %v6793_v21  ;;  %v5865_v4 = vld [vmem:[%s8435_s0 + $0x2e0] ss:$36 sps:$4 sm:$0xff]   ;;  %v5873_v21 = vld [vmem:[%s8435_s0 + $0x32c] ss:$36 sps:$4 sm:$0xff]  }
 0x15b   :  { %v2738_v40 = vpop.f32.mrf.mxu0  ;;  %v2987_v13 = vpop.f32.mrf.mxu1 }
 0x15c   :  { %v5870_v40 = vld [vmem:[%s8435_s0 + $0x834] ss:$36 sps:$4 sm:$0xff]  }
 0x15d   :  { %v6979_v45 = vpop.f32.mrf.mxu0  ;;  %v2988_v20 = vpop.f32.mrf.mxu1 }
 0x15e   :  { %v6987_v25 = vadd.f32 %v2988_v20, %v2668_v19  ;;  %v2681_v20 = vadd.f32 %v6902_v38, %v6812_v29  ;;  %v5868_v29 = vld [vmem:[%s8435_s0 + $0x830] ss:$36 sps:$4 sm:$0xff]   ;;  %v2740_v47 = vadd.f32 %v6902_v38, %v6979_v45  ;;  %v5926_v45 = vld [vmem:[%s8435_s0 + $0x64] ss:$36 sps:$4 sm:$0xff]  }
 0x15f   :  { %v2741_v28 = vpop.f32.mrf.mxu0  ;;  %v2990_v36 = vpop.f32.mrf.mxu1 }
 0x160   :  { %v2684_v36 = vadd.f32 %v6902_v38, %v6816_v33  ;;  %v5880_v33 = vld [vmem:[%s8435_s0 + $0x374] ss:$36 sps:$4 sm:$0xff]  }
 0x161   :  { %v6997_v48 = vpop.f32.mrf.mxu0  ;;  %v2993_v50 = vpop.f32.mrf.mxu1  ;;  %3184 = vmatmul.mubr.bf16.gmra.mxu1 %v5854_v2  ;;  %3361 = vmatmul.mubr.bf16.gmra.mxu0 %v5857_v24 }
 0x162   :  { %v6999_v54 = vadd.f32 %v2993_v50, %v2673_v37  ;;  %3191 = vmatprep.mubr.bf16.mxu1 %v5864_v26  ;;  %3368 = vmatprep.mubr.bf16.mxu0 %v5867_v6 }
 0x163   :  { %v2746_v53 = vpop.f32.mrf.mxu0  ;;  %v2995_v57 = vpop.f32.mrf.mxu1 }
 0x164   :  { %v5871_v53 = vld [vmem:[%s8435_s0 + $0x328] ss:$36 sps:$4 sm:$0xff]  }
 0x165   :  { %v7003_v60 = vpop.f32.mrf.mxu0  ;;  %v2996_v62 = vpop.f32.mrf.mxu1 }
 0x166   :  { %v7011_v10 = vadd.f32 %v2996_v62, %v2676_v58  ;;  %v5877_v58 = vld [vmem:[%s8435_s0 + $0x87c] ss:$36 sps:$4 sm:$0xff]   ;;  %v2748_v30 = vadd.f32 %v6902_v38, %v7003_v60  ;;  %v5932_v60 = vld [vmem:[%s8435_s0 + $0xac] ss:$36 sps:$4 sm:$0xff]  }
 0x167   :  { %v2749_v13 = vpop.f32.mrf.mxu0  ;;  %v2998_v19 = vpop.f32.mrf.mxu1 }
 0x168   :  { %v5976_v19 = vld [vmem:[%s8434_s1 + $0x208] sm:$0xff]  }
 0x169   :  { %v7021_v2 = vpop.f32.mrf.mxu0  ;;  %v3001_v24 = vpop.f32.mrf.mxu1  ;;  %3192 = vmatmul.mubr.bf16.gmra.mxu1 %v5862_v16  ;;  %3369 = vmatmul.mubr.bf16.gmra.mxu0 %v5865_v4  ;;  %v2689_v4 = vadd.f32 %v6902_v38, %v6832_v44 }
 0x16a   :  { %v7023_v26 = vadd.f32 %v3001_v24, %v2681_v20  ;;  %3199 = vmatprep.mubr.bf16.mxu1 %v5870_v40  ;;  %3376 = vmatprep.mubr.bf16.mxu0 %v5873_v21 }
 0x16b   :  { %v2754_v6 = vpop.f32.mrf.mxu0  ;;  %v3003_v28 = vpop.f32.mrf.mxu1  ;;  %5467 = vmatprep.subr.bf16.mxu0 %v5976_v19 }
 0x16c   :  { %v2692_v6 = vadd.f32 %v6902_v38, %v6839_v51  ;;  %5468 = vmatpush3.bf16.msra.mxu0 %v5976_v19  ;;  %v5886_v51 = vld [vmem:[%s8435_s0 + $0x3bc] ss:$36 sps:$4 sm:$0xff]  }
 0x16d   :  { %v7027_v37 = vpop.f32.mrf.mxu0  ;;  %v3004_v50 = vpop.f32.mrf.mxu1 }
 0x16e   :  { %v7035_v57 = vadd.f32 %v3004_v50, %v2684_v36  ;;  %v5875_v36 = vld [vmem:[%s8435_s0 + $0x878] ss:$36 sps:$4 sm:$0xff]   ;;  %v5878_v50 = vld [vmem:[%s8435_s0 + $0x370] ss:$36 sps:$4 sm:$0xff]  }
 0x16f   :  { %v2757_v62 = vpop.f32.mrf.mxu0  ;;  %v3006_v16 = vpop.f32.mrf.mxu1 }
 0x170   :  { %v2697_v62 = vadd.f32 %v6902_v38, %v6855_v0  ;;  %v5881_v0 = vld [vmem:[%s8435_s0 + $0x8c0] ss:$36 sps:$4 sm:$0xff]  }
 0x171   :  { %v7045_v40 = vpop.f32.mrf.mxu0  ;;  %v3009_v21 = vpop.f32.mrf.mxu1  ;;  %3200 = vmatmul.mubr.bf16.gmra.mxu1 %v5868_v29  ;;  %3377 = vmatmul.mubr.bf16.gmra.mxu0 %v5871_v53  ;;  %v5883_v53 = vld [vmem:[%s8435_s0 + $0x8c4] ss:$36 sps:$4 sm:$0xff]  }
 0x172   :  { %v7047_v13 = vadd.f32 %v3009_v21, %v2689_v4  ;;  %3207 = vmatprep.mubr.bf16.mxu1 %v5877_v58  ;;  %3384 = vmatprep.mubr.bf16.mxu0 %v5880_v33 }
 0x173   :  { %v2762_v20 = vpop.f32.mrf.mxu0  ;;  %v3011_v24 = vpop.f32.mrf.mxu1 }
 0x174   :  { %v2700_v24 = vadd.f32 %v6902_v38, %v6859_v5  ;;  %v5894_v5 = vld [vmem:[%s8435_s0 + $0x404] ss:$36 sps:$4 sm:$0xff]  }
 0x175   :  { %v7054_v44 = vpop.f32.mrf.mxu0  ;;  %v3012_v28 = vpop.f32.mrf.mxu1 }
 0x176   :  { %v7062_v29 = vadd.f32 %v3012_v28, %v2692_v6 }
 0x177   :  { %v2765_v58 = vpop.f32.mrf.mxu0  ;;  %v3014_v33 = vpop.f32.mrf.mxu1 }
 0x178   :  { %v2705_v33 = vadd.f32 %v6902_v38, %v6875_v15  ;;  %v5889_v15 = vld [vmem:[%s8435_s0 + $0x908] ss:$36 sps:$4 sm:$0xff]  }
 0x179   :  { %v7072_v16 = vpop.f32.mrf.mxu0  ;;  %v3017_v4 = vpop.f32.mrf.mxu1  ;;  %3208 = vmatmul.mubr.bf16.gmra.mxu1 %v5875_v36  ;;  %3385 = vmatmul.mubr.bf16.gmra.mxu0 %v5878_v50  ;;  %v5884_v36 = vld [vmem:[%s8435_s0 + $0x3b8] ss:$36 sps:$4 sm:$0xff]  }
 0x17a   :  { %v7074_v21 = vadd.f32 %v3017_v4, %v2697_v62  ;;  %3215 = vmatprep.mubr.bf16.mxu1 %v5883_v53  ;;  %3392 = vmatprep.mubr.bf16.mxu0 %v5886_v51  ;;  %v5891_v53 = vld [vmem:[%s8435_s0 + $0x90c] ss:$36 sps:$4 sm:$0xff]  }
 0x17b   :  { %v2770_v19 = vpop.f32.mrf.mxu0  ;;  %v3019_v20 = vpop.f32.mrf.mxu1 }
 0x17d   :  { %v7078_v6 = vpop.f32.mrf.mxu0  ;;  %v3020_v28 = vpop.f32.mrf.mxu1 }
 0x17e   :  { %v7086_v50 = vadd.f32 %v3020_v28, %v2700_v24  ;;  %v2708_v28 = vadd.f32 %v6902_v38, %v6879_v23  ;;  %v5900_v23 = vld [vmem:[%s8435_s0 + $0x44c] ss:$36 sps:$4 sm:$0xff]  }
 0x17f   :  { %v2773_v51 = vpop.f32.mrf.mxu0  ;;  %v3022_v58 = vpop.f32.mrf.mxu1 }
 0x181   :  { %v7096_v62 = vpop.f32.mrf.mxu0  ;;  %v3025_v4 = vpop.f32.mrf.mxu1  ;;  %3216 = vmatmul.mubr.bf16.gmra.mxu1 %v5881_v0  ;;  %3393 = vmatmul.mubr.bf16.gmra.mxu0 %v5884_v36  ;;  %v5892_v0 = vld [vmem:[%s8435_s0 + $0x400] ss:$36 sps:$4 sm:$0xff]  }
 0x182   :  { %v7098_v19 = vadd.f32 %v3025_v4, %v2705_v33  ;;  %3223 = vmatprep.mubr.bf16.mxu1 %v5891_v53  ;;  %3400 = vmatprep.mubr.bf16.mxu0 %v5894_v5  ;;  %v5897_v53 = vld [vmem:[%s8435_s0 + $0x954] ss:$36 sps:$4 sm:$0xff]   ;;  %v2713_v33 = vadd.f32 %v6902_v38, %v6895_v32 }
 0x183   :  { %v2778_v20 = vpop.f32.mrf.mxu0  ;;  %v3027_v24 = vpop.f32.mrf.mxu1  ;;  %v5895_v32 = vld [vmem:[%s8435_s0 + $0x950] ss:$36 sps:$4 sm:$0xff]  }
 0x185   :  { %v7102_v43 = vpop.f32.mrf.mxu0  ;;  %v3028_v51 = vpop.f32.mrf.mxu1 }
 0x186   :  { %v7110_v36 = vadd.f32 %v3028_v51, %v2708_v28 }
 0x187   :  { %v2781_v5 = vpop.f32.mrf.mxu0  ;;  %v3030_v58 = vpop.f32.mrf.mxu1 }
 0x189   :  { %v7120_v4 = vpop.f32.mrf.mxu0  ;;  %v3033_v20 = vpop.f32.mrf.mxu1  ;;  %3224 = vmatmul.mubr.bf16.gmra.mxu1 %v5889_v15  ;;  %3401 = vmatmul.mubr.bf16.gmra.mxu0 %v5892_v0  ;;  %v5898_v15 = vld [vmem:[%s8435_s0 + $0x448] ss:$36 sps:$4 sm:$0xff]  }
 0x18a   :  { %v7122_v24 = vadd.f32 %v3033_v20, %v2713_v33  ;;  %3231 = vmatprep.mubr.bf16.mxu1 %v5897_v53  ;;  %3408 = vmatprep.mubr.bf16.mxu0 %v5900_v23  ;;  %v5903_v53 = vld [vmem:[%s8435_s0 + $0x99c] ss:$36 sps:$4 sm:$0xff]   ;;  %v2721_v33 = vadd.f32 %v6902_v38, %v6922_v61 }
 0x18b   :  { %v2786_v28 = vpop.f32.mrf.mxu0  ;;  %v3035_v51 = vpop.f32.mrf.mxu1  ;;  %v5901_v61 = vld [vmem:[%s8435_s0 + $0x998] ss:$36 sps:$4 sm:$0xff]  }
 0x18d   :  { %v7126_v42 = vpop.f32.mrf.mxu0  ;;  %v3036_v5 = vpop.f32.mrf.mxu1 }
 0x18e   :  { %v7134_v0 = vadd.f32 %v3036_v5, %v2716_v35 }
 0x18f   :  { %v2789_v23 = vpop.f32.mrf.mxu0  ;;  %v3038_v58 = vpop.f32.mrf.mxu1 }
 0x191   :  { %v7144_v20 = vpop.f32.mrf.mxu0  ;;  %v3041_v28 = vpop.f32.mrf.mxu1  ;;  %3232 = vmatmul.mubr.bf16.gmra.mxu1 %v5895_v32  ;;  %3409 = vmatmul.mubr.bf16.gmra.mxu0 %v5898_v15  ;;  %v5904_v32 = vld [vmem:[%s8435_s0 + $0x490] ss:$36 sps:$4 sm:$0xff]  }
 0x192   :  { %v7146_v35 = vadd.f32 %v3041_v28, %v2721_v33  ;;  %3239 = vmatprep.mubr.bf16.mxu1 %v5903_v53  ;;  %3416 = vmatprep.mubr.bf16.mxu0 %v5906_v39  ;;  %v5910_v53 = vld [vmem:[%s8435_s0 + $0x9e4] ss:$36 sps:$4 sm:$0xff]   ;;  %v2729_v28 = vadd.f32 %v6902_v38, %v6949_v27 }
 0x193   :  { %v2794_v51 = vpop.f32.mrf.mxu0  ;;  %v3043_v5 = vpop.f32.mrf.mxu1  ;;  %v6001_v39 = vld [vmem:[%s8434_s1 + $0x200] sm:$0xff]  }
 0x194   :  { %5469 = vmatprep.subr.bf16.mxu0 %v6001_v39  ;;  %v5908_v27 = vld [vmem:[%s8435_s0 + $0x9e0] ss:$36 sps:$4 sm:$0xff]  }
 0x195   :  { %v7150_v8 = vpop.f32.mrf.mxu0  ;;  %v3044_v23 = vpop.f32.mrf.mxu1  ;;  %5470 = vmatpush3.bf16.msra.mxu0 %v6001_v39  ;;  %v2737_v39 = vadd.f32 %v6902_v38, %v6973_v9  ;;  %v5914_v9 = vld [vmem:[%s8435_s0 + $0x520] ss:$36 sps:$4 sm:$0xff]  }
 0x196   :  { %v7158_v15 = vadd.f32 %v3044_v23, %v2724_v18 }
 0x197   :  { %v2797_v58 = vpop.f32.mrf.mxu0  ;;  %v3046_v33 = vpop.f32.mrf.mxu1 }
 0x198   :  { %v2732_v58 = vadd.f32 %v6902_v38, %v6955_v49  ;;  %v5919_v49 = vld [vmem:[%s8435_s0 + $0x1c] ss:$36 sps:$4 sm:$0xff]  }
 0x199   :  { %v7171_v18 = vpop.f32.mrf.mxu0  ;;  %v3049_v51 = vpop.f32.mrf.mxu1  ;;  %3240 = vmatmul.mubr.bf16.gmra.mxu1 %v5901_v61  ;;  %3417 = vmatmul.mubr.bf16.gmra.mxu0 %v5904_v32  ;;  %v5911_v61 = vld [vmem:[%s8435_s0 + $0x4d8] ss:$36 sps:$4 sm:$0xff]  }
 0x19a   :  { %v7173_v5 = vadd.f32 %v3049_v51, %v2729_v28  ;;  %3247 = vmatprep.mubr.bf16.mxu1 %v5910_v53  ;;  %3424 = vmatprep.mubr.bf16.mxu0 %v5913_v11 }
 0x19b   :  { %v2802_v23 = vpop.f32.mrf.mxu0  ;;  %v3051_v63 = vpop.f32.mrf.mxu1 }
 0x19c   :  { %v5916_v63 = vld [vmem:[%s8435_s0 + $0x524] ss:$36 sps:$4 sm:$0xff]  }
 0x19d   :  { %v7177_v33 = vpop.f32.mrf.mxu0  ;;  %v3052_v52 = vpop.f32.mrf.mxu1 }
 0x19e   :  { %v7185_v32 = vadd.f32 %v3052_v52, %v2732_v58 }
 0x19f   :  { %v2805_v53 = vpop.f32.mrf.mxu0  ;;  %v3054_v11 = vpop.f32.mrf.mxu1 }
 0x1a1   :  { %v7195_v28 = vpop.f32.mrf.mxu0  ;;  %v3057_v51 = vpop.f32.mrf.mxu1  ;;  %3248 = vmatmul.mubr.bf16.gmra.mxu1 %v5908_v27  ;;  %3425 = vmatmul.mubr.bf16.gmra.mxu0 %v5911_v61  ;;  %v5917_v27 = vld [vmem:[%s8435_s0 + $0x18] ss:$36 sps:$4 sm:$0xff]  }
 0x1a2   :  { %v7197_v52 = vadd.f32 %v3057_v51, %v2737_v39  ;;  %3432 = vmatprep.mubr.bf16.mxu0 %v5916_v63  ;;  %3609 = vmatprep.mubr.bf16.mxu1 %v5919_v49  ;;  %v5923_v63 = vld [vmem:[%s8435_s0 + $0x56c] ss:$36 sps:$4 sm:$0xff]   ;;  %v2745_v39 = vadd.f32 %v6902_v38, %v6997_v48 }
 0x1a3   :  { %v2810_v23 = vpop.f32.mrf.mxu0  ;;  %v3059_v58 = vpop.f32.mrf.mxu1  ;;  %v5921_v48 = vld [vmem:[%s8435_s0 + $0x568] ss:$36 sps:$4 sm:$0xff]  }
 0x1a5   :  { %v7201_v34 = vpop.f32.mrf.mxu0  ;;  %v3060_v53 = vpop.f32.mrf.mxu1 }
 0x1a6   :  { %v7209_v61 = vadd.f32 %v3060_v53, %v2740_v47 }
 0x1a7   :  { %v2813_v49 = vpop.f32.mrf.mxu0  ;;  %v3062_v11 = vpop.f32.mrf.mxu1 }
 0x1a9   :  { %v7219_v51 = vpop.f32.mrf.mxu0  ;;  %v3065_v23 = vpop.f32.mrf.mxu1  ;;  %3433 = vmatmul.mubr.bf16.gmra.mxu0 %v5914_v9  ;;  %3610 = vmatmul.mubr.bf16.vlgmr.msra.gmra.mxu1 %v5917_v27  ;;  %v5924_v9 = vld [vmem:[%s8435_s0 + $0x60] ss:$36 sps:$4 sm:$0xff]  }
 0x1aa   :  { %v7221_v47 = vadd.f32 %v3065_v23, %v2745_v39  ;;  %3440 = vmatprep.mubr.bf16.mxu0 %v5923_v63  ;;  %3617 = vmatprep.mubr.bf16.mxu1 %v5926_v45  ;;  %v5929_v63 = vld [vmem:[%s8435_s0 + $0x5b4] ss:$36 sps:$4 sm:$0xff]   ;;  %v2753_v39 = vadd.f32 %v6902_v38, %v7021_v2 }
 0x1ab   :  { %v2818_v58 = vpop.f32.mrf.mxu0  ;;  %v3067_v53 = vpop.f32.mrf.mxu1  ;;  %v5927_v2 = vld [vmem:[%s8435_s0 + $0x5b0] ss:$36 sps:$4 sm:$0xff]  }
 0x1ac   :  { %8449 = vst [vmem:[#allocation13_spill] sm:$0xff] %v7221_v47 }
 0x1ad   :  { %v7225_v22 = vpop.f32.mrf.mxu0  ;;  %v3068_v49 = vpop.f32.mrf.mxu1 }
 0x1ae   :  { %v7233_v27 = vadd.f32 %v3068_v49, %v2748_v30 }
 0x1af   :  { %v2821_v45 = vpop.f32.mrf.mxu0  ;;  %v3070_v11 = vpop.f32.mrf.mxu1 }
 0x1b0   :  { %8450 = vst [vmem:[#allocation14_spill] sm:$0xff] %v7233_v27  ;;  %v2756_v27 = vadd.f32 %v6902_v38, %v7027_v37  ;;  %v5938_v37 = vld [vmem:[%s8435_s0 + $0xf4] ss:$36 sps:$4 sm:$0xff]  }
 0x1b1   :  { %v7243_v23 = vpop.f32.mrf.mxu0  ;;  %v3073_v58 = vpop.f32.mrf.mxu1  ;;  %3441 = vmatmul.mubr.bf16.gmra.mxu0 %v5921_v48  ;;  %3618 = vmatmul.mubr.bf16.gmra.mxu1 %v5924_v9  ;;  %v5930_v48 = vld [vmem:[%s8435_s0 + $0xa8] ss:$36 sps:$4 sm:$0xff]  }
 0x1b2   :  { %v7245_v30 = vadd.f32 %v3073_v58, %v2753_v39  ;;  %3448 = vmatprep.mubr.bf16.mxu0 %v5929_v63  ;;  %3625 = vmatprep.mubr.bf16.mxu1 %v5932_v60  ;;  %v5935_v63 = vld [vmem:[%s8435_s0 + $0x5fc] ss:$36 sps:$4 sm:$0xff]   ;;  %v2761_v39 = vadd.f32 %v6902_v38, %v7045_v40 }
 0x1b3   :  { %v2826_v53 = vpop.f32.mrf.mxu0  ;;  %v3075_v49 = vpop.f32.mrf.mxu1  ;;  %v5933_v40 = vld [vmem:[%s8435_s0 + $0x5f8] ss:$36 sps:$4 sm:$0xff]  }
 0x1b4   :  { %8451 = vst [vmem:[#allocation15_spill] sm:$0xff] %v7245_v30 }
 0x1b5   :  { %v7249_v47 = vpop.f32.mrf.mxu0  ;;  %v3076_v45 = vpop.f32.mrf.mxu1 }
 0x1b6   :  { %v7257_v9 = vadd.f32 %v3076_v45, %v2756_v27 }
 0x1b7   :  { %v2829_v60 = vpop.f32.mrf.mxu0  ;;  %v3078_v11 = vpop.f32.mrf.mxu1 }
 0x1b8   :  { %8452 = vst [vmem:[#allocation16_spill] sm:$0xff] %v7257_v9  ;;  %v2764_v9 = vadd.f32 %v6902_v38, %v7054_v44  ;;  %v5944_v44 = vld [vmem:[%s8435_s0 + $0x13c] ss:$36 sps:$4 sm:$0xff]  }
 0x1b9   :  { %v7267_v58 = vpop.f32.mrf.mxu0  ;;  %v3081_v53 = vpop.f32.mrf.mxu1  ;;  %3449 = vmatmul.mubr.bf16.gmra.mxu0 %v5927_v2  ;;  %3626 = vmatmul.mubr.bf16.gmra.mxu1 %v5930_v48  ;;  %v5936_v2 = vld [vmem:[%s8435_s0 + $0xf0] ss:$36 sps:$4 sm:$0xff]  }
 0x1ba   :  { %v7269_v27 = vadd.f32 %v3081_v53, %v2761_v39  ;;  %3456 = vmatprep.mubr.bf16.mxu0 %v5935_v63  ;;  %3633 = vmatprep.mubr.bf16.mxu1 %v5938_v37  ;;  %v5941_v63 = vld [vmem:[%s8435_s0 + $0x644] ss:$36 sps:$4 sm:$0xff]   ;;  %v2769_v39 = vadd.f32 %v6902_v38, %v7072_v16 }
 0x1bb   :  { %v2834_v49 = vpop.f32.mrf.mxu0  ;;  %v3083_v45 = vpop.f32.mrf.mxu1  ;;  %v5939_v16 = vld [vmem:[%s8435_s0 + $0x640] ss:$36 sps:$4 sm:$0xff]  }
 0x1bc   :  { %8453 = vst [vmem:[#allocation17_spill] sm:$0xff] %v7269_v27 }
 0x1bd   :  { %v7273_v30 = vpop.f32.mrf.mxu0  ;;  %v3084_v60 = vpop.f32.mrf.mxu1 }
 0x1be   :  { %v7281_v48 = vadd.f32 %v3084_v60, %v2764_v9 }
 0x1bf   :  { %v2837_v37 = vpop.f32.mrf.mxu0  ;;  %v3086_v11 = vpop.f32.mrf.mxu1 }
 0x1c0   :  { %8454 = vst [vmem:[#allocation18_spill] sm:$0xff] %v7281_v48  ;;  %v2772_v48 = vadd.f32 %v6902_v38, %v7078_v6  ;;  %v5951_v6 = vld [vmem:[%s8435_s0 + $0x184] ss:$36 sps:$4 sm:$0xff]  }
 0x1c1   :  { %v7291_v53 = vpop.f32.mrf.mxu0  ;;  %v3089_v49 = vpop.f32.mrf.mxu1  ;;  %3457 = vmatmul.mubr.bf16.gmra.mxu0 %v5933_v40  ;;  %3634 = vmatmul.mubr.bf16.gmra.mxu1 %v5936_v2  ;;  %v5942_v40 = vld [vmem:[%s8435_s0 + $0x138] ss:$36 sps:$4 sm:$0xff]  }
 0x1c2   :  { %v7293_v9 = vadd.f32 %v3089_v49, %v2769_v39  ;;  %3464 = vmatprep.mubr.bf16.mxu0 %v5941_v63  ;;  %3641 = vmatprep.mubr.bf16.mxu1 %v5944_v44  ;;  %v5948_v63 = vld [vmem:[%s8435_s0 + $0x68c] ss:$36 sps:$4 sm:$0xff]   ;;  %v2777_v39 = vadd.f32 %v6902_v38, %v7096_v62 }
 0x1c3   :  { %v2842_v45 = vpop.f32.mrf.mxu0  ;;  %v3091_v60 = vpop.f32.mrf.mxu1  ;;  %v5946_v62 = vld [vmem:[%s8435_s0 + $0x688] ss:$36 sps:$4 sm:$0xff]  }
 0x1c4   :  { %8455 = vst [vmem:[#allocation19_spill] sm:$0xff] %v7293_v9 }
 0x1c5   :  { %v7297_v27 = vpop.f32.mrf.mxu0  ;;  %v3092_v37 = vpop.f32.mrf.mxu1 }
 0x1c6   :  { %v7305_v2 = vadd.f32 %v3092_v37, %v2772_v48 }
 0x1c7   :  { %v2845_v44 = vpop.f32.mrf.mxu0  ;;  %v3094_v11 = vpop.f32.mrf.mxu1 }
 0x1c8   :  { %8456 = vst [vmem:[#allocation20_spill] sm:$0xff] %v7305_v2  ;;  %v2780_v2 = vadd.f32 %v6902_v38, %v7102_v43  ;;  %v5957_v43 = vld [vmem:[%s8435_s0 + $0x1cc] ss:$36 sps:$4 sm:$0xff]  }
 0x1c9   :  { %v7315_v49 = vpop.f32.mrf.mxu0  ;;  %v3097_v45 = vpop.f32.mrf.mxu1  ;;  %3465 = vmatmul.mubr.bf16.gmra.mxu0 %v5939_v16  ;;  %3642 = vmatmul.mubr.bf16.gmra.mxu1 %v5942_v40  ;;  %v5949_v16 = vld [vmem:[%s8435_s0 + $0x180] ss:$36 sps:$4 sm:$0xff]  }
 0x1ca   :  { %v7317_v48 = vadd.f32 %v3097_v45, %v2777_v39  ;;  %3472 = vmatprep.mubr.bf16.mxu0 %v5948_v63  ;;  %3649 = vmatprep.mubr.bf16.mxu1 %v5951_v6  ;;  %v5954_v63 = vld [vmem:[%s8435_s0 + $0x6d4] ss:$36 sps:$4 sm:$0xff]   ;;  %v2785_v39 = vadd.f32 %v6902_v38, %v7120_v4 }
 0x1cb   :  { %v2850_v60 = vpop.f32.mrf.mxu0  ;;  %v3099_v37 = vpop.f32.mrf.mxu1  ;;  %v5952_v4 = vld [vmem:[%s8435_s0 + $0x6d0] ss:$36 sps:$4 sm:$0xff]  }
 0x1cc   :  { %8457 = vst [vmem:[#allocation21_spill] sm:$0xff] %v7317_v48 }
 0x1cd   :  { %v7321_v9 = vpop.f32.mrf.mxu0  ;;  %v3100_v44 = vpop.f32.mrf.mxu1 }
 0x1ce   :  { %v7329_v40 = vadd.f32 %v3100_v44, %v2780_v2 }
 0x1cf   :  { %v2853_v6 = vpop.f32.mrf.mxu0  ;;  %v3102_v11 = vpop.f32.mrf.mxu1 }
 0x1d0   :  { %8458 = vst [vmem:[#allocation22_spill] sm:$0xff] %v7329_v40  ;;  %v2788_v40 = vadd.f32 %v6902_v38, %v7126_v42  ;;  %v5963_v42 = vld [vmem:[%s8435_s0 + $0x214] ss:$36 sps:$4 sm:$0xff]  }
 0x1d1   :  { %v7339_v45 = vpop.f32.mrf.mxu0  ;;  %v3105_v60 = vpop.f32.mrf.mxu1  ;;  %3473 = vmatmul.mubr.bf16.gmra.mxu0 %v5946_v62  ;;  %3650 = vmatmul.mubr.bf16.gmra.mxu1 %v5949_v16  ;;  %v5955_v62 = vld [vmem:[%s8435_s0 + $0x1c8] ss:$36 sps:$4 sm:$0xff]  }
 0x1d2   :  { %v7341_v2 = vadd.f32 %v3105_v60, %v2785_v39  ;;  %3480 = vmatprep.mubr.bf16.mxu0 %v5954_v63  ;;  %3657 = vmatprep.mubr.bf16.mxu1 %v5957_v43  ;;  %v5960_v63 = vld [vmem:[%s8435_s0 + $0x71c] ss:$36 sps:$4 sm:$0xff]   ;;  %v2793_v39 = vadd.f32 %v6902_v38, %v7144_v20 }
 0x1d3   :  { %v2858_v37 = vpop.f32.mrf.mxu0  ;;  %v3107_v44 = vpop.f32.mrf.mxu1  ;;  %v5958_v20 = vld [vmem:[%s8435_s0 + $0x718] ss:$36 sps:$4 sm:$0xff]  }
 0x1d4   :  { %8459 = vst [vmem:[#allocation23_spill] sm:$0xff] %v7341_v2 }
 0x1d5   :  { %v7345_v48 = vpop.f32.mrf.mxu0  ;;  %v3108_v6 = vpop.f32.mrf.mxu1 }
 0x1d6   :  { %v7353_v16 = vadd.f32 %v3108_v6, %v2788_v40 }
 0x1d7   :  { %v2861_v43 = vpop.f32.mrf.mxu0  ;;  %v3110_v11 = vpop.f32.mrf.mxu1 }
 0x1d8   :  { %8460 = vst [vmem:[#allocation24_spill] sm:$0xff] %v7353_v16  ;;  %v2796_v43 = vadd.f32 %v6902_v38, %v7150_v8  ;;  %v5969_v8 = vld [vmem:[%s8435_s0 + $0x25c] ss:$36 sps:$4 sm:$0xff]  }
 0x1d9   :  { %v3113_v60 = vpop.f32.mrf.mxu1  ;;  %v3290_v37 = vpop.f32.mrf.mxu0  ;;  %3481 = vmatmul.mubr.bf16.gmra.mxu0 %v5952_v4  ;;  %3658 = vmatmul.mubr.bf16.gmra.mxu1 %v5955_v62  ;;  %v5961_v4 = vld [vmem:[%s8435_s0 + $0x210] ss:$36 sps:$4 sm:$0xff]  }
 0x1da   :  { %v7363_v44 = vadd.f32 %v3113_v60, %v2793_v39  ;;  %v7366_v40 = vadd.f32 %v3290_v37, %v6924_v1  ;;  %3488 = vmatprep.mubr.bf16.mxu0 %v5960_v63  ;;  %3665 = vmatprep.mubr.bf16.mxu1 %v5963_v42  ;;  %v2801_v39 = vadd.f32 %v6902_v38, %v7171_v18  ;;  %v5964_v18 = vld [vmem:[%s8435_s0 + $0x760] ss:$36 sps:$4 sm:$0xff]  }
 0x1db   :  { %v3115_v6 = vpop.f32.mrf.mxu1  ;;  %v3292_v16 = vpop.f32.mrf.mxu0 }
 0x1dc   :  { %v5966_v16 = vld [vmem:[%s8435_s0 + $0x764] ss:$36 sps:$4 sm:$0xff]  }
 0x1dd   :  { %v3116_v11 = vpop.f32.mrf.mxu1  ;;  %v3293_v2 = vpop.f32.mrf.mxu0 }
 0x1de   :  { %v7376_v62 = vadd.f32 %v3116_v11, %v2796_v43  ;;  %v7379_v1 = vadd.f32 %v3293_v2, %v6936_v14  ;;  %v2804_v11 = vadd.f32 %v6902_v38, %v7177_v33  ;;  %v5975_v33 = vld [vmem:[%s8435_s0 + $0x2a4] ss:$36 sps:$4 sm:$0xff]  }
 0x1df   :  { %v3118_v63 = vpop.f32.mrf.mxu1  ;;  %v3295_v42 = vpop.f32.mrf.mxu0 }
 0x1e1   :  { %v3121_v60 = vpop.f32.mrf.mxu1  ;;  %v3298_v37 = vpop.f32.mrf.mxu0  ;;  %3489 = vmatmul.mubr.bf16.gmra.mxu0 %v5958_v20  ;;  %3666 = vmatmul.mubr.bf16.gmra.mxu1 %v5961_v4  ;;  %v5967_v20 = vld [vmem:[%s8435_s0 + $0x258] ss:$36 sps:$4 sm:$0xff]  }
 0x1e2   :  { %v7389_v6 = vadd.f32 %v3121_v60, %v2801_v39  ;;  %v7392_v14 = vadd.f32 %v3298_v37, %v6951_v31  ;;  %3496 = vmatprep.mubr.bf16.mxu0 %v5966_v16  ;;  %3673 = vmatprep.mubr.bf16.mxu1 %v5969_v8  ;;  %v5972_v16 = vld [vmem:[%s8435_s0 + $0x7ac] ss:$36 sps:$4 sm:$0xff]   ;;  %v2809_v60 = vadd.f32 %v6902_v38, %v7195_v28 }
 0x1e3   :  { %v3123_v2 = vpop.f32.mrf.mxu1  ;;  %v3300_v43 = vpop.f32.mrf.mxu0  ;;  %v5970_v28 = vld [vmem:[%s8435_s0 + $0x7a8] ss:$36 sps:$4 sm:$0xff]  }
 0x1e5   :  { %v3124_v63 = vpop.f32.mrf.mxu1  ;;  %v3301_v42 = vpop.f32.mrf.mxu0 }
 0x1e6   :  { %v7402_v4 = vadd.f32 %v3124_v63, %v2804_v11  ;;  %v7405_v31 = vadd.f32 %v3301_v42, %v6963_v56  ;;  %v2812_v42 = vadd.f32 %v6902_v38, %v7201_v34  ;;  %v5982_v34 = vld [vmem:[%s8435_s0 + $0x2ec] ss:$36 sps:$4 sm:$0xff]  }
 0x1e7   :  { %v3126_v8 = vpop.f32.mrf.mxu1  ;;  %v3303_v39 = vpop.f32.mrf.mxu0 }
 0x1e9   :  { %v3129_v37 = vpop.f32.mrf.mxu1  ;;  %v3306_v2 = vpop.f32.mrf.mxu0  ;;  %3497 = vmatmul.mubr.bf16.gmra.mxu0 %v5964_v18  ;;  %3674 = vmatmul.mubr.bf16.gmra.mxu1 %v5967_v20  ;;  %v5973_v18 = vld [vmem:[%s8435_s0 + $0x2a0] ss:$36 sps:$4 sm:$0xff]  }
 0x1ea   :  { %v7415_v43 = vadd.f32 %v3129_v37, %v2809_v60  ;;  %v7418_v56 = vadd.f32 %v3306_v2, %v6975_v12  ;;  %3504 = vmatprep.mubr.bf16.mxu0 %v5972_v16  ;;  %3681 = vmatprep.mubr.bf16.mxu1 %v5975_v33  ;;  %v5979_v16 = vld [vmem:[%s8435_s0 + $0x7f4] ss:$36 sps:$4 sm:$0xff]   ;;  %v2817_v37 = vadd.f32 %v6902_v38, %v7219_v51 }
 0x1eb   :  { %v3131_v11 = vpop.f32.mrf.mxu1  ;;  %v3308_v63 = vpop.f32.mrf.mxu0  ;;  %v5977_v51 = vld [vmem:[%s8435_s0 + $0x7f0] ss:$36 sps:$4 sm:$0xff]  }
 0x1ed   :  { %v3132_v8 = vpop.f32.mrf.mxu1  ;;  %v3309_v39 = vpop.f32.mrf.mxu0 }
 0x1ee   :  { %v7428_v20 = vadd.f32 %v3132_v8, %v2812_v42  ;;  %v7431_v12 = vadd.f32 %v3309_v39, %v6987_v25  ;;  %v2820_v39 = vadd.f32 %v6902_v38, %v7225_v22  ;;  %v5988_v22 = vld [vmem:[%s8435_s0 + $0x334] ss:$36 sps:$4 sm:$0xff]  }
 0x1ef   :  { %v3134_v33 = vpop.f32.mrf.mxu1  ;;  %v3311_v60 = vpop.f32.mrf.mxu0 }
 0x1f1   :  { %v3137_v2 = vpop.f32.mrf.mxu1  ;;  %v3314_v11 = vpop.f32.mrf.mxu0  ;;  %3505 = vmatmul.mubr.bf16.gmra.mxu0 %v5970_v28  ;;  %3682 = vmatmul.mubr.bf16.gmra.mxu1 %v5973_v18  ;;  %v5980_v28 = vld [vmem:[%s8435_s0 + $0x2e8] ss:$36 sps:$4 sm:$0xff]  }
 0x1f2   :  { %v7441_v63 = vadd.f32 %v3137_v2, %v2817_v37  ;;  %v7444_v25 = vadd.f32 %v3314_v11, %v6999_v54  ;;  %3512 = vmatprep.mubr.bf16.mxu0 %v5979_v16  ;;  %3689 = vmatprep.mubr.bf16.mxu1 %v5982_v34  ;;  %v5985_v16 = vld [vmem:[%s8435_s0 + $0x83c] ss:$36 sps:$4 sm:$0xff]   ;;  %v2825_v2 = vadd.f32 %v6902_v38, %v7243_v23 }
 0x1f3   :  { %v3139_v42 = vpop.f32.mrf.mxu1  ;;  %v3316_v8 = vpop.f32.mrf.mxu0  ;;  %v5983_v23 = vld [vmem:[%s8435_s0 + $0x838] ss:$36 sps:$4 sm:$0xff]  }
 0x1f5   :  { %v3140_v33 = vpop.f32.mrf.mxu1  ;;  %v3317_v60 = vpop.f32.mrf.mxu0 }
 0x1f6   :  { %v7454_v18 = vadd.f32 %v3140_v33, %v2820_v39  ;;  %v7457_v54 = vadd.f32 %v3317_v60, %v7011_v10  ;;  %v2828_v60 = vadd.f32 %v6902_v38, %v7249_v47  ;;  %v5994_v47 = vld [vmem:[%s8435_s0 + $0x37c] ss:$36 sps:$4 sm:$0xff]  }
 0x1f7   :  { %v3142_v34 = vpop.f32.mrf.mxu1  ;;  %v3319_v37 = vpop.f32.mrf.mxu0 }
 0x1f9   :  { %v3145_v11 = vpop.f32.mrf.mxu1  ;;  %v3322_v42 = vpop.f32.mrf.mxu0  ;;  %3513 = vmatmul.mubr.bf16.gmra.mxu0 %v5977_v51  ;;  %3690 = vmatmul.mubr.bf16.gmra.mxu1 %v5980_v28  ;;  %v5986_v51 = vld [vmem:[%s8435_s0 + $0x330] ss:$36 sps:$4 sm:$0xff]  }
 0x1fa   :  { %v7467_v8 = vadd.f32 %v3145_v11, %v2825_v2  ;;  %v7470_v10 = vadd.f32 %v3322_v42, %v7023_v26  ;;  %3520 = vmatprep.mubr.bf16.mxu0 %v5985_v16  ;;  %3697 = vmatprep.mubr.bf16.mxu1 %v5988_v22  ;;  %v5991_v16 = vld [vmem:[%s8435_s0 + $0x884] ss:$36 sps:$4 sm:$0xff]   ;;  %v2833_v11 = vadd.f32 %v6902_v38, %v7267_v58 }
 0x1fb   :  { %v3147_v39 = vpop.f32.mrf.mxu1  ;;  %v3324_v33 = vpop.f32.mrf.mxu0  ;;  %v5989_v58 = vld [vmem:[%s8435_s0 + $0x880] ss:$36 sps:$4 sm:$0xff]  }
 0x1fd   :  { %v3148_v34 = vpop.f32.mrf.mxu1  ;;  %v3325_v37 = vpop.f32.mrf.mxu0 }
 0x1fe   :  { %v7480_v28 = vadd.f32 %v3148_v34, %v2828_v60  ;;  %v7483_v26 = vadd.f32 %v3325_v37, %v7035_v57  ;;  %v2836_v37 = vadd.f32 %v6902_v38, %v7273_v30  ;;  %v6000_v30 = vld [vmem:[%s8435_s0 + $0x3c4] ss:$36 sps:$4 sm:$0xff]  }
 0x1ff   :  { %v3150_v22 = vpop.f32.mrf.mxu1  ;;  %v3327_v2 = vpop.f32.mrf.mxu0 }
 0x201   :  { %v3153_v42 = vpop.f32.mrf.mxu1  ;;  %v3330_v39 = vpop.f32.mrf.mxu0  ;;  %3521 = vmatmul.mubr.bf16.gmra.mxu0 %v5983_v23  ;;  %3698 = vmatmul.mubr.bf16.gmra.mxu1 %v5986_v51  ;;  %v5992_v23 = vld [vmem:[%s8435_s0 + $0x378] ss:$36 sps:$4 sm:$0xff]  }
 0x202   :  { %v7493_v33 = vadd.f32 %v3153_v42, %v2833_v11  ;;  %v7496_v57 = vadd.f32 %v3330_v39, %v7047_v13  ;;  %3528 = vmatprep.mubr.bf16.mxu0 %v5991_v16  ;;  %3705 = vmatprep.mubr.bf16.mxu1 %v5994_v47  ;;  %v5997_v16 = vld [vmem:[%s8435_s0 + $0x8cc] ss:$36 sps:$4 sm:$0xff]   ;;  %v2841_v42 = vadd.f32 %v6902_v38, %v7291_v53 }
 0x203   :  { %v3155_v60 = vpop.f32.mrf.mxu1  ;;  %v3332_v34 = vpop.f32.mrf.mxu0 }
 0x205   :  { %v3156_v22 = vpop.f32.mrf.mxu1  ;;  %v3333_v2 = vpop.f32.mrf.mxu0 }
 0x206   :  { %v7506_v51 = vadd.f32 %v3156_v22, %v2836_v37  ;;  %v7509_v13 = vadd.f32 %v3333_v2, %v7062_v29  ;;  %v7527_v2 = vld [vmem:[%s8436_s2] ss:$0 sm:$0xff] }
 0x207   :  { %v3158_v47 = vpop.f32.mrf.mxu1  ;;  %v3335_v11 = vpop.f32.mrf.mxu0  ;;  %v2844_v38 = vadd.f32 %v7527_v2, %v7297_v27  ;;  %v6007_v27 = vld [vmem:[%s8435_s0 + $0x40c] ss:$36 sps:$4 sm:$0xff]  }
 0x208   :  { %v6004_v47 = vld [vmem:[%s8435_s0 + $0x914] ss:$36 sps:$4 sm:$0xff]  }
 0x209   :  { %v3161_v39 = vpop.f32.mrf.mxu1  ;;  %v3338_v60 = vpop.f32.mrf.mxu0  ;;  %3529 = vmatmul.mubr.bf16.gmra.mxu0 %v5989_v58  ;;  %3706 = vmatmul.mubr.bf16.gmra.mxu1 %v5992_v23  ;;  %v5995_v23 = vld [vmem:[%s8435_s0 + $0x8c8] ss:$36 sps:$4 sm:$0xff]  }
 0x20a   :  { %v7519_v34 = vadd.f32 %v3161_v39, %v2841_v42  ;;  %v7522_v29 = vadd.f32 %v3338_v60, %v7074_v21  ;;  %3536 = vmatprep.mubr.bf16.mxu0 %v5997_v16  ;;  %3713 = vmatprep.mubr.bf16.mxu1 %v6000_v30  ;;  %v5998_v21 = vld [vmem:[%s8435_s0 + $0x3c0] ss:$36 sps:$4 sm:$0xff]   ;;  %v2849_v39 = vadd.f32 %v7527_v2, %v7315_v49  ;;  %v6002_v49 = vld [vmem:[%s8435_s0 + $0x910] ss:$36 sps:$4 sm:$0xff]  }
 0x20b   :  { %v3163_v37 = vpop.f32.mrf.mxu1  ;;  %v3340_v22 = vpop.f32.mrf.mxu0 }
 0x20d   :  { %v3164_v53 = vpop.f32.mrf.mxu1  ;;  %v3341_v58 = vpop.f32.mrf.mxu0 }
 0x20e   :  { %v7537_v16 = vadd.f32 %v3164_v53, %v2844_v38  ;;  %v7540_v30 = vadd.f32 %v3341_v58, %v7086_v50  ;;  %v2852_v58 = vadd.f32 %v7527_v2, %v7321_v9  ;;  %v6013_v9 = vld [vmem:[%s8435_s0 + $0x454] ss:$36 sps:$4 sm:$0xff]  }
 0x20f   :  { %v3166_v11 = vpop.f32.mrf.mxu1  ;;  %v3343_v42 = vpop.f32.mrf.mxu0 }
 0x211   :  { %v3169_v60 = vpop.f32.mrf.mxu1  ;;  %v3346_v37 = vpop.f32.mrf.mxu0  ;;  %3537 = vmatmul.mubr.bf16.gmra.mxu0 %v5995_v23  ;;  %3714 = vmatmul.mubr.bf16.gmra.mxu1 %v5998_v21  ;;  %v6005_v23 = vld [vmem:[%s8435_s0 + $0x408] ss:$36 sps:$4 sm:$0xff]  }
 0x212   :  { %v7550_v22 = vadd.f32 %v3169_v60, %v2849_v39  ;;  %v7553_v50 = vadd.f32 %v3346_v37, %v7098_v19  ;;  %3544 = vmatprep.mubr.bf16.mxu0 %v6004_v47  ;;  %3721 = vmatprep.mubr.bf16.mxu1 %v6007_v27  ;;  %v6010_v47 = vld [vmem:[%s8435_s0 + $0x95c] ss:$36 sps:$4 sm:$0xff]   ;;  %v2857_v60 = vadd.f32 %v7527_v2, %v7339_v45 }
 0x213   :  { %v3171_v38 = vpop.f32.mrf.mxu1  ;;  %v3348_v53 = vpop.f32.mrf.mxu0  ;;  %v6008_v45 = vld [vmem:[%s8435_s0 + $0x958] ss:$36 sps:$4 sm:$0xff]  }
 0x215   :  { %v3172_v11 = vpop.f32.mrf.mxu1  ;;  %v3349_v42 = vpop.f32.mrf.mxu0 }
 0x216   :  { %v7563_v21 = vadd.f32 %v3172_v11, %v2852_v58  ;;  %v7566_v19 = vadd.f32 %v3349_v42, %v7110_v36  ;;  %v2860_v42 = vadd.f32 %v7527_v2, %v7345_v48  ;;  %v6019_v48 = vld [vmem:[%s8435_s0 + $0x49c] ss:$36 sps:$4 sm:$0xff]  }
 0x217   :  { %v3174_v27 = vpop.f32.mrf.mxu1  ;;  %v3351_v39 = vpop.f32.mrf.mxu0 }
 0x219   :  { %v3177_v37 = vpop.f32.mrf.mxu1  ;;  %v3354_v38 = vpop.f32.mrf.mxu0  ;;  %3545 = vmatmul.mubr.bf16.gmra.mxu0 %v6002_v49  ;;  %3722 = vmatmul.mubr.bf16.gmra.mxu1 %v6005_v23  ;;  %v6011_v49 = vld [vmem:[%s8435_s0 + $0x450] ss:$36 sps:$4 sm:$0xff]  }
 0x21a   :  { %v7576_v53 = vadd.f32 %v3177_v37, %v2857_v60  ;;  %v7579_v36 = vadd.f32 %v3354_v38, %v7122_v24  ;;  %3552 = vmatprep.mubr.bf16.mxu0 %v6010_v47  ;;  %3729 = vmatprep.mubr.bf16.mxu1 %v6013_v9  ;;  %v6016_v47 = vld [vmem:[%s8435_s0 + $0x9a4] ss:$36 sps:$4 sm:$0xff]   ;;  %v2865_v37 = vadd.f32 %v7527_v2, %v6717_v41 }
 0x21b   :  { %v3179_v58 = vpop.f32.mrf.mxu1  ;;  %v3356_v11 = vpop.f32.mrf.mxu0  ;;  %v6014_v41 = vld [vmem:[%s8435_s0 + $0x9a0] ss:$36 sps:$4 sm:$0xff]  }
 0x21d   :  { %v3180_v27 = vpop.f32.mrf.mxu1  ;;  %v3357_v39 = vpop.f32.mrf.mxu0 }
 0x21e   :  { %v7589_v23 = vadd.f32 %v3180_v27, %v2860_v42  ;;  %v7592_v24 = vadd.f32 %v3357_v39, %v7134_v0  ;;  %v2868_v39 = vadd.f32 %v7527_v2, %v6721_v46  ;;  %v6025_v46 = vld [vmem:[%s8435_s0 + $0x4e4] ss:$36 sps:$4 sm:$0xff]  }
 0x21f   :  { %v3182_v9 = vpop.f32.mrf.mxu1  ;;  %v3359_v60 = vpop.f32.mrf.mxu0 }
 0x221   :  { %v3185_v38 = vpop.f32.mrf.mxu1  ;;  %v3362_v58 = vpop.f32.mrf.mxu0  ;;  %3553 = vmatmul.mubr.bf16.gmra.mxu0 %v6008_v45  ;;  %3730 = vmatmul.mubr.bf16.gmra.mxu1 %v6011_v49  ;;  %v6017_v45 = vld [vmem:[%s8435_s0 + $0x498] ss:$36 sps:$4 sm:$0xff]  }
 0x222   :  { %v7602_v11 = vadd.f32 %v3185_v38, %v2865_v37  ;;  %v7605_v0 = vadd.f32 %v3362_v58, %v7146_v35  ;;  %3560 = vmatprep.mubr.bf16.mxu0 %v6016_v47  ;;  %3737 = vmatprep.mubr.bf16.mxu1 %v6019_v48  ;;  %v6022_v47 = vld [vmem:[%s8435_s0 + $0x9ec] ss:$36 sps:$4 sm:$0xff]   ;;  %v2873_v38 = vadd.f32 %v7527_v2, %v6740_v55 }
 0x223   :  { %v3187_v42 = vpop.f32.mrf.mxu1  ;;  %v3364_v27 = vpop.f32.mrf.mxu0  ;;  %v6020_v55 = vld [vmem:[%s8435_s0 + $0x9e8] ss:$36 sps:$4 sm:$0xff]  }
 0x225   :  { %v3188_v9 = vpop.f32.mrf.mxu1  ;;  %v3365_v60 = vpop.f32.mrf.mxu0 }
 0x226   :  { %v7615_v49 = vadd.f32 %v3188_v9, %v2868_v39  ;;  %v7618_v35 = vadd.f32 %v3365_v60, %v7158_v15  ;;  %v2876_v60 = vadd.f32 %v7527_v2, %v6745_v59  ;;  %v6029_v59 = vld [vmem:[%s8435_s0 + $0x20] ss:$36 sps:$4 sm:$0xff]  }
 0x227   :  { %v3190_v48 = vpop.f32.mrf.mxu1  ;;  %v3367_v37 = vpop.f32.mrf.mxu0 }
 0x229   :  { %v3193_v58 = vpop.f32.mrf.mxu1  ;;  %v3370_v42 = vpop.f32.mrf.mxu0  ;;  %3561 = vmatmul.mubr.bf16.gmra.mxu0 %v6014_v41  ;;  %3738 = vmatmul.mubr.bf16.gmra.mxu1 %v6017_v45  ;;  %v6023_v41 = vld [vmem:[%s8435_s0 + $0x4e0] ss:$36 sps:$4 sm:$0xff]  }
 0x22a   :  { %v7628_v27 = vadd.f32 %v3193_v58, %v2873_v38  ;;  %v7631_v15 = vadd.f32 %v3370_v42, %v7173_v5  ;;  %3568 = vmatprep.mubr.bf16.mxu0 %v6022_v47  ;;  %3745 = vmatprep.mubr.bf16.mxu1 %v6025_v46  ;;  %v6028_v47 = vld [vmem:[%s8435_s0 + $0x52c] ss:$36 sps:$4 sm:$0xff]   ;;  %v2881_v58 = vadd.f32 %v7527_v2, %v6761_v3 }
 0x22b   :  { %v3195_v39 = vpop.f32.mrf.mxu1  ;;  %v3372_v9 = vpop.f32.mrf.mxu0  ;;  %v6026_v3 = vld [vmem:[%s8435_s0 + $0x528] ss:$36 sps:$4 sm:$0xff]  }
 0x22d   :  { %v3196_v48 = vpop.f32.mrf.mxu1  ;;  %v3373_v37 = vpop.f32.mrf.mxu0 }
 0x22e   :  { %v7641_v45 = vadd.f32 %v3196_v48, %v2876_v60  ;;  %v7644_v5 = vadd.f32 %v3373_v37, %v7185_v32  ;;  %v2884_v37 = vadd.f32 %v7527_v2, %v6765_v7  ;;  %v6034_v7 = vld [vmem:[%s8435_s0 + $0xb0] ss:$36 sps:$4 sm:$0xff]  }
 0x22f   :  { %v3198_v46 = vpop.f32.mrf.mxu1  ;;  %v3375_v38 = vpop.f32.mrf.mxu0 }
 0x231   :  { %v3201_v42 = vpop.f32.mrf.mxu1  ;;  %v3378_v39 = vpop.f32.mrf.mxu0  ;;  %3569 = vmatmul.mubr.bf16.gmra.mxu0 %v6020_v55  ;;  %3746 = vmatmul.mubr.bf16.gmra.mxu1 %v6023_v41  ;;  %v6030_v55 = vld [vmem:[%s8435_s0 + $0x68] ss:$36 sps:$4 sm:$0xff]  }
 0x232   :  { %v7654_v9 = vadd.f32 %v3201_v42, %v2881_v58  ;;  %v7657_v32 = vadd.f32 %v3378_v39, %v7197_v52  ;;  %3753 = vmatprep.mubr.bf16.mxu1 %v6028_v47  ;;  %5471 = vmatprep.mubr.bf16.mxu0 %v6029_v59  ;;  %v6033_v47 = vld [vmem:[%s8435_s0 + $0x574] ss:$36 sps:$4 sm:$0xff]   ;;  %v2889_v42 = vadd.f32 %v7527_v2, %v6787_v17 }
 0x233   :  { %v3203_v60 = vpop.f32.mrf.mxu1  ;;  %v3380_v48 = vpop.f32.mrf.mxu0  ;;  %v6031_v17 = vld [vmem:[%s8435_s0 + $0x570] ss:$36 sps:$4 sm:$0xff]  }
 0x235   :  { %v3204_v46 = vpop.f32.mrf.mxu1  ;;  %v3381_v38 = vpop.f32.mrf.mxu0 }
 0x236   :  { %v7667_v41 = vadd.f32 %v3204_v46, %v2884_v37  ;;  %v7670_v52 = vadd.f32 %v3381_v38, %v7209_v61  ;;  %v8464_v61 = vld [vmem:[#allocation13_spill] sm:$0xff] }
 0x237   :  { %v3206_v59 = vpop.f32.mrf.mxu1  ;;  %v3383_v58 = vpop.f32.mrf.mxu0 }
 0x238   :  { %8461 = vst [vmem:[#allocation25_spill] sm:$0xff] %v7667_v41  ;;  %8462 = vst [vmem:[#allocation26_spill] sm:$0xff] %v7670_v52  ;;  %v8466_v52 = vld [vmem:[#allocation2_spill] sm:$0xff] }
 0x239   :  { %v3209_v39 = vpop.f32.mrf.mxu1  ;;  %v3386_v60 = vpop.f32.mrf.mxu0  ;;  %3754 = vmatmul.mubr.bf16.gmra.mxu1 %v6026_v3  ;;  %5472 = vmatmul.mubr.bf16.vlgmr.msra.gmra.mxu0 %v6030_v55  ;;  %v2892_v59 = vadd.f32 %v7527_v2, %v8466_v52  ;;  %v6035_v3 = vld [vmem:[%s8435_s0 + $0xf8] ss:$36 sps:$4 sm:$0xff]   ;;  %v6039_v52 = vld [vmem:[%s8435_s0 + $0x140] ss:$36 sps:$4 sm:$0xff]  }
 0x23a   :  { %v7680_v48 = vadd.f32 %v3209_v39, %v2889_v42  ;;  %v7683_v37 = vadd.f32 %v3386_v60, %v8464_v61  ;;  %3761 = vmatprep.mubr.bf16.mxu1 %v6033_v47  ;;  %5475 = vmatprep.mubr.bf16.mxu0 %v6034_v7  ;;  %v8468_v42 = vld [vmem:[#allocation14_spill] sm:$0xff]  ;;  %v8470_v61 = vld [vmem:[#allocation3_spill] sm:$0xff] }
 0x23b   :  { %v3211_v46 = vpop.f32.mrf.mxu1  ;;  %v3388_v38 = vpop.f32.mrf.mxu0  ;;  %v6038_v7 = vld [vmem:[%s8435_s0 + $0x5bc] ss:$36 sps:$4 sm:$0xff]  }
 0x23c   :  { %8463 = vst [vmem:[#allocation27_spill] sm:$0xff] %v7680_v48  ;;  %8465 = vst [vmem:[#allocation13_spill] sm:$0xff] %v7683_v37  ;;  %v2897_v46 = vadd.f32 %v7527_v2, %v8470_v61  ;;  %v6036_v61 = vld [vmem:[%s8435_s0 + $0x5b8] ss:$36 sps:$4 sm:$0xff]  }
 0x23d   :  { %v3212_v58 = vpop.f32.mrf.mxu1  ;;  %v3389_v41 = vpop.f32.mrf.mxu0 }
 0x23e   :  { %v7693_v55 = vadd.f32 %v3212_v58, %v2892_v59  ;;  %v7696_v47 = vadd.f32 %v3389_v41, %v8468_v42  ;;  %v8472_v41 = vld [vmem:[#allocation15_spill] sm:$0xff] }
 0x23f   :  { %v3214_v39 = vpop.f32.mrf.mxu1  ;;  %v3391_v60 = vpop.f32.mrf.mxu0 }
 0x240   :  { %8467 = vst [vmem:[#allocation2_spill] sm:$0xff] %v7693_v55  ;;  %8469 = vst [vmem:[#allocation14_spill] sm:$0xff] %v7696_v47  ;;  %v8474_v55 = vld [vmem:[#allocation4_spill] sm:$0xff] }
 0x241   :  { %v3217_v38 = vpop.f32.mrf.mxu1  ;;  %v3394_v37 = vpop.f32.mrf.mxu0  ;;  %3762 = vmatmul.mubr.bf16.gmra.mxu1 %v6031_v17  ;;  %5476 = vmatmul.mubr.bf16.gmra.mxu0 %v6035_v3  ;;  %v2900_v39 = vadd.f32 %v7527_v2, %v8474_v55  ;;  %v6040_v17 = vld [vmem:[%s8435_s0 + $0x188] ss:$36 sps:$4 sm:$0xff]   ;;  %v6044_v55 = vld [vmem:[%s8435_s0 + $0x1d0] ss:$36 sps:$4 sm:$0xff]  }
 0x242   :  { %v7706_v59 = vadd.f32 %v3217_v38, %v2897_v46  ;;  %v7709_v58 = vadd.f32 %v3394_v37, %v8472_v41  ;;  %3769 = vmatprep.mubr.bf16.mxu1 %v6038_v7  ;;  %5479 = vmatprep.mubr.bf16.mxu0 %v6039_v52  ;;  %v8476_v37 = vld [vmem:[#allocation16_spill] sm:$0xff]  ;;  %v8478_v38 = vld [vmem:[#allocation5_spill] sm:$0xff] }
 0x243   :  { %v3219_v42 = vpop.f32.mrf.mxu1  ;;  %v3396_v47 = vpop.f32.mrf.mxu0  ;;  %v2905_v41 = vadd.f32 %v7527_v2, %v8478_v38  ;;  %v6041_v38 = vld [vmem:[%s8435_s0 + $0x600] ss:$36 sps:$4 sm:$0xff]  }
 0x244   :  { %8471 = vst [vmem:[#allocation3_spill] sm:$0xff] %v7706_v59  ;;  %8473 = vst [vmem:[#allocation15_spill] sm:$0xff] %v7709_v58  ;;  %v6043_v47 = vld [vmem:[%s8435_s0 + $0x604] ss:$36 sps:$4 sm:$0xff]  }
 0x245   :  { %v3220_v60 = vpop.f32.mrf.mxu1  ;;  %v3397_v48 = vpop.f32.mrf.mxu0 }
 0x246   :  { %v7719_v3 = vadd.f32 %v3220_v60, %v2900_v39  ;;  %v7722_v7 = vadd.f32 %v3397_v48, %v8476_v37  ;;  %v8480_v48 = vld [vmem:[#allocation17_spill] sm:$0xff] }
 0x247   :  { %v3222_v52 = vpop.f32.mrf.mxu1  ;;  %v3399_v46 = vpop.f32.mrf.mxu0 }
 0x248   :  { %8475 = vst [vmem:[#allocation4_spill] sm:$0xff] %v7719_v3  ;;  %8477 = vst [vmem:[#allocation16_spill] sm:$0xff] %v7722_v7  ;;  %v8482_v3 = vld [vmem:[#allocation6_spill] sm:$0xff] }
 0x249   :  { %v3225_v42 = vpop.f32.mrf.mxu1  ;;  %v3402_v58 = vpop.f32.mrf.mxu0  ;;  %3770 = vmatmul.mubr.bf16.gmra.mxu1 %v6036_v61  ;;  %5480 = vmatmul.mubr.bf16.gmra.mxu0 %v6040_v17  ;;  %v2908_v52 = vadd.f32 %v7527_v2, %v8482_v3  ;;  %v6045_v61 = vld [vmem:[%s8435_s0 + $0x218] ss:$36 sps:$4 sm:$0xff]   ;;  %v6049_v3 = vld [vmem:[%s8435_s0 + $0x260] ss:$36 sps:$4 sm:$0xff]  }
 0x24a   :  { %v7732_v39 = vadd.f32 %v3225_v42, %v2905_v41  ;;  %v7735_v60 = vadd.f32 %v3402_v58, %v8480_v48  ;;  %3777 = vmatprep.mubr.bf16.mxu1 %v6043_v47  ;;  %5483 = vmatprep.mubr.bf16.mxu0 %v6044_v55  ;;  %v8484_v58 = vld [vmem:[#allocation18_spill] sm:$0xff]  ;;  %v8486_v42 = vld [vmem:[#allocation7_spill] sm:$0xff] }
 0x24b   :  { %v3227_v37 = vpop.f32.mrf.mxu1  ;;  %v3404_v7 = vpop.f32.mrf.mxu0  ;;  %v2913_v48 = vadd.f32 %v7527_v2, %v8486_v42  ;;  %v6046_v42 = vld [vmem:[%s8435_s0 + $0x648] ss:$36 sps:$4 sm:$0xff]  }
 0x24c   :  { %8479 = vst [vmem:[#allocation5_spill] sm:$0xff] %v7732_v39  ;;  %8481 = vst [vmem:[#allocation17_spill] sm:$0xff] %v7735_v60  ;;  %v6048_v7 = vld [vmem:[%s8435_s0 + $0x64c] ss:$36 sps:$4 sm:$0xff]  }
 0x24d   :  { %v3228_v46 = vpop.f32.mrf.mxu1  ;;  %v3405_v59 = vpop.f32.mrf.mxu0 }
 0x24e   :  { %v7745_v17 = vadd.f32 %v3228_v46, %v2908_v52  ;;  %v7748_v47 = vadd.f32 %v3405_v59, %v8484_v58  ;;  %v8488_v59 = vld [vmem:[#allocation19_spill] sm:$0xff] }
 0x24f   :  { %v3230_v55 = vpop.f32.mrf.mxu1  ;;  %v3407_v41 = vpop.f32.mrf.mxu0 }
 0x250   :  { %8483 = vst [vmem:[#allocation6_spill] sm:$0xff] %v7745_v17  ;;  %8485 = vst [vmem:[#allocation18_spill] sm:$0xff] %v7748_v47  ;;  %v8490_v17 = vld [vmem:[#allocation8_spill] sm:$0xff] }
 0x251   :  { %v3233_v37 = vpop.f32.mrf.mxu1  ;;  %v3410_v60 = vpop.f32.mrf.mxu0  ;;  %3778 = vmatmul.mubr.bf16.gmra.mxu1 %v6041_v38  ;;  %5484 = vmatmul.mubr.bf16.gmra.mxu0 %v6045_v61  ;;  %v2916_v55 = vadd.f32 %v7527_v2, %v8490_v17  ;;  %v6050_v38 = vld [vmem:[%s8435_s0 + $0x2a8] ss:$36 sps:$4 sm:$0xff]   ;;  %v6054_v17 = vld [vmem:[%s8435_s0 + $0x2f0] ss:$36 sps:$4 sm:$0xff]  }
 0x252   :  { %v7758_v52 = vadd.f32 %v3233_v37, %v2913_v48  ;;  %v7761_v46 = vadd.f32 %v3410_v60, %v8488_v59  ;;  %3785 = vmatprep.mubr.bf16.mxu1 %v6048_v7  ;;  %5487 = vmatprep.mubr.bf16.mxu0 %v6049_v3  ;;  %v8492_v60 = vld [vmem:[#allocation20_spill] sm:$0xff]  ;;  %v8494_v37 = vld [vmem:[#allocation9_spill] sm:$0xff] }
 0x253   :  { %v3235_v58 = vpop.f32.mrf.mxu1  ;;  %v3412_v47 = vpop.f32.mrf.mxu0  ;;  %v2921_v59 = vadd.f32 %v7527_v2, %v8494_v37  ;;  %v6051_v37 = vld [vmem:[%s8435_s0 + $0x690] ss:$36 sps:$4 sm:$0xff]  }
 0x254   :  { %8487 = vst [vmem:[#allocation7_spill] sm:$0xff] %v7758_v52  ;;  %8489 = vst [vmem:[#allocation19_spill] sm:$0xff] %v7761_v46  ;;  %v6053_v47 = vld [vmem:[%s8435_s0 + $0x694] ss:$36 sps:$4 sm:$0xff]  }
 0x255   :  { %v3236_v41 = vpop.f32.mrf.mxu1  ;;  %v3413_v39 = vpop.f32.mrf.mxu0 }
 0x256   :  { %v7771_v61 = vadd.f32 %v3236_v41, %v2916_v55  ;;  %v7774_v7 = vadd.f32 %v3413_v39, %v8492_v60  ;;  %v8496_v39 = vld [vmem:[#allocation21_spill] sm:$0xff] }
 0x257   :  { %v3238_v3 = vpop.f32.mrf.mxu1  ;;  %v3415_v48 = vpop.f32.mrf.mxu0 }
 0x258   :  { %8491 = vst [vmem:[#allocation8_spill] sm:$0xff] %v7771_v61  ;;  %8493 = vst [vmem:[#allocation20_spill] sm:$0xff] %v7774_v7  ;;  %v8498_v61 = vld [vmem:[#allocation10_spill] sm:$0xff] }
 0x259   :  { %v3241_v58 = vpop.f32.mrf.mxu1  ;;  %v3418_v46 = vpop.f32.mrf.mxu0  ;;  %3786 = vmatmul.mubr.bf16.gmra.mxu1 %v6046_v42  ;;  %5488 = vmatmul.mubr.bf16.gmra.mxu0 %v6050_v38  ;;  %v2924_v3 = vadd.f32 %v7527_v2, %v8498_v61  ;;  %v6055_v42 = vld [vmem:[%s8435_s0 + $0x338] ss:$36 sps:$4 sm:$0xff]   ;;  %v6059_v61 = vld [vmem:[%s8435_s0 + $0x380] ss:$36 sps:$4 sm:$0xff]  }
 0x25a   :  { %v7784_v55 = vadd.f32 %v3241_v58, %v2921_v59  ;;  %v7787_v41 = vadd.f32 %v3418_v46, %v8496_v39  ;;  %3793 = vmatprep.mubr.bf16.mxu1 %v6053_v47  ;;  %5491 = vmatprep.mubr.bf16.mxu0 %v6054_v17  ;;  %v8500_v46 = vld [vmem:[#allocation22_spill] sm:$0xff]  ;;  %v8502_v58 = vld [vmem:[#allocation11_spill] sm:$0xff] }
 0x25b   :  { %v3243_v60 = vpop.f32.mrf.mxu1  ;;  %v3420_v7 = vpop.f32.mrf.mxu0  ;;  %v2929_v39 = vadd.f32 %v7527_v2, %v8502_v58  ;;  %v6056_v58 = vld [vmem:[%s8435_s0 + $0x6d8] ss:$36 sps:$4 sm:$0xff]  }
 0x25c   :  { %8495 = vst [vmem:[#allocation9_spill] sm:$0xff] %v7784_v55  ;;  %8497 = vst [vmem:[#allocation21_spill] sm:$0xff] %v7787_v41  ;;  %v6058_v7 = vld [vmem:[%s8435_s0 + $0x6dc] ss:$36 sps:$4 sm:$0xff]  }
 0x25d   :  { %v3244_v48 = vpop.f32.mrf.mxu1  ;;  %v3421_v52 = vpop.f32.mrf.mxu0 }
 0x25e   :  { %v7797_v38 = vadd.f32 %v3244_v48, %v2924_v3  ;;  %v7800_v47 = vadd.f32 %v3421_v52, %v8500_v46  ;;  %v8503_v52 = vld [vmem:[#allocation23_spill] sm:$0xff] }
 0x25f   :  { %v3246_v17 = vpop.f32.mrf.mxu1  ;;  %v3423_v59 = vpop.f32.mrf.mxu0 }
 0x260   :  { %8499 = vst [vmem:[#allocation10_spill] sm:$0xff] %v7797_v38  ;;  %8501 = vst [vmem:[#allocation22_spill] sm:$0xff] %v7800_v47  ;;  %v8504_v38 = vld [vmem:[#allocation12_spill] sm:$0xff] }
 0x261   :  { %v3249_v60 = vpop.f32.mrf.mxu1  ;;  %v3426_v41 = vpop.f32.mrf.mxu0  ;;  %3794 = vmatmul.mubr.bf16.gmra.mxu1 %v6051_v37  ;;  %5492 = vmatmul.mubr.bf16.gmra.mxu0 %v6055_v42  ;;  %v2932_v17 = vadd.f32 %v7527_v2, %v8504_v38  ;;  %v6060_v37 = vld [vmem:[%s8435_s0 + $0x3c8] ss:$36 sps:$4 sm:$0xff]   ;;  %v6064_v2 = vld [vmem:[%s8435_s0 + $0x410] ss:$36 sps:$4 sm:$0xff]  }
 0x262   :  { %v7810_v3 = vadd.f32 %v3249_v60, %v2929_v39  ;;  %v7813_v48 = vadd.f32 %v3426_v41, %v8503_v52  ;;  %3801 = vmatprep.mubr.bf16.mxu1 %v6058_v7  ;;  %5495 = vmatprep.mubr.bf16.mxu0 %v6059_v61  ;;  %v8505_v41 = vld [vmem:[#allocation24_spill] sm:$0xff] }
 0x263   :  { %v3251_v46 = vpop.f32.mrf.mxu1  ;;  %v3428_v47 = vpop.f32.mrf.mxu0 }
 0x264   :  { %v6063_v47 = vld [vmem:[%s8435_s0 + $0x724] ss:$36 sps:$4 sm:$0xff]  }
 0x265   :  { %v3252_v59 = vpop.f32.mrf.mxu1  ;;  %v3429_v55 = vpop.f32.mrf.mxu0 }
 0x266   :  { %v7823_v42 = vadd.f32 %v3252_v59, %v2932_v17  ;;  %v7826_v7 = vadd.f32 %v3429_v55, %v8505_v41 }
 0x267   :  { %v3254_v38 = vpop.f32.mrf.mxu1  ;;  %v3431_v61 = vpop.f32.mrf.mxu0 }
 0x268   :  { %v6061_v38 = vld [vmem:[%s8435_s0 + $0x720] ss:$36 sps:$4 sm:$0xff]  }
 0x269   :  { %v3434_v39 = vpop.f32.mrf.mxu0  ;;  %v3611_v60 = vpop.f32.mrf.mxu1  ;;  %3802 = vmatmul.mubr.bf16.gmra.mxu1 %v6056_v58  ;;  %5496 = vmatmul.mubr.bf16.gmra.mxu0 %v6060_v37  ;;  %v6065_v58 = vld [vmem:[%s8435_s0 + $0x458] ss:$36 sps:$4 sm:$0xff]   ;;  %v6068_v37 = vld [vmem:[%s8435_s0 + $0x76c] ss:$36 sps:$4 sm:$0xff]  }
 0x26a   :  { %v7835_v52 = vadd.f32 %v3434_v39, %v7363_v44  ;;  %v7838_v55 = vadd.f32 %v3611_v60, %v7366_v40  ;;  %3809 = vmatprep.mubr.bf16.mxu1 %v6063_v47  ;;  %5499 = vmatprep.mubr.bf16.mxu0 %v6064_v2  ;;  %v6069_v47 = vld [vmem:[%s8435_s0 + $0x4a0] ss:$36 sps:$4 sm:$0xff]  }
 0x26b   :  { %v3436_v46 = vpop.f32.mrf.mxu0  ;;  %v3613_v17 = vpop.f32.mrf.mxu1 }
 0x26d   :  { %v3437_v59 = vpop.f32.mrf.mxu0  ;;  %v3614_v41 = vpop.f32.mrf.mxu1 }
 0x26e   :  { %v7847_v44 = vadd.f32 %v3437_v59, %v7376_v62  ;;  %v7850_v40 = vadd.f32 %v3614_v41, %v7379_v1 }
 0x26f   :  { %v3439_v2 = vpop.f32.mrf.mxu0  ;;  %v3616_v61 = vpop.f32.mrf.mxu1 }
 0x270   :  { %v6066_v2 = vld [vmem:[%s8435_s0 + $0x768] ss:$36 sps:$4 sm:$0xff]  }
 0x271   :  { %v3442_v39 = vpop.f32.mrf.mxu0  ;;  %v3619_v60 = vpop.f32.mrf.mxu1  ;;  %3810 = vmatmul.mubr.bf16.gmra.mxu1 %v6061_v38  ;;  %5500 = vmatmul.mubr.bf16.gmra.mxu0 %v6065_v58  ;;  %v6070_v38 = vld [vmem:[%s8435_s0 + $0x4e8] ss:$36 sps:$4 sm:$0xff]   ;;  %v6073_v58 = vld [vmem:[%s8435_s0 + $0x7b4] ss:$36 sps:$4 sm:$0xff]  }
 0x272   :  { %v7859_v62 = vadd.f32 %v3442_v39, %v7389_v6  ;;  %v7862_v1 = vadd.f32 %v3619_v60, %v7392_v14  ;;  %3817 = vmatprep.mubr.bf16.mxu1 %v6068_v37  ;;  %5503 = vmatprep.mubr.bf16.mxu0 %v6069_v47  ;;  %v6074_v37 = vld [vmem:[%s8435_s0 + $0x530] ss:$36 sps:$4 sm:$0xff]  }
 0x273   :  { %v3444_v46 = vpop.f32.mrf.mxu0  ;;  %v3621_v17 = vpop.f32.mrf.mxu1 }
 0x275   :  { %v3445_v59 = vpop.f32.mrf.mxu0  ;;  %v3622_v41 = vpop.f32.mrf.mxu1 }
 0x276   :  { %v7871_v6 = vadd.f32 %v3445_v59, %v7402_v4  ;;  %v7874_v14 = vadd.f32 %v3622_v41, %v7405_v31 }
 0x277   :  { %v3447_v47 = vpop.f32.mrf.mxu0  ;;  %v3624_v61 = vpop.f32.mrf.mxu1 }
 0x278   :  { %v6071_v47 = vld [vmem:[%s8435_s0 + $0x7b0] ss:$36 sps:$4 sm:$0xff]  }
 0x279   :  { %v3450_v39 = vpop.f32.mrf.mxu0  ;;  %v3627_v60 = vpop.f32.mrf.mxu1  ;;  %3818 = vmatmul.mubr.bf16.gmra.mxu1 %v6066_v2  ;;  %5504 = vmatmul.mubr.bf16.gmra.mxu0 %v6070_v38  ;;  %v6075_v2 = vld [vmem:[%s8435_s0 + $0x578] ss:$36 sps:$4 sm:$0xff]  }
 0x27a   :  { %v7883_v4 = vadd.f32 %v3450_v39, %v7415_v43  ;;  %v7886_v31 = vadd.f32 %v3627_v60, %v7418_v56  ;;  %3825 = vmatprep.mubr.bf16.mxu1 %v6073_v58  ;;  %5507 = vmatprep.mubr.bf16.mxu0 %v6074_v37  ;;  %v6078_v38 = vld [vmem:[%s8435_s0 + $0x7fc] ss:$36 sps:$4 sm:$0xff]  }
 0x27b   :  { %v3452_v46 = vpop.f32.mrf.mxu0  ;;  %v3629_v17 = vpop.f32.mrf.mxu1  ;;  %v6079_v58 = vld [vmem:[%s8435_s0 + $0x5c0] ss:$36 sps:$4 sm:$0xff]  }
 0x27d   :  { %v3453_v59 = vpop.f32.mrf.mxu0  ;;  %v3630_v41 = vpop.f32.mrf.mxu1 }
 0x27e   :  { %v7895_v43 = vadd.f32 %v3453_v59, %v7428_v20  ;;  %v7898_v56 = vadd.f32 %v3630_v41, %v7431_v12 }
 0x27f   :  { %v3455_v37 = vpop.f32.mrf.mxu0  ;;  %v3632_v61 = vpop.f32.mrf.mxu1 }
 0x280   :  { %v6076_v37 = vld [vmem:[%s8435_s0 + $0x7f8] ss:$36 sps:$4 sm:$0xff]  }
 0x281   :  { %v3458_v39 = vpop.f32.mrf.mxu0  ;;  %v3635_v60 = vpop.f32.mrf.mxu1  ;;  %3826 = vmatmul.mubr.bf16.gmra.mxu1 %v6071_v47  ;;  %5508 = vmatmul.mubr.bf16.gmra.mxu0 %v6075_v2  ;;  %v6080_v47 = vld [vmem:[%s8435_s0 + $0x608] ss:$36 sps:$4 sm:$0xff]  }
 0x282   :  { %v7907_v20 = vadd.f32 %v3458_v39, %v7441_v63  ;;  %v7910_v12 = vadd.f32 %v3635_v60, %v7444_v25  ;;  %3833 = vmatprep.mubr.bf16.mxu1 %v6078_v38  ;;  %5511 = vmatprep.mubr.bf16.mxu0 %v6079_v58  ;;  %v6083_v2 = vld [vmem:[%s8435_s0 + $0x844] ss:$36 sps:$4 sm:$0xff]   ;;  %v6084_v38 = vld [vmem:[%s8435_s0 + $0x650] ss:$36 sps:$4 sm:$0xff]  }
 0x283   :  { %v3460_v46 = vpop.f32.mrf.mxu0  ;;  %v3637_v17 = vpop.f32.mrf.mxu1 }
 0x285   :  { %v3461_v59 = vpop.f32.mrf.mxu0  ;;  %v3638_v41 = vpop.f32.mrf.mxu1 }
 0x286   :  { %v7919_v63 = vadd.f32 %v3461_v59, %v7454_v18  ;;  %v7922_v25 = vadd.f32 %v3638_v41, %v7457_v54 }
 0x287   :  { %v3463_v58 = vpop.f32.mrf.mxu0  ;;  %v3640_v61 = vpop.f32.mrf.mxu1 }
 0x288   :  { %v6081_v58 = vld [vmem:[%s8435_s0 + $0x840] ss:$36 sps:$4 sm:$0xff]  }
 0x289   :  { %v3466_v39 = vpop.f32.mrf.mxu0  ;;  %v3643_v60 = vpop.f32.mrf.mxu1  ;;  %3834 = vmatmul.mubr.bf16.gmra.mxu1 %v6076_v37  ;;  %5512 = vmatmul.mubr.bf16.gmra.mxu0 %v6080_v47  ;;  %v6085_v37 = vld [vmem:[%s8435_s0 + $0x698] ss:$36 sps:$4 sm:$0xff]   ;;  %v6088_v47 = vld [vmem:[%s8435_s0 + $0x88c] ss:$36 sps:$4 sm:$0xff]  }
 0x28a   :  { %v7931_v18 = vadd.f32 %v3466_v39, %v7467_v8  ;;  %v7934_v54 = vadd.f32 %v3643_v60, %v7470_v10  ;;  %3841 = vmatprep.mubr.bf16.mxu1 %v6083_v2  ;;  %5515 = vmatprep.mubr.bf16.mxu0 %v6084_v38  ;;  %v6089_v2 = vld [vmem:[%s8435_s0 + $0x6e0] ss:$36 sps:$4 sm:$0xff]  }
 0x28b   :  { %v3468_v46 = vpop.f32.mrf.mxu0  ;;  %v3645_v17 = vpop.f32.mrf.mxu1 }
 0x28d   :  { %v3469_v59 = vpop.f32.mrf.mxu0  ;;  %v3646_v41 = vpop.f32.mrf.mxu1 }
 0x28e   :  { %v7943_v8 = vadd.f32 %v3469_v59, %v7480_v28  ;;  %v7946_v10 = vadd.f32 %v3646_v41, %v7483_v26 }
 0x28f   :  { %v3471_v38 = vpop.f32.mrf.mxu0  ;;  %v3648_v61 = vpop.f32.mrf.mxu1 }
 0x290   :  { %8506 = vst [vmem:[#allocation11_spill] sm:$0xff] %v7943_v8  ;;  %v6086_v38 = vld [vmem:[%s8435_s0 + $0x888] ss:$36 sps:$4 sm:$0xff]   ;;  %v8546_v8 = vld [vmem:[#allocation9_spill] sm:$0xff] }
 0x291   :  { %v3474_v39 = vpop.f32.mrf.mxu0  ;;  %v3651_v60 = vpop.f32.mrf.mxu1  ;;  %3842 = vmatmul.mubr.bf16.gmra.mxu1 %v6081_v58  ;;  %5516 = vmatmul.mubr.bf16.gmra.mxu0 %v6085_v37  ;;  %v6090_v58 = vld [vmem:[%s8435_s0 + $0x728] ss:$36 sps:$4 sm:$0xff]   ;;  %v6093_v37 = vld [vmem:[%s8435_s0 + $0x8d4] ss:$36 sps:$4 sm:$0xff]  }
 0x292   :  { %v7955_v28 = vadd.f32 %v3474_v39, %v7493_v33  ;;  %v7958_v26 = vadd.f32 %v3651_v60, %v7496_v57  ;;  %3849 = vmatprep.mubr.bf16.mxu1 %v6088_v47  ;;  %5519 = vmatprep.mubr.bf16.mxu0 %v6089_v2  ;;  %v6094_v47 = vld [vmem:[%s8435_s0 + $0x770] ss:$36 sps:$4 sm:$0xff]  }
 0x293   :  { %v3476_v46 = vpop.f32.mrf.mxu0  ;;  %v3653_v17 = vpop.f32.mrf.mxu1 }
 0x295   :  { %v3477_v59 = vpop.f32.mrf.mxu0  ;;  %v3654_v41 = vpop.f32.mrf.mxu1 }
 0x296   :  { %v7967_v33 = vadd.f32 %v3477_v59, %v7506_v51  ;;  %v7970_v57 = vadd.f32 %v3654_v41, %v7509_v13 }
 0x297   :  { %v3479_v2 = vpop.f32.mrf.mxu0  ;;  %v3656_v61 = vpop.f32.mrf.mxu1 }
 0x298   :  { %8507 = vst [vmem:[#allocation23_spill] sm:$0xff] %v7967_v33  ;;  %v6091_v2 = vld [vmem:[%s8435_s0 + $0x8d0] ss:$36 sps:$4 sm:$0xff]   ;;  %v8549_v33 = vld [vmem:[#allocation10_spill] sm:$0xff] }
 0x299   :  { %v3482_v39 = vpop.f32.mrf.mxu0  ;;  %v3659_v60 = vpop.f32.mrf.mxu1  ;;  %3850 = vmatmul.mubr.bf16.gmra.mxu1 %v6086_v38  ;;  %5520 = vmatmul.mubr.bf16.gmra.mxu0 %v6090_v58  ;;  %v6095_v38 = vld [vmem:[%s8435_s0 + $0x7b8] ss:$36 sps:$4 sm:$0xff]  }
 0x29a   :  { %v7979_v51 = vadd.f32 %v3482_v39, %v7519_v34  ;;  %v7982_v13 = vadd.f32 %v3659_v60, %v7522_v29  ;;  %3857 = vmatprep.mubr.bf16.mxu1 %v6093_v37  ;;  %5523 = vmatprep.mubr.bf16.mxu0 %v6094_v47  ;;  %v6098_v58 = vld [vmem:[%s8435_s0 + $0x91c] ss:$36 sps:$4 sm:$0xff]  }
 0x29b   :  { %v3484_v46 = vpop.f32.mrf.mxu0  ;;  %v3661_v17 = vpop.f32.mrf.mxu1  ;;  %v6099_v37 = vld [vmem:[%s8435_s0 + $0x800] ss:$36 sps:$4 sm:$0xff]  }
 0x29c   :  { %8508 = vst [vmem:[#allocation12_spill] sm:$0xff] %v7979_v51  ;;  %v8540_v51 = vld [vmem:[#allocation7_spill] sm:$0xff] }
 0x29d   :  { %v3485_v59 = vpop.f32.mrf.mxu0  ;;  %v3662_v41 = vpop.f32.mrf.mxu1 }
 0x29e   :  { %v7991_v34 = vadd.f32 %v3485_v59, %v7537_v16  ;;  %v7994_v29 = vadd.f32 %v3662_v41, %v7540_v30 }
 0x29f   :  { %v3487_v47 = vpop.f32.mrf.mxu0  ;;  %v3664_v61 = vpop.f32.mrf.mxu1 }
 0x2a0   :  { %8509 = vst [vmem:[#allocation24_spill] sm:$0xff] %v7991_v34  ;;  %v6096_v47 = vld [vmem:[%s8435_s0 + $0x918] ss:$36 sps:$4 sm:$0xff]  }
 0x2a1   :  { %v3490_v39 = vpop.f32.mrf.mxu0  ;;  %v3667_v60 = vpop.f32.mrf.mxu1  ;;  %3858 = vmatmul.mubr.bf16.gmra.mxu1 %v6091_v2  ;;  %5524 = vmatmul.mubr.bf16.gmra.mxu0 %v6095_v38  ;;  %v6100_v2 = vld [vmem:[%s8435_s0 + $0x848] ss:$36 sps:$4 sm:$0xff]   ;;  %v8534_v34 = vld [vmem:[#allocation5_spill] sm:$0xff] }
 0x2a2   :  { %v8003_v16 = vadd.f32 %v3490_v39, %v7550_v22  ;;  %v8006_v30 = vadd.f32 %v3667_v60, %v7553_v50  ;;  %3865 = vmatprep.mubr.bf16.mxu1 %v6098_v58  ;;  %5527 = vmatprep.mubr.bf16.mxu0 %v6099_v37  ;;  %v6103_v38 = vld [vmem:[%s8435_s0 + $0x964] ss:$36 sps:$4 sm:$0xff]   ;;  %v6104_v58 = vld [vmem:[%s8435_s0 + $0x890] ss:$36 sps:$4 sm:$0xff]  }
 0x2a3   :  { %v3492_v46 = vpop.f32.mrf.mxu0  ;;  %v3669_v17 = vpop.f32.mrf.mxu1 }
 0x2a4   :  { %8510 = vst [vmem:[#allocation28_spill] sm:$0xff] %v8003_v16  ;;  %v8543_v16 = vld [vmem:[#allocation8_spill] sm:$0xff] }
 0x2a5   :  { %v3493_v59 = vpop.f32.mrf.mxu0  ;;  %v3670_v41 = vpop.f32.mrf.mxu1 }
 0x2a6   :  { %v8015_v22 = vadd.f32 %v3493_v59, %v7563_v21  ;;  %v8018_v50 = vadd.f32 %v3670_v41, %v7566_v19 }
 0x2a7   :  { %v3495_v37 = vpop.f32.mrf.mxu0  ;;  %v3672_v61 = vpop.f32.mrf.mxu1 }
 0x2a8   :  { %8511 = vst [vmem:[#allocation29_spill] sm:$0xff] %v8015_v22  ;;  %v6101_v37 = vld [vmem:[%s8435_s0 + $0x960] ss:$36 sps:$4 sm:$0xff]  }
 0x2a9   :  { %v3498_v39 = vpop.f32.mrf.mxu0  ;;  %v3675_v60 = vpop.f32.mrf.mxu1  ;;  %3866 = vmatmul.mubr.bf16.gmra.mxu1 %v6096_v47  ;;  %5528 = vmatmul.mubr.bf16.gmra.mxu0 %v6100_v2  ;;  %v6105_v47 = vld [vmem:[%s8435_s0 + $0x8d8] ss:$36 sps:$4 sm:$0xff]   ;;  %v6108_v2 = vld [vmem:[%s8435_s0 + $0x9ac] ss:$36 sps:$4 sm:$0xff]   ;;  %v8537_v22 = vld [vmem:[#allocation6_spill] sm:$0xff] }
 0x2aa   :  { %v8027_v21 = vadd.f32 %v3498_v39, %v7576_v53  ;;  %v8030_v19 = vadd.f32 %v3675_v60, %v7579_v36  ;;  %3873 = vmatprep.mubr.bf16.mxu1 %v6103_v38  ;;  %5531 = vmatprep.mubr.bf16.mxu0 %v6104_v58  ;;  %v6109_v38 = vld [vmem:[%s8435_s0 + $0x920] ss:$36 sps:$4 sm:$0xff]  }
 0x2ab   :  { %v3500_v46 = vpop.f32.mrf.mxu0  ;;  %v3677_v17 = vpop.f32.mrf.mxu1 }
 0x2ac   :  { %8512 = vst [vmem:[#allocation30_spill] sm:$0xff] %v8027_v21  ;;  %v8528_v21 = vld [vmem:[#allocation3_spill] sm:$0xff] }
 0x2ad   :  { %v3501_v59 = vpop.f32.mrf.mxu0  ;;  %v3678_v41 = vpop.f32.mrf.mxu1 }
 0x2ae   :  { %v8039_v53 = vadd.f32 %v3501_v59, %v7589_v23  ;;  %v8042_v36 = vadd.f32 %v3678_v41, %v7592_v24 }
 0x2af   :  { %v3503_v58 = vpop.f32.mrf.mxu0  ;;  %v3680_v61 = vpop.f32.mrf.mxu1 }
 0x2b0   :  { %8513 = vst [vmem:[#allocation31_spill] sm:$0xff] %v8039_v53  ;;  %v6106_v58 = vld [vmem:[%s8435_s0 + $0x9a8] ss:$36 sps:$4 sm:$0xff]  }
 0x2b1   :  { %v3506_v39 = vpop.f32.mrf.mxu0  ;;  %v3683_v60 = vpop.f32.mrf.mxu1  ;;  %3874 = vmatmul.mubr.bf16.gmra.mxu1 %v6101_v37  ;;  %5532 = vmatmul.mubr.bf16.gmra.mxu0 %v6105_v47  ;;  %v6110_v37 = vld [vmem:[%s8435_s0 + $0x968] ss:$36 sps:$4 sm:$0xff]   ;;  %v6113_v47 = vld [vmem:[%s8435_s0 + $0x9f4] ss:$36 sps:$4 sm:$0xff]  }
 0x2b2   :  { %v8051_v23 = vadd.f32 %v3506_v39, %v7602_v11  ;;  %v8054_v24 = vadd.f32 %v3683_v60, %v7605_v0  ;;  %3881 = vmatprep.mubr.bf16.mxu1 %v6108_v2  ;;  %5535 = vmatprep.mubr.bf16.mxu0 %v6109_v38  ;;  %v6114_v2 = vld [vmem:[%s8435_s0 + $0x9b0] ss:$36 sps:$4 sm:$0xff]   ;;  %v8522_v53 = vld [vmem:[#allocation27_spill] sm:$0xff] }
 0x2b3   :  { %v3508_v46 = vpop.f32.mrf.mxu0  ;;  %v3685_v17 = vpop.f32.mrf.mxu1 }
 0x2b4   :  { %8514 = vst [vmem:[#allocation32_spill] sm:$0xff] %v8051_v23  ;;  %v8531_v23 = vld [vmem:[#allocation4_spill] sm:$0xff] }
 0x2b5   :  { %v3509_v59 = vpop.f32.mrf.mxu0  ;;  %v3686_v41 = vpop.f32.mrf.mxu1 }
 0x2b6   :  { %v8063_v11 = vadd.f32 %v3509_v59, %v7615_v49  ;;  %v8066_v0 = vadd.f32 %v3686_v41, %v7618_v35 }
 0x2b7   :  { %v3511_v38 = vpop.f32.mrf.mxu0  ;;  %v3688_v61 = vpop.f32.mrf.mxu1 }
 0x2b8   :  { %8515 = vst [vmem:[#allocation33_spill] sm:$0xff] %v8063_v11  ;;  %v6111_v38 = vld [vmem:[%s8435_s0 + $0x9f0] ss:$36 sps:$4 sm:$0xff]   ;;  %v8525_v11 = vld [vmem:[#allocation2_spill] sm:$0xff] }
 0x2b9   :  { %v3514_v39 = vpop.f32.mrf.mxu0  ;;  %v3691_v60 = vpop.f32.mrf.mxu1  ;;  %3882 = vmatmul.mubr.bf16.gmra.mxu1 %v6106_v58  ;;  %5536 = vmatmul.mubr.bf16.gmra.mxu0 %v6110_v37  ;;  %v6115_v58 = vld [vmem:[%s8435_s0 + $0x9f8] ss:$36 sps:$4 sm:$0xff]  }
 0x2ba   :  { %v8075_v49 = vadd.f32 %v3514_v39, %v7628_v27  ;;  %v8078_v35 = vadd.f32 %v3691_v60, %v7631_v15  ;;  %3889 = vmatprep.mubr.bf16.mxu1 %v6113_v47  ;;  %5539 = vmatprep.mubr.bf16.mxu0 %v6114_v2 }
 0x2bb   :  { %v3516_v46 = vpop.f32.mrf.mxu0  ;;  %v3693_v17 = vpop.f32.mrf.mxu1 }
 0x2bc   :  { %8516 = vst [vmem:[#allocation34_spill] sm:$0xff] %v8075_v49 }
 0x2bd   :  { %v3517_v59 = vpop.f32.mrf.mxu0  ;;  %v3694_v41 = vpop.f32.mrf.mxu1 }
 0x2be   :  { %v8087_v27 = vadd.f32 %v3517_v59, %v7641_v45  ;;  %v8090_v15 = vadd.f32 %v3694_v41, %v7644_v5  ;;  %v8519_v59 = vld [vmem:[#allocation25_spill] sm:$0xff]  ;;  %v8521_v5 = vld [vmem:[#allocation26_spill] sm:$0xff] }
 0x2bf   :  { %v3519_v37 = vpop.f32.mrf.mxu0  ;;  %v3696_v47 = vpop.f32.mrf.mxu1 }
 0x2c0   :  { %8517 = vst [vmem:[#allocation35_spill] sm:$0xff] %v8087_v27 }
 0x2c1   :  { %v3522_v2 = vpop.f32.mrf.mxu0  ;;  %v3699_v61 = vpop.f32.mrf.mxu1  ;;  %3890 = vmatmul.mubr.bf16.gmra.mxu1 %v6111_v38  ;;  %5540 = vmatmul.mubr.bf16.gmra.mxu0 %v6115_v58 }
 0x2c2   :  { %v8093_v39 = vadd.f32 %v3522_v2, %v7654_v9  ;;  %v8096_v60 = vadd.f32 %v3699_v61, %v7657_v32  ;;  %v8524_v2 = vld [vmem:[#allocation13_spill] sm:$0xff] }
 0x2c3   :  { %v3524_v46 = vpop.f32.mrf.mxu0  ;;  %v3701_v17 = vpop.f32.mrf.mxu1 }
 0x2c4   :  { %8518 = vst [vmem:[#allocation36_spill] sm:$0xff] %v8093_v39 }
 0x2c5   :  { %v3525_v49 = vpop.f32.mrf.mxu0  ;;  %v3702_v45 = vpop.f32.mrf.mxu1 }
 0x2c6   :  { %v8099_v27 = vadd.f32 %v3525_v49, %v8519_v59  ;;  %v8102_v41 = vadd.f32 %v3702_v45, %v8521_v5  ;;  %v8527_v59 = vld [vmem:[#allocation14_spill] sm:$0xff] }
 0x2c7   :  { %v3527_v37 = vpop.f32.mrf.mxu0  ;;  %v3704_v47 = vpop.f32.mrf.mxu1 }
 0x2c8   :  { %8520 = vst [vmem:[#allocation25_spill] sm:$0xff] %v8099_v27 }
 0x2c9   :  { %v3530_v38 = vpop.f32.mrf.mxu0  ;;  %v3707_v58 = vpop.f32.mrf.mxu1 }
 0x2ca   :  { %v8105_v9 = vadd.f32 %v3530_v38, %v8522_v53  ;;  %v8108_v32 = vadd.f32 %v3707_v58, %v8524_v2  ;;  %v8530_v38 = vld [vmem:[#allocation15_spill] sm:$0xff] }
 0x2cb   :  { %v3532_v61 = vpop.f32.mrf.mxu0  ;;  %v3709_v46 = vpop.f32.mrf.mxu1 }
 0x2cc   :  { %8523 = vst [vmem:[#allocation26_spill] sm:$0xff] %v8105_v9 }
 0x2cd   :  { %v3533_v17 = vpop.f32.mrf.mxu0  ;;  %v3710_v39 = vpop.f32.mrf.mxu1 }
 0x2ce   :  { %v8111_v49 = vadd.f32 %v3533_v17, %v8525_v11  ;;  %v8114_v45 = vadd.f32 %v3710_v39, %v8527_v59  ;;  %v8533_v17 = vld [vmem:[#allocation16_spill] sm:$0xff] }
 0x2cf   :  { %v3535_v5 = vpop.f32.mrf.mxu0  ;;  %v3712_v37 = vpop.f32.mrf.mxu1 }
 0x2d0   :  { %8526 = vst [vmem:[#allocation27_spill] sm:$0xff] %v8111_v49 }
 0x2d1   :  { %v3538_v47 = vpop.f32.mrf.mxu0  ;;  %v3715_v27 = vpop.f32.mrf.mxu1 }
 0x2d2   :  { %v8117_v53 = vadd.f32 %v3538_v47, %v8528_v21  ;;  %v8120_v58 = vadd.f32 %v3715_v27, %v8530_v38  ;;  %v8536_v47 = vld [vmem:[#allocation17_spill] sm:$0xff] }
 0x2d3   :  { %v3540_v2 = vpop.f32.mrf.mxu0  ;;  %v3717_v61 = vpop.f32.mrf.mxu1 }
 0x2d4   :  { %8529 = vst [vmem:[#allocation13_spill] sm:$0xff] %v8117_v53 }
 0x2d5   :  { %v3541_v46 = vpop.f32.mrf.mxu0  ;;  %v3718_v9 = vpop.f32.mrf.mxu1 }
 0x2d6   :  { %v8123_v11 = vadd.f32 %v3541_v46, %v8531_v23  ;;  %v8126_v39 = vadd.f32 %v3718_v9, %v8533_v17  ;;  %v8539_v46 = vld [vmem:[#allocation18_spill] sm:$0xff] }
 0x2d7   :  { %v3543_v59 = vpop.f32.mrf.mxu0  ;;  %v3720_v5 = vpop.f32.mrf.mxu1 }
 0x2d8   :  { %8532 = vst [vmem:[#allocation2_spill] sm:$0xff] %v8123_v11 }
 0x2d9   :  { %v3546_v37 = vpop.f32.mrf.mxu0  ;;  %v3723_v49 = vpop.f32.mrf.mxu1 }
 0x2da   :  { %v8129_v21 = vadd.f32 %v3546_v37, %v8534_v34  ;;  %v8132_v27 = vadd.f32 %v3723_v49, %v8536_v47  ;;  %v8542_v37 = vld [vmem:[#allocation19_spill] sm:$0xff] }
 0x2db   :  { %v3548_v38 = vpop.f32.mrf.mxu0  ;;  %v3725_v2 = vpop.f32.mrf.mxu1 }
 0x2dc   :  { %8535 = vst [vmem:[#allocation14_spill] sm:$0xff] %v8129_v21 }
 0x2dd   :  { %v3549_v61 = vpop.f32.mrf.mxu0  ;;  %v3726_v53 = vpop.f32.mrf.mxu1 }
 0x2de   :  { %v8135_v23 = vadd.f32 %v3549_v61, %v8537_v22  ;;  %v8138_v9 = vadd.f32 %v3726_v53, %v8539_v46  ;;  %v8545_v61 = vld [vmem:[#allocation20_spill] sm:$0xff] }
 0x2df   :  { %v3551_v17 = vpop.f32.mrf.mxu0  ;;  %v3728_v59 = vpop.f32.mrf.mxu1 }
 0x2e0   :  { %8538 = vst [vmem:[#allocation3_spill] sm:$0xff] %v8135_v23 }
 0x2e1   :  { %v3554_v5 = vpop.f32.mrf.mxu0  ;;  %v3731_v11 = vpop.f32.mrf.mxu1 }
 0x2e2   :  { %v8141_v34 = vadd.f32 %v3554_v5, %v8540_v51  ;;  %v8144_v49 = vadd.f32 %v3731_v11, %v8542_v37  ;;  %v8548_v5 = vld [vmem:[#allocation21_spill] sm:$0xff] }
 0x2e3   :  { %v3556_v47 = vpop.f32.mrf.mxu0  ;;  %v3733_v38 = vpop.f32.mrf.mxu1 }
 0x2e4   :  { %8541 = vst [vmem:[#allocation15_spill] sm:$0xff] %v8141_v34 }
 0x2e5   :  { %v3557_v2 = vpop.f32.mrf.mxu0  ;;  %v3734_v21 = vpop.f32.mrf.mxu1 }
 0x2e6   :  { %v8147_v22 = vadd.f32 %v3557_v2, %v8543_v16  ;;  %v8150_v53 = vadd.f32 %v3734_v21, %v8545_v61  ;;  %v8551_v2 = vld [vmem:[#allocation22_spill] sm:$0xff] }
 0x2e7   :  { %v3559_v46 = vpop.f32.mrf.mxu0  ;;  %v3736_v17 = vpop.f32.mrf.mxu1 }
 0x2e8   :  { %8544 = vst [vmem:[#allocation4_spill] sm:$0xff] %v8147_v22 }
 0x2e9   :  { %v3562_v59 = vpop.f32.mrf.mxu0  ;;  %v3739_v23 = vpop.f32.mrf.mxu1 }
 0x2ea   :  { %v8153_v51 = vadd.f32 %v3562_v59, %v8546_v8  ;;  %v8156_v11 = vadd.f32 %v3739_v23, %v8548_v5 }
 0x2eb   :  { %v3564_v37 = vpop.f32.mrf.mxu0  ;;  %v3741_v47 = vpop.f32.mrf.mxu1 }
 0x2ec   :  { %8547 = vst [vmem:[#allocation16_spill] sm:$0xff] %v8153_v51 }
 0x2ed   :  { %v3565_v38 = vpop.f32.mrf.mxu0  ;;  %v3742_v34 = vpop.f32.mrf.mxu1 }
 0x2ee   :  { %v8159_v16 = vadd.f32 %v3565_v38, %v8549_v33  ;;  %v8162_v21 = vadd.f32 %v3742_v34, %v8551_v2 }
 0x2ef   :  { %v3567_v61 = vpop.f32.mrf.mxu0  ;;  %v3744_v46 = vpop.f32.mrf.mxu1 }
 0x2f0   :  { %8550 = vst [vmem:[#allocation5_spill] sm:$0xff] %v8159_v16 }
 0x2f1   :  { %v3570_v17 = vpop.f32.mrf.mxu0  ;;  %v3747_v22 = vpop.f32.mrf.mxu1 }
 0x2f2   :  { %v8165_v8 = vadd.f32 %v3570_v17, %v7810_v3  ;;  %v8168_v23 = vadd.f32 %v3747_v22, %v7813_v48 }
 0x2f3   :  { %v3572_v59 = vpop.f32.mrf.mxu0  ;;  %v3749_v5 = vpop.f32.mrf.mxu1 }
 0x2f5   :  { %v3573_v37 = vpop.f32.mrf.mxu0  ;;  %v3750_v47 = vpop.f32.mrf.mxu1 }
 0x2f6   :  { %v8171_v33 = vadd.f32 %v3573_v37, %v7823_v42  ;;  %v8174_v34 = vadd.f32 %v3750_v47, %v7826_v7 }
 0x2f7   :  { %v3575_v38 = vpop.f32.mrf.mxu0  ;;  %v3752_v2 = vpop.f32.mrf.mxu1 }
 0x2f8   :  { %8552 = vst [vmem:[#allocation17_spill] sm:$0xff] %v8171_v33 }
 0x2f9   :  { %v3755_v61 = vpop.f32.mrf.mxu1  ;;  %v5473_v46 = vpop.f32.mrf.mxu0 }
 0x2fa   :  { %v8177_v3 = vadd.f32 %v3755_v61, %v7835_v52  ;;  %v3941_v22 = vadd.f32 %v5473_v46, %v7862_v1 }
 0x2fb   :  { %v3757_v17 = vpop.f32.mrf.mxu1  ;;  %v3932_v48 = vpop.f32.mrf.mxu0 }
 0x2fc   :  { %v3933_v16 = vadd.f32 %v3932_v48, %v7838_v55  ;;  %v4221_v38 = vmax.f32 %v3941_v22, 0.0 }
 0x2fd   :  { %v3758_v59 = vpop.f32.mrf.mxu1  ;;  %v5474_v5 = vpop.f32.mrf.mxu0 }
 0x2fe   :  { %v8182_v42 = vadd.f32 %v3758_v59, %v7847_v44  ;;  %v3944_v7 = vadd.f32 %v5474_v5, %v7874_v14  ;;  %v4219_v33 = vmax.f32 %v3933_v16, 0.0 }
 0x2ff   :  { %v3760_v37 = vpop.f32.mrf.mxu1  ;;  %v3935_v47 = vpop.f32.mrf.mxu0 }
 0x300   :  { %v4222_v2 = vmax.f32 %v3944_v7, 0.0  ;;  %v3936_v52 = vadd.f32 %v3935_v47, %v7850_v40 }
 0x301   :  { %v3763_v61 = vpop.f32.mrf.mxu1  ;;  %v5477_v17 = vpop.f32.mrf.mxu0 }
 0x302   :  { %v5204_v51 = vpack.c.bf16 %v4222_v2, %v4221_v38  ;;  %v4220_v1 = vmax.f32 %v3936_v52, 0.0  ;;  %v8187_v46 = vadd.f32 %v3763_v61, %v7859_v62  ;;  %v3957_v14 = vadd.f32 %v5477_v17, %v7910_v12 }
 0x303   :  { %v3765_v55 = vpop.f32.mrf.mxu1  ;;  %v3948_v48 = vpop.f32.mrf.mxu0 }
 0x304   :  { %5376 = vst [vmem:[%s8437_s3 + $0x8] sm:$0xff] %v5204_v51   ;;  %v5199_v44 = vpack.c.bf16 %v4220_v1, %v4219_v33  ;;  %v3949_v16 = vadd.f32 %v3948_v48, %v7886_v31  ;;  %v4225_v7 = vmax.f32 %v3957_v14, 0.0 }
 0x305   :  { %v8193_v22 = vpop.f32.mrf.mxu1  ;;  %v5478_v40 = vpop.f32.mrf.mxu0 }
 0x306   :  { %5200 = vst [vmem:[%s8437_s3] sm:$0xff] %v5199_v44   ;;  %v3960_v62 = vadd.f32 %v5478_v40, %v7922_v25  ;;  %v4223_v12 = vmax.f32 %v3949_v16, 0.0 }
 0x307   :  { %v3768_v59 = vpop.f32.mrf.mxu1  ;;  %v3951_v5 = vpop.f32.mrf.mxu0 }
 0x308   :  { %v4226_v37 = vmax.f32 %v3960_v62, 0.0  ;;  %v3952_v51 = vadd.f32 %v3951_v5, %v7898_v56 }
 0x309   :  { %v3771_v33 = vpop.f32.mrf.mxu1  ;;  %v5481_v47 = vpop.f32.mrf.mxu0 }
 0x30a   :  { %v5214_v38 = vpack.c.bf16 %v4226_v37, %v4225_v7  ;;  %v4224_v2 = vmax.f32 %v3952_v51, 0.0  ;;  %v8202_v52 = vadd.f32 %v3771_v33, %v7883_v4  ;;  %v3973_v25 = vadd.f32 %v5481_v47, %v7958_v26 }
 0x30b   :  { %v3773_v61 = vpop.f32.mrf.mxu1  ;;  %v3964_v17 = vpop.f32.mrf.mxu0 }
 0x30c   :  { %5378 = vst [vmem:[%s8437_s3 + $0x18] sm:$0xff] %v5214_v38   ;;  %v5209_v31 = vpack.c.bf16 %v4224_v2, %v4223_v12  ;;  %v3965_v56 = vadd.f32 %v3964_v17, %v7934_v54  ;;  %v4229_v40 = vmax.f32 %v3973_v25, 0.0 }
 0x30d   :  { %v3774_v1 = vpop.f32.mrf.mxu1  ;;  %v5482_v55 = vpop.f32.mrf.mxu0 }
 0x30e   :  { %5377 = vst [vmem:[%s8437_s3 + $0x10] sm:$0xff] %v5209_v31   ;;  %v8213_v4 = vadd.f32 %v3774_v1, %v7895_v43  ;;  %v3976_v48 = vadd.f32 %v5482_v55, %v7970_v57  ;;  %v4227_v5 = vmax.f32 %v3965_v56, 0.0 }
 0x30f   :  { %v3776_v44 = vpop.f32.mrf.mxu1  ;;  %v3967_v14 = vpop.f32.mrf.mxu0 }
 0x310   :  { %v4230_v16 = vmax.f32 %v3976_v48, 0.0  ;;  %v3968_v62 = vadd.f32 %v3967_v14, %v7946_v10 }
 0x311   :  { %v8217_v26 = vpop.f32.mrf.mxu1  ;;  %v5485_v59 = vpop.f32.mrf.mxu0 }
 0x312   :  { %v5224_v7 = vpack.c.bf16 %v4230_v16, %v4229_v40  ;;  %v4228_v37 = vmax.f32 %v3968_v62, 0.0  ;;  %v3989_v54 = vadd.f32 %v5485_v59, %v8006_v30 }
 0x313   :  { %v3781_v51 = vpop.f32.mrf.mxu1  ;;  %v3980_v33 = vpop.f32.mrf.mxu0 }
 0x314   :  { %5380 = vst [vmem:[%s8437_s3 + $0x28] sm:$0xff] %v5224_v7   ;;  %v5219_v43 = vpack.c.bf16 %v4228_v37, %v4227_v5  ;;  %v3981_v10 = vadd.f32 %v3980_v33, %v7982_v13  ;;  %v4233_v61 = vmax.f32 %v3989_v54, 0.0 }
 0x315   :  { %v8223_v57 = vpop.f32.mrf.mxu1  ;;  %v5486_v47 = vpop.f32.mrf.mxu0 }
 0x316   :  { %5379 = vst [vmem:[%s8437_s3 + $0x20] sm:$0xff] %v5219_v43   ;;  %v3992_v12 = vadd.f32 %v5486_v47, %v8018_v50  ;;  %v4231_v1 = vmax.f32 %v3981_v10, 0.0 }
 0x317   :  { %v3784_v38 = vpop.f32.mrf.mxu1  ;;  %v3983_v2 = vpop.f32.mrf.mxu0 }
 0x318   :  { %v4234_v17 = vmax.f32 %v3992_v12, 0.0  ;;  %v3984_v31 = vadd.f32 %v3983_v2, %v7994_v29 }
 0x319   :  { %v8231_v25 = vpop.f32.mrf.mxu1  ;;  %v5489_v30 = vpop.f32.mrf.mxu0 }
 0x31a   :  { %v5234_v55 = vpack.c.bf16 %v4234_v17, %v4233_v61  ;;  %v4232_v56 = vmax.f32 %v3984_v31, 0.0  ;;  %v4005_v50 = vadd.f32 %v5489_v30, %v8054_v24 }
 0x31b   :  { %v3789_v48 = vpop.f32.mrf.mxu1  ;;  %v3996_v44 = vpop.f32.mrf.mxu0 }
 0x31c   :  { %5382 = vst [vmem:[%s8437_s3 + $0x38] sm:$0xff] %v5234_v55   ;;  %v5229_v13 = vpack.c.bf16 %v4232_v56, %v4231_v1  ;;  %v3997_v29 = vadd.f32 %v3996_v44, %v8030_v19  ;;  %v4237_v5 = vmax.f32 %v4005_v50, 0.0 }
 0x31d   :  { %v8237_v14 = vpop.f32.mrf.mxu1  ;;  %v5490_v40 = vpop.f32.mrf.mxu0 }
 0x31e   :  { %5381 = vst [vmem:[%s8437_s3 + $0x30] sm:$0xff] %v5229_v13   ;;  %v4008_v16 = vadd.f32 %v5490_v40, %v8066_v0  ;;  %v4235_v33 = vmax.f32 %v3997_v29, 0.0 }
 0x31f   :  { %v3792_v62 = vpop.f32.mrf.mxu1  ;;  %v3999_v59 = vpop.f32.mrf.mxu0 }
 0x320   :  { %v4238_v7 = vmax.f32 %v4008_v16, 0.0  ;;  %v4000_v37 = vadd.f32 %v3999_v59, %v8042_v36 }
 0x321   :  { %v8245_v51 = vpop.f32.mrf.mxu1  ;;  %v5493_v24 = vpop.f32.mrf.mxu0 }
 0x322   :  { %v5244_v43 = vpack.c.bf16 %v4238_v7, %v4237_v5  ;;  %v4236_v54 = vmax.f32 %v4000_v37, 0.0  ;;  %v4021_v0 = vadd.f32 %v5493_v24, %v8096_v60 }
 0x323   :  { %v3797_v47 = vpop.f32.mrf.mxu1  ;;  %v4012_v10 = vpop.f32.mrf.mxu0 }
 0x324   :  { %5384 = vst [vmem:[%s8437_s3 + $0x48] sm:$0xff] %v5244_v43   ;;  %v5239_v19 = vpack.c.bf16 %v4236_v54, %v4235_v33  ;;  %v4013_v36 = vadd.f32 %v4012_v10, %v8078_v35  ;;  %v4241_v31 = vmax.f32 %v4021_v0, 0.0 }
 0x325   :  { %v8251_v12 = vpop.f32.mrf.mxu1  ;;  %v5494_v38 = vpop.f32.mrf.mxu0 }
 0x326   :  { %5383 = vst [vmem:[%s8437_s3 + $0x40] sm:$0xff] %v5239_v19   ;;  %v4024_v2 = vadd.f32 %v5494_v38, %v8102_v41  ;;  %v4239_v56 = vmax.f32 %v4013_v36, 0.0 }
 0x327   :  { %v3800_v61 = vpop.f32.mrf.mxu1  ;;  %v4015_v17 = vpop.f32.mrf.mxu0 }
 0x328   :  { %v4242_v30 = vmax.f32 %v4024_v2, 0.0  ;;  %v4016_v1 = vadd.f32 %v4015_v17, %v8090_v15 }
 0x329   :  { %v8259_v55 = vpop.f32.mrf.mxu1  ;;  %v5497_v60 = vpop.f32.mrf.mxu0 }
 0x32a   :  { %v5254_v48 = vpack.c.bf16 %v4242_v30, %v4241_v31  ;;  %v4240_v44 = vmax.f32 %v4016_v1, 0.0  ;;  %v4037_v41 = vadd.f32 %v5497_v60, %v8120_v58 }
 0x32b   :  { %v3805_v13 = vpop.f32.mrf.mxu1  ;;  %v4028_v50 = vpop.f32.mrf.mxu0 }
 0x32c   :  { %5386 = vst [vmem:[%s8437_s3 + $0x58] sm:$0xff] %v5254_v48   ;;  %v5249_v35 = vpack.c.bf16 %v4240_v44, %v4239_v56  ;;  %v4029_v15 = vadd.f32 %v4028_v50, %v8108_v32  ;;  %v4245_v5 = vmax.f32 %v4037_v41, 0.0 }
 0x32d   :  { %v8265_v40 = vpop.f32.mrf.mxu1  ;;  %v5498_v29 = vpop.f32.mrf.mxu0 }
 0x32e   :  { %5385 = vst [vmem:[%s8437_s3 + $0x50] sm:$0xff] %v5249_v35   ;;  %v4040_v16 = vadd.f32 %v5498_v29, %v8126_v39  ;;  %v4243_v33 = vmax.f32 %v4029_v15, 0.0 }
 0x32f   :  { %v3808_v62 = vpop.f32.mrf.mxu1  ;;  %v4031_v59 = vpop.f32.mrf.mxu0 }
 0x330   :  { %v4246_v7 = vmax.f32 %v4040_v16, 0.0  ;;  %v4032_v37 = vadd.f32 %v4031_v59, %v8114_v45 }
 0x331   :  { %v8273_v24 = vpop.f32.mrf.mxu1  ;;  %v5501_v58 = vpop.f32.mrf.mxu0 }
 0x332   :  { %v5264_v43 = vpack.c.bf16 %v4246_v7, %v4245_v5  ;;  %v4244_v54 = vmax.f32 %v4032_v37, 0.0  ;;  %v4053_v39 = vadd.f32 %v5501_v58, %v8144_v49 }
 0x333   :  { %v3813_v47 = vpop.f32.mrf.mxu1  ;;  %v4044_v10 = vpop.f32.mrf.mxu0 }
 0x334   :  { %5388 = vst [vmem:[%s8437_s3 + $0x68] sm:$0xff] %v5264_v43   ;;  %v5259_v32 = vpack.c.bf16 %v4244_v54, %v4243_v33  ;;  %v4045_v45 = vadd.f32 %v4044_v10, %v8132_v27  ;;  %v4249_v61 = vmax.f32 %v4053_v39, 0.0  ;;  %v3767_v43 = vadd.f32 %v8193_v22, %v7871_v6 }
 0x335   :  { %v8279_v19 = vpop.f32.mrf.mxu1  ;;  %v5502_v0 = vpop.f32.mrf.mxu0 }
 0x336   :  { %5387 = vst [vmem:[%s8437_s3 + $0x60] sm:$0xff] %v5259_v32   ;;  %v4056_v38 = vadd.f32 %v5502_v0, %v8150_v53  ;;  %v4247_v1 = vmax.f32 %v4045_v45, 0.0 }
 0x337   :  { %v3816_v36 = vpop.f32.mrf.mxu1  ;;  %v4047_v2 = vpop.f32.mrf.mxu0 }
 0x338   :  { %v4250_v17 = vmax.f32 %v4056_v38, 0.0  ;;  %v4048_v31 = vadd.f32 %v4047_v2, %v8138_v9 }
 0x339   :  { %v8287_v30 = vpop.f32.mrf.mxu1  ;;  %v5505_v49 = vpop.f32.mrf.mxu0 }
 0x33a   :  { %v5274_v60 = vpack.c.bf16 %v4250_v17, %v4249_v61  ;;  %v4248_v56 = vmax.f32 %v4048_v31, 0.0  ;;  %v4069_v53 = vadd.f32 %v5505_v49, %v8168_v23 }
 0x33b   :  { %v3821_v48 = vpop.f32.mrf.mxu1  ;;  %v4060_v44 = vpop.f32.mrf.mxu0 }
 0x33c   :  { %5390 = vst [vmem:[%s8437_s3 + $0x78] sm:$0xff] %v5274_v60   ;;  %v5269_v27 = vpack.c.bf16 %v4248_v56, %v4247_v1  ;;  %v4061_v9 = vadd.f32 %v4060_v44, %v8156_v11  ;;  %v4253_v15 = vmax.f32 %v4069_v53, 0.0 }
 0x33d   :  { %v8293_v13 = vpop.f32.mrf.mxu1  ;;  %v5506_v50 = vpop.f32.mrf.mxu0 }
 0x33e   :  { %5389 = vst [vmem:[%s8437_s3 + $0x70] sm:$0xff] %v5269_v27   ;;  %v4072_v35 = vadd.f32 %v5506_v50, %v8174_v34  ;;  %v4251_v5 = vmax.f32 %v4061_v9, 0.0  ;;  %v3796_v50 = vadd.f32 %v8245_v51, %v7955_v28  ;;  %v8554_v51 = vld [vmem:[#allocation11_spill] sm:$0xff] }
 0x33f   :  { %v3824_v41 = vpop.f32.mrf.mxu1  ;;  %v4063_v29 = vpop.f32.mrf.mxu0 }
 0x340   :  { %v4254_v16 = vmax.f32 %v4072_v35, 0.0  ;;  %v4064_v62 = vadd.f32 %v4063_v29, %v8162_v21 }
 0x341   :  { %v8301_v59 = vpop.f32.mrf.mxu1  ;;  %v5509_v23 = vpop.f32.mrf.mxu0 }
 0x342   :  { %v5284_v7 = vpack.c.bf16 %v4254_v16, %v4253_v15  ;;  %v4252_v37 = vmax.f32 %v4064_v62, 0.0  ;;  %v4085_v34 = vadd.f32 %v5509_v23, %v8187_v46  ;;  %v3780_v46 = vadd.f32 %v8217_v26, %v7907_v20  ;;  %v8553_v16 = vld [vmem:[#allocation23_spill] sm:$0xff] }
 0x343   :  { %v3829_v58 = vpop.f32.mrf.mxu1  ;;  %v4076_v33 = vpop.f32.mrf.mxu0  ;;  %v3799_v62 = vadd.f32 %v8251_v12, %v8553_v16 }
 0x344   :  { %5392 = vst [vmem:[%s8437_s3 + $0x88] sm:$0xff] %v5284_v7   ;;  %v5279_v11 = vpack.c.bf16 %v4252_v37, %v4251_v5  ;;  %v4077_v47 = vadd.f32 %v4076_v33, %v8177_v3  ;;  %v4257_v6 = vmax.f32 %v4085_v34, 0.0  ;;  %v3783_v3 = vadd.f32 %v8223_v57, %v7919_v63 }
 0x345   :  { %v8309_v54 = vpop.f32.mrf.mxu1  ;;  %v5510_v21 = vpop.f32.mrf.mxu0  ;;  %v3791_v7 = vadd.f32 %v8237_v14, %v8554_v51 }
 0x346   :  { %5391 = vst [vmem:[%s8437_s3 + $0x80] sm:$0xff] %v5279_v11   ;;  %v4088_v10 = vadd.f32 %v5510_v21, %v3767_v43  ;;  %v4255_v36 = vmax.f32 %v4077_v47, 0.0  ;;  %v8555_v21 = vld [vmem:[#allocation28_spill] sm:$0xff] }
 0x347   :  { %v3832_v32 = vpop.f32.mrf.mxu1  ;;  %v4079_v39 = vpop.f32.mrf.mxu0  ;;  %v3812_v47 = vadd.f32 %v8273_v24, %v8555_v21 }
 0x348   :  { %v4258_v22 = vmax.f32 %v4088_v10, 0.0  ;;  %v4080_v0 = vadd.f32 %v4079_v39, %v8182_v42 }
 0x349   :  { %v8316_v45 = vpop.f32.mrf.mxu1  ;;  %v5513_v38 = vpop.f32.mrf.mxu0 }
 0x34a   :  { %v5294_v2 = vpack.c.bf16 %v4258_v22, %v4257_v6  ;;  %v4256_v61 = vmax.f32 %v4080_v0, 0.0  ;;  %v4101_v42 = vadd.f32 %v5513_v38, %v3780_v46  ;;  %v8556_v22 = vld [vmem:[#allocation12_spill] sm:$0xff]  ;;  %v8557_v38 = vld [vmem:[#allocation29_spill] sm:$0xff] }
 0x34b   :  { %v3837_v17 = vpop.f32.mrf.mxu1  ;;  %v4092_v31 = vpop.f32.mrf.mxu0  ;;  %v3804_v0 = vadd.f32 %v8259_v55, %v8556_v22  ;;  %v3815_v46 = vadd.f32 %v8279_v19, %v8557_v38 }
 0x34c   :  { %5394 = vst [vmem:[%s8437_s3 + $0x98] sm:$0xff] %v5294_v2   ;;  %v5289_v49 = vpack.c.bf16 %v4256_v61, %v4255_v36  ;;  %v4093_v20 = vadd.f32 %v4092_v31, %v8202_v52  ;;  %v4261_v44 = vmax.f32 %v4101_v42, 0.0  ;;  %v3788_v52 = vadd.f32 %v8231_v25, %v7931_v18  ;;  %v8558_v17 = vld [vmem:[#allocation24_spill] sm:$0xff] }
 0x34d   :  { %v8325_v1 = vpop.f32.mrf.mxu1  ;;  %v5514_v60 = vpop.f32.mrf.mxu0  ;;  %v3807_v31 = vadd.f32 %v8265_v40, %v8558_v17 }
 0x34e   :  { %5393 = vst [vmem:[%s8437_s3 + $0x90] sm:$0xff] %v5289_v49   ;;  %v4104_v26 = vadd.f32 %v5514_v60, %v3783_v3  ;;  %v4259_v9 = vmax.f32 %v4093_v20, 0.0 }
 0x34f   :  { %v3840_v56 = vpop.f32.mrf.mxu1  ;;  %v4095_v48 = vpop.f32.mrf.mxu0 }
 0x350   :  { %v4262_v63 = vmax.f32 %v4104_v26, 0.0  ;;  %v4096_v57 = vadd.f32 %v4095_v48, %v8213_v4  ;;  %v8559_v48 = vld [vmem:[#allocation32_spill] sm:$0xff] }
 0x351   :  { %v8332_v27 = vpop.f32.mrf.mxu1  ;;  %v5517_v53 = vpop.f32.mrf.mxu0 }
 0x352   :  { %v5304_v35 = vpack.c.bf16 %v4262_v63, %v4261_v44  ;;  %v4260_v41 = vmax.f32 %v4096_v57, 0.0  ;;  %v4117_v23 = vadd.f32 %v5517_v53, %v3796_v50  ;;  %v3828_v44 = vadd.f32 %v8301_v59, %v8559_v48  ;;  %v8562_v59 = vld [vmem:[#allocation31_spill] sm:$0xff] }
 0x353   :  { %v3845_v29 = vpop.f32.mrf.mxu1  ;;  %v4108_v15 = vpop.f32.mrf.mxu0 }
 0x354   :  { %5396 = vst [vmem:[%s8437_s3 + $0xa8] sm:$0xff] %v5304_v35   ;;  %v5299_v4 = vpack.c.bf16 %v4260_v41, %v4259_v9  ;;  %v4109_v18 = vadd.f32 %v4108_v15, %v3788_v52  ;;  %v4265_v58 = vmax.f32 %v4117_v23, 0.0  ;;  %v8560_v9 = vld [vmem:[#allocation30_spill] sm:$0xff]  ;;  %v8561_v41 = vld [vmem:[#allocation33_spill] sm:$0xff] }
 0x355   :  { %v8343_v5 = vpop.f32.mrf.mxu1  ;;  %v5518_v28 = vpop.f32.mrf.mxu0  ;;  %v3820_v35 = vadd.f32 %v8287_v30, %v8560_v9  ;;  %v3831_v29 = vadd.f32 %v8309_v54, %v8561_v41  ;;  %v8570_v9 = vld [vmem:[#allocation27_spill] sm:$0xff] }
 0x356   :  { %5395 = vst [vmem:[%s8437_s3 + $0xa0] sm:$0xff] %v5299_v4   ;;  %v4120_v25 = vadd.f32 %v5518_v28, %v3799_v62  ;;  %v4263_v10 = vmax.f32 %v4109_v18, 0.0  ;;  %v3823_v4 = vadd.f32 %v8293_v13, %v8562_v59 }
 0x357   :  { %v3848_v37 = vpop.f32.mrf.mxu1  ;;  %v4111_v12 = vpop.f32.mrf.mxu0 }
 0x358   :  { %v4266_v33 = vmax.f32 %v4120_v25, 0.0  ;;  %v4112_v43 = vadd.f32 %v4111_v12, %v3791_v7  ;;  %v8563_v12 = vld [vmem:[#allocation36_spill] sm:$0xff] }
 0x359   :  { %v8350_v11 = vpop.f32.mrf.mxu1  ;;  %v5521_v34 = vpop.f32.mrf.mxu0 }
 0x35a   :  { %v5314_v32 = vpack.c.bf16 %v4266_v33, %v4265_v58  ;;  %v4264_v14 = vmax.f32 %v4112_v43, 0.0  ;;  %v4133_v2 = vadd.f32 %v5521_v34, %v3812_v47  ;;  %v3844_v58 = vadd.f32 %v8332_v27, %v8563_v12  ;;  %v8564_v47 = vld [vmem:[#allocation34_spill] sm:$0xff]  ;;  %v8566_v27 = vld [vmem:[#allocation35_spill] sm:$0xff] }
 0x35b   :  { %v3853_v39 = vpop.f32.mrf.mxu1  ;;  %v4124_v6 = vpop.f32.mrf.mxu0  ;;  %v3839_v38 = vadd.f32 %v8325_v1, %v8566_v27 }
 0x35c   :  { %5398 = vst [vmem:[%s8437_s3 + $0xb8] sm:$0xff] %v5314_v32   ;;  %v5309_v36 = vpack.c.bf16 %v4264_v14, %v4263_v10  ;;  %v4125_v55 = vadd.f32 %v4124_v6, %v3804_v0  ;;  %v4269_v42 = vmax.f32 %v4133_v2, 0.0  ;;  %v3836_v10 = vadd.f32 %v8316_v45, %v8564_v47  ;;  %v8565_v32 = vld [vmem:[#allocation25_spill] sm:$0xff] }
 0x35d   :  { %v8361_v61 = vpop.f32.mrf.mxu1  ;;  %v5522_v24 = vpop.f32.mrf.mxu0  ;;  %v3847_v14 = vadd.f32 %v8343_v5, %v8565_v32 }
 0x35e   :  { %5397 = vst [vmem:[%s8437_s3 + $0xb0] sm:$0xff] %v5309_v36   ;;  %v4136_v3 = vadd.f32 %v5522_v24, %v3815_v46  ;;  %v4267_v63 = vmax.f32 %v4125_v55, 0.0 }
 0x35f   :  { %v3856_v49 = vpop.f32.mrf.mxu1  ;;  %v4127_v19 = vpop.f32.mrf.mxu0 }
 0x360   :  { %v4270_v60 = vmax.f32 %v4136_v3, 0.0  ;;  %v4128_v20 = vadd.f32 %v4127_v19, %v3807_v31  ;;  %v8567_v3 = vld [vmem:[#allocation13_spill] sm:$0xff] }
 0x361   :  { %v3859_v26 = vpop.f32.mrf.mxu1  ;;  %v5525_v56 = vpop.f32.mrf.mxu0 }
 0x362   :  { %v5324_v57 = vpack.c.bf16 %v4270_v60, %v4269_v42  ;;  %v4268_v53 = vmax.f32 %v4128_v20, 0.0  ;;  %v4149_v52 = vadd.f32 %v5525_v56, %v3828_v44  ;;  %v3860_v49 = vadd.f32 %v3859_v26, %v8567_v3  ;;  %v8568_v56 = vld [vmem:[#allocation26_spill] sm:$0xff]  ;;  %v8576_v3 = vld [vmem:[#allocation5_spill] sm:$0xff] }
 0x363   :  { %v3861_v40 = vpop.f32.mrf.mxu1  ;;  %v4140_v50 = vpop.f32.mrf.mxu0  ;;  %v3852_v48 = vadd.f32 %v8350_v11, %v8568_v56  ;;  %v8569_v44 = vld [vmem:[#allocation2_spill] sm:$0xff]  ;;  %v3855_v26 = vadd.f32 %v8361_v61, %v8570_v9 }
 0x364   :  { %5400 = vst [vmem:[%s8437_s3 + $0xc8] sm:$0xff] %v5324_v57   ;;  %v5319_v15 = vpack.c.bf16 %v4268_v53, %v4267_v63  ;;  %v4141_v23 = vadd.f32 %v4140_v50, %v3820_v35  ;;  %v4273_v54 = vmax.f32 %v4149_v52, 0.0 }
 0x365   :  { %v3862_v16 = vpop.f32.mrf.mxu1  ;;  %v5526_v62 = vpop.f32.mrf.mxu0 }
 0x366   :  { %5399 = vst [vmem:[%s8437_s3 + $0xc0] sm:$0xff] %v5319_v15   ;;  %v4152_v30 = vadd.f32 %v5526_v62, %v3831_v29  ;;  %v4271_v33 = vmax.f32 %v4141_v23, 0.0  ;;  %v3863_v63 = vadd.f32 %v3862_v16, %v8569_v44 }
 0x367   :  { %v3864_v28 = vpop.f32.mrf.mxu1  ;;  %v4143_v51 = vpop.f32.mrf.mxu0 }
 0x368   :  { %v4274_v7 = vmax.f32 %v4152_v30, 0.0  ;;  %v4144_v18 = vadd.f32 %v4143_v51, %v3823_v4  ;;  %v8571_v4 = vld [vmem:[#allocation15_spill] sm:$0xff] }
 0x369   :  { %v3867_v25 = vpop.f32.mrf.mxu1  ;;  %v5529_v37 = vpop.f32.mrf.mxu0 }
 0x36a   :  { %v5334_v43 = vpack.c.bf16 %v4274_v7, %v4273_v54  ;;  %v4272_v34 = vmax.f32 %v4144_v18, 0.0  ;;  %v4165_v6 = vadd.f32 %v5529_v37, %v3844_v58  ;;  %v8572_v7 = vld [vmem:[#allocation14_spill] sm:$0xff]  ;;  %v8573_v37 = vld [vmem:[#allocation4_spill] sm:$0xff] }
 0x36b   :  { %v3869_v13 = vpop.f32.mrf.mxu1  ;;  %v4156_v21 = vpop.f32.mrf.mxu0  ;;  %v3868_v18 = vadd.f32 %v3867_v25, %v8572_v7 }
 0x36c   :  { %5402 = vst [vmem:[%s8437_s3 + $0xd8] sm:$0xff] %v5334_v43   ;;  %v5329_v39 = vpack.c.bf16 %v4272_v34, %v4271_v33  ;;  %v4157_v46 = vadd.f32 %v4156_v21, %v3836_v10  ;;  %v4277_v5 = vmax.f32 %v4165_v6, 0.0  ;;  %v8574_v13 = vld [vmem:[#allocation3_spill] sm:$0xff] }
 0x36d   :  { %v3870_v22 = vpop.f32.mrf.mxu1  ;;  %v5530_v0 = vpop.f32.mrf.mxu0 }
 0x36e   :  { %5401 = vst [vmem:[%s8437_s3 + $0xd0] sm:$0xff] %v5329_v39   ;;  %v4168_v45 = vadd.f32 %v5530_v0, %v3847_v14  ;;  %v4275_v19 = vmax.f32 %v4157_v46, 0.0  ;;  %v3871_v21 = vadd.f32 %v3870_v22, %v8574_v13 }
 0x36f   :  { %v3872_v36 = vpop.f32.mrf.mxu1  ;;  %v4159_v2 = vpop.f32.mrf.mxu0 }
 0x370   :  { %v4278_v24 = vmax.f32 %v4168_v45, 0.0  ;;  %v4160_v17 = vadd.f32 %v4159_v2, %v3839_v38 }
 0x371   :  { %v3875_v31 = vpop.f32.mrf.mxu1  ;;  %v5533_v55 = vpop.f32.mrf.mxu0 }
 0x372   :  { %v5344_v42 = vpack.c.bf16 %v4278_v24, %v4277_v5  ;;  %v4276_v60 = vmax.f32 %v4160_v17, 0.0  ;;  %v4181_v53 = vadd.f32 %v5533_v55, %v3860_v49  ;;  %v3876_v23 = vadd.f32 %v3875_v31, %v8571_v4  ;;  %v8575_v5 = vld [vmem:[#allocation16_spill] sm:$0xff] }
 0x373   :  { %v3877_v20 = vpop.f32.mrf.mxu1  ;;  %v4172_v1 = vpop.f32.mrf.mxu0 }
 0x374   :  { %5404 = vst [vmem:[%s8437_s3 + $0xe8] sm:$0xff] %v5344_v42   ;;  %v5339_v57 = vpack.c.bf16 %v4276_v60, %v4275_v19  ;;  %v4173_v35 = vadd.f32 %v4172_v1, %v3852_v48  ;;  %v4281_v15 = vmax.f32 %v4181_v53, 0.0 }
 0x375   :  { %v3878_v40 = vpop.f32.mrf.mxu1  ;;  %v5534_v50 = vpop.f32.mrf.mxu0 }
 0x376   :  { %5403 = vst [vmem:[%s8437_s3 + $0xe0] sm:$0xff] %v5339_v57   ;;  %v4184_v41 = vadd.f32 %v5534_v50, %v3863_v63  ;;  %v4279_v30 = vmax.f32 %v4173_v35, 0.0  ;;  %v3879_v12 = vadd.f32 %v3878_v40, %v8573_v37 }
 0x377   :  { %v3880_v11 = vpop.f32.mrf.mxu1  ;;  %v4175_v29 = vpop.f32.mrf.mxu0 }
 0x378   :  { %v4282_v52 = vmax.f32 %v4184_v41, 0.0  ;;  %v4176_v16 = vadd.f32 %v4175_v29, %v3855_v26 }
 0x379   :  { %v3883_v62 = vpop.f32.mrf.mxu1  ;;  %v5537_v59 = vpop.f32.mrf.mxu0 }
 0x37a   :  { %v5354_v28 = vpack.c.bf16 %v4282_v52, %v4281_v15  ;;  %v4280_v51 = vmax.f32 %v4176_v16, 0.0  ;;  %v4197_v33 = vadd.f32 %v5537_v59, %v3876_v23  ;;  %v3884_v24 = vadd.f32 %v3883_v62, %v8575_v5 }
 0x37b   :  { %v3885_v54 = vpop.f32.mrf.mxu1  ;;  %v4188_v61 = vpop.f32.mrf.mxu0 }
 0x37c   :  { %5406 = vst [vmem:[%s8437_s3 + $0xf8] sm:$0xff] %v5354_v28   ;;  %v5349_v58 = vpack.c.bf16 %v4280_v51, %v4279_v30  ;;  %v4189_v47 = vadd.f32 %v4188_v61, %v3868_v18  ;;  %v4285_v14 = vmax.f32 %v4197_v33, 0.0 }
 0x37d   :  { %v3886_v43 = vpop.f32.mrf.mxu1  ;;  %v5538_v34 = vpop.f32.mrf.mxu0 }
 0x37e   :  { %5405 = vst [vmem:[%s8437_s3 + $0xf0] sm:$0xff] %v5349_v58   ;;  %v4200_v10 = vadd.f32 %v5538_v34, %v3879_v12  ;;  %v4283_v38 = vmax.f32 %v4189_v47, 0.0  ;;  %v3887_v49 = vadd.f32 %v3886_v43, %v8576_v3 }
 0x37f   :  { %v3888_v32 = vpop.f32.mrf.mxu1  ;;  %v4191_v25 = vpop.f32.mrf.mxu0 }
 0x380   :  { %v4286_v39 = vmax.f32 %v4200_v10, 0.0  ;;  %v4192_v6 = vadd.f32 %v4191_v25, %v3871_v21 }
 0x381   :  { %v3891_v0 = vpop.f32.mrf.mxu1  ;;  %v5541_v27 = vpop.f32.mrf.mxu0 }
 0x382   :  { %v5364_v46 = vpack.c.bf16 %v4286_v39, %v4285_v14  ;;  %v4284_v45 = vmax.f32 %v4192_v6, 0.0  ;;  %v3892_v36 = vadd.f32 %v3891_v0, %v8165_v8  ;;  %v8577_v8 = vld [vmem:[#allocation17_spill] sm:$0xff] }
 0x383   :  { %v3893_v2 = vpop.f32.mrf.mxu1  ;;  %v4204_v22 = vpop.f32.mrf.mxu0 }
 0x384   :  { %5408 = vst [vmem:[%s8437_s3 + $0x108] sm:$0xff] %v5364_v46   ;;  %v5359_v17 = vpack.c.bf16 %v4284_v45, %v4283_v38  ;;  %v4213_v19 = vadd.f32 %v5541_v27, %v3892_v36  ;;  %v4205_v42 = vadd.f32 %v4204_v22, %v3884_v24 }
 0x385   :  { %v3894_v31 = vpop.f32.mrf.mxu1  ;;  %v5542_v55 = vpop.f32.mrf.mxu0 }
 0x386   :  { %5407 = vst [vmem:[%s8437_s3 + $0x100] sm:$0xff] %v5359_v17   ;;  %v3895_v60 = vadd.f32 %v3894_v31, %v8577_v8  ;;  %v4289_v44 = vmax.f32 %v4213_v19, 0.0  ;;  %v4287_v63 = vmax.f32 %v4205_v42, 0.0 }
 0x387   :  { %v3896_v20 = vpop.f32.mrf.mxu1  ;;  %v4207_v1 = vpop.f32.mrf.mxu0 }
 0x388   :  { %v4216_v56 = vadd.f32 %v5542_v55, %v3895_v60  ;;  %v4208_v48 = vadd.f32 %v4207_v1, %v3887_v49 }
 0x38a   :  { %v4290_v57 = vmax.f32 %v4216_v56, 0.0  ;;  %v4288_v53 = vmax.f32 %v4208_v48, 0.0 }
 0x38c   :  { %v5374_v40 = vpack.c.bf16 %v4290_v57, %v4289_v44  ;;  %v5369_v50 = vpack.c.bf16 %v4288_v53, %v4287_v63 }
 0x38e   :  { %5410 = vst [vmem:[%s8437_s3 + $0x118] sm:$0xff] %v5374_v40   ;;  %5409 = vst [vmem:[%s8437_s3 + $0x110] sm:$0xff] %v5369_v50  }

// kernel: model_forward.5
= control target key start
LH: loop header
LB: loop body
LE: loop exit
PB: predicated region body
PF: predicated region fallthrough
CT: control target
= control target key end

     0   :  { %s3079_s29 = smov 0   ;;  %s3081_s30 = smov 0   ;;  %s3471_s0 = inlined_call_operand.vmem [shape: bf16[32,5632], index: 0, kind: input, shape index: {}]   ;;  %s3472_s1 = inlined_call_operand.vmem [shape: bf16[5632,128], index: 1, kind: input, shape index: {}]   ;;  %s3473_s2 = inlined_call_operand.vmem [shape: f32[1,128], index: 2, kind: input, shape index: {}]   ;;  %s3474_s3 = inlined_call_operand.vmem [shape: bf16[2,32], index: 3, kind: input, shape index: {}]   ;;  %s3475_s4 = inlined_call_operand.vmem [shape: bf16[2,32], index: 4, kind: input, shape index: {}]   ;;  %s3476_s5 = inlined_call_operand.vmem [shape: bf16[128,128], index: 5, kind: input, shape index: {}]   ;;  %s3477_s6 = inlined_call_operand.vmem [shape: f32[1,128], index: 6, kind: input, shape index: {}]   ;;  %s3478_s7 = inlined_call_operand.vmem [shape: bf16[128,128], index: 7, kind: input, shape index: {}]   ;;  %s3479_s8 = inlined_call_operand.vmem [shape: f32[1,128], index: 8, kind: input, shape index: {}]   ;;  %s3480_s9 = inlined_call_operand.vmem [shape: bf16[128,128], index: 9, kind: input, shape index: {}]   ;;  %s3481_s10 = inlined_call_operand.vmem [shape: bf16[128,128], index: 10, kind: input, shape index: {}]   ;;  %s3482_s11 = inlined_call_operand.vmem [shape: f32[1,128], index: 11, kind: input, shape index: {}]   ;;  %s3483_s12 = inlined_call_operand.vmem [shape: f32[2,128], index: 12, kind: output, shape index: {0}]   ;;  %s3484_s13 = inlined_call_operand.vmem [shape: f32[2,128], index: 13, kind: output, shape index: {1}]   ;;  %s3485_s14 = inlined_call_operand.vmem [shape: f32[2,128], index: 14, kind: output, shape index: {2}]  }
   0x1   :  { %s3083_s15 = smov 0  }
   0x2 LB: > { %s3095_s16 = sadd.s32 4294967295, %s2999_s15   ;;  %s3098_s17 = sadd.s32 1, %s2999_s15   ;;  %s2999_s15 = sphi %s3083_s15, %s3488_s15   ;;  %s2995_s30 = sphi %s3081_s30, %s3487_s30   ;;  %s2991_s29 = sphi %s3079_s29, %s3486_s29  }
   0x3   : > { %s29_s18 = ssub.s32 %s2999_s15, %s3098_s17  ;;  %s32_s19 = sadd.s32 1, %s2995_s30 }
   0x4   : > { %p30_p0 = scmp.eq.s32.totalorder %s29_s18, 0  ;;  %p39_p1 = scmp.ne.s32.totalorder %s2995_s30, %s2991_s29 }
   0x5   : > { %p40_p2 = scmp.eq.s32.totalorder %s2999_s15, 0  ;;  %p2323_p4 = scmp.ge.s32.totalorder %s2999_s15, 4 }
   0x6   : > { %s3107_s20 = scalar_select %p30_p0, %s2995_s30, %s32_s19  }
   0x7   : > { %p41_p3 = por %p40_p2, %p39_p1  ;;  %394 = sbr.rel (%p2323_p4) target bundleno = 29 (0x1d), region = 56 }
   0xc   : > { %397 = sbr.rel (!%p41_p3) target bundleno = 29 (0x1d), region = 60  ;;  %s399_s21 = sand.u32 (%p41_p3), 1, %s2995_s30  }
   0xd   : > { %s2487_s22 = smul.u32 (%p41_p3), 44, %s2999_s15 }
   0xe   : > { %s2796_s23 = smul.u32 (%p41_p3), 176, %s399_s21 }
   0xf   : > { %s3115_s26 = scalar_lea.vmem (%p41_p3), %s3471_s0, %s2487_s22 }
  0x10   : > { %v419_v0 = vld [vmem:[%s3115_s26] sm:$0xff] (%p41_p3)  ;;  %v421_v1 = vld [vmem:[%s3115_s26 + $0x8] sm:$0xff] (%p41_p3)  ;;  %v423_v2 = vld [vmem:[%s3115_s26 + $0x10] sm:$0xff] (%p41_p3)  ;;  %s3120_s27 = scalar_lea.vmem (%p41_p3), [#allocation3], %s2796_s23 }
  0x11   : > { %420 = vst [vmem:[%s3120_s27] sm:$0xff] %v419_v0  ;;  %422 = vst [vmem:[%s3120_s27 + $0x8] sm:$0xff] %v421_v1  ;;  %v425_v3 = vld [vmem:[%s3115_s26 + $0x18] sm:$0xff]  ;;  %v427_v4 = vld [vmem:[%s3115_s26 + $0x20] sm:$0xff] }
  0x12   : > { %424 = vst [vmem:[%s3120_s27 + $0x10] sm:$0xff] %v423_v2  ;;  %v429_v5 = vld [vmem:[%s3115_s26 + $0xb0] sm:$0xff]  ;;  %426 = vst [vmem:[%s3120_s27 + $0x18] sm:$0xff] %v425_v3  ;;  %v431_v6 = vld [vmem:[%s3115_s26 + $0xb8] sm:$0xff] }
  0x13   : > { %428 = vst [vmem:[%s3120_s27 + $0x20] sm:$0xff] %v427_v4  ;;  %430 = vst [vmem:[%s3120_s27 + $0x2c] sm:$0xff] %v429_v5  ;;  %v433_v7 = vld [vmem:[%s3115_s26 + $0xc0] sm:$0xff]  ;;  %v435_v8 = vld [vmem:[%s3115_s26 + $0xc8] sm:$0xff] }
  0x14   : > { %432 = vst [vmem:[%s3120_s27 + $0x34] sm:$0xff] %v431_v6  ;;  %434 = vst [vmem:[%s3120_s27 + $0x3c] sm:$0xff] %v433_v7  ;;  %v437_v9 = vld [vmem:[%s3115_s26 + $0xd0] sm:$0xff]  ;;  %v439_v10 = vld [vmem:[%s3115_s26 + $0x160] sm:$0xff] }
  0x15   : > { %436 = vst [vmem:[%s3120_s27 + $0x44] sm:$0xff] %v435_v8  ;;  %v441_v11 = vld [vmem:[%s3115_s26 + $0x168] sm:$0xff]  ;;  %438 = vst [vmem:[%s3120_s27 + $0x4c] sm:$0xff] %v437_v9  ;;  %v443_v12 = vld [vmem:[%s3115_s26 + $0x170] sm:$0xff] }
  0x16   : > { %440 = vst [vmem:[%s3120_s27 + $0x58] sm:$0xff] %v439_v10  ;;  %442 = vst [vmem:[%s3120_s27 + $0x60] sm:$0xff] %v441_v11  ;;  %v445_v13 = vld [vmem:[%s3115_s26 + $0x178] sm:$0xff]  ;;  %v447_v14 = vld [vmem:[%s3115_s26 + $0x180] sm:$0xff] }
  0x17   : > { %444 = vst [vmem:[%s3120_s27 + $0x68] sm:$0xff] %v443_v12  ;;  %446 = vst [vmem:[%s3120_s27 + $0x70] sm:$0xff] %v445_v13  ;;  %v449_v15 = vld [vmem:[%s3115_s26 + $0x210] sm:$0xff]  ;;  %v451_v16 = vld [vmem:[%s3115_s26 + $0x218] sm:$0xff] }
  0x18   : > { %448 = vst [vmem:[%s3120_s27 + $0x78] sm:$0xff] %v447_v14  ;;  %v453_v17 = vld [vmem:[%s3115_s26 + $0x220] sm:$0xff]  ;;  %450 = vst [vmem:[%s3120_s27 + $0x84] sm:$0xff] %v449_v15  ;;  %v455_v18 = vld [vmem:[%s3115_s26 + $0x228] sm:$0xff] }
  0x19   : > { %452 = vst [vmem:[%s3120_s27 + $0x8c] sm:$0xff] %v451_v16  ;;  %454 = vst [vmem:[%s3120_s27 + $0x94] sm:$0xff] %v453_v17  ;;  %v457_v19 = vld [vmem:[%s3115_s26 + $0x230] sm:$0xff]  ;;  %v2325_v20 = vld [vmem:[%s3115_s26 + $0x28] sm:$0xf] }
  0x1a   : > { %456 = vst [vmem:[%s3120_s27 + $0x9c] sm:$0xff] %v455_v18  ;;  %458 = vst [vmem:[%s3120_s27 + $0xa4] sm:$0xff] %v457_v19  ;;  %v2327_v21 = vld [vmem:[%s3115_s26 + $0xd8] sm:$0xf]  ;;  %v2329_v22 = vld [vmem:[%s3115_s26 + $0x188] sm:$0xf] }
  0x1b   : > { %2326 = vst [vmem:[%s3120_s27 + $0x28] sm:$0xf] %v2325_v20  ;;  %v2331_v23 = vld [vmem:[%s3115_s26 + $0x238] sm:$0xf]  ;;  %2328 = vst [vmem:[%s3120_s27 + $0x54] sm:$0xf] %v2327_v21 }
  0x1c   : > { %2330 = vst [vmem:[%s3120_s27 + $0x80] sm:$0xf] %v2329_v22  ;;  %2332 = vst [vmem:[%s3120_s27 + $0xac] sm:$0xf] %v2331_v23 }
  0x1d PF: > { %p2333_p5 = scmp.ge.s32.totalorder %s2999_s15, 1  ;;  %p488_p6 = scmp.lt.s32.totalorder %s2999_s15, 5 }
  0x1f   : > { %p489_p7 = pnand %p2333_p5, %p488_p6 }
  0x20   : > { %s495_s28 = sand.u32 (!%p489_p7), 1, %s2991_s29   ;;  %s541_s18 = smul.u32 (!%p489_p7), 176, %s3095_s16 }
  0x21   : > { %492 = sbr.rel (%p489_p7) target bundleno = 806 (0x326), region = 90  ;;  %p2335_p9 = scmp.ne.s32.totalorder (!%p489_p7), %s3095_s16, 0 }
  0x22   : > { %s2797_s19 = smul.u32 (!%p489_p7), 176, %s495_s28  ;;  %p542_p8 = scmp.lt.s32.totalorder (!%p489_p7), %s541_s18, 703 }
  0x24   : > { %s3176_s25 = scalar_lea.vmem (!%p489_p7), [#allocation3], %s2797_s19 }
  0x26   : > { %s3490_s18 = smov (!%p542_p8, %s541_s18), 703  ;;  %551 = sbr.rel (%p2335_p9) target bundleno = 46 (0x2e), region = 98 }
  0x27   : > { %s2334_s21 = sshll.u32 %s3490_s18, 2 }
  0x28   : > { %s3174_s24 = scalar_lea.vmem %s3472_s1, %s2334_s21 }
  0x2b   : > { %v3001_v24 = vmov 0.0  }
  0x2c   : > { %552 = vst [vmem:[#allocation2 + $0x10] sm:$0xff] %v3001_v24  ;;  %553 = vst [vmem:[#allocation2] sm:$0xff] %v3001_v24 }
  0x2d   : > { %554 = vst [vmem:[#allocation2 + $0x18] sm:$0xff] %v3001_v24  ;;  %555 = vst [vmem:[#allocation2 + $0x8] sm:$0xff] %v3001_v24 }
  0x2e PF: > { %v2825_v25 = vld [vmem:[%s3174_s24 + $0x78] sm:$0xff]   ;;  %v2829_v29 = vld [vmem:[%s3174_s24 + $0x70] sm:$0xff]   ;;  %v2833_v33 = vld [vmem:[%s3174_s24 + $0x68] sm:$0xff]   ;;  %p2446_p10 = scmp.ne.s32.totalorder %s3095_s16, 3 }
  0x2f   : > { %v2826_v26 = vld [vmem:[%s3174_s24 + $0xf8] sm:$0xff]   ;;  %2488 = vmatprep.subr.bf16.mxu0 %v2825_v25  ;;  %v2830_v30 = vld [vmem:[%s3174_s24 + $0xf0] sm:$0xff]   ;;  %v2834_v34 = vld [vmem:[%s3174_s24 + $0xe8] sm:$0xff]  }
  0x30   : > { %v2827_v27 = vld [vmem:[%s3174_s24 + $0x38] sm:$0xff]   ;;  %2516 = vmatprep.subr.bf16.mxu1 %v2826_v26  ;;  %v2831_v31 = vld [vmem:[%s3174_s24 + $0x30] sm:$0xff]   ;;  %v2835_v35 = vld [vmem:[%s3174_s24 + $0x28] sm:$0xff]  }
  0x31   : > { %v2828_v28 = vld [vmem:[%s3174_s24 + $0xb8] sm:$0xff]   ;;  %2489 = vmatpush3.bf16.msra.mxu0 %v2827_v27  ;;  %v2832_v32 = vld [vmem:[%s3174_s24 + $0xb0] sm:$0xff]   ;;  %v2836_v36 = vld [vmem:[%s3174_s24 + $0xa8] sm:$0xff]  }
  0x32   : > { %2517 = vmatpush3.bf16.msra.mxu1 %v2828_v28  ;;  %2490 = vmatprep.subr.bf16.mxu0 %v2829_v29  ;;  %v2837_v37 = vld [vmem:[%s3174_s24 + $0x60] sm:$0xff]   ;;  %v2841_v41 = vld [vmem:[%s3174_s24 + $0x58] sm:$0xff]   ;;  %v2845_v45 = vld [vmem:[%s3174_s24 + $0x50] sm:$0xff]  }
  0x33   : > { %2518 = vmatprep.subr.bf16.mxu1 %v2830_v30  ;;  %v2838_v38 = vld [vmem:[%s3174_s24 + $0xe0] sm:$0xff]   ;;  %v2842_v42 = vld [vmem:[%s3174_s24 + $0xd8] sm:$0xff]   ;;  %v2846_v46 = vld [vmem:[%s3174_s24 + $0xd0] sm:$0xff]  }
  0x34   : > { %v2839_v39 = vld [vmem:[%s3174_s24 + $0x20] sm:$0xff]   ;;  %v2843_v43 = vld [vmem:[%s3174_s24 + $0x18] sm:$0xff]   ;;  %v2847_v47 = vld [vmem:[%s3174_s24 + $0x10] sm:$0xff]  }
  0x35   : > { %2491 = vmatpush3.bf16.msra.mxu0 %v2831_v31  ;;  %v2840_v40 = vld [vmem:[%s3174_s24 + $0xa0] sm:$0xff]   ;;  %v2844_v44 = vld [vmem:[%s3174_s24 + $0x98] sm:$0xff]   ;;  %v2848_v48 = vld [vmem:[%s3174_s24 + $0x90] sm:$0xff]  }
  0x36   : > { %2519 = vmatpush3.bf16.msra.mxu1 %v2832_v32  ;;  %2492 = vmatprep.subr.bf16.mxu0 %v2833_v33  ;;  %v2849_v49 = vld [vmem:[%s3174_s24 + $0x48] sm:$0xff]   ;;  %v2853_v53 = vld [vmem:[%s3174_s24 + $0x40] sm:$0xff]   ;;  %v2863_v61 = vld [vmem:[%s3174_s24 + $0x178] sm:$0xff]  }
  0x37   : > { %2520 = vmatprep.subr.bf16.mxu1 %v2834_v34  ;;  %v2850_v50 = vld [vmem:[%s3174_s24 + $0xc8] sm:$0xff]   ;;  %v2854_v54 = vld [vmem:[%s3174_s24 + $0xc0] sm:$0xff]   ;;  %v2864_v62 = vld [vmem:[%s3174_s24 + $0x138] sm:$0xff]  }
  0x38   : > { %v2851_v51 = vld [vmem:[%s3174_s24 + $0x8] sm:$0xff]   ;;  %v2855_v55 = vld [vmem:[%s3174_s24] sm:$0xff]   ;;  %v2865_v63 = vld [vmem:[%s3174_s24 + $0x1f8] sm:$0xff]  }
  0x39   : > { %2493 = vmatpush3.bf16.msra.mxu0 %v2835_v35  ;;  %v2852_v52 = vld [vmem:[%s3174_s24 + $0x88] sm:$0xff]   ;;  %v2856_v56 = vld [vmem:[%s3174_s24 + $0x80] sm:$0xff]   ;;  %v2866_v0 = vld [vmem:[%s3174_s24 + $0x1b8] sm:$0xff]  }
  0x3a   : > { %2521 = vmatpush3.bf16.msra.mxu1 %v2836_v36  ;;  %2494 = vmatprep.subr.bf16.mxu0 %v2837_v37  ;;  %v2857_v57 = vld [vmem:[%s3176_s25] ss:$44 sps:$4 sm:$0xff]   ;;  %v2859_v58 = vld [vmem:[%s3176_s25 + $0x4] ss:$44 sps:$4 sm:$0xff]   ;;  %v2860_v59 = vld [vmem:[%s3176_s25 + $0x8] ss:$44 sps:$4 sm:$0xff]  }
  0x3b   : > { %2522 = vmatprep.subr.bf16.mxu1 %v2838_v38  ;;  %v2862_v60 = vld [vmem:[%s3176_s25 + $0xc] ss:$44 sps:$4 sm:$0xff]   ;;  %1432 = vmatprep.mubr.bf16.mxu0 %v2859_v58  ;;  %v2867_v1 = vld [vmem:[%s3174_s24 + $0x170] sm:$0xff]   ;;  %v2875_v9 = vld [vmem:[%s3174_s24 + $0x160] sm:$0xff]  }
  0x3c   : > { %1481 = vmatprep.mubr.bf16.mxu1 %v2862_v60  ;;  %v2868_v2 = vld [vmem:[%s3174_s24 + $0x130] sm:$0xff]   ;;  %v2871_v5 = vld [vmem:[%s3174_s24 + $0x168] sm:$0xff]   ;;  %v2876_v10 = vld [vmem:[%s3174_s24 + $0x120] sm:$0xff]  }
  0x3d   : > { %2495 = vmatpush3.bf16.msra.mxu0 %v2839_v39  ;;  %v2869_v3 = vld [vmem:[%s3174_s24 + $0x1f0] sm:$0xff]   ;;  %v2872_v6 = vld [vmem:[%s3174_s24 + $0x128] sm:$0xff]   ;;  %v2877_v11 = vld [vmem:[%s3174_s24 + $0x1e0] sm:$0xff]  }
  0x3e   : > { %2523 = vmatpush3.bf16.msra.mxu1 %v2840_v40  ;;  %2496 = vmatprep.subr.bf16.mxu0 %v2841_v41  ;;  %v2870_v4 = vld [vmem:[%s3174_s24 + $0x1b0] sm:$0xff]   ;;  %v2873_v7 = vld [vmem:[%s3174_s24 + $0x1e8] sm:$0xff]   ;;  %v2878_v12 = vld [vmem:[%s3174_s24 + $0x1a0] sm:$0xff]  }
  0x3f   : > { %2524 = vmatprep.subr.bf16.mxu1 %v2842_v42  ;;  %v2874_v8 = vld [vmem:[%s3174_s24 + $0x1a8] sm:$0xff]   ;;  %v2879_v13 = vld [vmem:[%s3174_s24 + $0x158] sm:$0xff]   ;;  %v2883_v16 = vld [vmem:[%s3176_s25 + $0x64] ss:$44 sps:$4 sm:$0xff]  }
  0x40   : > { %v2880_v14 = vld [vmem:[%s3174_s24 + $0x118] sm:$0xff]   ;;  %v2889_v21 = vld [vmem:[%s3174_s24 + $0x150] sm:$0xff]   ;;  %v2893_v25 = vld [vmem:[%s3174_s24 + $0x148] sm:$0xff]  }
  0x41   : > { %2497 = vmatpush3.bf16.msra.mxu0 %v2843_v43  ;;  %v2881_v15 = vld [vmem:[%s3176_s25 + $0x5c] ss:$44 sps:$4 sm:$0xff]   ;;  %v2886_v18 = vld [vmem:[%s3176_s25 + $0x58] ss:$44 sps:$4 sm:$0xff]   ;;  %v2887_v19 = vld [vmem:[%s3176_s25 + $0x60] ss:$44 sps:$4 sm:$0xff]  }
  0x42   : > { %2525 = vmatpush3.bf16.msra.mxu1 %v2844_v44  ;;  %2498 = vmatprep.subr.bf16.mxu0 %v2845_v45  ;;  %v2885_v17 = vld [vmem:[%s3174_s24 + $0x1d8] sm:$0xff]   ;;  %v2890_v22 = vld [vmem:[%s3174_s24 + $0x110] sm:$0xff]   ;;  %v2894_v26 = vld [vmem:[%s3174_s24 + $0x108] sm:$0xff]  }
  0x43   : > { %2526 = vmatprep.subr.bf16.mxu1 %v2846_v46  ;;  %v2888_v20 = vld [vmem:[%s3174_s24 + $0x198] sm:$0xff]   ;;  %v2891_v23 = vld [vmem:[%s3174_s24 + $0x1d0] sm:$0xff]   ;;  %v2895_v27 = vld [vmem:[%s3174_s24 + $0x1c8] sm:$0xff]  }
  0x44   : > { %v2892_v24 = vld [vmem:[%s3174_s24 + $0x190] sm:$0xff]   ;;  %v2896_v28 = vld [vmem:[%s3174_s24 + $0x188] sm:$0xff]   ;;  %v2897_v29 = vld [vmem:[%s3174_s24 + $0x140] sm:$0xff]  }
  0x45   : > { %2499 = vmatpush3.bf16.msra.mxu0 %v2847_v47  ;;  %v2898_v30 = vld [vmem:[%s3174_s24 + $0x100] sm:$0xff]   ;;  %v2904_v35 = vld [vmem:[%s3174_s24 + $0x278] sm:$0xff]   ;;  %v2909_v39 = vld [vmem:[%s3174_s24 + $0x270] sm:$0xff]  }
  0x46   : > { %2527 = vmatpush3.bf16.msra.mxu1 %v2848_v48  ;;  %2500 = vmatprep.subr.bf16.mxu0 %v2849_v49  ;;  %v2899_v31 = vld [vmem:[%s3174_s24 + $0x1c0] sm:$0xff]   ;;  %v2907_v37 = vld [vmem:[%s3176_s25 + $0x1c] ss:$44 sps:$4 sm:$0xff]   ;;  %v2911_v41 = vld [vmem:[%s3174_s24 + $0x230] sm:$0xff]  }
  0x47   : > { %2528 = vmatprep.subr.bf16.mxu1 %v2850_v50  ;;  %v2900_v32 = vld [vmem:[%s3176_s25 + $0x10] ss:$44 sps:$4 sm:$0xff]   ;;  %v2902_v33 = vld [vmem:[%s3176_s25 + $0x14] ss:$44 sps:$4 sm:$0xff]   ;;  %v2905_v36 = vld [vmem:[%s3176_s25 + $0x18] ss:$44 sps:$4 sm:$0xff]  }
  0x48   : > { %v2903_v34 = vld [vmem:[%s3174_s24 + $0x180] sm:$0xff]   ;;  %v2908_v38 = vld [vmem:[%s3174_s24 + $0x238] sm:$0xff]   ;;  %v2915_v44 = vld [vmem:[%s3174_s24 + $0x268] sm:$0xff]  }
  0x49   : > { %2501 = vmatpush3.bf16.msra.mxu0 %v2851_v51  ;;  %v2910_v40 = vld [vmem:[%s3174_s24 + $0x2b8] sm:$0xff]   ;;  %v2916_v45 = vld [vmem:[%s3174_s24 + $0x2b0] sm:$0xff]   ;;  %v2919_v47 = vld [vmem:[%s3174_s24 + $0x228] sm:$0xff]  }
  0x4a   : > { %2529 = vmatpush3.bf16.msra.mxu1 %v2852_v52  ;;  %2502 = vmatprep.subr.bf16.mxu0 %v2853_v53  ;;  %v2912_v42 = vld [vmem:[%s3176_s25 + $0x6c] ss:$44 sps:$4 sm:$0xff]   ;;  %v2914_v43 = vld [vmem:[%s3176_s25 + $0x68] ss:$44 sps:$4 sm:$0xff]   ;;  %v2920_v48 = vld [vmem:[%s3176_s25 + $0x70] ss:$44 sps:$4 sm:$0xff]  }
  0x4b   : > { %2530 = vmatprep.subr.bf16.mxu1 %v2854_v54  ;;  %v2917_v46 = vld [vmem:[%s3176_s25 + $0x74] ss:$44 sps:$4 sm:$0xff]   ;;  %v2922_v50 = vld [vmem:[%s3174_s24 + $0x2a8] sm:$0xff]   ;;  %v2924_v52 = vld [vmem:[%s3174_s24 + $0x258] sm:$0xff]  }
  0x4c   : > { %v2921_v49 = vld [vmem:[%s3174_s24 + $0x260] sm:$0xff]   ;;  %v2926_v54 = vld [vmem:[%s3174_s24 + $0x218] sm:$0xff]   ;;  %v2930_v58 = vld [vmem:[%s3174_s24 + $0x248] sm:$0xff]  }
  0x4d   : > { %2503 = vmatpush3.bf16.msra.mxu0 %v2855_v55  ;;  %v2923_v51 = vld [vmem:[%s3174_s24 + $0x220] sm:$0xff]   ;;  %v2927_v55 = vld [vmem:[%s3174_s24 + $0x250] sm:$0xff]   ;;  %v2932_v60 = vld [vmem:[%s3174_s24 + $0x208] sm:$0xff]  }
  0x4e   : > { %2531 = vmatpush3.bf16.msra.mxu1 %v2856_v56  ;;  %2544 = vmatprep.subr.bf16.mxu0 %v2863_v61  ;;  %v2925_v53 = vld [vmem:[%s3174_s24 + $0x2a0] sm:$0xff]   ;;  %v2928_v56 = vld [vmem:[%s3174_s24 + $0x298] sm:$0xff]   ;;  %v2934_v61 = vld [vmem:[%s3174_s24 + $0x288] sm:$0xff]  }
  0x4f   : > { %2572 = vmatprep.subr.bf16.mxu1 %v2865_v63  ;;  %v2935_v63 = vld [vmem:[%s3174_s24 + $0x200] sm:$0xff]  }
  0x50   : > { %1433 = vmatmul.mubr.bf16.vlgmr.msra.gmra.mxu0 %v2857_v57  ;;  %v2929_v57 = vld [vmem:[%s3174_s24 + $0x210] sm:$0xff]  }
  0x51   : > { %1482 = vmatmul.mubr.bf16.vlgmr.msra.gmra.mxu1 %v2860_v59  ;;  %2545 = vmatpush3.bf16.msra.mxu0 %v2864_v62  ;;  %v2931_v59 = vld [vmem:[%s3174_s24 + $0x290] sm:$0xff]   ;;  %v2933_v62 = vld [vmem:[%s3174_s24 + $0x240] sm:$0xff]  }
  0x52   : > { %2573 = vmatpush3.bf16.msra.mxu1 %v2866_v0  ;;  %2546 = vmatprep.subr.bf16.mxu0 %v2867_v1  ;;  %v2938_v0 = vld [vmem:[%s3176_s25 + $0x24] ss:$44 sps:$4 sm:$0xff]  }
  0x53   : > { %2574 = vmatprep.subr.bf16.mxu1 %v2869_v3  ;;  %1440 = vmatprep.mubr.bf16.mxu0 %v2881_v15  ;;  %v2939_v1 = vld [vmem:[%s3174_s24 + $0x280] sm:$0xff]  }
  0x54   : > { %1489 = vmatprep.mubr.bf16.mxu1 %v2883_v16  ;;  %v2936_v3 = vld [vmem:[%s3176_s25 + $0x20] ss:$44 sps:$4 sm:$0xff]  }
  0x55   : > { %2547 = vmatpush3.bf16.msra.mxu0 %v2868_v2  ;;  %v2940_v2 = vld [vmem:[%s3176_s25 + $0x28] ss:$44 sps:$4 sm:$0xff]  }
  0x56   : > { %2575 = vmatpush3.bf16.msra.mxu1 %v2870_v4  ;;  %2548 = vmatprep.subr.bf16.mxu0 %v2871_v5  ;;  %v2942_v4 = vld [vmem:[%s3176_s25 + $0x7c] ss:$44 sps:$4 sm:$0xff]   ;;  %v2941_v5 = vld [vmem:[%s3176_s25 + $0x80] ss:$44 sps:$4 sm:$0xff]  }
  0x57   : > { %2576 = vmatprep.subr.bf16.mxu1 %v2873_v7 }
  0x58   : > { %1441 = vmatmul.mubr.bf16.gmra.mxu0 %v2886_v18 }
  0x59   : > { %2549 = vmatpush3.bf16.msra.mxu0 %v2872_v6  ;;  %1490 = vmatmul.mubr.bf16.gmra.mxu1 %v2887_v19  ;;  %v2944_v6 = vld [vmem:[%s3176_s25 + $0x78] ss:$44 sps:$4 sm:$0xff]  }
  0x5a   : > { %2577 = vmatpush3.bf16.msra.mxu1 %v2874_v8  ;;  %2550 = vmatprep.subr.bf16.mxu0 %v2875_v9 }
  0x5b   : > { %2578 = vmatprep.subr.bf16.mxu1 %v2877_v11  ;;  %1530 = vmatprep.mubr.bf16.mxu0 %v2902_v33 }
  0x5c   : > { %1579 = vmatprep.mubr.bf16.mxu1 %v2907_v37 }
  0x5d   : > { %2551 = vmatpush3.bf16.msra.mxu0 %v2876_v10 }
  0x5e   : > { %2579 = vmatpush3.bf16.msra.mxu1 %v2878_v12  ;;  %2552 = vmatprep.subr.bf16.mxu0 %v2879_v13 }
  0x5f   : > { %2580 = vmatprep.subr.bf16.mxu1 %v2885_v17 }
  0x61   : > { %2553 = vmatpush3.bf16.msra.mxu0 %v2880_v14 }
  0x62   : > { %2581 = vmatpush3.bf16.msra.mxu1 %v2888_v20  ;;  %2554 = vmatprep.subr.bf16.mxu0 %v2889_v21 }
  0x63   : > { %2582 = vmatprep.subr.bf16.mxu1 %v2891_v23 }
  0x65   : > { %2555 = vmatpush3.bf16.msra.mxu0 %v2890_v22 }
  0x66   : > { %2583 = vmatpush3.bf16.msra.mxu1 %v2892_v24  ;;  %2556 = vmatprep.subr.bf16.mxu0 %v2893_v25 }
  0x67   : > { %2584 = vmatprep.subr.bf16.mxu1 %v2895_v27 }
  0x69   : > { %2557 = vmatpush3.bf16.msra.mxu0 %v2894_v26 }
  0x6a   : > { %2585 = vmatpush3.bf16.msra.mxu1 %v2896_v28  ;;  %2558 = vmatprep.subr.bf16.mxu0 %v2897_v29 }
  0x6b   : > { %2586 = vmatprep.subr.bf16.mxu1 %v2899_v31 }
  0x6d   : > { %2559 = vmatpush3.bf16.msra.mxu0 %v2898_v30 }
  0x6e   : > { %2587 = vmatpush3.bf16.msra.mxu1 %v2903_v34  ;;  %2600 = vmatprep.subr.bf16.mxu0 %v2904_v35 }
  0x6f   : > { %2680 = vmatprep.subr.bf16.mxu1 %v2910_v40 }
  0x70   : > { %1531 = vmatmul.mubr.bf16.vlgmr.msra.gmra.mxu0 %v2900_v32 }
  0x71   : > { %2601 = vmatpush3.bf16.msra.mxu0 %v2908_v38  ;;  %1580 = vmatmul.mubr.bf16.vlgmr.msra.gmra.mxu1 %v2905_v36 }
  0x72   : > { %2602 = vmatprep.subr.bf16.mxu0 %v2909_v39  ;;  %2681 = vmatpush3.bf16.msra.mxu1 %v2910_v40 }
  0x73   : > { %1538 = vmatprep.mubr.bf16.mxu0 %v2912_v42  ;;  %2682 = vmatprep.subr.bf16.mxu1 %v2916_v45 }
  0x74   : > { %1587 = vmatprep.mubr.bf16.mxu1 %v2917_v46 }
  0x75   : > { %2603 = vmatpush3.bf16.msra.mxu0 %v2911_v41 }
  0x76   : > { %2604 = vmatprep.subr.bf16.mxu0 %v2915_v44  ;;  %2683 = vmatpush3.bf16.msra.mxu1 %v2916_v45 }
  0x77   : > { %2684 = vmatprep.subr.bf16.mxu1 %v2922_v50 }
  0x78   : > { %1539 = vmatmul.mubr.bf16.gmra.mxu0 %v2914_v43 }
  0x79   : > { %2605 = vmatpush3.bf16.msra.mxu0 %v2919_v47  ;;  %1588 = vmatmul.mubr.bf16.gmra.mxu1 %v2920_v48 }
  0x7a   : > { %2606 = vmatprep.subr.bf16.mxu0 %v2921_v49  ;;  %2685 = vmatpush3.bf16.msra.mxu1 %v2922_v50 }
  0x7b   : > { %2686 = vmatprep.subr.bf16.mxu1 %v2925_v53  ;;  %1628 = vmatprep.mubr.bf16.mxu0 %v2938_v0 }
  0x7c   : > { %2696 = vmatprep.mubr.bf16.mxu1 %v2940_v2 }
  0x7d   : > { %2607 = vmatpush3.bf16.msra.mxu0 %v2923_v51 }
  0x7e   : > { %2608 = vmatprep.subr.bf16.mxu0 %v2924_v52  ;;  %2687 = vmatpush3.bf16.msra.mxu1 %v2925_v53 }
  0x7f   : > { %2688 = vmatprep.subr.bf16.mxu1 %v2928_v56 }
  0x81   : > { %2609 = vmatpush3.bf16.msra.mxu0 %v2926_v54 }
  0x82   : > { %2610 = vmatprep.subr.bf16.mxu0 %v2927_v55  ;;  %2689 = vmatpush3.bf16.msra.mxu1 %v2928_v56 }
  0x83   : > { %2690 = vmatprep.subr.bf16.mxu1 %v2931_v59 }
  0x85   : > { %2611 = vmatpush3.bf16.msra.mxu0 %v2929_v57 }
  0x86   : > { %2612 = vmatprep.subr.bf16.mxu0 %v2930_v58  ;;  %2691 = vmatpush3.bf16.msra.mxu1 %v2931_v59 }
  0x87   : > { %2692 = vmatprep.subr.bf16.mxu1 %v2934_v61 }
  0x89   : > { %2613 = vmatpush3.bf16.msra.mxu0 %v2932_v60 }
  0x8a   : > { %2614 = vmatprep.subr.bf16.mxu0 %v2933_v62  ;;  %2693 = vmatpush3.bf16.msra.mxu1 %v2934_v61 }
  0x8b   : > { %2694 = vmatprep.subr.bf16.mxu1 %v2939_v1 }
  0x8d   : > { %2615 = vmatpush3.bf16.msra.mxu0 %v2935_v63 }
  0x8e   : > { %2695 = vmatpush3.bf16.msra.mxu1 %v2939_v1 }
  0x90   : > { %1629 = vmatmul.mubr.bf16.vlgmr.msra.gmra.mxu0 %v2936_v3 }
  0x91   : > { %1636 = vmatprep.mubr.bf16.mxu0 %v2942_v4  ;;  %2697 = vmatmul.mubr.bf16.vlgmr.msra.gmra.mxu1 %v2941_v5  ;;  %v556_v4 = vld [vmem:[#allocation2 + $0x10] sm:$0xff] }
  0x98   : > { %1637 = vmatmul.mubr.bf16.gmra.mxu0 %v2944_v6 }
 0x110   : > { %v2504_v7 = vpop.f32.mrf.mxu0 }
 0x111   : > { %v2532_v8 = vpop.f32.mrf.mxu1 }
 0x112   : > { %v2505_v9 = vpop.f32.mrf.mxu0 }
 0x113   : > { %v2533_v10 = vpop.f32.mrf.mxu1  ;;  %v2506_v34 = vadd.f32 %v2505_v9, %v2504_v7 }
 0x114   : > { %v2507_v11 = vpop.f32.mrf.mxu0  ;;  %v2534_v35 = vadd.f32 %v2533_v10, %v2532_v8 }
 0x115   : > { %v2535_v12 = vpop.f32.mrf.mxu1 }
 0x116   : > { %v2508_v13 = vpop.f32.mrf.mxu0  ;;  %v1484_v39 = vadd.f32 %v2534_v35, %v2506_v34 }
 0x117   : > { %v2536_v15 = vpop.f32.mrf.mxu1  ;;  %v2509_v40 = vadd.f32 %v2508_v13, %v2507_v11 }
 0x118   : > { %v2510_v14 = vpop.f32.mrf.mxu0  ;;  %v2537_v41 = vadd.f32 %v2536_v15, %v2535_v12 }
 0x119   : > { %v2538_v16 = vpop.f32.mrf.mxu1 }
 0x11a   : > { %v2511_v17 = vpop.f32.mrf.mxu0  ;;  %v1487_v50 = vadd.f32 %v2537_v41, %v2509_v40 }
 0x11b   : > { %v2539_v18 = vpop.f32.mrf.mxu1  ;;  %v2512_v47 = vadd.f32 %v2511_v17, %v2510_v14  ;;  %v557_v17 = vld [vmem:[#allocation2] sm:$0xff] }
 0x11c   : > { %v2513_v19 = vpop.f32.mrf.mxu0  ;;  %v2540_v48 = vadd.f32 %v2539_v18, %v2538_v16 }
 0x11d   : > { %v2541_v20 = vpop.f32.mrf.mxu1 }
 0x11e   : > { %v2514_v21 = vpop.f32.mrf.mxu0  ;;  %v1492_v59 = vadd.f32 %v2540_v48, %v2512_v47 }
 0x11f   : > { %v2542_v23 = vpop.f32.mrf.mxu1  ;;  %v2515_v61 = vadd.f32 %v2514_v21, %v2513_v19 }
 0x120   : > { %v2543_v62 = vadd.f32 %v2542_v23, %v2541_v20 }
 0x122   : > { %v1495_v11 = vadd.f32 %v2543_v62, %v2515_v61 }
 0x130   : > { %v2560_v22 = vpop.f32.mrf.mxu0 }
 0x131   : > { %v2588_v24 = vpop.f32.mrf.mxu1 }
 0x132   : > { %v2561_v25 = vpop.f32.mrf.mxu0 }
 0x133   : > { %v2589_v26 = vpop.f32.mrf.mxu1  ;;  %v2562_v38 = vadd.f32 %v2561_v25, %v2560_v22  ;;  %v558_v25 = vld [vmem:[#allocation2 + $0x18] sm:$0xff] }
 0x134   : > { %v2563_v27 = vpop.f32.mrf.mxu0  ;;  %v2590_v45 = vadd.f32 %v2589_v26, %v2588_v24 }
 0x135   : > { %v2591_v28 = vpop.f32.mrf.mxu1  ;;  %v1533_v44 = vadd.f32 %v2562_v38, %v1484_v39 }
 0x136   : > { %v2564_v29 = vpop.f32.mrf.mxu0 }
 0x137   : > { %v2592_v30 = vpop.f32.mrf.mxu1  ;;  %v2565_v46 = vadd.f32 %v2564_v29, %v2563_v27  ;;  %v1582_v54 = vadd.f32 %v2590_v45, %v1533_v44 }
 0x138   : > { %v2566_v31 = vpop.f32.mrf.mxu0  ;;  %v2593_v56 = vadd.f32 %v2592_v30, %v2591_v28 }
 0x139   : > { %v2594_v32 = vpop.f32.mrf.mxu1  ;;  %v1536_v55 = vadd.f32 %v2565_v46, %v1487_v50 }
 0x13a   : > { %v2567_v33 = vpop.f32.mrf.mxu0 }
 0x13b   : > { %v2595_v36 = vpop.f32.mrf.mxu1  ;;  %v2568_v52 = vadd.f32 %v2567_v33, %v2566_v31  ;;  %v1585_v5 = vadd.f32 %v2593_v56, %v1536_v55 }
 0x13c   : > { %v2569_v37 = vpop.f32.mrf.mxu0  ;;  %v2596_v2 = vadd.f32 %v2595_v36, %v2594_v32  ;;  %v559_v32 = vld [vmem:[#allocation2 + $0x8] sm:$0xff] }
 0x13d   : > { %v2597_v42 = vpop.f32.mrf.mxu1  ;;  %v1541_v1 = vadd.f32 %v2568_v52, %v1492_v59 }
 0x13e   : > { %v2570_v43 = vpop.f32.mrf.mxu0 }
 0x13f   : > { %v2598_v51 = vpop.f32.mrf.mxu1  ;;  %v2571_v6 = vadd.f32 %v2570_v43, %v2569_v37  ;;  %v1590_v15 = vadd.f32 %v2596_v2, %v1541_v1 }
 0x140   : > { %v2599_v19 = vadd.f32 %v2598_v51, %v2597_v42 }
 0x141   : > { %v1544_v18 = vadd.f32 %v2571_v6, %v1495_v11 }
 0x143   : > { %v1593_v27 = vadd.f32 %v2599_v19, %v1544_v18 }
 0x150   : > { %v2616_v49 = vpop.f32.mrf.mxu0 }
 0x151   : > { %v2698_v58 = vpop.f32.mrf.mxu1 }
 0x152   : > { %v2617_v53 = vpop.f32.mrf.mxu0 }
 0x153   : > { %v2618_v57 = vadd.f32 %v2617_v53, %v2616_v49  ;;  %v1679_v0 = vpop.f32.mrf.mxu1 }
 0x154   : > { %v2619_v60 = vpop.f32.mrf.mxu0 }
 0x155   : > { %v1631_v63 = vadd.f32 %v2618_v57, %v1582_v54  ;;  %v2699_v9 = vpop.f32.mrf.mxu1 }
 0x156   : > { %v2620_v3 = vpop.f32.mrf.mxu0 }
 0x157   : > { %v2621_v7 = vadd.f32 %v2620_v3, %v2619_v60  ;;  %v1680_v8 = vadd.f32 %v1679_v0, %v1631_v63  ;;  %v1682_v14 = vpop.f32.mrf.mxu1 }
 0x158   : > { %v2622_v10 = vpop.f32.mrf.mxu0 }
 0x159   : > { %v1694_v12 = vadd.f32 %v1680_v8, %v556_v4  ;;  %v1634_v13 = vadd.f32 %v2621_v7, %v1585_v5 }
 0x15a   : > { %v2623_v16 = vpop.f32.mrf.mxu0 }
 0x15b   : > { %1698 = vst [vmem:[#allocation2 + $0x10] sm:$0xff] %v1694_v12  ;;  %v2624_v20 = vadd.f32 %v2623_v16, %v2622_v10  ;;  %v1683_v21 = vadd.f32 %v1682_v14, %v1634_v13 }
 0x15c   : > { %v2625_v22 = vpop.f32.mrf.mxu0 }
 0x15d   : > { %v1639_v23 = vadd.f32 %v2624_v20, %v1590_v15  ;;  %v1695_v24 = vadd.f32 %v1683_v21, %v557_v17 }
 0x15e   : > { %v2626_v26 = vpop.f32.mrf.mxu0 }
 0x15f   : > { %v1688_v28 = vadd.f32 %v2698_v58, %v1639_v23  ;;  %1699 = vst [vmem:[#allocation2] sm:$0xff] %v1695_v24  ;;  %v2627_v29 = vadd.f32 %v2626_v26, %v2625_v22 }
 0x161   : > { %v1696_v30 = vadd.f32 %v1688_v28, %v558_v25  ;;  %v1642_v31 = vadd.f32 %v2627_v29, %v1593_v27 }
 0x163   : > { %1700 = vst [vmem:[#allocation2 + $0x18] sm:$0xff] %v1696_v30  ;;  %v1691_v33 = vadd.f32 %v2699_v9, %v1642_v31  ;;  %1705 = sbr.rel (%p2446_p10) target bundleno = 806 (0x326), region = 102 }
 0x165   : > { %v1697_v34 = vadd.f32 %v1691_v33, %v559_v32 }
 0x167   : > { %1701 = vst [vmem:[#allocation2 + $0x8] sm:$0xff] %v1697_v34 }
 0x168   : > { %v2447_v37 = vld [vmem:[%s3473_s2] ss:$0 sm:$0xff]  ;;  %v3002_v38 = vmov 0.0   ;;  %v1706_v41 = vld [vmem:[#allocation2 + $0x10] sm:$0xff]  ;;  %vm3003_vm0 = vmmov 0   ;;  %v2945_v53 = vld [vmem:[%s3476_s5 + $0x38] sm:$0xff]  }
 0x169   : > { %2700 = vmatprep.subr.bf16.mxu0 %v3002_v38  ;;  %2708 = vmatprep.subr.bf16.mxu1 %v3002_v38  ;;  %v1707_v42 = vld [vmem:[#allocation2] sm:$0xff]  ;;  %v1717_v43 = vadd.f32 %v2447_v37, %v1706_v41  ;;  %vm1728_vm1 = vcmask 261120   ;;  %v2946_v54 = vld [vmem:[%s3478_s7 + $0x38] sm:$0xff]   ;;  %v2947_v55 = vld [vmem:[%s3476_s5 + $0x30] sm:$0xff]  }
 0x16a   : > { %v1708_v35 = vld [vmem:[#allocation2 + $0x18] sm:$0xff]  ;;  %v1718_v44 = vadd.f32 %v2447_v37, %v1707_v42  ;;  %2704 = vmatprep.mubr.msk.bf16.mxu0 %vm3003_vm0, %v3002_v38  ;;  %2712 = vmatprep.mubr.msk.bf16.mxu1 %vm3003_vm0, %v3002_v38  ;;  %v1727_v51 = vld [vmem:[%s3474_s3] sm:$0x1]  ;;  %v2948_v56 = vld [vmem:[%s3478_s7 + $0x30] sm:$0xff]  }
 0x16b   : > { %v1719_v39 = vadd.f32 %v2447_v37, %v1708_v35  ;;  %v1721_v47 = vmax.f32 %v1717_v43, 0.0  ;;  %v1773_v52 = vld [vmem:[%s3475_s4] sm:$0x1]  ;;  %v2949_v57 = vld [vmem:[%s3476_s5 + $0x28] sm:$0xff]   ;;  %v2953_v61 = vld [vmem:[%s3476_s5 + $0x18] sm:$0xff]  }
 0x16c   : > { %v1722_v48 = vmax.f32 %v1718_v44, 0.0  ;;  %v2950_v58 = vld [vmem:[%s3478_s7 + $0x28] sm:$0xff]   ;;  %v2951_v59 = vld [vmem:[%s3476_s5 + $0x20] sm:$0xff]   ;;  %v2954_v62 = vld [vmem:[%s3478_s7 + $0x18] sm:$0xff]  }
 0x16d   : > { %v1723_v45 = vmax.f32 %v1719_v39, 0.0  ;;  %v2952_v60 = vld [vmem:[%s3478_s7 + $0x20] sm:$0xff]   ;;  %v2955_v63 = vld [vmem:[%s3476_s5 + $0x10] sm:$0xff]   ;;  %v2957_v1 = vld [vmem:[%s3476_s5 + $0x8] sm:$0xff]  }
 0x16e   : > { %v1709_v36 = vld [vmem:[#allocation2 + $0x8] sm:$0xff]  ;;  %v1725_v50 = vpack.c.bf16 %v1722_v48, %v1721_v47  ;;  %v2956_v0 = vld [vmem:[%s3478_s7 + $0x10] sm:$0xff]   ;;  %v2959_v3 = vld [vmem:[%s3476_s5] sm:$0xff]  }
 0x16f   : > { %v1720_v40 = vadd.f32 %v2447_v37, %v1709_v36  ;;  %v2958_v2 = vld [vmem:[%s3478_s7 + $0x8] sm:$0xff]   ;;  %v2960_v4 = vld [vmem:[%s3478_s7] sm:$0xff]   ;;  %v2961_v7 = vld [vmem:[%s3481_s10 + $0x38] sm:$0xff]  }
 0x170   : > { %v2962_v8 = vld [vmem:[%s3480_s9 + $0x38] sm:$0xff]   ;;  %v2963_v15 = vld [vmem:[%s3481_s10 + $0x30] sm:$0xff]   ;;  %v2965_v19 = vld [vmem:[%s3481_s10 + $0x28] sm:$0xff]  }
 0x171   : > { %v1724_v46 = vmax.f32 %v1720_v40, 0.0  ;;  %v2964_v16 = vld [vmem:[%s3480_s9 + $0x30] sm:$0xff]   ;;  %v2966_v20 = vld [vmem:[%s3480_s9 + $0x28] sm:$0xff]   ;;  %v2967_v21 = vld [vmem:[%s3481_s10 + $0x20] sm:$0xff]  }
 0x172   : > { %v2968_v22 = vld [vmem:[%s3480_s9 + $0x20] sm:$0xff]   ;;  %v2969_v23 = vld [vmem:[%s3481_s10 + $0x18] sm:$0xff]   ;;  %v2971_v25 = vld [vmem:[%s3481_s10 + $0x10] sm:$0xff]  }
 0x173   : > { %v1726_v49 = vpack.c.bf16 %v1724_v46, %v1723_v45  ;;  %v2970_v24 = vld [vmem:[%s3480_s9 + $0x18] sm:$0xff]   ;;  %v2972_v26 = vld [vmem:[%s3480_s9 + $0x10] sm:$0xff]   ;;  %v2973_v27 = vld [vmem:[%s3481_s10 + $0x8] sm:$0xff]  }
 0x174   : > { %v2974_v28 = vld [vmem:[%s3480_s9 + $0x8] sm:$0xff]   ;;  %v2975_v29 = vld [vmem:[%s3481_s10] sm:$0xff]  }
 0x175   : > { %2701 = vmatpush3.bf16.msra.mxu0 %v1726_v49  ;;  %2709 = vmatpush3.bf16.msra.mxu1 %v1726_v49  ;;  %v2976_v30 = vld [vmem:[%s3480_s9] sm:$0xff]  }
 0x176   : > { %2702 = vmatprep.subr.bf16.mxu0 %v3002_v38  ;;  %2710 = vmatprep.subr.bf16.mxu1 %v3002_v38  ;;  %v2450_v31 = vld [vmem:[%s3477_s6] ss:$0 sm:$0xff] }
 0x177   : > { %v2459_v32 = vld [vmem:[%s3479_s8] ss:$0 sm:$0xff] }
 0x178   : > { %v2484_v45 = vld [vmem:[%s3482_s11] ss:$0 sm:$0xff] }
 0x179   : > { %2703 = vmatpush3.bf16.msra.mxu0 %v1725_v50  ;;  %2711 = vmatpush3.bf16.msra.mxu1 %v1725_v50 }
 0x17a   : > { %2716 = vmatprep.subr.bf16.mxu0 %v3002_v38  ;;  %2736 = vmatprep.subr.bf16.mxu1 %v3002_v38 }
 0x17c   : > { %2705 = vmatmul.mubr.msk.bf16.vlgmr.msra.gmra.mxu0 %vm1728_vm1, %v1727_v51  ;;  %2713 = vmatmul.mubr.msk.bf16.vlgmr.msra.gmra.mxu1 %vm1728_vm1, %v1773_v52 }
 0x17d   : > { %2717 = vmatpush3.bf16.msra.mxu0 %v2945_v53  ;;  %2737 = vmatpush3.bf16.msra.mxu1 %v2946_v54 }
 0x17e   : > { %2718 = vmatprep.subr.bf16.mxu0 %v3002_v38  ;;  %2738 = vmatprep.subr.bf16.mxu1 %v3002_v38 }
 0x17f   : > { %2732 = vmatprep.mubr.msk.bf16.mxu0 %vm3003_vm0, %v3002_v38  ;;  %2752 = vmatprep.mubr.msk.bf16.mxu1 %vm3003_vm0, %v3002_v38 }
 0x181   : > { %2719 = vmatpush3.bf16.msra.mxu0 %v2947_v55  ;;  %2739 = vmatpush3.bf16.msra.mxu1 %v2948_v56 }
 0x182   : > { %2720 = vmatprep.subr.bf16.mxu0 %v3002_v38  ;;  %2740 = vmatprep.subr.bf16.mxu1 %v3002_v38 }
 0x185   : > { %2721 = vmatpush3.bf16.msra.mxu0 %v2949_v57  ;;  %2741 = vmatpush3.bf16.msra.mxu1 %v2950_v58 }
 0x186   : > { %2722 = vmatprep.subr.bf16.mxu0 %v3002_v38  ;;  %2742 = vmatprep.subr.bf16.mxu1 %v3002_v38 }
 0x189   : > { %2723 = vmatpush3.bf16.msra.mxu0 %v2951_v59  ;;  %2743 = vmatpush3.bf16.msra.mxu1 %v2952_v60 }
 0x18a   : > { %2724 = vmatprep.subr.bf16.mxu0 %v3002_v38  ;;  %2744 = vmatprep.subr.bf16.mxu1 %v3002_v38 }
 0x18d   : > { %2725 = vmatpush3.bf16.msra.mxu0 %v2953_v61  ;;  %2745 = vmatpush3.bf16.msra.mxu1 %v2954_v62 }
 0x18e   : > { %2726 = vmatprep.subr.bf16.mxu0 %v3002_v38  ;;  %2746 = vmatprep.subr.bf16.mxu1 %v3002_v38 }
 0x191   : > { %2727 = vmatpush3.bf16.msra.mxu0 %v2955_v63  ;;  %2747 = vmatpush3.bf16.msra.mxu1 %v2956_v0 }
 0x192   : > { %2728 = vmatprep.subr.bf16.mxu0 %v3002_v38  ;;  %2748 = vmatprep.subr.bf16.mxu1 %v3002_v38 }
 0x195   : > { %2729 = vmatpush3.bf16.msra.mxu0 %v2957_v1  ;;  %2749 = vmatpush3.bf16.msra.mxu1 %v2958_v2 }
 0x196   : > { %2730 = vmatprep.subr.bf16.mxu0 %v3002_v38  ;;  %2750 = vmatprep.subr.bf16.mxu1 %v3002_v38 }
 0x199   : > { %2731 = vmatpush3.bf16.msra.mxu0 %v2959_v3  ;;  %2751 = vmatpush3.bf16.msra.mxu1 %v2960_v4 }
 0x19a   : > { %2756 = vmatprep.subr.bf16.mxu0 %v3002_v38  ;;  %2776 = vmatprep.subr.bf16.mxu1 %v3002_v38 }
 0x23c   : > { %v1766_v5 = vpop.f32.mrf.mxu0  ;;  %v1811_v6 = vpop.f32.mrf.mxu1 }
 0x23d   : > { %v1772_v9 = vpack.c.bf16 %v1766_v5, %v1766_v5  ;;  %v1817_v10 = vpack.c.bf16 %v1811_v6, %v1811_v6 }
 0x23e   : > { %v2706_v11 = vpop.f32.mrf.mxu0  ;;  %v2714_v12 = vpop.f32.mrf.mxu1 }
 0x23f   : > { %2733 = vmatmul.mubr.bf16.vlgmr.msra.gmra.mxu0 %v1772_v9  ;;  %2753 = vmatmul.mubr.bf16.vlgmr.msra.gmra.mxu1 %v1817_v10 }
 0x240   : > { %2757 = vmatpush3.bf16.msra.mxu0 %v2961_v7  ;;  %2777 = vmatpush3.bf16.msra.mxu1 %v2962_v8  ;;  %v1769_v13 = vpop.f32.mrf.mxu0  ;;  %v1814_v14 = vpop.f32.mrf.mxu1 }
 0x241   : > { %2758 = vmatprep.subr.bf16.mxu0 %v3002_v38  ;;  %2778 = vmatprep.subr.bf16.mxu1 %v3002_v38 }
 0x242   : > { %v2707_v17 = vpop.f32.mrf.mxu0  ;;  %v2715_v18 = vpop.f32.mrf.mxu1  ;;  %2772 = vmatprep.mubr.msk.bf16.mxu0 %vm3003_vm0, %v3002_v38  ;;  %2792 = vmatprep.mubr.msk.bf16.mxu1 %vm3003_vm0, %v3002_v38 }
 0x244   : > { %2759 = vmatpush3.bf16.msra.mxu0 %v2963_v15  ;;  %2779 = vmatpush3.bf16.msra.mxu1 %v2964_v16 }
 0x245   : > { %2760 = vmatprep.subr.bf16.mxu0 %v3002_v38  ;;  %2780 = vmatprep.subr.bf16.mxu1 %v3002_v38 }
 0x248   : > { %2761 = vmatpush3.bf16.msra.mxu0 %v2965_v19  ;;  %2781 = vmatpush3.bf16.msra.mxu1 %v2966_v20 }
 0x249   : > { %2762 = vmatprep.subr.bf16.mxu0 %v3002_v38  ;;  %2782 = vmatprep.subr.bf16.mxu1 %v3002_v38 }
 0x24c   : > { %2763 = vmatpush3.bf16.msra.mxu0 %v2967_v21  ;;  %2783 = vmatpush3.bf16.msra.mxu1 %v2968_v22 }
 0x24d   : > { %2764 = vmatprep.subr.bf16.mxu0 %v3002_v38  ;;  %2784 = vmatprep.subr.bf16.mxu1 %v3002_v38 }
 0x250   : > { %2765 = vmatpush3.bf16.msra.mxu0 %v2969_v23  ;;  %2785 = vmatpush3.bf16.msra.mxu1 %v2970_v24 }
 0x251   : > { %2766 = vmatprep.subr.bf16.mxu0 %v3002_v38  ;;  %2786 = vmatprep.subr.bf16.mxu1 %v3002_v38 }
 0x254   : > { %2767 = vmatpush3.bf16.msra.mxu0 %v2971_v25  ;;  %2787 = vmatpush3.bf16.msra.mxu1 %v2972_v26 }
 0x255   : > { %2768 = vmatprep.subr.bf16.mxu0 %v3002_v38  ;;  %2788 = vmatprep.subr.bf16.mxu1 %v3002_v38 }
 0x258   : > { %2769 = vmatpush3.bf16.msra.mxu0 %v2973_v27  ;;  %2789 = vmatpush3.bf16.msra.mxu1 %v2974_v28 }
 0x259   : > { %2770 = vmatprep.subr.bf16.mxu0 %v3002_v38  ;;  %2790 = vmatprep.subr.bf16.mxu1 %v3002_v38 }
 0x25c   : > { %2771 = vmatpush3.bf16.msra.mxu0 %v2975_v29  ;;  %2791 = vmatpush3.bf16.msra.mxu1 %v2976_v30 }
 0x25f   : > { %2773 = vmatmul.mubr.bf16.vlgmr.msra.gmra.mxu0 %v1817_v10  ;;  %2793 = vmatmul.mubr.bf16.vlgmr.msra.gmra.mxu1 %v1772_v9 }
 0x2ff   : > { %v1923_v33 = vpop.f32.mrf.mxu0  ;;  %v2035_v34 = vpop.f32.mrf.mxu1 }
 0x300   : > { %v1924_v35 = vadd.f32 %v2450_v31, %v1923_v33  ;;  %v2036_v36 = vadd.f32 %v2459_v32, %v2035_v34 }
 0x301   : > { %v2734_v37 = vpop.f32.mrf.mxu0  ;;  %v2754_v39 = vpop.f32.mrf.mxu1 }
 0x302   : > { %1929 = vst [vmem:[%s3484_s13] sm:$0x3] %v1924_v35  ;;  %2041 = vst [vmem:[%s3485_s14] sm:$0x3] %v2036_v36 }
 0x303   : > { %v1926_v38 = vpop.f32.mrf.mxu0  ;;  %v2038_v40 = vpop.f32.mrf.mxu1 }
 0x305   : > { %v2735_v41 = vpop.f32.mrf.mxu0  ;;  %v2755_v42 = vpop.f32.mrf.mxu1 }
 0x31f   : > { %v2156_v43 = vpop.f32.mrf.mxu0  ;;  %v2244_v44 = vpop.f32.mrf.mxu1 }
 0x320   : > { %v2245_v46 = vadd.f32 %v2244_v44, %v2156_v43 }
 0x321   : > { %v2774_v47 = vpop.f32.mrf.mxu0  ;;  %v2794_v48 = vpop.f32.mrf.mxu1 }
 0x322   : > { %v2257_v49 = vadd.f32 %v2484_v45, %v2245_v46 }
 0x323   : > { %v2159_v50 = vpop.f32.mrf.mxu0  ;;  %v2247_v51 = vpop.f32.mrf.mxu1 }
 0x324   : > { %2258 = vst [vmem:[%s3483_s12] sm:$0x3] %v2257_v49 }
 0x325   : > { %v2775_v52 = vpop.f32.mrf.mxu0  ;;  %v2795_v53 = vpop.f32.mrf.mxu1 }
 0x326 PF: > { %p22_p11 = scmp.ge.s32.totalorder %s3098_s17, 6   ;;  %s3486_s29 = smov %s2995_s30 }
 0x327   : > { %s3487_s30 = smov %s3107_s20  ;;  %s3488_s15 = smov %s3098_s17 }
 0x328   :  { %24 = sbr.rel (!%p22_p11) target bundleno = 2 (0x2), region = 158 }

</bundles_post_ra>
